<compile_context>
chip_gen: v5e
topology: v5e:2x2
jax: 0.10.0
libtpu: 0.0.40
codegen_flags: <defaults>
</compile_context>

<pallas_src>
import functools

import numpy as np

import jax
import jax.numpy as jnp
from jax.experimental import pallas as pl
from jax.experimental.pallas import tpu as pltpu


def _round_up(x, m):
    return (x + m - 1) // m * m


# ------------------------------ Pallas kernel ------------------------------ #
def _conv_block_kernel(x_ref, wa_ref, ga_ref, ba_ref,
                       wb_ref, gb_ref, bb_ref,
                       o_ref,
                       xpad_ref, slab_a_ref, ypad_ref, slab_b_ref,
                       *, dims, eps):
    """Fused ConvBlock: (conv3x3x3 -> BN(batch stats) -> ELU) x 2.

    Layout: channels-last with W folded into the lane dimension, i.e. every
    activation tensor is (N, D, H, W*C); matmul outputs are (N*D*H, W*C).

    x_ref      : (N, D, H, W*Cin)            f32   input activations
    wa_ref     : (9*SLOT_A, W*Cmid)          bf16  banded conv-A weights
    ga_ref     : (1, W*Cmid)                 f32   BN gamma, tiled across W
    ba_ref     : (1, W*Cmid)                 f32   BN beta,  tiled across W
    wb_/gb_/bb_ref                           same, for layer B
    o_ref      : (N*D*H, W*Cout)             f32   lane-dense output slab
    xpad_ref   : (N, D+2, H+2, (W+2)*Cin)    f32   scratch: zero-padded input
    slab_a_ref : (N, D, H, 9*SLOT_A)         bf16  im2col slab (slot per (kd,kh))
    ypad_ref   : (N, D+2, H+2, (W+2)*Cmid)   f32   scratch: padded mid acts
    slab_b_ref : (N, D, H, 9*SLOT_B)         bf16  im2col slab for layer B
    """
    D, H, W, Cin, Cmid, Cout = dims
    N = x_ref.shape[0]
    NDH = N * D * H
    inv_m = 1.0 / float(NDH * W)                 # 1 / (N*D*H*W)

    def pad_halo(pad_ref, c):
        # Zero ONLY the 1-voxel halo; the interior is fully overwritten below.
        wpc = (W + 2) * c
        z = lambda s: jnp.zeros(s, pad_ref.dtype)
        pad_ref[:, 0:1, :, :] = z((N, 1, H + 2, wpc))             # d = 0
        pad_ref[:, D + 1:D + 2, :, :] = z((N, 1, H + 2, wpc))     # d = D+1
        pad_ref[:, :, 0:1, :] = z((N, D + 2, 1, wpc))             # h = 0
        pad_ref[:, :, H + 1:H + 2, :] = z((N, D + 2, 1, wpc))     # h = H+1
        pad_ref[:, :, :, 0:c] = z((N, D + 2, H + 2, c))           # w = 0
        pad_ref[:, :, :, (W + 1) * c:(W + 2) * c] = z((N, D + 2, H + 2, c))

    def conv(pad_ref, slab_ref, w_ref, c_in):
        # One 3x3x3 conv as a single MXU matmul: the 9 (kd, kh) taps land in
        # 128-aligned slots of the im2col slab (folded into K) and the kw tap
        # lives inside the banded weight (W folded into the output lanes).
        wpc = (W + 2) * c_in
        slot = slab_ref.shape[-1] // 9
        zero_pad = (jnp.zeros((N, D, H, slot - wpc), jnp.bfloat16)
                    if wpc < slot else None)
        for t in range(9):
            kd, kh = divmod(t, 3)
            tap = pad_ref[:, kd:kd + D, kh:kh + H, :]             # (N,D,H,wpc)
            slab_ref[:, :, :, t * slot:t * slot + wpc] = tap.astype(jnp.bfloat16)
            if zero_pad is not None:
                # Keep zeroing the slot-padding columns (0 * garbage-NaN trap),
                # but never re-zero the columns the taps overwrite.
                slab_ref[:, :, :, t * slot + wpc:(t + 1) * slot] = zero_pad
        slab2d = slab_ref[...].reshape(NDH, 9 * slot)             # tile-aligned
        return jnp.dot(slab2d, w_ref[...], preferred_element_type=jnp.float32)

    def bn_elu(y, g_ref, b_ref, c):
        # Training-mode BatchNorm (biased variance), two-pass / centered.
        # Column sums are exact f32 sublane reductions; the per-channel
        # gather + broadcast across W-folded columns (column j <-> channel j%c)
        # is a tiny VPU masked reduce (no MXU, no bf16 rounding of the stats).
        wc = y.shape[1]
        lane_ch = jax.lax.broadcasted_iota(jnp.int32, (1, wc), 1) % c

        def ch_bcast(row):                         # (1, wc) -> (1, wc)
            out = jnp.zeros_like(row)
            for ch in range(c):
                m = lane_ch == ch
                out = jnp.where(m, jnp.sum(jnp.where(m, row, 0.0)), out)
            return out

        mean = ch_bcast(jnp.sum(y, axis=0, keepdims=True)) * inv_m
        d = y - mean
        var = ch_bcast(jnp.sum(d * d, axis=0, keepdims=True)) * inv_m
        yn = d * jax.lax.rsqrt(var + eps) * g_ref[...] + b_ref[...]
        return jnp.where(yn > 0, yn, jnp.exp(yn) - 1.0)           # ELU(alpha=1)

    # ----- layer A: zero-pad the input inside VMEM, conv + BN + ELU -----
    pad_halo(xpad_ref, Cin)
    xpad_ref[:, 1:1 + D, 1:1 + H, Cin:Cin + W * Cin] = x_ref[...]
    # NOTE: the conv bias is dropped on purpose -- a bias added before
    # training-mode BatchNorm is exactly cancelled by the mean subtraction.
    ya = bn_elu(conv(xpad_ref, slab_a_ref, wa_ref, Cin), ga_ref, ba_ref, Cmid)

    # ----- layer B: mid activations stay in VMEM, re-pad, conv + BN + ELU -----
    pad_halo(ypad_ref, Cmid)
    ypad_ref[:, 1:1 + D, 1:1 + H, Cmid:Cmid + W * Cmid] = (
        ya.reshape(N, D, H, W * Cmid))
    yb = bn_elu(conv(ypad_ref, slab_b_ref, wb_ref, Cmid), gb_ref, bb_ref, Cout)

    # Lane-dense store: one (N*D*H, W*Cout) slab; wrapper reshapes to NCDHW.
    o_ref[...] = yb


# ------------------------------ wrapper helpers ----------------------------- #
def _banded_conv_weight(w, W):
    """(3,3,3,Cin,Cout) conv weights -> (9*SLOT, W*Cout) banded matrix (bf16).

    Row block t = kd*3 + kh occupies a 128-aligned slot. Within a slot, row
    wi*Cin + ci multiplies padded-input column wi of that (kd, kh) tap and
    feeds output column wo*Cout + co iff wi == wo + kw, i.e. the kw tap of the
    3x3x3 kernel is folded into a band of the weight matrix.
    """
    Cin, Cout = w.shape[3], w.shape[4]
    Wp = W + 2
    slot = _round_up(Wp * Cin, 128)
    bands = [jnp.asarray(np.eye(Wp, W, k=-kw, dtype=np.float32))
             for kw in range(3)]                   # band[wi, wo] = [wi == wo+kw]
    blocks = []
    for kd in range(3):
        for kh in range(3):
            blk = sum(jnp.einsum("pq,io->piqo", bands[kw], w[kd, kh, kw])
                      for kw in range(3))          # (Wp, Cin, W, Cout)
            blk = blk.reshape(Wp * Cin, W * Cout)
            blocks.append(jnp.pad(blk, ((0, slot - Wp * Cin), (0, 0))))
    return jnp.concatenate(blocks, axis=0).astype(jnp.bfloat16)


def _tile_bn(gamma, beta, W):
    """Tile per-channel BN params across the W-folded columns."""
    C = gamma.shape[0]
    g = jnp.tile(gamma.astype(jnp.float32), W).reshape(1, W * C)
    b = jnp.tile(beta.astype(jnp.float32), W).reshape(1, W * C)
    return g, b


def _compiler_params(footprint_bytes):
    # Size the scoped-VMEM limit from the actual kernel footprint (operands +
    # output + scratch) with 2x headroom for Pallas' staging buffers, then
    # clamp to the queried per-core capacity (v7x: only 64 MiB per TensorCore).
    want = int(2 * footprint_bytes) + (4 << 20)
    want = max(want, 8 << 20)
    try:
        cap = int(pltpu.get_tpu_info().vmem_capacity_bytes)
        want = min(want, int(cap * 0.9))
    except Exception:
        want = min(want, 48 << 20)
    return pltpu.CompilerParams(vmem_limit_bytes=want)


# --------------------------------- ConvBlock -------------------------------- #
def init_conv_block_params(key, in_channels, out_channels):
    """Weights laid out (kd, kh, kw, Cin, Cout) (== torch (Cout,Cin,kd,kh,kw))."""
    mid = (in_channels + out_channels) // 2
    k0, k1, k2, k3 = jax.random.split(key, 4)

    def conv_init(kw_key, kb_key, cin, cout):
        fan_in = cin * 27
        std = 1.0 / jnp.sqrt(jnp.float32(fan_in))
        w = jax.random.normal(kw_key, (3, 3, 3, cin, cout), jnp.float32) * std
        b = jax.random.normal(kb_key, (cout,), jnp.float32) * std
        return w, b

    w_a, b_a = conv_init(k0, k1, in_channels, mid)
    w_b, b_b = conv_init(k2, k3, mid, out_channels)
    return {
        "w_a": w_a, "b_a": b_a,
        "g_a": jnp.ones((mid,), jnp.float32),
        "beta_a": jnp.zeros((mid,), jnp.float32),
        "w_b": w_b, "b_b": b_b,
        "g_b": jnp.ones((out_channels,), jnp.float32),
        "beta_b": jnp.zeros((out_channels,), jnp.float32),
    }


def conv_block_forward(x_ncdhw, params, eps=1e-5):
    """ConvBlock.forward (training-mode BN). Input/output are NCDHW."""
    N, Cin, D, H, W = x_ncdhw.shape
    w_a, w_b = params["w_a"], params["w_b"]
    Cmid, Cout = w_a.shape[-1], w_b.shape[-1]

    # NCDHW -> channels-last with W folded into the lane dim: (N, D, H, W*Cin).
    x = jnp.transpose(x_ncdhw, (0, 2, 3, 4, 1)).reshape(N, D, H, W * Cin)

    wa = _banded_conv_weight(w_a, W)
    wb = _banded_conv_weight(w_b, W)
    g_a, be_a = _tile_bn(params["g_a"], params["beta_a"], W)
    g_b, be_b = _tile_bn(params["g_b"], params["beta_b"], W)

    slot_a = wa.shape[0] // 9
    slot_b = wb.shape[0] // 9

    scratch_defs = [
        ((N, D + 2, H + 2, (W + 2) * Cin), jnp.float32),    # padded input
        ((N, D, H, 9 * slot_a), jnp.bfloat16),              # im2col slab A
        ((N, D + 2, H + 2, (W + 2) * Cmid), jnp.float32),   # padded mid acts
        ((N, D, H, 9 * slot_b), jnp.bfloat16),              # im2col slab B
    ]
    scratch_shapes = [pltpu.VMEM(s, d) for s, d in scratch_defs]

    inputs = (x, wa, g_a, be_a, wb, g_b, be_b)
    out_bytes = N * D * H * W * Cout * 4
    footprint = (sum(int(a.size) * a.dtype.itemsize for a in inputs)
                 + out_bytes
                 + sum(int(np.prod(s)) * jnp.dtype(d).itemsize
                       for s, d in scratch_defs))

    kernel = functools.partial(_conv_block_kernel,
                               dims=(D, H, W, Cin, Cmid, Cout), eps=eps)
    out2d = pl.pallas_call(
        kernel,
        out_shape=jax.ShapeDtypeStruct((N * D * H, W * Cout), jnp.float32),
        in_specs=[pl.BlockSpec(memory_space=pltpu.MemorySpace.VMEM)] * len(inputs),
        out_specs=pl.BlockSpec(memory_space=pltpu.MemorySpace.VMEM),
        scratch_shapes=scratch_shapes,
        compiler_params=_compiler_params(footprint),
    )(*inputs)

    out = out2d.reshape(N, D, H, W, Cout)
    return jnp.transpose(out, (0, 4, 1, 2, 3))          # -> NCDHW


# --------------------------------- reference -------------------------------- #
def _ref_layer(x_ndhwc, w, b, g, be, eps=1e-5):
    N, D, H, W, Cin = x_ndhwc.shape
    Cout = w.shape[-1]
    xp = jnp.pad(x_ndhwc, ((0, 0), (1, 1), (1, 1), (1, 1), (0, 0)))
    acc = jnp.zeros((N, D, H, W, Cout), jnp.float32)
    for kd in range(3):
        for kh in range(3):
            for kw in range(3):
                slab = xp[:, kd:kd + D, kh:kh + H, kw:kw + W, :]
                acc = acc + jnp.einsum("ndhwc,co->ndhwo", slab, w[kd, kh, kw])
    y = acc + b
    mean = y.mean(axis=(0, 1, 2, 3), keepdims=True)
    var = ((y - mean) ** 2).mean(axis=(0, 1, 2, 3), keepdims=True)
    yn = (y - mean) / jnp.sqrt(var + eps) * g + be
    return jnp.where(yn > 0, yn, jnp.exp(yn) - 1.0)


def _ref_forward(x_ncdhw, p, eps=1e-5):
    x = jnp.transpose(x_ncdhw, (0, 2, 3, 4, 1))
    x = _ref_layer(x, p["w_a"], p["b_a"], p["g_a"], p["beta_a"], eps)
    x = _ref_layer(x, p["w_b"], p["b_b"], p["g_b"], p["beta_b"], eps)
    return jnp.transpose(x, (0, 4, 1, 2, 3))


# ----------------------------------- main ------------------------------------ #
if __name__ == "__main__":
    in_channels, out_channels = 4, 8            # mid = 6
    N, D, H, W = 2, 8, 8, 8

    key = jax.random.PRNGKey(0)
    kx, kp = jax.random.split(key)
    x = jax.random.normal(kx, (N, in_channels, D, H, W), jnp.float32)   # NCDHW
    params = init_conv_block_params(kp, in_channels, out_channels)

    out = jax.block_until_ready(jax.jit(conv_block_forward)(x, params))
    ref = jax.block_until_ready(_ref_forward(x, params))

    assert out.shape == (N, out_channels, D, H, W), out.shape
    max_err = float(jnp.max(jnp.abs(out - ref)))
    # bf16 MXU operands with f32 accumulation -> compare at bf16-level tolerance.
    assert jnp.allclose(out, ref, atol=2e-2, rtol=2e-2), max_err

    print("KERNEL_OK")
</pallas_src>

<mosaic_0001>
module attributes {stable_mosaic.version = 11 : i64} {
  func.func @_conv_block_kernel(%arg0: memref<2x8x8x32xf32, #tpu.memory_space<vmem>>, %arg1: memref<1152x48xbf16, #tpu.memory_space<vmem>>, %arg2: memref<1x48xf32, #tpu.memory_space<vmem>>, %arg3: memref<1x48xf32, #tpu.memory_space<vmem>>, %arg4: memref<1152x64xbf16, #tpu.memory_space<vmem>>, %arg5: memref<1x64xf32, #tpu.memory_space<vmem>>, %arg6: memref<1x64xf32, #tpu.memory_space<vmem>>, %arg7: memref<128x64xf32, #tpu.memory_space<vmem>>, %arg8: memref<2x10x10x40xf32, #tpu.memory_space<vmem>>, %arg9: memref<2x8x8x1152xbf16, #tpu.memory_space<vmem>>, %arg10: memref<2x10x10x60xf32, #tpu.memory_space<vmem>>, %arg11: memref<2x8x8x1152xbf16, #tpu.memory_space<vmem>>) attributes {dimension_semantics = [], scalar_prefetch = 0 : i64, scratch_operands = 4 : i64, tpu.core_type = #tpu.core_type<tc>} {
    %cst = arith.constant 0.000000e+00 : f32
    %0 = vector.broadcast %cst : f32 to vector<2x1x10x40xf32>
    %c0 = arith.constant 0 : index
    %c0_0 = arith.constant 0 : index
    %c0_1 = arith.constant 0 : index
    %c0_2 = arith.constant 0 : index
    %1 = vector.load %arg8[%c0, %c0_0, %c0_1, %c0_2] : memref<2x10x10x40xf32, #tpu.memory_space<vmem>>, vector<2x1x10x40xf32>
    tpu.vector_store %arg8[%c0, %c0_0, %c0_1, %c0_2], %0 {strides = array<i32>} : memref<2x10x10x40xf32, #tpu.memory_space<vmem>>, vector<2x1x10x40xf32>,
    %cst_3 = arith.constant 0.000000e+00 : f32
    %2 = vector.broadcast %cst_3 : f32 to vector<2x1x10x40xf32>
    %c0_4 = arith.constant 0 : index
    %c9 = arith.constant 9 : index
    %c0_5 = arith.constant 0 : index
    %c0_6 = arith.constant 0 : index
    %3 = vector.load %arg8[%c0_4, %c9, %c0_5, %c0_6] : memref<2x10x10x40xf32, #tpu.memory_space<vmem>>, vector<2x1x10x40xf32>
    tpu.vector_store %arg8[%c0_4, %c9, %c0_5, %c0_6], %2 {strides = array<i32>} : memref<2x10x10x40xf32, #tpu.memory_space<vmem>>, vector<2x1x10x40xf32>,
    %cst_7 = arith.constant 0.000000e+00 : f32
    %4 = vector.broadcast %cst_7 : f32 to vector<2x10x1x40xf32>
    %c0_8 = arith.constant 0 : index
    %c0_9 = arith.constant 0 : index
    %c0_10 = arith.constant 0 : index
    %c0_11 = arith.constant 0 : index
    %5 = vector.load %arg8[%c0_8, %c0_9, %c0_10, %c0_11] : memref<2x10x10x40xf32, #tpu.memory_space<vmem>>, vector<2x10x1x40xf32>
    tpu.vector_store %arg8[%c0_8, %c0_9, %c0_10, %c0_11], %4 {strides = array<i32>} : memref<2x10x10x40xf32, #tpu.memory_space<vmem>>, vector<2x10x1x40xf32>,
    %cst_12 = arith.constant 0.000000e+00 : f32
    %6 = vector.broadcast %cst_12 : f32 to vector<2x10x1x40xf32>
    %c0_13 = arith.constant 0 : index
    %c0_14 = arith.constant 0 : index
    %c9_15 = arith.constant 9 : index
    %c0_16 = arith.constant 0 : index
    %7 = vector.load %arg8[%c0_13, %c0_14, %c9_15, %c0_16] : memref<2x10x10x40xf32, #tpu.memory_space<vmem>>, vector<2x10x1x40xf32>
    tpu.vector_store %arg8[%c0_13, %c0_14, %c9_15, %c0_16], %6 {strides = array<i32>} : memref<2x10x10x40xf32, #tpu.memory_space<vmem>>, vector<2x10x1x40xf32>,
    %cst_17 = arith.constant 0.000000e+00 : f32
    %8 = vector.broadcast %cst_17 : f32 to vector<2x10x10x4xf32>
    %c0_18 = arith.constant 0 : index
    %c0_19 = arith.constant 0 : index
    %c0_20 = arith.constant 0 : index
    %c0_21 = arith.constant 0 : index
    %9 = vector.load %arg8[%c0_18, %c0_19, %c0_20, %c0_21] : memref<2x10x10x40xf32, #tpu.memory_space<vmem>>, vector<2x10x10x4xf32>
    tpu.vector_store %arg8[%c0_18, %c0_19, %c0_20, %c0_21], %8 {strides = array<i32>} : memref<2x10x10x40xf32, #tpu.memory_space<vmem>>, vector<2x10x10x4xf32>,
    %cst_22 = arith.constant 0.000000e+00 : f32
    %10 = vector.broadcast %cst_22 : f32 to vector<2x10x10x4xf32>
    %c0_23 = arith.constant 0 : index
    %c0_24 = arith.constant 0 : index
    %c0_25 = arith.constant 0 : index
    %c36 = arith.constant 36 : index
    %11 = vector.load %arg8[%c0_23, %c0_24, %c0_25, %c36] : memref<2x10x10x40xf32, #tpu.memory_space<vmem>>, vector<2x10x10x4xf32>
    tpu.vector_store %arg8[%c0_23, %c0_24, %c0_25, %c36], %10 {strides = array<i32>} : memref<2x10x10x40xf32, #tpu.memory_space<vmem>>, vector<2x10x10x4xf32>,
    %c0_26 = arith.constant 0 : index
    %c0_27 = arith.constant 0 : index
    %c0_28 = arith.constant 0 : index
    %c0_29 = arith.constant 0 : index
    %12 = vector.load %arg0[%c0_26, %c0_27, %c0_28, %c0_29] : memref<2x8x8x32xf32, #tpu.memory_space<vmem>>, vector<2x8x8x32xf32>
    %c0_30 = arith.constant 0 : index
    %c1 = arith.constant 1 : index
    %c1_31 = arith.constant 1 : index
    %c4 = arith.constant 4 : index
    %13 = vector.load %arg8[%c0_30, %c1, %c1_31, %c4] : memref<2x10x10x40xf32, #tpu.memory_space<vmem>>, vector<2x8x8x32xf32>
    tpu.vector_store %arg8[%c0_30, %c1, %c1_31, %c4], %12 {strides = array<i32>} : memref<2x10x10x40xf32, #tpu.memory_space<vmem>>, vector<2x8x8x32xf32>,
    %cst_32 = arith.constant 0.000000e+00 : bf16
    %14 = vector.broadcast %cst_32 : bf16 to vector<2x8x8x88xbf16>
    %c0_33 = arith.constant 0 : index
    %c0_34 = arith.constant 0 : index
    %c0_35 = arith.constant 0 : index
    %c0_36 = arith.constant 0 : index
    %15 = vector.load %arg8[%c0_33, %c0_34, %c0_35, %c0_36] : memref<2x10x10x40xf32, #tpu.memory_space<vmem>>, vector<2x8x8x40xf32>
    %16 = arith.truncf %15 : vector<2x8x8x40xf32> to vector<2x8x8x40xbf16>
    %c0_37 = arith.constant 0 : index
    %c0_38 = arith.constant 0 : index
    %c0_39 = arith.constant 0 : index
    %c0_40 = arith.constant 0 : index
    %17 = vector.load %arg9[%c0_37, %c0_38, %c0_39, %c0_40] : memref<2x8x8x1152xbf16, #tpu.memory_space<vmem>>, vector<2x8x8x40xbf16>
    tpu.vector_store %arg9[%c0_37, %c0_38, %c0_39, %c0_40], %16 {strides = array<i32>} : memref<2x8x8x1152xbf16, #tpu.memory_space<vmem>>, vector<2x8x8x40xbf16>,
    %c0_41 = arith.constant 0 : index
    %c0_42 = arith.constant 0 : index
    %c0_43 = arith.constant 0 : index
    %c40 = arith.constant 40 : index
    %18 = vector.load %arg9[%c0_41, %c0_42, %c0_43, %c40] : memref<2x8x8x1152xbf16, #tpu.memory_space<vmem>>, vector<2x8x8x88xbf16>
    tpu.vector_store %arg9[%c0_41, %c0_42, %c0_43, %c40], %14 {strides = array<i32>} : memref<2x8x8x1152xbf16, #tpu.memory_space<vmem>>, vector<2x8x8x88xbf16>,
    %c0_44 = arith.constant 0 : index
    %c0_45 = arith.constant 0 : index
    %c1_46 = arith.constant 1 : index
    %c0_47 = arith.constant 0 : index
    %19 = vector.load %arg8[%c0_44, %c0_45, %c1_46, %c0_47] : memref<2x10x10x40xf32, #tpu.memory_space<vmem>>, vector<2x8x8x40xf32>
    %20 = arith.truncf %19 : vector<2x8x8x40xf32> to vector<2x8x8x40xbf16>
    %c0_48 = arith.constant 0 : index
    %c0_49 = arith.constant 0 : index
    %c0_50 = arith.constant 0 : index
    %c128 = arith.constant 128 : index
    %21 = vector.load %arg9[%c0_48, %c0_49, %c0_50, %c128] : memref<2x8x8x1152xbf16, #tpu.memory_space<vmem>>, vector<2x8x8x40xbf16>
    tpu.vector_store %arg9[%c0_48, %c0_49, %c0_50, %c128], %20 {strides = array<i32>} : memref<2x8x8x1152xbf16, #tpu.memory_space<vmem>>, vector<2x8x8x40xbf16>,
    %c0_51 = arith.constant 0 : index
    %c0_52 = arith.constant 0 : index
    %c0_53 = arith.constant 0 : index
    %c168 = arith.constant 168 : index
    %22 = vector.load %arg9[%c0_51, %c0_52, %c0_53, %c168] : memref<2x8x8x1152xbf16, #tpu.memory_space<vmem>>, vector<2x8x8x88xbf16>
    tpu.vector_store %arg9[%c0_51, %c0_52, %c0_53, %c168], %14 {strides = array<i32>} : memref<2x8x8x1152xbf16, #tpu.memory_space<vmem>>, vector<2x8x8x88xbf16>,
    %c0_54 = arith.constant 0 : index
    %c0_55 = arith.constant 0 : index
    %c2 = arith.constant 2 : index
    %c0_56 = arith.constant 0 : index
    %23 = vector.load %arg8[%c0_54, %c0_55, %c2, %c0_56] : memref<2x10x10x40xf32, #tpu.memory_space<vmem>>, vector<2x8x8x40xf32>
    %24 = arith.truncf %23 : vector<2x8x8x40xf32> to vector<2x8x8x40xbf16>
    %c0_57 = arith.constant 0 : index
    %c0_58 = arith.constant 0 : index
    %c0_59 = arith.constant 0 : index
    %c256 = arith.constant 256 : index
    %25 = vector.load %arg9[%c0_57, %c0_58, %c0_59, %c256] : memref<2x8x8x1152xbf16, #tpu.memory_space<vmem>>, vector<2x8x8x40xbf16>
    tpu.vector_store %arg9[%c0_57, %c0_58, %c0_59, %c256], %24 {strides = array<i32>} : memref<2x8x8x1152xbf16, #tpu.memory_space<vmem>>, vector<2x8x8x40xbf16>,
    %c0_60 = arith.constant 0 : index
    %c0_61 = arith.constant 0 : index
    %c0_62 = arith.constant 0 : index
    %c296 = arith.constant 296 : index
    %26 = vector.load %arg9[%c0_60, %c0_61, %c0_62, %c296] : memref<2x8x8x1152xbf16, #tpu.memory_space<vmem>>, vector<2x8x8x88xbf16>
    tpu.vector_store %arg9[%c0_60, %c0_61, %c0_62, %c296], %14 {strides = array<i32>} : memref<2x8x8x1152xbf16, #tpu.memory_space<vmem>>, vector<2x8x8x88xbf16>,
    %c0_63 = arith.constant 0 : index
    %c1_64 = arith.constant 1 : index
    %c0_65 = arith.constant 0 : index
    %c0_66 = arith.constant 0 : index
    %27 = vector.load %arg8[%c0_63, %c1_64, %c0_65, %c0_66] : memref<2x10x10x40xf32, #tpu.memory_space<vmem>>, vector<2x8x8x40xf32>
    %28 = arith.truncf %27 : vector<2x8x8x40xf32> to vector<2x8x8x40xbf16>
    %c0_67 = arith.constant 0 : index
    %c0_68 = arith.constant 0 : index
    %c0_69 = arith.constant 0 : index
    %c384 = arith.constant 384 : index
    %29 = vector.load %arg9[%c0_67, %c0_68, %c0_69, %c384] : memref<2x8x8x1152xbf16, #tpu.memory_space<vmem>>, vector<2x8x8x40xbf16>
    tpu.vector_store %arg9[%c0_67, %c0_68, %c0_69, %c384], %28 {strides = array<i32>} : memref<2x8x8x1152xbf16, #tpu.memory_space<vmem>>, vector<2x8x8x40xbf16>,
    %c0_70 = arith.constant 0 : index
    %c0_71 = arith.constant 0 : index
    %c0_72 = arith.constant 0 : index
    %c424 = arith.constant 424 : index
    %30 = vector.load %arg9[%c0_70, %c0_71, %c0_72, %c424] : memref<2x8x8x1152xbf16, #tpu.memory_space<vmem>>, vector<2x8x8x88xbf16>
    tpu.vector_store %arg9[%c0_70, %c0_71, %c0_72, %c424], %14 {strides = array<i32>} : memref<2x8x8x1152xbf16, #tpu.memory_space<vmem>>, vector<2x8x8x88xbf16>,
    %c0_73 = arith.constant 0 : index
    %c1_74 = arith.constant 1 : index
    %c1_75 = arith.constant 1 : index
    %c0_76 = arith.constant 0 : index
    %31 = vector.load %arg8[%c0_73, %c1_74, %c1_75, %c0_76] : memref<2x10x10x40xf32, #tpu.memory_space<vmem>>, vector<2x8x8x40xf32>
    %32 = arith.truncf %31 : vector<2x8x8x40xf32> to vector<2x8x8x40xbf16>
    %c0_77 = arith.constant 0 : index
    %c0_78 = arith.constant 0 : index
    %c0_79 = arith.constant 0 : index
    %c512 = arith.constant 512 : index
    %33 = vector.load %arg9[%c0_77, %c0_78, %c0_79, %c512] : memref<2x8x8x1152xbf16, #tpu.memory_space<vmem>>, vector<2x8x8x40xbf16>
    tpu.vector_store %arg9[%c0_77, %c0_78, %c0_79, %c512], %32 {strides = array<i32>} : memref<2x8x8x1152xbf16, #tpu.memory_space<vmem>>, vector<2x8x8x40xbf16>,
    %c0_80 = arith.constant 0 : index
    %c0_81 = arith.constant 0 : index
    %c0_82 = arith.constant 0 : index
    %c552 = arith.constant 552 : index
    %34 = vector.load %arg9[%c0_80, %c0_81, %c0_82, %c552] : memref<2x8x8x1152xbf16, #tpu.memory_space<vmem>>, vector<2x8x8x88xbf16>
    tpu.vector_store %arg9[%c0_80, %c0_81, %c0_82, %c552], %14 {strides = array<i32>} : memref<2x8x8x1152xbf16, #tpu.memory_space<vmem>>, vector<2x8x8x88xbf16>,
    %c0_83 = arith.constant 0 : index
    %c1_84 = arith.constant 1 : index
    %c2_85 = arith.constant 2 : index
    %c0_86 = arith.constant 0 : index
    %35 = vector.load %arg8[%c0_83, %c1_84, %c2_85, %c0_86] : memref<2x10x10x40xf32, #tpu.memory_space<vmem>>, vector<2x8x8x40xf32>
    %36 = arith.truncf %35 : vector<2x8x8x40xf32> to vector<2x8x8x40xbf16>
    %c0_87 = arith.constant 0 : index
    %c0_88 = arith.constant 0 : index
    %c0_89 = arith.constant 0 : index
    %c640 = arith.constant 640 : index
    %37 = vector.load %arg9[%c0_87, %c0_88, %c0_89, %c640] : memref<2x8x8x1152xbf16, #tpu.memory_space<vmem>>, vector<2x8x8x40xbf16>
    tpu.vector_store %arg9[%c0_87, %c0_88, %c0_89, %c640], %36 {strides = array<i32>} : memref<2x8x8x1152xbf16, #tpu.memory_space<vmem>>, vector<2x8x8x40xbf16>,
    %c0_90 = arith.constant 0 : index
    %c0_91 = arith.constant 0 : index
    %c0_92 = arith.constant 0 : index
    %c680 = arith.constant 680 : index
    %38 = vector.load %arg9[%c0_90, %c0_91, %c0_92, %c680] : memref<2x8x8x1152xbf16, #tpu.memory_space<vmem>>, vector<2x8x8x88xbf16>
    tpu.vector_store %arg9[%c0_90, %c0_91, %c0_92, %c680], %14 {strides = array<i32>} : memref<2x8x8x1152xbf16, #tpu.memory_space<vmem>>, vector<2x8x8x88xbf16>,
    %c0_93 = arith.constant 0 : index
    %c2_94 = arith.constant 2 : index
    %c0_95 = arith.constant 0 : index
    %c0_96 = arith.constant 0 : index
    %39 = vector.load %arg8[%c0_93, %c2_94, %c0_95, %c0_96] : memref<2x10x10x40xf32, #tpu.memory_space<vmem>>, vector<2x8x8x40xf32>
    %40 = arith.truncf %39 : vector<2x8x8x40xf32> to vector<2x8x8x40xbf16>
    %c0_97 = arith.constant 0 : index
    %c0_98 = arith.constant 0 : index
    %c0_99 = arith.constant 0 : index
    %c768 = arith.constant 768 : index
    %41 = vector.load %arg9[%c0_97, %c0_98, %c0_99, %c768] : memref<2x8x8x1152xbf16, #tpu.memory_space<vmem>>, vector<2x8x8x40xbf16>
    tpu.vector_store %arg9[%c0_97, %c0_98, %c0_99, %c768], %40 {strides = array<i32>} : memref<2x8x8x1152xbf16, #tpu.memory_space<vmem>>, vector<2x8x8x40xbf16>,
    %c0_100 = arith.constant 0 : index
    %c0_101 = arith.constant 0 : index
    %c0_102 = arith.constant 0 : index
    %c808 = arith.constant 808 : index
    %42 = vector.load %arg9[%c0_100, %c0_101, %c0_102, %c808] : memref<2x8x8x1152xbf16, #tpu.memory_space<vmem>>, vector<2x8x8x88xbf16>
    tpu.vector_store %arg9[%c0_100, %c0_101, %c0_102, %c808], %14 {strides = array<i32>} : memref<2x8x8x1152xbf16, #tpu.memory_space<vmem>>, vector<2x8x8x88xbf16>,
    %c0_103 = arith.constant 0 : index
    %c2_104 = arith.constant 2 : index
    %c1_105 = arith.constant 1 : index
    %c0_106 = arith.constant 0 : index
    %43 = vector.load %arg8[%c0_103, %c2_104, %c1_105, %c0_106] : memref<2x10x10x40xf32, #tpu.memory_space<vmem>>, vector<2x8x8x40xf32>
    %44 = arith.truncf %43 : vector<2x8x8x40xf32> to vector<2x8x8x40xbf16>
    %c0_107 = arith.constant 0 : index
    %c0_108 = arith.constant 0 : index
    %c0_109 = arith.constant 0 : index
    %c896 = arith.constant 896 : index
    %45 = vector.load %arg9[%c0_107, %c0_108, %c0_109, %c896] : memref<2x8x8x1152xbf16, #tpu.memory_space<vmem>>, vector<2x8x8x40xbf16>
    tpu.vector_store %arg9[%c0_107, %c0_108, %c0_109, %c896], %44 {strides = array<i32>} : memref<2x8x8x1152xbf16, #tpu.memory_space<vmem>>, vector<2x8x8x40xbf16>,
    %c0_110 = arith.constant 0 : index
    %c0_111 = arith.constant 0 : index
    %c0_112 = arith.constant 0 : index
    %c936 = arith.constant 936 : index
    %46 = vector.load %arg9[%c0_110, %c0_111, %c0_112, %c936] : memref<2x8x8x1152xbf16, #tpu.memory_space<vmem>>, vector<2x8x8x88xbf16>
    tpu.vector_store %arg9[%c0_110, %c0_111, %c0_112, %c936], %14 {strides = array<i32>} : memref<2x8x8x1152xbf16, #tpu.memory_space<vmem>>, vector<2x8x8x88xbf16>,
    %c0_113 = arith.constant 0 : index
    %c2_114 = arith.constant 2 : index
    %c2_115 = arith.constant 2 : index
    %c0_116 = arith.constant 0 : index
    %47 = vector.load %arg8[%c0_113, %c2_114, %c2_115, %c0_116] : memref<2x10x10x40xf32, #tpu.memory_space<vmem>>, vector<2x8x8x40xf32>
    %48 = arith.truncf %47 : vector<2x8x8x40xf32> to vector<2x8x8x40xbf16>
    %c0_117 = arith.constant 0 : index
    %c0_118 = arith.constant 0 : index
    %c0_119 = arith.constant 0 : index
    %c1024 = arith.constant 1024 : index
    %49 = vector.load %arg9[%c0_117, %c0_118, %c0_119, %c1024] : memref<2x8x8x1152xbf16, #tpu.memory_space<vmem>>, vector<2x8x8x40xbf16>
    tpu.vector_store %arg9[%c0_117, %c0_118, %c0_119, %c1024], %48 {strides = array<i32>} : memref<2x8x8x1152xbf16, #tpu.memory_space<vmem>>, vector<2x8x8x40xbf16>,
    %c0_120 = arith.constant 0 : index
    %c0_121 = arith.constant 0 : index
    %c0_122 = arith.constant 0 : index
    %c1064 = arith.constant 1064 : index
    %50 = vector.load %arg9[%c0_120, %c0_121, %c0_122, %c1064] : memref<2x8x8x1152xbf16, #tpu.memory_space<vmem>>, vector<2x8x8x88xbf16>
    tpu.vector_store %arg9[%c0_120, %c0_121, %c0_122, %c1064], %14 {strides = array<i32>} : memref<2x8x8x1152xbf16, #tpu.memory_space<vmem>>, vector<2x8x8x88xbf16>,
    %c0_123 = arith.constant 0 : index
    %c0_124 = arith.constant 0 : index
    %c0_125 = arith.constant 0 : index
    %c0_126 = arith.constant 0 : index
    %51 = vector.load %arg9[%c0_123, %c0_124, %c0_125, %c0_126] : memref<2x8x8x1152xbf16, #tpu.memory_space<vmem>>, vector<2x8x8x1152xbf16>
    %52 = vector.shape_cast %51 : vector<2x8x8x1152xbf16> to vector<128x1152xbf16>
    %c0_127 = arith.constant 0 : index
    %c0_128 = arith.constant 0 : index
    %53 = vector.load %arg1[%c0_127, %c0_128] : memref<1152x48xbf16, #tpu.memory_space<vmem>>, vector<1152x48xbf16>
    %cst_129 = arith.constant dense<0.000000e+00> : vector<128x48xf32>
    %54 = tpu.matmul %52, %53, %cst_129 {dimension_numbers = #tpu.dot_dimension_numbers<[1], [0], [0], [1], [0, 0, 1, 1], [], []>} : vector<128x1152xbf16>, vector<1152x48xbf16>, vector<128x48xf32> -> vector<128x48xf32>
    %55 = tpu.iota {dimensions = array<i32: 1>} : vector<1x48xi32>
    %c6_i32 = arith.constant 6 : i32
    %c0_i32 = arith.constant 0 : i32
    %56 = arith.cmpi eq, %c6_i32, %c0_i32 : i32
    %c1_i32 = arith.constant 1 : i32
    %57 = arith.select %56, %c1_i32, %c6_i32 : i32
    %58 = vector.broadcast %57 : i32 to vector<1x48xi32>
    %59 = arith.remsi %55, %58 : vector<1x48xi32>
    %c0_i32_130 = arith.constant 0 : i32
    %60 = vector.broadcast %c0_i32_130 : i32 to vector<1x48xi32>
    %61 = arith.cmpi ne, %59, %60 : vector<1x48xi32>
    %c0_i32_131 = arith.constant 0 : i32
    %62 = vector.broadcast %c0_i32_131 : i32 to vector<1x48xi32>
    %63 = arith.cmpi slt, %59, %62 : vector<1x48xi32>
    %c0_i32_132 = arith.constant 0 : i32
    %64 = arith.cmpi slt, %57, %c0_i32_132 : i32
    %65 = vector.broadcast %64 : i1 to vector<1x48xi1>
    %66 = vector.broadcast %65 : vector<1x48xi1> to vector<1x48xi1>
    %67 = arith.xori %63, %66 : vector<1x48xi1>
    %68 = arith.andi %67, %61 : vector<1x48xi1>
    %69 = vector.broadcast %57 : i32 to vector<1x48xi32>
    %70 = arith.addi %59, %69 : vector<1x48xi32>
    %71 = arith.select %68, %70, %59 : vector<1x48xi1>, vector<1x48xi32>
    %cst_133 = arith.constant dense<0.000000e+00> : vector<48xf32>
    %72 = vector.multi_reduction <add>, %54, %cst_133 [0] : vector<128x48xf32> to vector<48xf32>
    %73 = vector.shape_cast %72 : vector<48xf32> to vector<1x48xf32>
    %cst_134 = arith.constant 0.000000e+00 : f32
    %74 = vector.broadcast %cst_134 : f32 to vector<1x48xf32>
    %c0_i32_135 = arith.constant 0 : i32
    %75 = vector.broadcast %c0_i32_135 : i32 to vector<1x48xi32>
    %76 = arith.cmpi eq, %71, %75 : vector<1x48xi32>
    %cst_136 = arith.constant 0.000000e+00 : f32
    %77 = vector.broadcast %cst_136 : f32 to vector<1x48xf32>
    %78 = arith.select %76, %73, %77 : vector<1x48xi1>, vector<1x48xf32>
    %79 = vector.shape_cast %78 : vector<1x48xf32> to vector<1x1x48xf32>
    %cst_137 = arith.constant dense<0.000000e+00> : vector<1xf32>
    %80 = vector.multi_reduction <add>, %79, %cst_137 [1, 2] : vector<1x1x48xf32> to vector<1xf32>
    %81 = vector.shape_cast %80 : vector<1xf32> to vector<1x1x1xf32>
    %82 = vector.extract %81[0, 0, 0] : f32 from vector<1x1x1xf32>
    %83 = vector.broadcast %82 : f32 to vector<1x48xf32>
    %84 = arith.select %76, %83, %74 : vector<1x48xi1>, vector<1x48xf32>
    %c1_i32_138 = arith.constant 1 : i32
    %85 = vector.broadcast %c1_i32_138 : i32 to vector<1x48xi32>
    %86 = arith.cmpi eq, %71, %85 : vector<1x48xi32>
    %cst_139 = arith.constant 0.000000e+00 : f32
    %87 = vector.broadcast %cst_139 : f32 to vector<1x48xf32>
    %88 = arith.select %86, %73, %87 : vector<1x48xi1>, vector<1x48xf32>
    %89 = vector.shape_cast %88 : vector<1x48xf32> to vector<1x1x48xf32>
    %cst_140 = arith.constant dense<0.000000e+00> : vector<1xf32>
    %90 = vector.multi_reduction <add>, %89, %cst_140 [1, 2] : vector<1x1x48xf32> to vector<1xf32>
    %91 = vector.shape_cast %90 : vector<1xf32> to vector<1x1x1xf32>
    %92 = vector.extract %91[0, 0, 0] : f32 from vector<1x1x1xf32>
    %93 = vector.broadcast %92 : f32 to vector<1x48xf32>
    %94 = arith.select %86, %93, %84 : vector<1x48xi1>, vector<1x48xf32>
    %c2_i32 = arith.constant 2 : i32
    %95 = vector.broadcast %c2_i32 : i32 to vector<1x48xi32>
    %96 = arith.cmpi eq, %71, %95 : vector<1x48xi32>
    %cst_141 = arith.constant 0.000000e+00 : f32
    %97 = vector.broadcast %cst_141 : f32 to vector<1x48xf32>
    %98 = arith.select %96, %73, %97 : vector<1x48xi1>, vector<1x48xf32>
    %99 = vector.shape_cast %98 : vector<1x48xf32> to vector<1x1x48xf32>
    %cst_142 = arith.constant dense<0.000000e+00> : vector<1xf32>
    %100 = vector.multi_reduction <add>, %99, %cst_142 [1, 2] : vector<1x1x48xf32> to vector<1xf32>
    %101 = vector.shape_cast %100 : vector<1xf32> to vector<1x1x1xf32>
    %102 = vector.extract %101[0, 0, 0] : f32 from vector<1x1x1xf32>
    %103 = vector.broadcast %102 : f32 to vector<1x48xf32>
    %104 = arith.select %96, %103, %94 : vector<1x48xi1>, vector<1x48xf32>
    %c3_i32 = arith.constant 3 : i32
    %105 = vector.broadcast %c3_i32 : i32 to vector<1x48xi32>
    %106 = arith.cmpi eq, %71, %105 : vector<1x48xi32>
    %cst_143 = arith.constant 0.000000e+00 : f32
    %107 = vector.broadcast %cst_143 : f32 to vector<1x48xf32>
    %108 = arith.select %106, %73, %107 : vector<1x48xi1>, vector<1x48xf32>
    %109 = vector.shape_cast %108 : vector<1x48xf32> to vector<1x1x48xf32>
    %cst_144 = arith.constant dense<0.000000e+00> : vector<1xf32>
    %110 = vector.multi_reduction <add>, %109, %cst_144 [1, 2] : vector<1x1x48xf32> to vector<1xf32>
    %111 = vector.shape_cast %110 : vector<1xf32> to vector<1x1x1xf32>
    %112 = vector.extract %111[0, 0, 0] : f32 from vector<1x1x1xf32>
    %113 = vector.broadcast %112 : f32 to vector<1x48xf32>
    %114 = arith.select %106, %113, %104 : vector<1x48xi1>, vector<1x48xf32>
    %c4_i32 = arith.constant 4 : i32
    %115 = vector.broadcast %c4_i32 : i32 to vector<1x48xi32>
    %116 = arith.cmpi eq, %71, %115 : vector<1x48xi32>
    %cst_145 = arith.constant 0.000000e+00 : f32
    %117 = vector.broadcast %cst_145 : f32 to vector<1x48xf32>
    %118 = arith.select %116, %73, %117 : vector<1x48xi1>, vector<1x48xf32>
    %119 = vector.shape_cast %118 : vector<1x48xf32> to vector<1x1x48xf32>
    %cst_146 = arith.constant dense<0.000000e+00> : vector<1xf32>
    %120 = vector.multi_reduction <add>, %119, %cst_146 [1, 2] : vector<1x1x48xf32> to vector<1xf32>
    %121 = vector.shape_cast %120 : vector<1xf32> to vector<1x1x1xf32>
    %122 = vector.extract %121[0, 0, 0] : f32 from vector<1x1x1xf32>
    %123 = vector.broadcast %122 : f32 to vector<1x48xf32>
    %124 = arith.select %116, %123, %114 : vector<1x48xi1>, vector<1x48xf32>
    %c5_i32 = arith.constant 5 : i32
    %125 = vector.broadcast %c5_i32 : i32 to vector<1x48xi32>
    %126 = arith.cmpi eq, %71, %125 : vector<1x48xi32>
    %cst_147 = arith.constant 0.000000e+00 : f32
    %127 = vector.broadcast %cst_147 : f32 to vector<1x48xf32>
    %128 = arith.select %126, %73, %127 : vector<1x48xi1>, vector<1x48xf32>
    %129 = vector.shape_cast %128 : vector<1x48xf32> to vector<1x1x48xf32>
    %cst_148 = arith.constant dense<0.000000e+00> : vector<1xf32>
    %130 = vector.multi_reduction <add>, %129, %cst_148 [1, 2] : vector<1x1x48xf32> to vector<1xf32>
    %131 = vector.shape_cast %130 : vector<1xf32> to vector<1x1x1xf32>
    %132 = vector.extract %131[0, 0, 0] : f32 from vector<1x1x1xf32>
    %133 = vector.broadcast %132 : f32 to vector<1x48xf32>
    %134 = arith.select %126, %133, %124 : vector<1x48xi1>, vector<1x48xf32>
    %cst_149 = arith.constant 9.765625E-4 : f32
    %135 = vector.broadcast %cst_149 : f32 to vector<1x48xf32>
    %136 = arith.mulf %134, %135 : vector<1x48xf32>
    %137 = vector.broadcast %136 : vector<1x48xf32> to vector<128x48xf32>
    %138 = arith.subf %54, %137 : vector<128x48xf32>
    %139 = arith.mulf %138, %138 : vector<128x48xf32>
    %cst_150 = arith.constant dense<0.000000e+00> : vector<48xf32>
    %140 = vector.multi_reduction <add>, %139, %cst_150 [0] : vector<128x48xf32> to vector<48xf32>
    %141 = vector.shape_cast %140 : vector<48xf32> to vector<1x48xf32>
    %cst_151 = arith.constant 0.000000e+00 : f32
    %142 = vector.broadcast %cst_151 : f32 to vector<1x48xf32>
    %c0_i32_152 = arith.constant 0 : i32
    %143 = vector.broadcast %c0_i32_152 : i32 to vector<1x48xi32>
    %144 = arith.cmpi eq, %71, %143 : vector<1x48xi32>
    %cst_153 = arith.constant 0.000000e+00 : f32
    %145 = vector.broadcast %cst_153 : f32 to vector<1x48xf32>
    %146 = arith.select %144, %141, %145 : vector<1x48xi1>, vector<1x48xf32>
    %147 = vector.shape_cast %146 : vector<1x48xf32> to vector<1x1x48xf32>
    %cst_154 = arith.constant dense<0.000000e+00> : vector<1xf32>
    %148 = vector.multi_reduction <add>, %147, %cst_154 [1, 2] : vector<1x1x48xf32> to vector<1xf32>
    %149 = vector.shape_cast %148 : vector<1xf32> to vector<1x1x1xf32>
    %150 = vector.extract %149[0, 0, 0] : f32 from vector<1x1x1xf32>
    %151 = vector.broadcast %150 : f32 to vector<1x48xf32>
    %152 = arith.select %144, %151, %142 : vector<1x48xi1>, vector<1x48xf32>
    %c1_i32_155 = arith.constant 1 : i32
    %153 = vector.broadcast %c1_i32_155 : i32 to vector<1x48xi32>
    %154 = arith.cmpi eq, %71, %153 : vector<1x48xi32>
    %cst_156 = arith.constant 0.000000e+00 : f32
    %155 = vector.broadcast %cst_156 : f32 to vector<1x48xf32>
    %156 = arith.select %154, %141, %155 : vector<1x48xi1>, vector<1x48xf32>
    %157 = vector.shape_cast %156 : vector<1x48xf32> to vector<1x1x48xf32>
    %cst_157 = arith.constant dense<0.000000e+00> : vector<1xf32>
    %158 = vector.multi_reduction <add>, %157, %cst_157 [1, 2] : vector<1x1x48xf32> to vector<1xf32>
    %159 = vector.shape_cast %158 : vector<1xf32> to vector<1x1x1xf32>
    %160 = vector.extract %159[0, 0, 0] : f32 from vector<1x1x1xf32>
    %161 = vector.broadcast %160 : f32 to vector<1x48xf32>
    %162 = arith.select %154, %161, %152 : vector<1x48xi1>, vector<1x48xf32>
    %c2_i32_158 = arith.constant 2 : i32
    %163 = vector.broadcast %c2_i32_158 : i32 to vector<1x48xi32>
    %164 = arith.cmpi eq, %71, %163 : vector<1x48xi32>
    %cst_159 = arith.constant 0.000000e+00 : f32
    %165 = vector.broadcast %cst_159 : f32 to vector<1x48xf32>
    %166 = arith.select %164, %141, %165 : vector<1x48xi1>, vector<1x48xf32>
    %167 = vector.shape_cast %166 : vector<1x48xf32> to vector<1x1x48xf32>
    %cst_160 = arith.constant dense<0.000000e+00> : vector<1xf32>
    %168 = vector.multi_reduction <add>, %167, %cst_160 [1, 2] : vector<1x1x48xf32> to vector<1xf32>
    %169 = vector.shape_cast %168 : vector<1xf32> to vector<1x1x1xf32>
    %170 = vector.extract %169[0, 0, 0] : f32 from vector<1x1x1xf32>
    %171 = vector.broadcast %170 : f32 to vector<1x48xf32>
    %172 = arith.select %164, %171, %162 : vector<1x48xi1>, vector<1x48xf32>
    %c3_i32_161 = arith.constant 3 : i32
    %173 = vector.broadcast %c3_i32_161 : i32 to vector<1x48xi32>
    %174 = arith.cmpi eq, %71, %173 : vector<1x48xi32>
    %cst_162 = arith.constant 0.000000e+00 : f32
    %175 = vector.broadcast %cst_162 : f32 to vector<1x48xf32>
    %176 = arith.select %174, %141, %175 : vector<1x48xi1>, vector<1x48xf32>
    %177 = vector.shape_cast %176 : vector<1x48xf32> to vector<1x1x48xf32>
    %cst_163 = arith.constant dense<0.000000e+00> : vector<1xf32>
    %178 = vector.multi_reduction <add>, %177, %cst_163 [1, 2] : vector<1x1x48xf32> to vector<1xf32>
    %179 = vector.shape_cast %178 : vector<1xf32> to vector<1x1x1xf32>
    %180 = vector.extract %179[0, 0, 0] : f32 from vector<1x1x1xf32>
    %181 = vector.broadcast %180 : f32 to vector<1x48xf32>
    %182 = arith.select %174, %181, %172 : vector<1x48xi1>, vector<1x48xf32>
    %c4_i32_164 = arith.constant 4 : i32
    %183 = vector.broadcast %c4_i32_164 : i32 to vector<1x48xi32>
    %184 = arith.cmpi eq, %71, %183 : vector<1x48xi32>
    %cst_165 = arith.constant 0.000000e+00 : f32
    %185 = vector.broadcast %cst_165 : f32 to vector<1x48xf32>
    %186 = arith.select %184, %141, %185 : vector<1x48xi1>, vector<1x48xf32>
    %187 = vector.shape_cast %186 : vector<1x48xf32> to vector<1x1x48xf32>
    %cst_166 = arith.constant dense<0.000000e+00> : vector<1xf32>
    %188 = vector.multi_reduction <add>, %187, %cst_166 [1, 2] : vector<1x1x48xf32> to vector<1xf32>
    %189 = vector.shape_cast %188 : vector<1xf32> to vector<1x1x1xf32>
    %190 = vector.extract %189[0, 0, 0] : f32 from vector<1x1x1xf32>
    %191 = vector.broadcast %190 : f32 to vector<1x48xf32>
    %192 = arith.select %184, %191, %182 : vector<1x48xi1>, vector<1x48xf32>
    %c5_i32_167 = arith.constant 5 : i32
    %193 = vector.broadcast %c5_i32_167 : i32 to vector<1x48xi32>
    %194 = arith.cmpi eq, %71, %193 : vector<1x48xi32>
    %cst_168 = arith.constant 0.000000e+00 : f32
    %195 = vector.broadcast %cst_168 : f32 to vector<1x48xf32>
    %196 = arith.select %194, %141, %195 : vector<1x48xi1>, vector<1x48xf32>
    %197 = vector.shape_cast %196 : vector<1x48xf32> to vector<1x1x48xf32>
    %cst_169 = arith.constant dense<0.000000e+00> : vector<1xf32>
    %198 = vector.multi_reduction <add>, %197, %cst_169 [1, 2] : vector<1x1x48xf32> to vector<1xf32>
    %199 = vector.shape_cast %198 : vector<1xf32> to vector<1x1x1xf32>
    %200 = vector.extract %199[0, 0, 0] : f32 from vector<1x1x1xf32>
    %201 = vector.broadcast %200 : f32 to vector<1x48xf32>
    %202 = arith.select %194, %201, %192 : vector<1x48xi1>, vector<1x48xf32>
    %cst_170 = arith.constant 9.765625E-4 : f32
    %203 = vector.broadcast %cst_170 : f32 to vector<1x48xf32>
    %204 = arith.mulf %202, %203 : vector<1x48xf32>
    %cst_171 = arith.constant 9.99999974E-6 : f32
    %205 = vector.broadcast %cst_171 : f32 to vector<1x48xf32>
    %206 = arith.addf %204, %205 : vector<1x48xf32>
    %207 = math.rsqrt %206 : vector<1x48xf32>
    %208 = vector.broadcast %207 : vector<1x48xf32> to vector<128x48xf32>
    %209 = arith.mulf %138, %208 : vector<128x48xf32>
    %c0_172 = arith.constant 0 : index
    %c0_173 = arith.constant 0 : index
    %210 = vector.load %arg2[%c0_172, %c0_173] : memref<1x48xf32, #tpu.memory_space<vmem>>, vector<1x48xf32>
    %211 = vector.broadcast %210 : vector<1x48xf32> to vector<128x48xf32>
    %212 = arith.mulf %209, %211 : vector<128x48xf32>
    %c0_174 = arith.constant 0 : index
    %c0_175 = arith.constant 0 : index
    %213 = vector.load %arg3[%c0_174, %c0_175] : memref<1x48xf32, #tpu.memory_space<vmem>>, vector<1x48xf32>
    %214 = vector.broadcast %213 : vector<1x48xf32> to vector<128x48xf32>
    %215 = arith.addf %212, %214 : vector<128x48xf32>
    %cst_176 = arith.constant 0.000000e+00 : f32
    %216 = vector.broadcast %cst_176 : f32 to vector<128x48xf32>
    %217 = arith.cmpf ogt, %215, %216 : vector<128x48xf32>
    %218 = math.exp %215 : vector<128x48xf32>
    %cst_177 = arith.constant 1.000000e+00 : f32
    %219 = vector.broadcast %cst_177 : f32 to vector<128x48xf32>
    %220 = arith.subf %218, %219 : vector<128x48xf32>
    %221 = arith.select %217, %215, %220 : vector<128x48xi1>, vector<128x48xf32>
    %cst_178 = arith.constant 0.000000e+00 : f32
    %222 = vector.broadcast %cst_178 : f32 to vector<2x1x10x60xf32>
    %c0_179 = arith.constant 0 : index
    %c0_180 = arith.constant 0 : index
    %c0_181 = arith.constant 0 : index
    %c0_182 = arith.constant 0 : index
    %223 = vector.load %arg10[%c0_179, %c0_180, %c0_181, %c0_182] : memref<2x10x10x60xf32, #tpu.memory_space<vmem>>, vector<2x1x10x60xf32>
    tpu.vector_store %arg10[%c0_179, %c0_180, %c0_181, %c0_182], %222 {strides = array<i32>} : memref<2x10x10x60xf32, #tpu.memory_space<vmem>>, vector<2x1x10x60xf32>,
    %cst_183 = arith.constant 0.000000e+00 : f32
    %224 = vector.broadcast %cst_183 : f32 to vector<2x1x10x60xf32>
    %c0_184 = arith.constant 0 : index
    %c9_185 = arith.constant 9 : index
    %c0_186 = arith.constant 0 : index
    %c0_187 = arith.constant 0 : index
    %225 = vector.load %arg10[%c0_184, %c9_185, %c0_186, %c0_187] : memref<2x10x10x60xf32, #tpu.memory_space<vmem>>, vector<2x1x10x60xf32>
    tpu.vector_store %arg10[%c0_184, %c9_185, %c0_186, %c0_187], %224 {strides = array<i32>} : memref<2x10x10x60xf32, #tpu.memory_space<vmem>>, vector<2x1x10x60xf32>,
    %cst_188 = arith.constant 0.000000e+00 : f32
    %226 = vector.broadcast %cst_188 : f32 to vector<2x10x1x60xf32>
    %c0_189 = arith.constant 0 : index
    %c0_190 = arith.constant 0 : index
    %c0_191 = arith.constant 0 : index
    %c0_192 = arith.constant 0 : index
    %227 = vector.load %arg10[%c0_189, %c0_190, %c0_191, %c0_192] : memref<2x10x10x60xf32, #tpu.memory_space<vmem>>, vector<2x10x1x60xf32>
    tpu.vector_store %arg10[%c0_189, %c0_190, %c0_191, %c0_192], %226 {strides = array<i32>} : memref<2x10x10x60xf32, #tpu.memory_space<vmem>>, vector<2x10x1x60xf32>,
    %cst_193 = arith.constant 0.000000e+00 : f32
    %228 = vector.broadcast %cst_193 : f32 to vector<2x10x1x60xf32>
    %c0_194 = arith.constant 0 : index
    %c0_195 = arith.constant 0 : index
    %c9_196 = arith.constant 9 : index
    %c0_197 = arith.constant 0 : index
    %229 = vector.load %arg10[%c0_194, %c0_195, %c9_196, %c0_197] : memref<2x10x10x60xf32, #tpu.memory_space<vmem>>, vector<2x10x1x60xf32>
    tpu.vector_store %arg10[%c0_194, %c0_195, %c9_196, %c0_197], %228 {strides = array<i32>} : memref<2x10x10x60xf32, #tpu.memory_space<vmem>>, vector<2x10x1x60xf32>,
    %cst_198 = arith.constant 0.000000e+00 : f32
    %230 = vector.broadcast %cst_198 : f32 to vector<2x10x10x6xf32>
    %c0_199 = arith.constant 0 : index
    %c0_200 = arith.constant 0 : index
    %c0_201 = arith.constant 0 : index
    %c0_202 = arith.constant 0 : index
    %231 = vector.load %arg10[%c0_199, %c0_200, %c0_201, %c0_202] : memref<2x10x10x60xf32, #tpu.memory_space<vmem>>, vector<2x10x10x6xf32>
    tpu.vector_store %arg10[%c0_199, %c0_200, %c0_201, %c0_202], %230 {strides = array<i32>} : memref<2x10x10x60xf32, #tpu.memory_space<vmem>>, vector<2x10x10x6xf32>,
    %cst_203 = arith.constant 0.000000e+00 : f32
    %232 = vector.broadcast %cst_203 : f32 to vector<2x10x10x6xf32>
    %c0_204 = arith.constant 0 : index
    %c0_205 = arith.constant 0 : index
    %c0_206 = arith.constant 0 : index
    %c54 = arith.constant 54 : index
    %233 = vector.load %arg10[%c0_204, %c0_205, %c0_206, %c54] : memref<2x10x10x60xf32, #tpu.memory_space<vmem>>, vector<2x10x10x6xf32>
    tpu.vector_store %arg10[%c0_204, %c0_205, %c0_206, %c54], %232 {strides = array<i32>} : memref<2x10x10x60xf32, #tpu.memory_space<vmem>>, vector<2x10x10x6xf32>,
    %234 = vector.shape_cast %221 : vector<128x48xf32> to vector<2x8x8x48xf32>
    %c0_207 = arith.constant 0 : index
    %c1_208 = arith.constant 1 : index
    %c1_209 = arith.constant 1 : index
    %c6 = arith.constant 6 : index
    %235 = vector.load %arg10[%c0_207, %c1_208, %c1_209, %c6] : memref<2x10x10x60xf32, #tpu.memory_space<vmem>>, vector<2x8x8x48xf32>
    tpu.vector_store %arg10[%c0_207, %c1_208, %c1_209, %c6], %234 {strides = array<i32>} : memref<2x10x10x60xf32, #tpu.memory_space<vmem>>, vector<2x8x8x48xf32>,
    %cst_210 = arith.constant 0.000000e+00 : bf16
    %236 = vector.broadcast %cst_210 : bf16 to vector<2x8x8x68xbf16>
    %c0_211 = arith.constant 0 : index
    %c0_212 = arith.constant 0 : index
    %c0_213 = arith.constant 0 : index
    %c0_214 = arith.constant 0 : index
    %237 = vector.load %arg10[%c0_211, %c0_212, %c0_213, %c0_214] : memref<2x10x10x60xf32, #tpu.memory_space<vmem>>, vector<2x8x8x60xf32>
    %238 = arith.truncf %237 : vector<2x8x8x60xf32> to vector<2x8x8x60xbf16>
    %c0_215 = arith.constant 0 : index
    %c0_216 = arith.constant 0 : index
    %c0_217 = arith.constant 0 : index
    %c0_218 = arith.constant 0 : index
    %239 = vector.load %arg11[%c0_215, %c0_216, %c0_217, %c0_218] : memref<2x8x8x1152xbf16, #tpu.memory_space<vmem>>, vector<2x8x8x60xbf16>
    tpu.vector_store %arg11[%c0_215, %c0_216, %c0_217, %c0_218], %238 {strides = array<i32>} : memref<2x8x8x1152xbf16, #tpu.memory_space<vmem>>, vector<2x8x8x60xbf16>,
    %c0_219 = arith.constant 0 : index
    %c0_220 = arith.constant 0 : index
    %c0_221 = arith.constant 0 : index
    %c60 = arith.constant 60 : index
    %240 = vector.load %arg11[%c0_219, %c0_220, %c0_221, %c60] : memref<2x8x8x1152xbf16, #tpu.memory_space<vmem>>, vector<2x8x8x68xbf16>
    tpu.vector_store %arg11[%c0_219, %c0_220, %c0_221, %c60], %236 {strides = array<i32>} : memref<2x8x8x1152xbf16, #tpu.memory_space<vmem>>, vector<2x8x8x68xbf16>,
    %c0_222 = arith.constant 0 : index
    %c0_223 = arith.constant 0 : index
    %c1_224 = arith.constant 1 : index
    %c0_225 = arith.constant 0 : index
    %241 = vector.load %arg10[%c0_222, %c0_223, %c1_224, %c0_225] : memref<2x10x10x60xf32, #tpu.memory_space<vmem>>, vector<2x8x8x60xf32>
    %242 = arith.truncf %241 : vector<2x8x8x60xf32> to vector<2x8x8x60xbf16>
    %c0_226 = arith.constant 0 : index
    %c0_227 = arith.constant 0 : index
    %c0_228 = arith.constant 0 : index
    %c128_229 = arith.constant 128 : index
    %243 = vector.load %arg11[%c0_226, %c0_227, %c0_228, %c128_229] : memref<2x8x8x1152xbf16, #tpu.memory_space<vmem>>, vector<2x8x8x60xbf16>
    tpu.vector_store %arg11[%c0_226, %c0_227, %c0_228, %c128_229], %242 {strides = array<i32>} : memref<2x8x8x1152xbf16, #tpu.memory_space<vmem>>, vector<2x8x8x60xbf16>,
    %c0_230 = arith.constant 0 : index
    %c0_231 = arith.constant 0 : index
    %c0_232 = arith.constant 0 : index
    %c188 = arith.constant 188 : index
    %244 = vector.load %arg11[%c0_230, %c0_231, %c0_232, %c188] : memref<2x8x8x1152xbf16, #tpu.memory_space<vmem>>, vector<2x8x8x68xbf16>
    tpu.vector_store %arg11[%c0_230, %c0_231, %c0_232, %c188], %236 {strides = array<i32>} : memref<2x8x8x1152xbf16, #tpu.memory_space<vmem>>, vector<2x8x8x68xbf16>,
    %c0_233 = arith.constant 0 : index
    %c0_234 = arith.constant 0 : index
    %c2_235 = arith.constant 2 : index
    %c0_236 = arith.constant 0 : index
    %245 = vector.load %arg10[%c0_233, %c0_234, %c2_235, %c0_236] : memref<2x10x10x60xf32, #tpu.memory_space<vmem>>, vector<2x8x8x60xf32>
    %246 = arith.truncf %245 : vector<2x8x8x60xf32> to vector<2x8x8x60xbf16>
    %c0_237 = arith.constant 0 : index
    %c0_238 = arith.constant 0 : index
    %c0_239 = arith.constant 0 : index
    %c256_240 = arith.constant 256 : index
    %247 = vector.load %arg11[%c0_237, %c0_238, %c0_239, %c256_240] : memref<2x8x8x1152xbf16, #tpu.memory_space<vmem>>, vector<2x8x8x60xbf16>
    tpu.vector_store %arg11[%c0_237, %c0_238, %c0_239, %c256_240], %246 {strides = array<i32>} : memref<2x8x8x1152xbf16, #tpu.memory_space<vmem>>, vector<2x8x8x60xbf16>,
    %c0_241 = arith.constant 0 : index
    %c0_242 = arith.constant 0 : index
    %c0_243 = arith.constant 0 : index
    %c316 = arith.constant 316 : index
    %248 = vector.load %arg11[%c0_241, %c0_242, %c0_243, %c316] : memref<2x8x8x1152xbf16, #tpu.memory_space<vmem>>, vector<2x8x8x68xbf16>
    tpu.vector_store %arg11[%c0_241, %c0_242, %c0_243, %c316], %236 {strides = array<i32>} : memref<2x8x8x1152xbf16, #tpu.memory_space<vmem>>, vector<2x8x8x68xbf16>,
    %c0_244 = arith.constant 0 : index
    %c1_245 = arith.constant 1 : index
    %c0_246 = arith.constant 0 : index
    %c0_247 = arith.constant 0 : index
    %249 = vector.load %arg10[%c0_244, %c1_245, %c0_246, %c0_247] : memref<2x10x10x60xf32, #tpu.memory_space<vmem>>, vector<2x8x8x60xf32>
    %250 = arith.truncf %249 : vector<2x8x8x60xf32> to vector<2x8x8x60xbf16>
    %c0_248 = arith.constant 0 : index
    %c0_249 = arith.constant 0 : index
    %c0_250 = arith.constant 0 : index
    %c384_251 = arith.constant 384 : index
    %251 = vector.load %arg11[%c0_248, %c0_249, %c0_250, %c384_251] : memref<2x8x8x1152xbf16, #tpu.memory_space<vmem>>, vector<2x8x8x60xbf16>
    tpu.vector_store %arg11[%c0_248, %c0_249, %c0_250, %c384_251], %250 {strides = array<i32>} : memref<2x8x8x1152xbf16, #tpu.memory_space<vmem>>, vector<2x8x8x60xbf16>,
    %c0_252 = arith.constant 0 : index
    %c0_253 = arith.constant 0 : index
    %c0_254 = arith.constant 0 : index
    %c444 = arith.constant 444 : index
    %252 = vector.load %arg11[%c0_252, %c0_253, %c0_254, %c444] : memref<2x8x8x1152xbf16, #tpu.memory_space<vmem>>, vector<2x8x8x68xbf16>
    tpu.vector_store %arg11[%c0_252, %c0_253, %c0_254, %c444], %236 {strides = array<i32>} : memref<2x8x8x1152xbf16, #tpu.memory_space<vmem>>, vector<2x8x8x68xbf16>,
    %c0_255 = arith.constant 0 : index
    %c1_256 = arith.constant 1 : index
    %c1_257 = arith.constant 1 : index
    %c0_258 = arith.constant 0 : index
    %253 = vector.load %arg10[%c0_255, %c1_256, %c1_257, %c0_258] : memref<2x10x10x60xf32, #tpu.memory_space<vmem>>, vector<2x8x8x60xf32>
    %254 = arith.truncf %253 : vector<2x8x8x60xf32> to vector<2x8x8x60xbf16>
    %c0_259 = arith.constant 0 : index
    %c0_260 = arith.constant 0 : index
    %c0_261 = arith.constant 0 : index
    %c512_262 = arith.constant 512 : index
    %255 = vector.load %arg11[%c0_259, %c0_260, %c0_261, %c512_262] : memref<2x8x8x1152xbf16, #tpu.memory_space<vmem>>, vector<2x8x8x60xbf16>
    tpu.vector_store %arg11[%c0_259, %c0_260, %c0_261, %c512_262], %254 {strides = array<i32>} : memref<2x8x8x1152xbf16, #tpu.memory_space<vmem>>, vector<2x8x8x60xbf16>,
    %c0_263 = arith.constant 0 : index
    %c0_264 = arith.constant 0 : index
    %c0_265 = arith.constant 0 : index
    %c572 = arith.constant 572 : index
    %256 = vector.load %arg11[%c0_263, %c0_264, %c0_265, %c572] : memref<2x8x8x1152xbf16, #tpu.memory_space<vmem>>, vector<2x8x8x68xbf16>
    tpu.vector_store %arg11[%c0_263, %c0_264, %c0_265, %c572], %236 {strides = array<i32>} : memref<2x8x8x1152xbf16, #tpu.memory_space<vmem>>, vector<2x8x8x68xbf16>,
    %c0_266 = arith.constant 0 : index
    %c1_267 = arith.constant 1 : index
    %c2_268 = arith.constant 2 : index
    %c0_269 = arith.constant 0 : index
    %257 = vector.load %arg10[%c0_266, %c1_267, %c2_268, %c0_269] : memref<2x10x10x60xf32, #tpu.memory_space<vmem>>, vector<2x8x8x60xf32>
    %258 = arith.truncf %257 : vector<2x8x8x60xf32> to vector<2x8x8x60xbf16>
    %c0_270 = arith.constant 0 : index
    %c0_271 = arith.constant 0 : index
    %c0_272 = arith.constant 0 : index
    %c640_273 = arith.constant 640 : index
    %259 = vector.load %arg11[%c0_270, %c0_271, %c0_272, %c640_273] : memref<2x8x8x1152xbf16, #tpu.memory_space<vmem>>, vector<2x8x8x60xbf16>
    tpu.vector_store %arg11[%c0_270, %c0_271, %c0_272, %c640_273], %258 {strides = array<i32>} : memref<2x8x8x1152xbf16, #tpu.memory_space<vmem>>, vector<2x8x8x60xbf16>,
    %c0_274 = arith.constant 0 : index
    %c0_275 = arith.constant 0 : index
    %c0_276 = arith.constant 0 : index
    %c700 = arith.constant 700 : index
    %260 = vector.load %arg11[%c0_274, %c0_275, %c0_276, %c700] : memref<2x8x8x1152xbf16, #tpu.memory_space<vmem>>, vector<2x8x8x68xbf16>
    tpu.vector_store %arg11[%c0_274, %c0_275, %c0_276, %c700], %236 {strides = array<i32>} : memref<2x8x8x1152xbf16, #tpu.memory_space<vmem>>, vector<2x8x8x68xbf16>,
    %c0_277 = arith.constant 0 : index
    %c2_278 = arith.constant 2 : index
    %c0_279 = arith.constant 0 : index
    %c0_280 = arith.constant 0 : index
    %261 = vector.load %arg10[%c0_277, %c2_278, %c0_279, %c0_280] : memref<2x10x10x60xf32, #tpu.memory_space<vmem>>, vector<2x8x8x60xf32>
    %262 = arith.truncf %261 : vector<2x8x8x60xf32> to vector<2x8x8x60xbf16>
    %c0_281 = arith.constant 0 : index
    %c0_282 = arith.constant 0 : index
    %c0_283 = arith.constant 0 : index
    %c768_284 = arith.constant 768 : index
    %263 = vector.load %arg11[%c0_281, %c0_282, %c0_283, %c768_284] : memref<2x8x8x1152xbf16, #tpu.memory_space<vmem>>, vector<2x8x8x60xbf16>
    tpu.vector_store %arg11[%c0_281, %c0_282, %c0_283, %c768_284], %262 {strides = array<i32>} : memref<2x8x8x1152xbf16, #tpu.memory_space<vmem>>, vector<2x8x8x60xbf16>,
    %c0_285 = arith.constant 0 : index
    %c0_286 = arith.constant 0 : index
    %c0_287 = arith.constant 0 : index
    %c828 = arith.constant 828 : index
    %264 = vector.load %arg11[%c0_285, %c0_286, %c0_287, %c828] : memref<2x8x8x1152xbf16, #tpu.memory_space<vmem>>, vector<2x8x8x68xbf16>
    tpu.vector_store %arg11[%c0_285, %c0_286, %c0_287, %c828], %236 {strides = array<i32>} : memref<2x8x8x1152xbf16, #tpu.memory_space<vmem>>, vector<2x8x8x68xbf16>,
    %c0_288 = arith.constant 0 : index
    %c2_289 = arith.constant 2 : index
    %c1_290 = arith.constant 1 : index
    %c0_291 = arith.constant 0 : index
    %265 = vector.load %arg10[%c0_288, %c2_289, %c1_290, %c0_291] : memref<2x10x10x60xf32, #tpu.memory_space<vmem>>, vector<2x8x8x60xf32>
    %266 = arith.truncf %265 : vector<2x8x8x60xf32> to vector<2x8x8x60xbf16>
    %c0_292 = arith.constant 0 : index
    %c0_293 = arith.constant 0 : index
    %c0_294 = arith.constant 0 : index
    %c896_295 = arith.constant 896 : index
    %267 = vector.load %arg11[%c0_292, %c0_293, %c0_294, %c896_295] : memref<2x8x8x1152xbf16, #tpu.memory_space<vmem>>, vector<2x8x8x60xbf16>
    tpu.vector_store %arg11[%c0_292, %c0_293, %c0_294, %c896_295], %266 {strides = array<i32>} : memref<2x8x8x1152xbf16, #tpu.memory_space<vmem>>, vector<2x8x8x60xbf16>,
    %c0_296 = arith.constant 0 : index
    %c0_297 = arith.constant 0 : index
    %c0_298 = arith.constant 0 : index
    %c956 = arith.constant 956 : index
    %268 = vector.load %arg11[%c0_296, %c0_297, %c0_298, %c956] : memref<2x8x8x1152xbf16, #tpu.memory_space<vmem>>, vector<2x8x8x68xbf16>
    tpu.vector_store %arg11[%c0_296, %c0_297, %c0_298, %c956], %236 {strides = array<i32>} : memref<2x8x8x1152xbf16, #tpu.memory_space<vmem>>, vector<2x8x8x68xbf16>,
    %c0_299 = arith.constant 0 : index
    %c2_300 = arith.constant 2 : index
    %c2_301 = arith.constant 2 : index
    %c0_302 = arith.constant 0 : index
    %269 = vector.load %arg10[%c0_299, %c2_300, %c2_301, %c0_302] : memref<2x10x10x60xf32, #tpu.memory_space<vmem>>, vector<2x8x8x60xf32>
    %270 = arith.truncf %269 : vector<2x8x8x60xf32> to vector<2x8x8x60xbf16>
    %c0_303 = arith.constant 0 : index
    %c0_304 = arith.constant 0 : index
    %c0_305 = arith.constant 0 : index
    %c1024_306 = arith.constant 1024 : index
    %271 = vector.load %arg11[%c0_303, %c0_304, %c0_305, %c1024_306] : memref<2x8x8x1152xbf16, #tpu.memory_space<vmem>>, vector<2x8x8x60xbf16>
    tpu.vector_store %arg11[%c0_303, %c0_304, %c0_305, %c1024_306], %270 {strides = array<i32>} : memref<2x8x8x1152xbf16, #tpu.memory_space<vmem>>, vector<2x8x8x60xbf16>,
    %c0_307 = arith.constant 0 : index
    %c0_308 = arith.constant 0 : index
    %c0_309 = arith.constant 0 : index
    %c1084 = arith.constant 1084 : index
    %272 = vector.load %arg11[%c0_307, %c0_308, %c0_309, %c1084] : memref<2x8x8x1152xbf16, #tpu.memory_space<vmem>>, vector<2x8x8x68xbf16>
    tpu.vector_store %arg11[%c0_307, %c0_308, %c0_309, %c1084], %236 {strides = array<i32>} : memref<2x8x8x1152xbf16, #tpu.memory_space<vmem>>, vector<2x8x8x68xbf16>,
    %c0_310 = arith.constant 0 : index
    %c0_311 = arith.constant 0 : index
    %c0_312 = arith.constant 0 : index
    %c0_313 = arith.constant 0 : index
    %273 = vector.load %arg11[%c0_310, %c0_311, %c0_312, %c0_313] : memref<2x8x8x1152xbf16, #tpu.memory_space<vmem>>, vector<2x8x8x1152xbf16>
    %274 = vector.shape_cast %273 : vector<2x8x8x1152xbf16> to vector<128x1152xbf16>
    %c0_314 = arith.constant 0 : index
    %c0_315 = arith.constant 0 : index
    %275 = vector.load %arg4[%c0_314, %c0_315] : memref<1152x64xbf16, #tpu.memory_space<vmem>>, vector<1152x64xbf16>
    %cst_316 = arith.constant dense<0.000000e+00> : vector<128x64xf32>
    %276 = tpu.matmul %274, %275, %cst_316 {dimension_numbers = #tpu.dot_dimension_numbers<[1], [0], [0], [1], [0, 0, 1, 1], [], []>} : vector<128x1152xbf16>, vector<1152x64xbf16>, vector<128x64xf32> -> vector<128x64xf32>
    %277 = tpu.iota {dimensions = array<i32: 1>} : vector<1x64xi32>
    %c8_i32 = arith.constant 8 : i32
    %c0_i32_317 = arith.constant 0 : i32
    %278 = arith.cmpi eq, %c8_i32, %c0_i32_317 : i32
    %c1_i32_318 = arith.constant 1 : i32
    %279 = arith.select %278, %c1_i32_318, %c8_i32 : i32
    %280 = vector.broadcast %279 : i32 to vector<1x64xi32>
    %281 = arith.remsi %277, %280 : vector<1x64xi32>
    %c0_i32_319 = arith.constant 0 : i32
    %282 = vector.broadcast %c0_i32_319 : i32 to vector<1x64xi32>
    %283 = arith.cmpi ne, %281, %282 : vector<1x64xi32>
    %c0_i32_320 = arith.constant 0 : i32
    %284 = vector.broadcast %c0_i32_320 : i32 to vector<1x64xi32>
    %285 = arith.cmpi slt, %281, %284 : vector<1x64xi32>
    %c0_i32_321 = arith.constant 0 : i32
    %286 = arith.cmpi slt, %279, %c0_i32_321 : i32
    %287 = vector.broadcast %286 : i1 to vector<1x64xi1>
    %288 = vector.broadcast %287 : vector<1x64xi1> to vector<1x64xi1>
    %289 = arith.xori %285, %288 : vector<1x64xi1>
    %290 = arith.andi %289, %283 : vector<1x64xi1>
    %291 = vector.broadcast %279 : i32 to vector<1x64xi32>
    %292 = arith.addi %281, %291 : vector<1x64xi32>
    %293 = arith.select %290, %292, %281 : vector<1x64xi1>, vector<1x64xi32>
    %cst_322 = arith.constant dense<0.000000e+00> : vector<64xf32>
    %294 = vector.multi_reduction <add>, %276, %cst_322 [0] : vector<128x64xf32> to vector<64xf32>
    %295 = vector.shape_cast %294 : vector<64xf32> to vector<1x64xf32>
    %cst_323 = arith.constant 0.000000e+00 : f32
    %296 = vector.broadcast %cst_323 : f32 to vector<1x64xf32>
    %c0_i32_324 = arith.constant 0 : i32
    %297 = vector.broadcast %c0_i32_324 : i32 to vector<1x64xi32>
    %298 = arith.cmpi eq, %293, %297 : vector<1x64xi32>
    %cst_325 = arith.constant 0.000000e+00 : f32
    %299 = vector.broadcast %cst_325 : f32 to vector<1x64xf32>
    %300 = arith.select %298, %295, %299 : vector<1x64xi1>, vector<1x64xf32>
    %301 = vector.shape_cast %300 : vector<1x64xf32> to vector<1x1x64xf32>
    %cst_326 = arith.constant dense<0.000000e+00> : vector<1xf32>
    %302 = vector.multi_reduction <add>, %301, %cst_326 [1, 2] : vector<1x1x64xf32> to vector<1xf32>
    %303 = vector.shape_cast %302 : vector<1xf32> to vector<1x1x1xf32>
    %304 = vector.extract %303[0, 0, 0] : f32 from vector<1x1x1xf32>
    %305 = vector.broadcast %304 : f32 to vector<1x64xf32>
    %306 = arith.select %298, %305, %296 : vector<1x64xi1>, vector<1x64xf32>
    %c1_i32_327 = arith.constant 1 : i32
    %307 = vector.broadcast %c1_i32_327 : i32 to vector<1x64xi32>
    %308 = arith.cmpi eq, %293, %307 : vector<1x64xi32>
    %cst_328 = arith.constant 0.000000e+00 : f32
    %309 = vector.broadcast %cst_328 : f32 to vector<1x64xf32>
    %310 = arith.select %308, %295, %309 : vector<1x64xi1>, vector<1x64xf32>
    %311 = vector.shape_cast %310 : vector<1x64xf32> to vector<1x1x64xf32>
    %cst_329 = arith.constant dense<0.000000e+00> : vector<1xf32>
    %312 = vector.multi_reduction <add>, %311, %cst_329 [1, 2] : vector<1x1x64xf32> to vector<1xf32>
    %313 = vector.shape_cast %312 : vector<1xf32> to vector<1x1x1xf32>
    %314 = vector.extract %313[0, 0, 0] : f32 from vector<1x1x1xf32>
    %315 = vector.broadcast %314 : f32 to vector<1x64xf32>
    %316 = arith.select %308, %315, %306 : vector<1x64xi1>, vector<1x64xf32>
    %c2_i32_330 = arith.constant 2 : i32
    %317 = vector.broadcast %c2_i32_330 : i32 to vector<1x64xi32>
    %318 = arith.cmpi eq, %293, %317 : vector<1x64xi32>
    %cst_331 = arith.constant 0.000000e+00 : f32
    %319 = vector.broadcast %cst_331 : f32 to vector<1x64xf32>
    %320 = arith.select %318, %295, %319 : vector<1x64xi1>, vector<1x64xf32>
    %321 = vector.shape_cast %320 : vector<1x64xf32> to vector<1x1x64xf32>
    %cst_332 = arith.constant dense<0.000000e+00> : vector<1xf32>
    %322 = vector.multi_reduction <add>, %321, %cst_332 [1, 2] : vector<1x1x64xf32> to vector<1xf32>
    %323 = vector.shape_cast %322 : vector<1xf32> to vector<1x1x1xf32>
    %324 = vector.extract %323[0, 0, 0] : f32 from vector<1x1x1xf32>
    %325 = vector.broadcast %324 : f32 to vector<1x64xf32>
    %326 = arith.select %318, %325, %316 : vector<1x64xi1>, vector<1x64xf32>
    %c3_i32_333 = arith.constant 3 : i32
    %327 = vector.broadcast %c3_i32_333 : i32 to vector<1x64xi32>
    %328 = arith.cmpi eq, %293, %327 : vector<1x64xi32>
    %cst_334 = arith.constant 0.000000e+00 : f32
    %329 = vector.broadcast %cst_334 : f32 to vector<1x64xf32>
    %330 = arith.select %328, %295, %329 : vector<1x64xi1>, vector<1x64xf32>
    %331 = vector.shape_cast %330 : vector<1x64xf32> to vector<1x1x64xf32>
    %cst_335 = arith.constant dense<0.000000e+00> : vector<1xf32>
    %332 = vector.multi_reduction <add>, %331, %cst_335 [1, 2] : vector<1x1x64xf32> to vector<1xf32>
    %333 = vector.shape_cast %332 : vector<1xf32> to vector<1x1x1xf32>
    %334 = vector.extract %333[0, 0, 0] : f32 from vector<1x1x1xf32>
    %335 = vector.broadcast %334 : f32 to vector<1x64xf32>
    %336 = arith.select %328, %335, %326 : vector<1x64xi1>, vector<1x64xf32>
    %c4_i32_336 = arith.constant 4 : i32
    %337 = vector.broadcast %c4_i32_336 : i32 to vector<1x64xi32>
    %338 = arith.cmpi eq, %293, %337 : vector<1x64xi32>
    %cst_337 = arith.constant 0.000000e+00 : f32
    %339 = vector.broadcast %cst_337 : f32 to vector<1x64xf32>
    %340 = arith.select %338, %295, %339 : vector<1x64xi1>, vector<1x64xf32>
    %341 = vector.shape_cast %340 : vector<1x64xf32> to vector<1x1x64xf32>
    %cst_338 = arith.constant dense<0.000000e+00> : vector<1xf32>
    %342 = vector.multi_reduction <add>, %341, %cst_338 [1, 2] : vector<1x1x64xf32> to vector<1xf32>
    %343 = vector.shape_cast %342 : vector<1xf32> to vector<1x1x1xf32>
    %344 = vector.extract %343[0, 0, 0] : f32 from vector<1x1x1xf32>
    %345 = vector.broadcast %344 : f32 to vector<1x64xf32>
    %346 = arith.select %338, %345, %336 : vector<1x64xi1>, vector<1x64xf32>
    %c5_i32_339 = arith.constant 5 : i32
    %347 = vector.broadcast %c5_i32_339 : i32 to vector<1x64xi32>
    %348 = arith.cmpi eq, %293, %347 : vector<1x64xi32>
    %cst_340 = arith.constant 0.000000e+00 : f32
    %349 = vector.broadcast %cst_340 : f32 to vector<1x64xf32>
    %350 = arith.select %348, %295, %349 : vector<1x64xi1>, vector<1x64xf32>
    %351 = vector.shape_cast %350 : vector<1x64xf32> to vector<1x1x64xf32>
    %cst_341 = arith.constant dense<0.000000e+00> : vector<1xf32>
    %352 = vector.multi_reduction <add>, %351, %cst_341 [1, 2] : vector<1x1x64xf32> to vector<1xf32>
    %353 = vector.shape_cast %352 : vector<1xf32> to vector<1x1x1xf32>
    %354 = vector.extract %353[0, 0, 0] : f32 from vector<1x1x1xf32>
    %355 = vector.broadcast %354 : f32 to vector<1x64xf32>
    %356 = arith.select %348, %355, %346 : vector<1x64xi1>, vector<1x64xf32>
    %c6_i32_342 = arith.constant 6 : i32
    %357 = vector.broadcast %c6_i32_342 : i32 to vector<1x64xi32>
    %358 = arith.cmpi eq, %293, %357 : vector<1x64xi32>
    %cst_343 = arith.constant 0.000000e+00 : f32
    %359 = vector.broadcast %cst_343 : f32 to vector<1x64xf32>
    %360 = arith.select %358, %295, %359 : vector<1x64xi1>, vector<1x64xf32>
    %361 = vector.shape_cast %360 : vector<1x64xf32> to vector<1x1x64xf32>
    %cst_344 = arith.constant dense<0.000000e+00> : vector<1xf32>
    %362 = vector.multi_reduction <add>, %361, %cst_344 [1, 2] : vector<1x1x64xf32> to vector<1xf32>
    %363 = vector.shape_cast %362 : vector<1xf32> to vector<1x1x1xf32>
    %364 = vector.extract %363[0, 0, 0] : f32 from vector<1x1x1xf32>
    %365 = vector.broadcast %364 : f32 to vector<1x64xf32>
    %366 = arith.select %358, %365, %356 : vector<1x64xi1>, vector<1x64xf32>
    %c7_i32 = arith.constant 7 : i32
    %367 = vector.broadcast %c7_i32 : i32 to vector<1x64xi32>
    %368 = arith.cmpi eq, %293, %367 : vector<1x64xi32>
    %cst_345 = arith.constant 0.000000e+00 : f32
    %369 = vector.broadcast %cst_345 : f32 to vector<1x64xf32>
    %370 = arith.select %368, %295, %369 : vector<1x64xi1>, vector<1x64xf32>
    %371 = vector.shape_cast %370 : vector<1x64xf32> to vector<1x1x64xf32>
    %cst_346 = arith.constant dense<0.000000e+00> : vector<1xf32>
    %372 = vector.multi_reduction <add>, %371, %cst_346 [1, 2] : vector<1x1x64xf32> to vector<1xf32>
    %373 = vector.shape_cast %372 : vector<1xf32> to vector<1x1x1xf32>
    %374 = vector.extract %373[0, 0, 0] : f32 from vector<1x1x1xf32>
    %375 = vector.broadcast %374 : f32 to vector<1x64xf32>
    %376 = arith.select %368, %375, %366 : vector<1x64xi1>, vector<1x64xf32>
    %cst_347 = arith.constant 9.765625E-4 : f32
    %377 = vector.broadcast %cst_347 : f32 to vector<1x64xf32>
    %378 = arith.mulf %376, %377 : vector<1x64xf32>
    %379 = vector.broadcast %378 : vector<1x64xf32> to vector<128x64xf32>
    %380 = arith.subf %276, %379 : vector<128x64xf32>
    %381 = arith.mulf %380, %380 : vector<128x64xf32>
    %cst_348 = arith.constant dense<0.000000e+00> : vector<64xf32>
    %382 = vector.multi_reduction <add>, %381, %cst_348 [0] : vector<128x64xf32> to vector<64xf32>
    %383 = vector.shape_cast %382 : vector<64xf32> to vector<1x64xf32>
    %cst_349 = arith.constant 0.000000e+00 : f32
    %384 = vector.broadcast %cst_349 : f32 to vector<1x64xf32>
    %c0_i32_350 = arith.constant 0 : i32
    %385 = vector.broadcast %c0_i32_350 : i32 to vector<1x64xi32>
    %386 = arith.cmpi eq, %293, %385 : vector<1x64xi32>
    %cst_351 = arith.constant 0.000000e+00 : f32
    %387 = vector.broadcast %cst_351 : f32 to vector<1x64xf32>
    %388 = arith.select %386, %383, %387 : vector<1x64xi1>, vector<1x64xf32>
    %389 = vector.shape_cast %388 : vector<1x64xf32> to vector<1x1x64xf32>
    %cst_352 = arith.constant dense<0.000000e+00> : vector<1xf32>
    %390 = vector.multi_reduction <add>, %389, %cst_352 [1, 2] : vector<1x1x64xf32> to vector<1xf32>
    %391 = vector.shape_cast %390 : vector<1xf32> to vector<1x1x1xf32>
    %392 = vector.extract %391[0, 0, 0] : f32 from vector<1x1x1xf32>
    %393 = vector.broadcast %392 : f32 to vector<1x64xf32>
    %394 = arith.select %386, %393, %384 : vector<1x64xi1>, vector<1x64xf32>
    %c1_i32_353 = arith.constant 1 : i32
    %395 = vector.broadcast %c1_i32_353 : i32 to vector<1x64xi32>
    %396 = arith.cmpi eq, %293, %395 : vector<1x64xi32>
    %cst_354 = arith.constant 0.000000e+00 : f32
    %397 = vector.broadcast %cst_354 : f32 to vector<1x64xf32>
    %398 = arith.select %396, %383, %397 : vector<1x64xi1>, vector<1x64xf32>
    %399 = vector.shape_cast %398 : vector<1x64xf32> to vector<1x1x64xf32>
    %cst_355 = arith.constant dense<0.000000e+00> : vector<1xf32>
    %400 = vector.multi_reduction <add>, %399, %cst_355 [1, 2] : vector<1x1x64xf32> to vector<1xf32>
    %401 = vector.shape_cast %400 : vector<1xf32> to vector<1x1x1xf32>
    %402 = vector.extract %401[0, 0, 0] : f32 from vector<1x1x1xf32>
    %403 = vector.broadcast %402 : f32 to vector<1x64xf32>
    %404 = arith.select %396, %403, %394 : vector<1x64xi1>, vector<1x64xf32>
    %c2_i32_356 = arith.constant 2 : i32
    %405 = vector.broadcast %c2_i32_356 : i32 to vector<1x64xi32>
    %406 = arith.cmpi eq, %293, %405 : vector<1x64xi32>
    %cst_357 = arith.constant 0.000000e+00 : f32
    %407 = vector.broadcast %cst_357 : f32 to vector<1x64xf32>
    %408 = arith.select %406, %383, %407 : vector<1x64xi1>, vector<1x64xf32>
    %409 = vector.shape_cast %408 : vector<1x64xf32> to vector<1x1x64xf32>
    %cst_358 = arith.constant dense<0.000000e+00> : vector<1xf32>
    %410 = vector.multi_reduction <add>, %409, %cst_358 [1, 2] : vector<1x1x64xf32> to vector<1xf32>
    %411 = vector.shape_cast %410 : vector<1xf32> to vector<1x1x1xf32>
    %412 = vector.extract %411[0, 0, 0] : f32 from vector<1x1x1xf32>
    %413 = vector.broadcast %412 : f32 to vector<1x64xf32>
    %414 = arith.select %406, %413, %404 : vector<1x64xi1>, vector<1x64xf32>
    %c3_i32_359 = arith.constant 3 : i32
    %415 = vector.broadcast %c3_i32_359 : i32 to vector<1x64xi32>
    %416 = arith.cmpi eq, %293, %415 : vector<1x64xi32>
    %cst_360 = arith.constant 0.000000e+00 : f32
    %417 = vector.broadcast %cst_360 : f32 to vector<1x64xf32>
    %418 = arith.select %416, %383, %417 : vector<1x64xi1>, vector<1x64xf32>
    %419 = vector.shape_cast %418 : vector<1x64xf32> to vector<1x1x64xf32>
    %cst_361 = arith.constant dense<0.000000e+00> : vector<1xf32>
    %420 = vector.multi_reduction <add>, %419, %cst_361 [1, 2] : vector<1x1x64xf32> to vector<1xf32>
    %421 = vector.shape_cast %420 : vector<1xf32> to vector<1x1x1xf32>
    %422 = vector.extract %421[0, 0, 0] : f32 from vector<1x1x1xf32>
    %423 = vector.broadcast %422 : f32 to vector<1x64xf32>
    %424 = arith.select %416, %423, %414 : vector<1x64xi1>, vector<1x64xf32>
    %c4_i32_362 = arith.constant 4 : i32
    %425 = vector.broadcast %c4_i32_362 : i32 to vector<1x64xi32>
    %426 = arith.cmpi eq, %293, %425 : vector<1x64xi32>
    %cst_363 = arith.constant 0.000000e+00 : f32
    %427 = vector.broadcast %cst_363 : f32 to vector<1x64xf32>
    %428 = arith.select %426, %383, %427 : vector<1x64xi1>, vector<1x64xf32>
    %429 = vector.shape_cast %428 : vector<1x64xf32> to vector<1x1x64xf32>
    %cst_364 = arith.constant dense<0.000000e+00> : vector<1xf32>
    %430 = vector.multi_reduction <add>, %429, %cst_364 [1, 2] : vector<1x1x64xf32> to vector<1xf32>
    %431 = vector.shape_cast %430 : vector<1xf32> to vector<1x1x1xf32>
    %432 = vector.extract %431[0, 0, 0] : f32 from vector<1x1x1xf32>
    %433 = vector.broadcast %432 : f32 to vector<1x64xf32>
    %434 = arith.select %426, %433, %424 : vector<1x64xi1>, vector<1x64xf32>
    %c5_i32_365 = arith.constant 5 : i32
    %435 = vector.broadcast %c5_i32_365 : i32 to vector<1x64xi32>
    %436 = arith.cmpi eq, %293, %435 : vector<1x64xi32>
    %cst_366 = arith.constant 0.000000e+00 : f32
    %437 = vector.broadcast %cst_366 : f32 to vector<1x64xf32>
    %438 = arith.select %436, %383, %437 : vector<1x64xi1>, vector<1x64xf32>
    %439 = vector.shape_cast %438 : vector<1x64xf32> to vector<1x1x64xf32>
    %cst_367 = arith.constant dense<0.000000e+00> : vector<1xf32>
    %440 = vector.multi_reduction <add>, %439, %cst_367 [1, 2] : vector<1x1x64xf32> to vector<1xf32>
    %441 = vector.shape_cast %440 : vector<1xf32> to vector<1x1x1xf32>
    %442 = vector.extract %441[0, 0, 0] : f32 from vector<1x1x1xf32>
    %443 = vector.broadcast %442 : f32 to vector<1x64xf32>
    %444 = arith.select %436, %443, %434 : vector<1x64xi1>, vector<1x64xf32>
    %c6_i32_368 = arith.constant 6 : i32
    %445 = vector.broadcast %c6_i32_368 : i32 to vector<1x64xi32>
    %446 = arith.cmpi eq, %293, %445 : vector<1x64xi32>
    %cst_369 = arith.constant 0.000000e+00 : f32
    %447 = vector.broadcast %cst_369 : f32 to vector<1x64xf32>
    %448 = arith.select %446, %383, %447 : vector<1x64xi1>, vector<1x64xf32>
    %449 = vector.shape_cast %448 : vector<1x64xf32> to vector<1x1x64xf32>
    %cst_370 = arith.constant dense<0.000000e+00> : vector<1xf32>
    %450 = vector.multi_reduction <add>, %449, %cst_370 [1, 2] : vector<1x1x64xf32> to vector<1xf32>
    %451 = vector.shape_cast %450 : vector<1xf32> to vector<1x1x1xf32>
    %452 = vector.extract %451[0, 0, 0] : f32 from vector<1x1x1xf32>
    %453 = vector.broadcast %452 : f32 to vector<1x64xf32>
    %454 = arith.select %446, %453, %444 : vector<1x64xi1>, vector<1x64xf32>
    %c7_i32_371 = arith.constant 7 : i32
    %455 = vector.broadcast %c7_i32_371 : i32 to vector<1x64xi32>
    %456 = arith.cmpi eq, %293, %455 : vector<1x64xi32>
    %cst_372 = arith.constant 0.000000e+00 : f32
    %457 = vector.broadcast %cst_372 : f32 to vector<1x64xf32>
    %458 = arith.select %456, %383, %457 : vector<1x64xi1>, vector<1x64xf32>
    %459 = vector.shape_cast %458 : vector<1x64xf32> to vector<1x1x64xf32>
    %cst_373 = arith.constant dense<0.000000e+00> : vector<1xf32>
    %460 = vector.multi_reduction <add>, %459, %cst_373 [1, 2] : vector<1x1x64xf32> to vector<1xf32>
    %461 = vector.shape_cast %460 : vector<1xf32> to vector<1x1x1xf32>
    %462 = vector.extract %461[0, 0, 0] : f32 from vector<1x1x1xf32>
    %463 = vector.broadcast %462 : f32 to vector<1x64xf32>
    %464 = arith.select %456, %463, %454 : vector<1x64xi1>, vector<1x64xf32>
    %cst_374 = arith.constant 9.765625E-4 : f32
    %465 = vector.broadcast %cst_374 : f32 to vector<1x64xf32>
    %466 = arith.mulf %464, %465 : vector<1x64xf32>
    %cst_375 = arith.constant 9.99999974E-6 : f32
    %467 = vector.broadcast %cst_375 : f32 to vector<1x64xf32>
    %468 = arith.addf %466, %467 : vector<1x64xf32>
    %469 = math.rsqrt %468 : vector<1x64xf32>
    %470 = vector.broadcast %469 : vector<1x64xf32> to vector<128x64xf32>
    %471 = arith.mulf %380, %470 : vector<128x64xf32>
    %c0_376 = arith.constant 0 : index
    %c0_377 = arith.constant 0 : index
    %472 = vector.load %arg5[%c0_376, %c0_377] : memref<1x64xf32, #tpu.memory_space<vmem>>, vector<1x64xf32>
    %473 = vector.broadcast %472 : vector<1x64xf32> to vector<128x64xf32>
    %474 = arith.mulf %471, %473 : vector<128x64xf32>
    %c0_378 = arith.constant 0 : index
    %c0_379 = arith.constant 0 : index
    %475 = vector.load %arg6[%c0_378, %c0_379] : memref<1x64xf32, #tpu.memory_space<vmem>>, vector<1x64xf32>
    %476 = vector.broadcast %475 : vector<1x64xf32> to vector<128x64xf32>
    %477 = arith.addf %474, %476 : vector<128x64xf32>
    %cst_380 = arith.constant 0.000000e+00 : f32
    %478 = vector.broadcast %cst_380 : f32 to vector<128x64xf32>
    %479 = arith.cmpf ogt, %477, %478 : vector<128x64xf32>
    %480 = math.exp %477 : vector<128x64xf32>
    %cst_381 = arith.constant 1.000000e+00 : f32
    %481 = vector.broadcast %cst_381 : f32 to vector<128x64xf32>
    %482 = arith.subf %480, %481 : vector<128x64xf32>
    %483 = arith.select %479, %477, %482 : vector<128x64xi1>, vector<128x64xf32>
    %c0_382 = arith.constant 0 : index
    %c0_383 = arith.constant 0 : index
    %484 = vector.load %arg7[%c0_382, %c0_383] : memref<128x64xf32, #tpu.memory_space<vmem>>, vector<128x64xf32>
    tpu.vector_store %arg7[%c0_382, %c0_383], %483 {strides = array<i32>} : memref<128x64xf32, #tpu.memory_space<vmem>>, vector<128x64xf32>,
    return
  }
}

</mosaic_0001>

<bundles_post_ra>
// kernel: tile.39
= control target key start
LH: loop header
LB: loop body
LE: loop exit
PB: predicated region body
PF: predicated region fallthrough
CT: control target
= control target key end

     0   :  { %s67_s10 = smov 56   ;;  %s68_s11 = smov 40   ;;  %vm3_vm0 = vcmask 64512   ;;  %vm9_vm1 = vcmask 523712   ;;  %vm15_vm2 = vcmask 458112   ;;  %vm21_vm3 = vcmask 392512   ;;  %s111_s0 = inlined_call_operand.vmem [shape: f32[8,8], index: 0, kind: input, shape index: {}]   ;;  %s112_s1 = inlined_call_operand.vmem [shape: f32[1,64], index: 1, kind: output, shape index: {}]  }
   0x1   :  { %v53_v0 = vld [vmem:[%s111_s0 + $0x7] sm:$0x1]   ;;  %v55_v1 = vld [vmem:[%s111_s0 + $0x5] sm:$0x1]   ;;  %v57_v2 = vld [vmem:[%s111_s0 + $0x3] sm:$0x1]  }
   0x2   :  { %7 = vrot.lane.b32.xlu0 %v53_v0, %s67_s10  ;;  %19 = vrot.lane.b32.xlu1 %v55_v1, %s68_s11  ;;  %s69_s14 = smov 24   ;;  %v54_v3 = vld [vmem:[%s111_s0 + $0x6] sm:$0x1]   ;;  %v56_v4 = vld [vmem:[%s111_s0 + $0x4] sm:$0x1]   ;;  %s70_s21 = smov 48  }
   0x3   :  { %31 = vrot.lane.b32.xlu2 %v57_v2, %s69_s14  ;;  %v58_v5 = vld [vmem:[%s111_s0 + $0x2] sm:$0x1]   ;;  %s71_s22 = smov 32   ;;  %s72_s23 = smov 16   ;;  %v59_v6 = vld [vmem:[%s111_s0 + $0x1] sm:$0x1]  }
   0x4   :  { %s73_s26 = smov 8   ;;  %v2_v7 = vld [vmem:[%s111_s0] sm:$0x1]   ;;  %vm27_vm4 = vcmask 326912   ;;  %vm33_vm5 = vcmask 261312   ;;  %vm39_vm6 = vcmask 195712  }
   0x5   :  { %4 = vst.msk [vmem:[#allocation0] sm:$0x1] %vm3_vm0, %v2_v7   ;;  %vm45_vm7 = vcmask 130112  }
   0xa   :  { %13 = vrot.lane.b32.xlu0 %v54_v3, %s70_s21  ;;  %25 = vrot.lane.b32.xlu1 %v56_v4, %s71_s22 }
   0xb   :  { %37 = vrot.lane.b32.xlu2 %v58_v5, %s72_s23 }
  0x12   :  { %43 = vrot.lane.b32.xlu0 %v59_v6, %s73_s26 }
  0x5d   :  { %v32_v8 = vpop.permute.xlu2 %31  }
  0x65   :  { %v38_v9 = vpop.permute.xlu2 %37  }
  0x74   :  { %v8_v10 = vpop.permute.xlu0 %7   ;;  %v20_v11 = vpop.permute.xlu1 %19  }
  0x75   :  { %10 = vst.msk [vmem:[#allocation0] sm:$0x1] %vm9_vm1, %v8_v10  }
  0x7c   :  { %v14_v12 = vpop.permute.xlu0 %13   ;;  %v26_v13 = vpop.permute.xlu1 %25  }
  0x7d   :  { %16 = vst.msk [vmem:[#allocation0] sm:$0x1] %vm15_vm2, %v14_v12  }
  0x7e   :  { %22 = vst.msk [vmem:[#allocation0] sm:$0x1] %vm21_vm3, %v20_v11  }
  0x7f   :  { %28 = vst.msk [vmem:[#allocation0] sm:$0x1] %vm27_vm4, %v26_v13  }
  0x80   :  { %34 = vst.msk [vmem:[#allocation0] sm:$0x1] %vm33_vm5, %v32_v8  }
  0x81   :  { %40 = vst.msk [vmem:[#allocation0] sm:$0x1] %vm39_vm6, %v38_v9  }
  0x84   :  { %v44_v14 = vpop.permute.xlu0 %43  }
  0x85   :  { %46 = vst.msk [vmem:[#allocation0] sm:$0x1] %vm45_vm7, %v44_v14  }
  0x8c   :  { %v49_v15 = vld [vmem:[#allocation0] sm:$0x1] }
  0x8d   :  { %52 = vst [vmem:[%s112_s1] sm:$0x1] %v49_v15 }

// kernel: tile.29
= control target key start
LH: loop header
LB: loop body
LE: loop exit
PB: predicated region body
PF: predicated region fallthrough
CT: control target
= control target key end

     0   :  { %s67_s10 = smov 42   ;;  %s68_s11 = smov 30   ;;  %vm3_vm0 = vcmask 48128   ;;  %vm9_vm1 = vcmask 392528   ;;  %vm15_vm2 = vcmask 343328   ;;  %vm21_vm3 = vcmask 294128   ;;  %s111_s0 = inlined_call_operand.vmem [shape: f32[8,6], index: 0, kind: input, shape index: {}]   ;;  %s112_s1 = inlined_call_operand.vmem [shape: f32[1,48], index: 1, kind: output, shape index: {}]  }
   0x1   :  { %v53_v0 = vld [vmem:[%s111_s0 + $0x7] sm:$0x1]   ;;  %v55_v1 = vld [vmem:[%s111_s0 + $0x5] sm:$0x1]   ;;  %v57_v2 = vld [vmem:[%s111_s0 + $0x3] sm:$0x1]  }
   0x2   :  { %7 = vrot.lane.b32.xlu0 %v53_v0, %s67_s10  ;;  %19 = vrot.lane.b32.xlu1 %v55_v1, %s68_s11  ;;  %s69_s14 = smov 18   ;;  %v54_v3 = vld [vmem:[%s111_s0 + $0x6] sm:$0x1]   ;;  %v56_v4 = vld [vmem:[%s111_s0 + $0x4] sm:$0x1]   ;;  %s70_s21 = smov 36  }
   0x3   :  { %31 = vrot.lane.b32.xlu2 %v57_v2, %s69_s14  ;;  %v58_v5 = vld [vmem:[%s111_s0 + $0x2] sm:$0x1]   ;;  %s71_s22 = smov 24   ;;  %s72_s23 = smov 12   ;;  %v59_v6 = vld [vmem:[%s111_s0 + $0x1] sm:$0x1]  }
   0x4   :  { %s73_s26 = smov 6   ;;  %v2_v7 = vld [vmem:[%s111_s0] sm:$0x1]   ;;  %vm27_vm4 = vcmask 244928   ;;  %vm33_vm5 = vcmask 195728   ;;  %vm39_vm6 = vcmask 146528  }
   0x5   :  { %4 = vst.msk [vmem:[#allocation0] sm:$0x1] %vm3_vm0, %v2_v7   ;;  %vm45_vm7 = vcmask 97328  }
   0xa   :  { %13 = vrot.lane.b32.xlu0 %v54_v3, %s70_s21  ;;  %25 = vrot.lane.b32.xlu1 %v56_v4, %s71_s22 }
   0xb   :  { %37 = vrot.lane.b32.xlu2 %v58_v5, %s72_s23 }
  0x12   :  { %43 = vrot.lane.b32.xlu0 %v59_v6, %s73_s26 }
  0x5d   :  { %v32_v8 = vpop.permute.xlu2 %31  }
  0x65   :  { %v38_v9 = vpop.permute.xlu2 %37  }
  0x74   :  { %v8_v10 = vpop.permute.xlu0 %7   ;;  %v20_v11 = vpop.permute.xlu1 %19  }
  0x75   :  { %10 = vst.msk [vmem:[#allocation0] sm:$0x1] %vm9_vm1, %v8_v10  }
  0x7c   :  { %v14_v12 = vpop.permute.xlu0 %13   ;;  %v26_v13 = vpop.permute.xlu1 %25  }
  0x7d   :  { %16 = vst.msk [vmem:[#allocation0] sm:$0x1] %vm15_vm2, %v14_v12  }
  0x7e   :  { %22 = vst.msk [vmem:[#allocation0] sm:$0x1] %vm21_vm3, %v20_v11  }
  0x7f   :  { %28 = vst.msk [vmem:[#allocation0] sm:$0x1] %vm27_vm4, %v26_v13  }
  0x80   :  { %34 = vst.msk [vmem:[#allocation0] sm:$0x1] %vm33_vm5, %v32_v8  }
  0x81   :  { %40 = vst.msk [vmem:[#allocation0] sm:$0x1] %vm39_vm6, %v38_v9  }
  0x84   :  { %v44_v14 = vpop.permute.xlu0 %43  }
  0x85   :  { %46 = vst.msk [vmem:[#allocation0] sm:$0x1] %vm45_vm7, %v44_v14  }
  0x8c   :  { %v49_v15 = vld [vmem:[#allocation0] sm:$0x1] }
  0x8d   :  { %52 = vst [vmem:[%s112_s1] sm:$0x1] %v49_v15 }

// kernel: tile.38
= control target key start
LH: loop header
LB: loop body
LE: loop exit
PB: predicated region body
PF: predicated region fallthrough
CT: control target
= control target key end

     0   :  { %s22_s0 = inlined_call_operand.vmem [shape: f32[8], index: 0, kind: input, shape index: {}]   ;;  %s23_s1 = inlined_call_operand.vmem [shape: f32[8,8], index: 1, kind: output, shape index: {}]  }
   0x1   :  { %v4_v0 = vld [vmem:[%s22_s0] ss:$0 sm:$0xff] }
   0x2   :  { %5 = vst [vmem:[%s23_s1] sm:$0xff] %v4_v0 }

// kernel: tile.28
= control target key start
LH: loop header
LB: loop body
LE: loop exit
PB: predicated region body
PF: predicated region fallthrough
CT: control target
= control target key end

     0   :  { %2 = vsyncpa [#allocation1], 0  ;;  %s48_s8 = smov [#allocation0]   ;;  %s65_s0 = inlined_call_operand.hbm [shape: f32[6], index: 0, kind: input, shape index: {}]   ;;  %s66_s1 = inlined_call_operand.vmem [shape: f32[8,6], index: 1, kind: output, shape index: {}]  }
   0x1   :  { %s8_s0 = sshll.u32 %s65_s0, 4  ;;  %s10_s9 = sshll.u32 %s48_s8, 4  ;;  %s9_s0 = int_to_ptr.hbm [resolvable:$true] %s8_s0  ;;  %s11_s9 = int_to_ptr.vmem [resolvable:$true] %s10_s9 }
   0x2   :  { %13 = dma.hbm_to_vmem [thread:$0]  %s9_s0, 16, %s11_s9, [#allocation1]  }
   0x3   :  { %46 = dma.done.wait [#allocation1], 16  }
   0x4   :  { %47 = vsyncadd [#allocation1], 4294967280  ;;  %v18_v0 = vld [vmem:[#allocation0] ss:$0 sm:$0xff] }
   0x5   :  { %19 = vst [vmem:[%s66_s1] sm:$0xff] %v18_v0 }
   0x6   :  { %20 = vsyncpa [#allocation1], 1 }

// kernel: tile.23
= control target key start
LH: loop header
LB: loop body
LE: loop exit
PB: predicated region body
PF: predicated region fallthrough
CT: control target
= control target key end

     0   :  { %s22_s0 = inlined_call_operand.vmem [shape: f32[6], index: 0, kind: input, shape index: {}]   ;;  %s23_s1 = inlined_call_operand.vmem [shape: f32[8,6], index: 1, kind: output, shape index: {}]  }
   0x1   :  { %v4_v0 = vld [vmem:[%s22_s0] ss:$0 sm:$0xff] }
   0x2   :  { %5 = vst [vmem:[%s23_s1] sm:$0xff] %v4_v0 }

// kernel: conv_block_forward.1
= control target key start
LH: loop header
LB: loop body
LE: loop exit
PB: predicated region body
PF: predicated region fallthrough
CT: control target
= control target key end

     0   :  { %s7147_s28 = smov 4   ;;  %vm38_vm0 = vcmask 319488   ;;  %vm79_vm1 = vcmask 31744   ;;  %v10252_v3 = vmov 0.0   ;;  %vm81_vm2 = vcmask 25600   ;;  %s7150_s9 = smov 6   ;;  %s10244_s0 = inlined_call_operand.vmem [shape: f32[2,8,8,32], index: 0, kind: input, shape index: {}]   ;;  %s10245_s1 = inlined_call_operand.vmem [shape: bf16[1152,48], index: 1, kind: input, shape index: {}]   ;;  %s10246_s2 = inlined_call_operand.vmem [shape: f32[1,48], index: 2, kind: input, shape index: {}]   ;;  %s10247_s3 = inlined_call_operand.vmem [shape: f32[1,48], index: 3, kind: input, shape index: {}]   ;;  %s10248_s4 = inlined_call_operand.vmem [shape: bf16[1152,64], index: 4, kind: input, shape index: {}]   ;;  %s10249_s5 = inlined_call_operand.vmem [shape: f32[1,64], index: 5, kind: input, shape index: {}]   ;;  %s10250_s6 = inlined_call_operand.vmem [shape: f32[1,64], index: 6, kind: input, shape index: {}]   ;;  %s10251_s7 = inlined_call_operand.vmem [shape: f32[128,64], index: 7, kind: output, shape index: {}]  }
   0x1   :  { %v171_v0 = vld [vmem:[%s10244_s0 + $0x40] sm:$0xff]  ;;  %v172_v1 = vld [vmem:[%s10244_s0 + $0x48] sm:$0xff]  ;;  %50 = vst.msk [vmem:[#allocation2 + $0xb0] sm:$0x1] %vm38_vm0, %v10252_v3  ;;  %vm121_vm3 = vcmask 326944   ;;  %vm123_vm4 = vcmask 320800  }
   0x2   :  { %211 = vrot.lane.b32.xlu0 %v171_v0, %s7147_s28  ;;  %213 = vrot.lane.b32.xlu1 %v172_v1, %s7147_s28  ;;  %v164_v2 = vld [vmem:[%s10244_s0 + $0x8] sm:$0xff]  ;;  %70 = vst.msk [vmem:[#allocation2 + $0xb9] sm:$0x1] %vm38_vm0, %v10252_v3  ;;  %v6790_v4 = vld [vmem:[%s10245_s1 + $0x38] sm:$0xff]  ;;  %vm244_vm5 = vcmask 293920   ;;  %vm293_vm6 = vcmask 322560  }
   0x3   :  { %197 = vrot.lane.b32.xlu2 %v164_v2, %s7147_s28  ;;  %103 = vst.msk [vmem:[#allocation2 + $0xb0] sm:$0xff] %vm79_vm1, %v10252_v3  ;;  %v6798_v5 = vld [vmem:[%s10245_s1 + $0x78] sm:$0xff]  ;;  %v163_v6 = vld [vmem:[%s10244_s0] sm:$0xff]  ;;  %v173_v7 = vld [vmem:[%s10244_s0 + $0x50] sm:$0xff]  ;;  %6999 = vmatpush.bf16.msra.mxu2 %v6790_v4  ;;  %vm310_vm7 = vcmask 1043776   ;;  %v10254_v2 = vmov 0  }
   0x4   :  { %104 = vst.msk [vmem:[#allocation2 + $0xb8] sm:$0x3] %vm81_vm2, %v10252_v3  ;;  %7007 = vmatpush.bf16.msra.mxu3 %v6798_v5  ;;  %v6789_v8 = vld [vmem:[%s10245_s1 + $0x30] sm:$0xff]  ;;  %1864 = vmatpush.bf16.msra.mxu0 %v6790_v4  ;;  %v6788_v11 = vld [vmem:[%s10245_s1 + $0x28] sm:$0xff]  ;;  %v175_v13 = vld [vmem:[%s10244_s0 + $0x60] sm:$0xff]  ;;  %vm27_vm8 = vcmask 326656  }
   0x5   :  { %145 = vst.msk [vmem:[#allocation2 + $0xb0] sm:$0xff] %vm121_vm3, %v10252_v3  ;;  %v165_v9 = vld [vmem:[%s10244_s0 + $0x10] sm:$0xff]  ;;  %1913 = vmatpush.bf16.msra.mxu1 %v6798_v5  ;;  %v6796_v12 = vld [vmem:[%s10245_s1 + $0x68] sm:$0xff]  ;;  %v174_v14 = vld [vmem:[%s10244_s0 + $0x58] sm:$0xff]  ;;  %vm29_vm9 = vcmask 320512   ;;  %vm2341_vm10 = vcmask 392192  }
   0x6   :  { %146 = vst.msk [vmem:[#allocation2 + $0xb8] sm:$0x3] %vm123_vm4, %v10252_v3  ;;  %v6797_v10 = vld [vmem:[%s10245_s1 + $0x70] sm:$0xff]  ;;  %v166_v15 = vld [vmem:[%s10244_s0 + $0x18] sm:$0xff]  ;;  %v167_v16 = vld [vmem:[%s10244_s0 + $0x20] sm:$0xff] }
   0x7   :  { %40 = vst.msk [vmem:[#allocation2 + $0x10] sm:$0x1] %vm38_vm0, %v10252_v3  ;;  %7000 = vmatpush.bf16.msra.mxu2 %v6789_v8  ;;  %v176_v17 = vld [vmem:[%s10244_s0 + $0x68] sm:$0xff]  ;;  %v177_v18 = vld [vmem:[%s10244_s0 + $0x70] sm:$0xff]  ;;  %v6787_v21 = vld [vmem:[%s10245_s1 + $0x20] sm:$0xff] }
   0x8   :  { %41 = vst.msk [vmem:[#allocation2 + $0x20] sm:$0x1] %vm38_vm0, %v10252_v3  ;;  %7008 = vmatpush.bf16.msra.mxu3 %v6797_v10  ;;  %1865 = vmatpush.bf16.msra.mxu0 %v6789_v8  ;;  %v169_v19 = vld [vmem:[%s10244_s0 + $0x30] sm:$0xff]  ;;  %v168_v20 = vld [vmem:[%s10244_s0 + $0x28] sm:$0xff]  ;;  %v6795_v22 = vld [vmem:[%s10245_s1 + $0x60] sm:$0xff] }
   0x9   :  { %42 = vst.msk [vmem:[#allocation2 + $0x30] sm:$0x1] %vm38_vm0, %v10252_v3  ;;  %1914 = vmatpush.bf16.msra.mxu1 %v6797_v10  ;;  %v6786_v23 = vld [vmem:[%s10245_s1 + $0x18] sm:$0xff]  ;;  %v6785_v25 = vld [vmem:[%s10245_s1 + $0x10] sm:$0xff]  ;;  %v6784_v27 = vld [vmem:[%s10245_s1 + $0x8] sm:$0xff] }
   0xa   :  { %195 = vrot.lane.b32.xlu0 %v163_v6, %s7147_s28  ;;  %215 = vrot.lane.b32.xlu1 %v173_v7, %s7147_s28  ;;  %43 = vst.msk [vmem:[#allocation2 + $0x40] sm:$0x1] %vm38_vm0, %v10252_v3  ;;  %v6794_v24 = vld [vmem:[%s10245_s1 + $0x58] sm:$0xff]  ;;  %v6793_v26 = vld [vmem:[%s10245_s1 + $0x50] sm:$0xff] }
   0xb   :  { %199 = vrot.lane.b32.xlu2 %v165_v9, %s7147_s28  ;;  %44 = vst.msk [vmem:[#allocation2 + $0x50] sm:$0x1] %vm38_vm0, %v10252_v3  ;;  %7001 = vmatpush.bf16.msra.mxu2 %v6788_v11  ;;  %v6792_v28 = vld [vmem:[%s10245_s1 + $0x48] sm:$0xff]  ;;  %v6783_v61 = vld [vmem:[%s10245_s1] sm:$0xff]  ;;  %v6806_v4 = vld [vmem:[%s10245_s1 + $0xb8] sm:$0xff] }
   0xc   :  { %45 = vst.msk [vmem:[#allocation2 + $0x60] sm:$0x1] %vm38_vm0, %v10252_v3  ;;  %7009 = vmatpush.bf16.msra.mxu3 %v6796_v12  ;;  %1866 = vmatpush.bf16.msra.mxu0 %v6788_v11  ;;  %v6791_v62 = vld [vmem:[%s10245_s1 + $0x40] sm:$0xff]  ;;  %v170_v5 = vld [vmem:[%s10244_s0 + $0x38] sm:$0xff] }
   0xd   :  { %46 = vst.msk [vmem:[#allocation2 + $0x70] sm:$0x1] %vm38_vm0, %v10252_v3  ;;  %1915 = vmatpush.bf16.msra.mxu1 %v6796_v12  ;;  %v6814_v6 = vld [vmem:[%s10245_s1 + $0xf8] sm:$0xff] }
   0xe   :  { %47 = vst.msk [vmem:[#allocation2 + $0x80] sm:$0x1] %vm38_vm0, %v10252_v3 }
   0xf   :  { %51 = vst.msk [vmem:[#allocation2 + $0xc0] sm:$0x1] %vm38_vm0, %v10252_v3  ;;  %7002 = vmatpush.bf16.msra.mxu2 %v6787_v21 }
  0x10   :  { %52 = vst.msk [vmem:[#allocation2 + $0xd0] sm:$0x1] %vm38_vm0, %v10252_v3  ;;  %7010 = vmatpush.bf16.msra.mxu3 %v6795_v22  ;;  %1867 = vmatpush.bf16.msra.mxu0 %v6787_v21 }
  0x11   :  { %53 = vst.msk [vmem:[#allocation2 + $0xe0] sm:$0x1] %vm38_vm0, %v10252_v3  ;;  %1916 = vmatpush.bf16.msra.mxu1 %v6795_v22 }
  0x12   :  { %219 = vrot.lane.b32.xlu1 %v175_v13, %s7147_s28  ;;  %217 = vrot.lane.b32.xlu0 %v174_v14, %s7147_s28  ;;  %54 = vst.msk [vmem:[#allocation2 + $0xf0] sm:$0x1] %vm38_vm0, %v10252_v3 }
  0x13   :  { %201 = vrot.lane.b32.xlu2 %v166_v15, %s7147_s28  ;;  %55 = vst.msk [vmem:[#allocation2 + $0x100] sm:$0x1] %vm38_vm0, %v10252_v3  ;;  %7003 = vmatpush.bf16.msra.mxu2 %v6786_v23 }
  0x14   :  { %56 = vst.msk [vmem:[#allocation2 + $0x110] sm:$0x1] %vm38_vm0, %v10252_v3  ;;  %7011 = vmatpush.bf16.msra.mxu3 %v6794_v24  ;;  %1868 = vmatpush.bf16.msra.mxu0 %v6786_v23 }
  0x15   :  { %57 = vst.msk [vmem:[#allocation2 + $0x120] sm:$0x1] %vm38_vm0, %v10252_v3  ;;  %1917 = vmatpush.bf16.msra.mxu1 %v6794_v24 }
  0x16   :  { %60 = vst.msk [vmem:[#allocation2 + $0x19] sm:$0x1] %vm38_vm0, %v10252_v3 }
  0x17   :  { %61 = vst.msk [vmem:[#allocation2 + $0x29] sm:$0x1] %vm38_vm0, %v10252_v3  ;;  %7004 = vmatpush.bf16.msra.mxu2 %v6785_v25 }
  0x18   :  { %62 = vst.msk [vmem:[#allocation2 + $0x39] sm:$0x1] %vm38_vm0, %v10252_v3  ;;  %7012 = vmatpush.bf16.msra.mxu3 %v6793_v26  ;;  %1869 = vmatpush.bf16.msra.mxu0 %v6785_v25 }
  0x19   :  { %63 = vst.msk [vmem:[#allocation2 + $0x49] sm:$0x1] %vm38_vm0, %v10252_v3  ;;  %1918 = vmatpush.bf16.msra.mxu1 %v6793_v26 }
  0x1a   :  { %203 = vrot.lane.b32.xlu0 %v167_v16, %s7147_s28  ;;  %221 = vrot.lane.b32.xlu1 %v176_v17, %s7147_s28  ;;  %64 = vst.msk [vmem:[#allocation2 + $0x59] sm:$0x1] %vm38_vm0, %v10252_v3  ;;  %v6805_v17 = vld [vmem:[%s10245_s1 + $0xb0] sm:$0xff] }
  0x1b   :  { %223 = vrot.lane.b32.xlu2 %v177_v18, %s7147_s28  ;;  %65 = vst.msk [vmem:[#allocation2 + $0x69] sm:$0x1] %vm38_vm0, %v10252_v3  ;;  %7005 = vmatpush.bf16.msra.mxu2 %v6784_v27  ;;  %v6813_v18 = vld [vmem:[%s10245_s1 + $0xf0] sm:$0xff] }
  0x1c   :  { %66 = vst.msk [vmem:[#allocation2 + $0x79] sm:$0x1] %vm38_vm0, %v10252_v3  ;;  %7013 = vmatpush.bf16.msra.mxu3 %v6792_v28  ;;  %1870 = vmatpush.bf16.msra.mxu0 %v6784_v27 }
  0x1d   :  { %67 = vst.msk [vmem:[#allocation2 + $0x89] sm:$0x1] %vm38_vm0, %v10252_v3  ;;  %1919 = vmatpush.bf16.msra.mxu1 %v6792_v28 }
  0x1e   :  { %71 = vst.msk [vmem:[#allocation2 + $0xc9] sm:$0x1] %vm38_vm0, %v10252_v3 }
  0x1f   :  { %72 = vst.msk [vmem:[#allocation2 + $0xd9] sm:$0x1] %vm38_vm0, %v10252_v3  ;;  %7006 = vmatpush.bf16.msra.mxu2 %v6783_v61 }
  0x20   :  { %73 = vst.msk [vmem:[#allocation2 + $0xe9] sm:$0x1] %vm38_vm0, %v10252_v3  ;;  %7014 = vmatpush.bf16.msra.mxu3 %v6791_v62  ;;  %1871 = vmatpush.bf16.msra.mxu0 %v6783_v61 }
  0x21   :  { %74 = vst.msk [vmem:[#allocation2 + $0xf9] sm:$0x1] %vm38_vm0, %v10252_v3  ;;  %1920 = vmatpush.bf16.msra.mxu1 %v6791_v62 }
  0x22   :  { %207 = vrot.lane.b32.xlu1 %v169_v19, %s7147_s28  ;;  %205 = vrot.lane.b32.xlu0 %v168_v20, %s7147_s28  ;;  %75 = vst.msk [vmem:[#allocation2 + $0x109] sm:$0x1] %vm38_vm0, %v10252_v3  ;;  %v6822_v19 = vld [vmem:[%s10245_s1 + $0x138] sm:$0xff] }
  0x23   :  { %76 = vst.msk [vmem:[#allocation2 + $0x119] sm:$0x1] %vm38_vm0, %v10252_v3  ;;  %209 = vrot.lane.b32.xlu2 %v170_v5, %s7147_s28  ;;  %1962 = vmatpush.bf16.msrb.mxu2 %v6806_v4 }
  0x24   :  { %77 = vst.msk [vmem:[#allocation2 + $0x129] sm:$0x1] %vm38_vm0, %v10252_v3  ;;  %2011 = vmatpush.bf16.msrb.mxu3 %v6814_v6  ;;  %2060 = vmatpush.bf16.msrb.mxu0 %v6822_v19 }
  0x25   :  { %83 = vst.msk [vmem:[#allocation2 + $0x10] sm:$0xff] %vm79_vm1, %v10252_v3 }
  0x26   :  { %84 = vst.msk [vmem:[#allocation2 + $0x18] sm:$0x3] %vm81_vm2, %v10252_v3 }
  0x27   :  { %85 = vst.msk [vmem:[#allocation2 + $0x20] sm:$0xff] %vm79_vm1, %v10252_v3  ;;  %1963 = vmatpush.bf16.msrb.mxu2 %v6805_v17 }
  0x28   :  { %86 = vst.msk [vmem:[#allocation2 + $0x28] sm:$0x3] %vm81_vm2, %v10252_v3  ;;  %2012 = vmatpush.bf16.msrb.mxu3 %v6813_v18 }
  0x29   :  { %87 = vst.msk [vmem:[#allocation2 + $0x30] sm:$0xff] %vm79_vm1, %v10252_v3 }
  0x2a   :  { %88 = vst.msk [vmem:[#allocation2 + $0x38] sm:$0x3] %vm81_vm2, %v10252_v3 }
  0x2b   :  { %89 = vst.msk [vmem:[#allocation2 + $0x40] sm:$0xff] %vm79_vm1, %v10252_v3 }
  0x2c   :  { %90 = vst.msk [vmem:[#allocation2 + $0x48] sm:$0x3] %vm81_vm2, %v10252_v3 }
  0x2d   :  { %91 = vst.msk [vmem:[#allocation2 + $0x50] sm:$0xff] %vm79_vm1, %v10252_v3 }
  0x2e   :  { %92 = vst.msk [vmem:[#allocation2 + $0x58] sm:$0x3] %vm81_vm2, %v10252_v3 }
  0x2f   :  { %93 = vst.msk [vmem:[#allocation2 + $0x60] sm:$0xff] %vm79_vm1, %v10252_v3 }
  0x30   :  { %94 = vst.msk [vmem:[#allocation2 + $0x68] sm:$0x3] %vm81_vm2, %v10252_v3 }
  0x31   :  { %95 = vst.msk [vmem:[#allocation2 + $0x70] sm:$0xff] %vm79_vm1, %v10252_v3 }
  0x32   :  { %96 = vst.msk [vmem:[#allocation2 + $0x78] sm:$0x3] %vm81_vm2, %v10252_v3 }
  0x33   :  { %97 = vst.msk [vmem:[#allocation2 + $0x80] sm:$0xff] %vm79_vm1, %v10252_v3 }
  0x34   :  { %98 = vst.msk [vmem:[#allocation2 + $0x88] sm:$0x3] %vm81_vm2, %v10252_v3 }
  0x35   :  { %105 = vst.msk [vmem:[#allocation2 + $0xc0] sm:$0xff] %vm79_vm1, %v10252_v3 }
  0x36   :  { %106 = vst.msk [vmem:[#allocation2 + $0xc8] sm:$0x3] %vm81_vm2, %v10252_v3 }
  0x37   :  { %107 = vst.msk [vmem:[#allocation2 + $0xd0] sm:$0xff] %vm79_vm1, %v10252_v3 }
  0x38   :  { %108 = vst.msk [vmem:[#allocation2 + $0xd8] sm:$0x3] %vm81_vm2, %v10252_v3 }
  0x39   :  { %109 = vst.msk [vmem:[#allocation2 + $0xe0] sm:$0xff] %vm79_vm1, %v10252_v3 }
  0x3a   :  { %110 = vst.msk [vmem:[#allocation2 + $0xe8] sm:$0x3] %vm81_vm2, %v10252_v3 }
  0x3b   :  { %111 = vst.msk [vmem:[#allocation2 + $0xf0] sm:$0xff] %vm79_vm1, %v10252_v3 }
  0x3c   :  { %112 = vst.msk [vmem:[#allocation2 + $0xf8] sm:$0x3] %vm81_vm2, %v10252_v3 }
  0x3d   :  { %113 = vst.msk [vmem:[#allocation2 + $0x100] sm:$0xff] %vm79_vm1, %v10252_v3 }
  0x3e   :  { %114 = vst.msk [vmem:[#allocation2 + $0x108] sm:$0x3] %vm81_vm2, %v10252_v3 }
  0x3f   :  { %115 = vst.msk [vmem:[#allocation2 + $0x110] sm:$0xff] %vm79_vm1, %v10252_v3 }
  0x40   :  { %116 = vst.msk [vmem:[#allocation2 + $0x118] sm:$0x3] %vm81_vm2, %v10252_v3 }
  0x41   :  { %117 = vst.msk [vmem:[#allocation2 + $0x120] sm:$0xff] %vm79_vm1, %v10252_v3 }
  0x42   :  { %118 = vst.msk [vmem:[#allocation2 + $0x128] sm:$0x3] %vm81_vm2, %v10252_v3 }
  0x43   :  { %125 = vst.msk [vmem:[#allocation2 + $0x10] sm:$0xff] %vm121_vm3, %v10252_v3 }
  0x44   :  { %126 = vst.msk [vmem:[#allocation2 + $0x18] sm:$0x3] %vm123_vm4, %v10252_v3 }
  0x45   :  { %127 = vst.msk [vmem:[#allocation2 + $0x20] sm:$0xff] %vm121_vm3, %v10252_v3 }
  0x46   :  { %128 = vst.msk [vmem:[#allocation2 + $0x28] sm:$0x3] %vm123_vm4, %v10252_v3 }
  0x47   :  { %129 = vst.msk [vmem:[#allocation2 + $0x30] sm:$0xff] %vm121_vm3, %v10252_v3 }
  0x48   :  { %130 = vst.msk [vmem:[#allocation2 + $0x38] sm:$0x3] %vm123_vm4, %v10252_v3 }
  0x49   :  { %131 = vst.msk [vmem:[#allocation2 + $0x40] sm:$0xff] %vm121_vm3, %v10252_v3 }
  0x4a   :  { %132 = vst.msk [vmem:[#allocation2 + $0x48] sm:$0x3] %vm123_vm4, %v10252_v3 }
  0x4b   :  { %133 = vst.msk [vmem:[#allocation2 + $0x50] sm:$0xff] %vm121_vm3, %v10252_v3 }
  0x4c   :  { %134 = vst.msk [vmem:[#allocation2 + $0x58] sm:$0x3] %vm123_vm4, %v10252_v3 }
  0x4d   :  { %135 = vst.msk [vmem:[#allocation2 + $0x60] sm:$0xff] %vm121_vm3, %v10252_v3 }
  0x4e   :  { %136 = vst.msk [vmem:[#allocation2 + $0x68] sm:$0x3] %vm123_vm4, %v10252_v3 }
  0x4f   :  { %137 = vst.msk [vmem:[#allocation2 + $0x70] sm:$0xff] %vm121_vm3, %v10252_v3 }
  0x50   :  { %138 = vst.msk [vmem:[#allocation2 + $0x78] sm:$0x3] %vm123_vm4, %v10252_v3 }
  0x51   :  { %139 = vst.msk [vmem:[#allocation2 + $0x80] sm:$0xff] %vm121_vm3, %v10252_v3 }
  0x52   :  { %140 = vst.msk [vmem:[#allocation2 + $0x88] sm:$0x3] %vm123_vm4, %v10252_v3 }
  0x53   :  { %147 = vst.msk [vmem:[#allocation2 + $0xc0] sm:$0xff] %vm121_vm3, %v10252_v3 }
  0x54   :  { %148 = vst.msk [vmem:[#allocation2 + $0xc8] sm:$0x3] %vm123_vm4, %v10252_v3 }
  0x55   :  { %149 = vst.msk [vmem:[#allocation2 + $0xd0] sm:$0xff] %vm121_vm3, %v10252_v3 }
  0x56   :  { %150 = vst.msk [vmem:[#allocation2 + $0xd8] sm:$0x3] %vm123_vm4, %v10252_v3 }
  0x57   :  { %151 = vst.msk [vmem:[#allocation2 + $0xe0] sm:$0xff] %vm121_vm3, %v10252_v3 }
  0x58   :  { %152 = vst.msk [vmem:[#allocation2 + $0xe8] sm:$0x3] %vm123_vm4, %v10252_v3 }
  0x59   :  { %153 = vst.msk [vmem:[#allocation2 + $0xf0] sm:$0xff] %vm121_vm3, %v10252_v3 }
  0x5a   :  { %154 = vst.msk [vmem:[#allocation2 + $0xf8] sm:$0x3] %vm123_vm4, %v10252_v3 }
  0x5b   :  { %155 = vst.msk [vmem:[#allocation2 + $0x100] sm:$0xff] %vm121_vm3, %v10252_v3 }
  0x5c   :  { %156 = vst.msk [vmem:[#allocation2 + $0x108] sm:$0x3] %vm123_vm4, %v10252_v3 }
  0x5d   :  { %157 = vst.msk [vmem:[#allocation2 + $0x110] sm:$0xff] %vm121_vm3, %v10252_v3  ;;  %v198_v29 = vpop.permute.xlu2 %197 }
  0x5e   :  { %158 = vst.msk [vmem:[#allocation2 + $0x118] sm:$0x3] %vm123_vm4, %v10252_v3 }
  0x5f   :  { %159 = vst.msk [vmem:[#allocation2 + $0x120] sm:$0xff] %vm121_vm3, %v10252_v3 }
  0x60   :  { %160 = vst.msk [vmem:[#allocation2 + $0x128] sm:$0x3] %vm123_vm4, %v10252_v3 }
  0x61   :  { %246 = vst.msk [vmem:[#allocation2 + $0x21] sm:$0xff] %vm244_vm5, %v198_v29 }
  0x62   :  { %31 = vst.msk [vmem:[#allocation2 + $0xa0] sm:$0xff] %vm27_vm8, %v10252_v3 }
  0x63   :  { %49 = vst.msk [vmem:[#allocation2 + $0xa0] sm:$0x1] %vm38_vm0, %v10252_v3 }
  0x64   :  { %101 = vst.msk [vmem:[#allocation2 + $0xa0] sm:$0xff] %vm79_vm1, %v10252_v3 }
  0x65   :  { %143 = vst.msk [vmem:[#allocation2 + $0xa0] sm:$0xff] %vm121_vm3, %v10252_v3  ;;  %v200_v20 = vpop.permute.xlu2 %199 }
  0x66   :  { %28 = vst.msk [vmem:[#allocation2] sm:$0xff] %vm27_vm8, %v10252_v3 }
  0x67   :  { %34 = vst.msk [vmem:[#allocation2 + $0x90] sm:$0xff] %vm27_vm8, %v10252_v3 }
  0x68   :  { %v263_v58 = vld [vmem:[#allocation2 + $0x20] sm:$0xff]  ;;  %36 = vst.msk [vmem:[#allocation2 + $0x130] sm:$0xff] %vm27_vm8, %v10252_v3 }
  0x69   :  { %v329_v59 = vld [vmem:[#allocation2 + $0x21] sm:$0xff]  ;;  %v279_v63 = vpack.c.bf16 %v263_v58, %v263_v58  ;;  %32 = vst.msk [vmem:[#allocation2 + $0xa8] sm:$0x3] %vm29_vm9, %v10252_v3 }
  0x6a   :  { %v393_v60 = vld [vmem:[#allocation2 + $0x22] sm:$0xff]  ;;  %v345_v0 = vpack.c.bf16 %v329_v59, %v329_v59  ;;  %69 = vst.msk [vmem:[#allocation2 + $0xa9] sm:$0x1] %vm38_vm0, %v10252_v3 }
  0x6b   :  { %v409_v1 = vpack.c.bf16 %v393_v60, %v393_v60  ;;  %488 = vst.msk [vmem:[#allocation3 + $0x30] sm:$0xf] %vm293_vm6, %v279_v63 }
  0x6c   :  { %552 = vst.msk [vmem:[#allocation3 + $0x34] sm:$0xf] %vm293_vm6, %v345_v0  ;;  %v269_v7 = vld [vmem:[#allocation2 + $0xa0] sm:$0xff] }
  0x6d   :  { %616 = vst.msk [vmem:[#allocation3 + $0x38] sm:$0xf] %vm293_vm6, %v409_v1  ;;  %v285_v8 = vpack.c.bf16 %v269_v7, %v269_v7 }
  0x6e   :  { %680 = vst.msk [vmem:[#allocation3 + $0x18] sm:$0xf] %vm293_vm6, %v279_v63 }
  0x6f   :  { %696 = vst.msk [vmem:[#allocation3 + $0x18] sm:$0xf] %vm310_vm7, %v10254_v2 }
  0x70   :  { %744 = vst.msk [vmem:[#allocation3 + $0x1c] sm:$0xf] %vm293_vm6, %v345_v0 }
  0x71   :  { %760 = vst.msk [vmem:[#allocation3 + $0x1c] sm:$0xf] %vm310_vm7, %v10254_v2 }
  0x72   :  { %808 = vst.msk [vmem:[#allocation3 + $0x20] sm:$0xf] %vm293_vm6, %v409_v1 }
  0x73   :  { %824 = vst.msk [vmem:[#allocation3 + $0x20] sm:$0xf] %vm310_vm7, %v10254_v2 }
  0x74   :  { %v212_v30 = vpop.permute.xlu0 %211  ;;  %v214_v31 = vpop.permute.xlu1 %213  ;;  %296 = vst.msk [vmem:[#allocation3 + $0x48] sm:$0xf] %vm293_vm6, %v279_v63 }
  0x75   :  { %253 = vst.msk [vmem:[#allocation2 + $0xb1] sm:$0xff] %vm244_vm5, %v212_v30  ;;  %v202_v63 = vpop.permute.xlu2 %201 }
  0x76   :  { %254 = vst.msk [vmem:[#allocation2 + $0xc1] sm:$0xff] %vm244_vm5, %v214_v31 }
  0x77   :  { %361 = vst.msk [vmem:[#allocation3 + $0x4c] sm:$0xf] %vm293_vm6, %v345_v0 }
  0x78   :  { %425 = vst.msk [vmem:[#allocation3 + $0x50] sm:$0xf] %vm293_vm6, %v409_v1 }
  0x79   :  { %504 = vst.msk [vmem:[#allocation3 + $0x30] sm:$0xf] %vm310_vm7, %v10254_v2 }
  0x7a   :  { %568 = vst.msk [vmem:[#allocation3 + $0x34] sm:$0xf] %vm310_vm7, %v10254_v2 }
  0x7b   :  { %632 = vst.msk [vmem:[#allocation3 + $0x38] sm:$0xf] %vm310_vm7, %v10254_v2 }
  0x7c   :  { %v270_v32 = vld [vmem:[#allocation2 + $0xb0] sm:$0xff]  ;;  %v196_v34 = vpop.permute.xlu0 %195  ;;  %v216_v35 = vpop.permute.xlu1 %215  ;;  %313 = vst.msk [vmem:[#allocation3 + $0x48] sm:$0xf] %vm310_vm7, %v10254_v2 }
  0x7d   :  { %v336_v33 = vld [vmem:[#allocation2 + $0xb1] sm:$0xff]  ;;  %v286_v36 = vpack.c.bf16 %v270_v32, %v270_v32  ;;  %v271_v37 = vld [vmem:[#allocation2 + $0xc0] sm:$0xff]  ;;  %245 = vst.msk [vmem:[#allocation2 + $0x11] sm:$0xff] %vm244_vm5, %v196_v34 }
  0x7e   :  { %v337_v38 = vld [vmem:[#allocation2 + $0xc1] sm:$0xff]  ;;  %v287_v40 = vpack.c.bf16 %v271_v37, %v271_v37  ;;  %255 = vst.msk [vmem:[#allocation2 + $0xd1] sm:$0xff] %vm244_vm5, %v216_v35  ;;  %v400_v43 = vld [vmem:[#allocation2 + $0xb2] sm:$0xff]  ;;  %v352_v44 = vpack.c.bf16 %v336_v33, %v336_v33 }
  0x7f   :  { %v401_v39 = vld [vmem:[#allocation2 + $0xc2] sm:$0xff]  ;;  %v353_v41 = vpack.c.bf16 %v337_v38, %v337_v38  ;;  %303 = vst.msk [vmem:[#allocation3 + $0x144] sm:$0xf] %vm293_vm6, %v286_v36  ;;  %v416_v45 = vpack.c.bf16 %v400_v43, %v400_v43 }
  0x80   :  { %v417_v42 = vpack.c.bf16 %v401_v39, %v401_v39  ;;  %688 = vst.msk [vmem:[#allocation3 + $0x138] sm:$0xf] %vm293_vm6, %v287_v40 }
  0x81   :  { %752 = vst.msk [vmem:[#allocation3 + $0x13c] sm:$0xf] %vm293_vm6, %v353_v41 }
  0x82   :  { %816 = vst.msk [vmem:[#allocation3 + $0x140] sm:$0xf] %vm293_vm6, %v417_v42 }
  0x83   :  { %304 = vst.msk [vmem:[#allocation3 + $0x168] sm:$0xf] %vm293_vm6, %v287_v40  ;;  %v5565_v60 = vld [vmem:[#allocation3 + $0x48] sm:$0xf] }
  0x84   :  { %368 = vst.msk [vmem:[#allocation3 + $0x148] sm:$0xf] %vm293_vm6, %v352_v44  ;;  %v392_v46 = vld [vmem:[#allocation2 + $0x12] sm:$0xff]  ;;  %v220_v21 = vpop.permute.xlu1 %219  ;;  %v218_v22 = vpop.permute.xlu0 %217 }
  0x85   :  { %369 = vst.msk [vmem:[#allocation3 + $0x16c] sm:$0xf] %vm293_vm6, %v353_v41  ;;  %v262_v47 = vld [vmem:[#allocation2 + $0x10] sm:$0xff]  ;;  %v408_v48 = vpack.c.bf16 %v392_v46, %v392_v46 }
  0x86   :  { %432 = vst.msk [vmem:[#allocation3 + $0x14c] sm:$0xf] %vm293_vm6, %v416_v45  ;;  %v328_v49 = vld [vmem:[#allocation2 + $0x11] sm:$0xff]  ;;  %v278_v50 = vpack.c.bf16 %v262_v47, %v262_v47 }
  0x87   :  { %433 = vst.msk [vmem:[#allocation3 + $0x170] sm:$0xf] %vm293_vm6, %v417_v42  ;;  %v272_v51 = vld [vmem:[#allocation2 + $0xd0] sm:$0xff]  ;;  %v344_v52 = vpack.c.bf16 %v328_v49, %v328_v49 }
  0x88   :  { %495 = vst.msk [vmem:[#allocation3 + $0x12c] sm:$0xf] %vm293_vm6, %v286_v36  ;;  %v338_v53 = vld [vmem:[#allocation2 + $0xd1] sm:$0xff]  ;;  %v288_v55 = vpack.c.bf16 %v272_v51, %v272_v51  ;;  %v6804_v51 = vld [vmem:[%s10245_s1 + $0xa8] sm:$0xff] }
  0x89   :  { %496 = vst.msk [vmem:[#allocation3 + $0x150] sm:$0xf] %vm293_vm6, %v287_v40  ;;  %v402_v54 = vld [vmem:[#allocation2 + $0xd2] sm:$0xff]  ;;  %v354_v56 = vpack.c.bf16 %v338_v53, %v338_v53  ;;  %1964 = vmatpush.bf16.msrb.mxu2 %v6804_v51 }
  0x8a   :  { %559 = vst.msk [vmem:[#allocation3 + $0x130] sm:$0xf] %vm293_vm6, %v352_v44  ;;  %v418_v57 = vpack.c.bf16 %v402_v54, %v402_v54  ;;  %v6821_v53 = vld [vmem:[%s10245_s1 + $0x130] sm:$0xff]  ;;  %v178_v51 = vld [vmem:[%s10244_s0 + $0x78] sm:$0xff] }
  0x8b   :  { %560 = vst.msk [vmem:[#allocation3 + $0x154] sm:$0xf] %vm293_vm6, %v353_v41  ;;  %2061 = vmatpush.bf16.msrb.mxu0 %v6821_v53  ;;  %225 = vrot.lane.b32.xlu0 %v178_v51, %s7147_s28 }
  0x8c   :  { %623 = vst.msk [vmem:[#allocation3 + $0x134] sm:$0xf] %vm293_vm6, %v416_v45  ;;  %v204_v0 = vpop.permute.xlu0 %203  ;;  %v222_v6 = vpop.permute.xlu1 %221 }
  0x8d   :  { %624 = vst.msk [vmem:[#allocation3 + $0x158] sm:$0xf] %vm293_vm6, %v417_v42 }
  0x8e   :  { %424 = vst.msk [vmem:[#allocation3 + $0x2c] sm:$0xf] %vm293_vm6, %v408_v48 }
  0x8f   :  { %487 = vst.msk [vmem:[#allocation3 + $0xc] sm:$0xf] %vm293_vm6, %v278_v50 }
  0x90   :  { %551 = vst.msk [vmem:[#allocation3 + $0x10] sm:$0xf] %vm293_vm6, %v344_v52 }
  0x91   :  { %615 = vst.msk [vmem:[#allocation3 + $0x14] sm:$0xf] %vm293_vm6, %v408_v48 }
  0x92   :  { %295 = vst.msk [vmem:[#allocation3 + $0x24] sm:$0xf] %vm293_vm6, %v278_v50 }
  0x93   :  { %360 = vst.msk [vmem:[#allocation3 + $0x28] sm:$0xf] %vm293_vm6, %v344_v52  ;;  %v6812_v52 = vld [vmem:[%s10245_s1 + $0xe8] sm:$0xff] }
  0x94   :  { %689 = vst.msk [vmem:[#allocation3 + $0x15c] sm:$0xf] %vm293_vm6, %v288_v55  ;;  %2013 = vmatpush.bf16.msrb.mxu3 %v6812_v52 }
  0x95   :  { %753 = vst.msk [vmem:[#allocation3 + $0x160] sm:$0xf] %vm293_vm6, %v354_v56 }
  0x96   :  { %817 = vst.msk [vmem:[#allocation3 + $0x164] sm:$0xf] %vm293_vm6, %v418_v57 }
  0x97   :  { %305 = vst.msk [vmem:[#allocation3 + $0x18c] sm:$0xf] %vm293_vm6, %v288_v55 }
  0x98   :  { %370 = vst.msk [vmem:[#allocation3 + $0x190] sm:$0xf] %vm293_vm6, %v354_v56 }
  0x99   :  { %434 = vst.msk [vmem:[#allocation3 + $0x194] sm:$0xf] %vm293_vm6, %v418_v57 }
  0x9a   :  { %497 = vst.msk [vmem:[#allocation3 + $0x174] sm:$0xf] %vm293_vm6, %v288_v55 }
  0x9b   :  { %561 = vst.msk [vmem:[#allocation3 + $0x178] sm:$0xf] %vm293_vm6, %v354_v56 }
  0x9c   :  { %625 = vst.msk [vmem:[#allocation3 + $0x17c] sm:$0xf] %vm293_vm6, %v418_v57 }
  0x9d   :  { %312 = vst.msk [vmem:[#allocation3 + $0x24] sm:$0xf] %vm310_vm7, %v10254_v2 }
  0x9e   :  { %320 = vst.msk [vmem:[#allocation3 + $0x144] sm:$0xf] %vm310_vm7, %v10254_v2 }
  0x9f   :  { %321 = vst.msk [vmem:[#allocation3 + $0x168] sm:$0xf] %vm310_vm7, %v10254_v2 }
  0xa0   :  { %322 = vst.msk [vmem:[#allocation3 + $0x18c] sm:$0xf] %vm310_vm7, %v10254_v2 }
  0xa1   :  { %376 = vst.msk [vmem:[#allocation3 + $0x28] sm:$0xf] %vm310_vm7, %v10254_v2 }
  0xa2   :  { %384 = vst.msk [vmem:[#allocation3 + $0x148] sm:$0xf] %vm310_vm7, %v10254_v2 }
  0xa3   :  { %385 = vst.msk [vmem:[#allocation3 + $0x16c] sm:$0xf] %vm310_vm7, %v10254_v2 }
  0xa4   :  { %386 = vst.msk [vmem:[#allocation3 + $0x190] sm:$0xf] %vm310_vm7, %v10254_v2  ;;  %v6715_v33 = vld [vmem:[#allocation3 + $0x20] sm:$0xf0] }
  0xa5   :  { %440 = vst.msk [vmem:[#allocation3 + $0x2c] sm:$0xf] %vm310_vm7, %v10254_v2  ;;  %v6751_v11 = vld [vmem:[#allocation3 + $0x140] sm:$0xf0] }
  0xa6   :  { %448 = vst.msk [vmem:[#allocation3 + $0x14c] sm:$0xf] %vm310_vm7, %v10254_v2  ;;  %v5709_v37 = vld [vmem:[#allocation3 + $0x168] sm:$0xf] }
  0xa7   :  { %449 = vst.msk [vmem:[#allocation3 + $0x170] sm:$0xf] %vm310_vm7, %v10254_v2  ;;  %v6760_v38 = vld [vmem:[#allocation3 + $0x188] sm:$0xf0] }
  0xa8   :  { %450 = vst.msk [vmem:[#allocation3 + $0x194] sm:$0xf] %vm310_vm7, %v10254_v2  ;;  %v5531_v35 = vld [vmem:[#allocation3 + $0x24] sm:$0xf0]  ;;  %v5710_v39 = vor.u32 %v6760_v38, %v5709_v37  ;;  %v224_v37 = vpop.permute.xlu2 %223  ;;  %v208_v38 = vpop.permute.xlu1 %207 }
  0xa9   :  { %503 = vst.msk [vmem:[#allocation3 + $0xc] sm:$0xf] %vm310_vm7, %v10254_v2  ;;  %v5675_v14 = vld [vmem:[#allocation3 + $0x144] sm:$0xf0] }
  0xaa   :  { %511 = vst.msk [vmem:[#allocation3 + $0x12c] sm:$0xf] %vm310_vm7, %v10254_v2  ;;  %v6756_v42 = vld [vmem:[#allocation3 + $0x16c] sm:$0xf] }
  0xab   :  { %512 = vst.msk [vmem:[#allocation3 + $0x150] sm:$0xf] %vm310_vm7, %v10254_v2  ;;  %v5711_v43 = vld [vmem:[#allocation3 + $0x18c] sm:$0xf0] }
  0xac   :  { %513 = vst.msk [vmem:[#allocation3 + $0x174] sm:$0xf] %vm310_vm7, %v10254_v2  ;;  %v5714_v44 = vor.u32 %v6756_v42, %v5711_v43 }
  0xad   :  { %567 = vst.msk [vmem:[#allocation3 + $0x10] sm:$0xf] %vm310_vm7, %v10254_v2 }
  0xae   :  { %575 = vst.msk [vmem:[#allocation3 + $0x130] sm:$0xf] %vm310_vm7, %v10254_v2 }
  0xaf   :  { %576 = vst.msk [vmem:[#allocation3 + $0x154] sm:$0xf] %vm310_vm7, %v10254_v2 }
  0xb0   :  { %577 = vst.msk [vmem:[#allocation3 + $0x178] sm:$0xf] %vm310_vm7, %v10254_v2 }
  0xb1   :  { %631 = vst.msk [vmem:[#allocation3 + $0x14] sm:$0xf] %vm310_vm7, %v10254_v2 }
  0xb2   :  { %639 = vst.msk [vmem:[#allocation3 + $0x134] sm:$0xf] %vm310_vm7, %v10254_v2 }
  0xb3   :  { %640 = vst.msk [vmem:[#allocation3 + $0x158] sm:$0xf] %vm310_vm7, %v10254_v2 }
  0xb4   :  { %641 = vst.msk [vmem:[#allocation3 + $0x17c] sm:$0xf] %vm310_vm7, %v10254_v2 }
  0xb5   :  { %704 = vst.msk [vmem:[#allocation3 + $0x138] sm:$0xf] %vm310_vm7, %v10254_v2 }
  0xb6   :  { %705 = vst.msk [vmem:[#allocation3 + $0x15c] sm:$0xf] %vm310_vm7, %v10254_v2 }
  0xb7   :  { %768 = vst.msk [vmem:[#allocation3 + $0x13c] sm:$0xf] %vm310_vm7, %v10254_v2 }
  0xb8   :  { %769 = vst.msk [vmem:[#allocation3 + $0x160] sm:$0xf] %vm310_vm7, %v10254_v2 }
  0xb9   :  { %832 = vst.msk [vmem:[#allocation3 + $0x140] sm:$0xf] %vm310_vm7, %v10254_v2 }
  0xba   :  { %833 = vst.msk [vmem:[#allocation3 + $0x164] sm:$0xf] %vm310_vm7, %v10254_v2 }
  0xbb   :  { %377 = vst.msk [vmem:[#allocation3 + $0x4c] sm:$0xf] %vm310_vm7, %v10254_v2 }
  0xbc   :  { %441 = vst.msk [vmem:[#allocation3 + $0x50] sm:$0xf] %vm310_vm7, %v10254_v2 }
  0xbd   :  { %102 = vst.msk [vmem:[#allocation2 + $0xa8] sm:$0x3] %vm81_vm2, %v10252_v3 }
  0xbe   :  { %144 = vst.msk [vmem:[#allocation2 + $0xa8] sm:$0x3] %vm123_vm4, %v10252_v3 }
  0xbf   :  { %30 = vst.msk [vmem:[#allocation2 + $0x8] sm:$0x3] %vm29_vm9, %v10252_v3 }
  0xc0   :  { %35 = vst.msk [vmem:[#allocation2 + $0x98] sm:$0x3] %vm29_vm9, %v10252_v3 }
  0xc1   :  { %302 = vst.msk [vmem:[#allocation3 + $0x120] sm:$0xf] %vm293_vm6, %v285_v8 }
  0xc2   :  { %319 = vst.msk [vmem:[#allocation3 + $0x120] sm:$0xf] %vm310_vm7, %v10254_v2  ;;  %v6720_v1 = vld [vmem:[#allocation3 + $0x4c] sm:$0xf] }
  0xc3   :  { %37 = vst.msk [vmem:[#allocation2 + $0x138] sm:$0x3] %vm29_vm9, %v10252_v3 }
  0xc4   :  { %39 = vst.msk [vmem:[#allocation2] sm:$0x1] %vm38_vm0, %v10252_v3 }
  0xc5   :  { %v335_v9 = vld [vmem:[#allocation2 + $0xa1] sm:$0xff]  ;;  %48 = vst.msk [vmem:[#allocation2 + $0x90] sm:$0x1] %vm38_vm0, %v10252_v3 }
  0xc6   :  { %v351_v10 = vpack.c.bf16 %v335_v9, %v335_v9  ;;  %58 = vst.msk [vmem:[#allocation2 + $0x130] sm:$0x1] %vm38_vm0, %v10252_v3 }
  0xc7   :  { %59 = vst.msk [vmem:[#allocation2 + $0x9] sm:$0x1] %vm38_vm0, %v10252_v3 }
  0xc8   :  { %367 = vst.msk [vmem:[#allocation3 + $0x124] sm:$0xf] %vm293_vm6, %v351_v10 }
  0xc9   :  { %v5673_v12 = vld [vmem:[#allocation3 + $0x120] sm:$0xf]  ;;  %383 = vst.msk [vmem:[#allocation3 + $0x124] sm:$0xf] %vm310_vm7, %v10254_v2 }
  0xca   :  { %v5674_v13 = vor.u32 %v6751_v11, %v5673_v12  ;;  %68 = vst.msk [vmem:[#allocation2 + $0x99] sm:$0x1] %vm38_vm0, %v10252_v3 }
  0xcb   :  { %78 = vst.msk [vmem:[#allocation2 + $0x139] sm:$0x1] %vm38_vm0, %v10252_v3 }
  0xcc   :  { %1892 = vmatmul.bf16.vlgmr.msra.gmra.mxu2 %v5674_v13  ;;  %80 = vst.msk [vmem:[#allocation2] sm:$0xff] %vm79_vm1, %v10252_v3  ;;  %v6803_v13 = vld [vmem:[%s10245_s1 + $0xa0] sm:$0xff] }
  0xcd   :  { %99 = vst.msk [vmem:[#allocation2 + $0x90] sm:$0xff] %vm79_vm1, %v10252_v3  ;;  %1965 = vmatpush.bf16.msrb.mxu2 %v6803_v13 }
  0xce   :  { %119 = vst.msk [vmem:[#allocation2 + $0x130] sm:$0xff] %vm79_vm1, %v10252_v3 }
  0xcf   :  { %82 = vst.msk [vmem:[#allocation2 + $0x8] sm:$0x3] %vm81_vm2, %v10252_v3 }
  0xd0   :  { %v6747_v15 = vld [vmem:[#allocation3 + $0x124] sm:$0xf]  ;;  %100 = vst.msk [vmem:[#allocation2 + $0x98] sm:$0x3] %vm81_vm2, %v10252_v3 }
  0xd1   :  { %v5678_v16 = vor.u32 %v6747_v15, %v5675_v14  ;;  %120 = vst.msk [vmem:[#allocation2 + $0x138] sm:$0x3] %vm81_vm2, %v10252_v3  ;;  %v6811_v14 = vld [vmem:[%s10245_s1 + $0xe0] sm:$0xff]  ;;  %v6820_v15 = vld [vmem:[%s10245_s1 + $0x128] sm:$0xff] }
  0xd2   :  { %122 = vst.msk [vmem:[#allocation2] sm:$0xff] %vm121_vm3, %v10252_v3  ;;  %2014 = vmatpush.bf16.msrb.mxu3 %v6811_v14  ;;  %2062 = vmatpush.bf16.msrb.mxu0 %v6820_v15  ;;  %v6827_v15 = vld [vmem:[%s10245_s1 + $0x160] sm:$0xff] }
  0xd3   :  { %1941 = vmatmul.bf16.vlgmr.msra.gmra.mxu3 %v5678_v16  ;;  %141 = vst.msk [vmem:[#allocation2 + $0x90] sm:$0xff] %vm121_vm3, %v10252_v3 }
  0xd4   :  { %161 = vst.msk [vmem:[#allocation2 + $0x130] sm:$0xff] %vm121_vm3, %v10252_v3  ;;  %vm2381_vm3 = vcmask 385024  }
  0xd5   :  { %124 = vst.msk [vmem:[#allocation2 + $0x8] sm:$0x3] %vm123_vm4, %v10252_v3 }
  0xd6   :  { %142 = vst.msk [vmem:[#allocation2 + $0x98] sm:$0x3] %vm123_vm4, %v10252_v3 }
  0xd7   :  { %162 = vst.msk [vmem:[#allocation2 + $0x138] sm:$0x3] %vm123_vm4, %v10252_v3 }
  0xd8   :  { %247 = vst.msk [vmem:[#allocation2 + $0x31] sm:$0xff] %vm244_vm5, %v200_v20 }
  0xd9   :  { %v261_v23 = vld [vmem:[#allocation2] sm:$0xff]  ;;  %257 = vst.msk [vmem:[#allocation2 + $0xf1] sm:$0xff] %vm244_vm5, %v220_v21 }
  0xda   :  { %v277_v24 = vpack.c.bf16 %v261_v23, %v261_v23  ;;  %256 = vst.msk [vmem:[#allocation2 + $0xe1] sm:$0xff] %vm244_vm5, %v218_v22 }
  0xdb   :  { %248 = vst.msk [vmem:[#allocation2 + $0x41] sm:$0xff] %vm244_vm5, %v202_v63  ;;  %v6829_v63 = vld [vmem:[%s10245_s1 + $0x170] sm:$0xff] }
  0xdc   :  { %294 = vst.msk [vmem:[#allocation3] sm:$0xf] %vm293_vm6, %v277_v24  ;;  %v327_v25 = vld [vmem:[#allocation2 + $0x1] sm:$0xff]  ;;  %1897 = vmatmul.bf16.gmra.mxu2 %v5710_v39  ;;  %v206_v39 = vpop.permute.xlu0 %205 }
  0xdd   :  { %311 = vst.msk [vmem:[#allocation3] sm:$0xf] %vm310_vm7, %v10254_v2  ;;  %v343_v26 = vpack.c.bf16 %v327_v25, %v327_v25 }
  0xde   :  { %249 = vst.msk [vmem:[#allocation2 + $0x51] sm:$0xff] %vm244_vm5, %v204_v0 }
  0xdf   :  { %v264_v27 = vld [vmem:[#allocation2 + $0x30] sm:$0xff]  ;;  %359 = vst.msk [vmem:[#allocation3 + $0x4] sm:$0xf] %vm293_vm6, %v343_v26 }
  0xe0   :  { %v330_v28 = vld [vmem:[#allocation2 + $0x31] sm:$0xff]  ;;  %v280_v30 = vpack.c.bf16 %v264_v27, %v264_v27  ;;  %375 = vst.msk [vmem:[#allocation3 + $0x4] sm:$0xf] %vm310_vm7, %v10254_v2 }
  0xe1   :  { %v394_v29 = vld [vmem:[#allocation2 + $0x32] sm:$0xff]  ;;  %v346_v31 = vpack.c.bf16 %v330_v28, %v330_v28  ;;  %v273_v54 = vld [vmem:[#allocation2 + $0xe0] sm:$0xff]  ;;  %258 = vst.msk [vmem:[#allocation2 + $0x101] sm:$0xff] %vm244_vm5, %v222_v6 }
  0xe2   :  { %v410_v32 = vpack.c.bf16 %v394_v29, %v394_v29  ;;  %681 = vst.msk [vmem:[#allocation3 + $0x3c] sm:$0xf] %vm293_vm6, %v280_v30  ;;  %v274_v45 = vld [vmem:[#allocation2 + $0xf0] sm:$0xff]  ;;  %v339_v55 = vld [vmem:[#allocation2 + $0xe1] sm:$0xff]  ;;  %v289_v57 = vpack.c.bf16 %v273_v54, %v273_v54  ;;  %v6818_v6 = vld [vmem:[%s10245_s1 + $0x118] sm:$0xff] }
  0xe3   :  { %697 = vst.msk [vmem:[#allocation3 + $0x3c] sm:$0xf] %vm310_vm7, %v10254_v2  ;;  %1946 = vmatmul.bf16.gmra.mxu3 %v5714_v44  ;;  %v340_v46 = vld [vmem:[#allocation2 + $0xf1] sm:$0xff]  ;;  %v290_v48 = vpack.c.bf16 %v274_v45, %v274_v45  ;;  %v403_v56 = vld [vmem:[#allocation2 + $0xe2] sm:$0xff]  ;;  %v355_v58 = vpack.c.bf16 %v339_v55, %v339_v55 }
  0xe4   :  { %745 = vst.msk [vmem:[#allocation3 + $0x40] sm:$0xf] %vm293_vm6, %v346_v31  ;;  %v5529_v34 = vld [vmem:[#allocation3] sm:$0xf]  ;;  %v404_v47 = vld [vmem:[#allocation2 + $0xf2] sm:$0xff]  ;;  %v356_v49 = vpack.c.bf16 %v340_v46, %v340_v46  ;;  %v419_v59 = vpack.c.bf16 %v403_v56, %v403_v56 }
  0xe5   :  { %761 = vst.msk [vmem:[#allocation3 + $0x40] sm:$0xf] %vm310_vm7, %v10254_v2  ;;  %v5530_v36 = vor.u32 %v6715_v33, %v5529_v34  ;;  %v420_v50 = vpack.c.bf16 %v404_v47, %v404_v47  ;;  %v265_v7 = vld [vmem:[#allocation2 + $0x40] sm:$0xff]  ;;  %v266_v16 = vld [vmem:[#allocation2 + $0x50] sm:$0xff]  ;;  %v6802_v34 = vld [vmem:[%s10245_s1 + $0x98] sm:$0xff] }
  0xe6   :  { %809 = vst.msk [vmem:[#allocation3 + $0x44] sm:$0xf] %vm293_vm6, %v410_v32  ;;  %v331_v8 = vld [vmem:[#allocation2 + $0x41] sm:$0xff]  ;;  %v281_v10 = vpack.c.bf16 %v265_v7, %v265_v7  ;;  %v396_v17 = vld [vmem:[#allocation2 + $0x52] sm:$0xff]  ;;  %v282_v19 = vpack.c.bf16 %v266_v16, %v266_v16  ;;  %1966 = vmatpush.bf16.msrb.mxu2 %v6802_v34 }
  0xe7   :  { %825 = vst.msk [vmem:[#allocation3 + $0x44] sm:$0xf] %vm310_vm7, %v10254_v2  ;;  %1872 = vmatmul.bf16.vlgmr.msra.gmra.mxu0 %v5530_v36  ;;  %v6711_v40 = vld [vmem:[#allocation3 + $0x4] sm:$0xf]  ;;  %v347_v11 = vpack.c.bf16 %v331_v8, %v331_v8  ;;  %v332_v18 = vld [vmem:[#allocation2 + $0x51] sm:$0xff]  ;;  %v412_v20 = vpack.c.bf16 %v396_v17, %v396_v17  ;;  %v6800_v8 = vld [vmem:[%s10245_s1 + $0x88] sm:$0xff] }
  0xe8   :  { %297 = vst.msk [vmem:[#allocation3 + $0x6c] sm:$0xf] %vm293_vm6, %v280_v30  ;;  %v5534_v41 = vor.u32 %v6711_v40, %v5531_v35  ;;  %v395_v9 = vld [vmem:[#allocation2 + $0x42] sm:$0xff]  ;;  %v348_v21 = vpack.c.bf16 %v332_v18, %v332_v18  ;;  %v6810_v35 = vld [vmem:[%s10245_s1 + $0xd8] sm:$0xff] }
  0xe9   :  { %362 = vst.msk [vmem:[#allocation3 + $0x70] sm:$0xf] %vm293_vm6, %v346_v31  ;;  %v411_v12 = vpack.c.bf16 %v395_v9, %v395_v9  ;;  %v275_v25 = vld [vmem:[#allocation2 + $0x100] sm:$0xff]  ;;  %2015 = vmatpush.bf16.msrb.mxu3 %v6810_v35  ;;  %v6830_v56 = vld [vmem:[%s10245_s1 + $0x178] sm:$0xff]  ;;  %v6828_v9 = vld [vmem:[%s10245_s1 + $0x168] sm:$0xff] }
  0xea   :  { %426 = vst.msk [vmem:[#allocation3 + $0x74] sm:$0xf] %vm293_vm6, %v410_v32  ;;  %1921 = vmatmul.bf16.vlgmr.msra.gmra.mxu1 %v5534_v41  ;;  %v341_v26 = vld [vmem:[#allocation2 + $0x101] sm:$0xff] }
  0xeb   :  { %489 = vst.msk [vmem:[#allocation3 + $0x54] sm:$0xf] %vm293_vm6, %v280_v30  ;;  %v405_v29 = vld [vmem:[#allocation2 + $0x102] sm:$0xff]  ;;  %2109 = vmatpush.bf16.msrb.mxu1 %v6830_v56 }
  0xec   :  { %553 = vst.msk [vmem:[#allocation3 + $0x58] sm:$0xf] %vm293_vm6, %v346_v31  ;;  %v291_v31 = vpack.c.bf16 %v275_v25, %v275_v25  ;;  %v421_v33 = vpack.c.bf16 %v405_v29, %v405_v29  ;;  %v6819_v36 = vld [vmem:[%s10245_s1 + $0x120] sm:$0xff]  ;;  %v6816_v18 = vld [vmem:[%s10245_s1 + $0x108] sm:$0xff]  ;;  %v6838_v25 = vld [vmem:[%s10245_s1 + $0x1b8] sm:$0xff] }
  0xed   :  { %617 = vst.msk [vmem:[#allocation3 + $0x5c] sm:$0xf] %vm293_vm6, %v410_v32  ;;  %v357_v32 = vpack.c.bf16 %v341_v26, %v341_v26  ;;  %2063 = vmatpush.bf16.msrb.mxu0 %v6819_v36  ;;  %v6799_v16 = vld [vmem:[%s10245_s1 + $0x80] sm:$0xff]  ;;  %v6825_v26 = vld [vmem:[%s10245_s1 + $0x150] sm:$0xff] }
  0xee   :  { %314 = vst.msk [vmem:[#allocation3 + $0x6c] sm:$0xf] %vm310_vm7, %v10254_v2  ;;  %v6807_v17 = vld [vmem:[%s10245_s1 + $0xc0] sm:$0xff]  ;;  %v6837_v36 = vld [vmem:[%s10245_s1 + $0x1b0] sm:$0xff] }
  0xef   :  { %378 = vst.msk [vmem:[#allocation3 + $0x70] sm:$0xf] %vm310_vm7, %v10254_v2  ;;  %2110 = vmatpush.bf16.msrb.mxu1 %v6829_v63  ;;  %v6713_v63 = vld [vmem:[#allocation3 + $0x14] sm:$0xf] }
  0xf0   :  { %442 = vst.msk [vmem:[#allocation3 + $0x74] sm:$0xf] %vm310_vm7, %v10254_v2 }
  0xf1   :  { %505 = vst.msk [vmem:[#allocation3 + $0x54] sm:$0xf] %vm310_vm7, %v10254_v2  ;;  %2064 = vmatpush.bf16.msrb.mxu0 %v6818_v6  ;;  %v5573_v6 = vld [vmem:[#allocation3 + $0x50] sm:$0xf] }
  0xf2   :  { %569 = vst.msk [vmem:[#allocation3 + $0x58] sm:$0xf] %vm310_vm7, %v10254_v2 }
  0xf3   :  { %633 = vst.msk [vmem:[#allocation3 + $0x5c] sm:$0xf] %vm310_vm7, %v10254_v2  ;;  %2111 = vmatpush.bf16.msrb.mxu1 %v6828_v9 }
  0xf4   :  { %691 = vst.msk [vmem:[#allocation3 + $0x1a4] sm:$0xf] %vm293_vm6, %v290_v48 }
  0xf5   :  { %755 = vst.msk [vmem:[#allocation3 + $0x1a8] sm:$0xf] %vm293_vm6, %v356_v49  ;;  %v6724_v61 = vld [vmem:[#allocation3 + $0x68] sm:$0xf0] }
  0xf6   :  { %819 = vst.msk [vmem:[#allocation3 + $0x1ac] sm:$0xf] %vm293_vm6, %v420_v50  ;;  %v5566_v62 = vor.u32 %v6724_v61, %v5565_v60  ;;  %v5567_v4 = vld [vmem:[#allocation3 + $0x6c] sm:$0xf0] }
  0xf7   :  { %307 = vst.msk [vmem:[#allocation3 + $0x1d4] sm:$0xf] %vm293_vm6, %v290_v48  ;;  %v5570_v5 = vor.u32 %v6720_v1, %v5567_v4  ;;  %2112 = vmatpush.bf16.msrb.mxu1 %v6827_v15 }
  0xf8   :  { %372 = vst.msk [vmem:[#allocation3 + $0x1d8] sm:$0xf] %vm293_vm6, %v356_v49  ;;  %1877 = vmatmul.bf16.gmra.mxu0 %v5566_v62  ;;  %v6721_v34 = vld [vmem:[#allocation3 + $0x54] sm:$0xf] }
  0xf9   :  { %436 = vst.msk [vmem:[#allocation3 + $0x1dc] sm:$0xf] %vm293_vm6, %v420_v50 }
  0xfa   :  { %499 = vst.msk [vmem:[#allocation3 + $0x1bc] sm:$0xf] %vm293_vm6, %v290_v48  ;;  %1926 = vmatmul.bf16.gmra.mxu1 %v5570_v5  ;;  %v6809_v5 = vld [vmem:[%s10245_s1 + $0xd0] sm:$0xff]  ;;  %v6722_v15 = vld [vmem:[#allocation3 + $0x5c] sm:$0xf] }
  0xfb   :  { %563 = vst.msk [vmem:[#allocation3 + $0x1c0] sm:$0xf] %vm293_vm6, %v356_v49  ;;  %2016 = vmatpush.bf16.msrb.mxu3 %v6809_v5 }
  0xfc   :  { %627 = vst.msk [vmem:[#allocation3 + $0x1c4] sm:$0xf] %vm293_vm6, %v420_v50 }
  0xfd   :  { %707 = vst.msk [vmem:[#allocation3 + $0x1a4] sm:$0xf] %vm310_vm7, %v10254_v2 }
  0xfe   :  { %771 = vst.msk [vmem:[#allocation3 + $0x1a8] sm:$0xf] %vm310_vm7, %v10254_v2 }
  0xff   :  { %835 = vst.msk [vmem:[#allocation3 + $0x1ac] sm:$0xf] %vm310_vm7, %v10254_v2 }
 0x100   :  { %690 = vst.msk [vmem:[#allocation3 + $0x180] sm:$0xf] %vm293_vm6, %v289_v57 }
 0x101   :  { %754 = vst.msk [vmem:[#allocation3 + $0x184] sm:$0xf] %vm293_vm6, %v355_v58 }
 0x102   :  { %818 = vst.msk [vmem:[#allocation3 + $0x188] sm:$0xf] %vm293_vm6, %v419_v59 }
 0x103   :  { %306 = vst.msk [vmem:[#allocation3 + $0x1b0] sm:$0xf] %vm293_vm6, %v289_v57 }
 0x104   :  { %324 = vst.msk [vmem:[#allocation3 + $0x1d4] sm:$0xf] %vm310_vm7, %v10254_v2 }
 0x105   :  { %371 = vst.msk [vmem:[#allocation3 + $0x1b4] sm:$0xf] %vm293_vm6, %v355_v58 }
 0x106   :  { %388 = vst.msk [vmem:[#allocation3 + $0x1d8] sm:$0xf] %vm310_vm7, %v10254_v2 }
 0x107   :  { %435 = vst.msk [vmem:[#allocation3 + $0x1b8] sm:$0xf] %vm293_vm6, %v419_v59 }
 0x108   :  { %452 = vst.msk [vmem:[#allocation3 + $0x1dc] sm:$0xf] %vm310_vm7, %v10254_v2 }
 0x109   :  { %498 = vst.msk [vmem:[#allocation3 + $0x198] sm:$0xf] %vm293_vm6, %v289_v57  ;;  %v6801_v57 = vld [vmem:[%s10245_s1 + $0x90] sm:$0xff] }
 0x10a   :  { %515 = vst.msk [vmem:[#allocation3 + $0x1bc] sm:$0xf] %vm310_vm7, %v10254_v2  ;;  %1967 = vmatpush.bf16.msrb.mxu2 %v6801_v57 }
 0x10b   :  { %562 = vst.msk [vmem:[#allocation3 + $0x19c] sm:$0xf] %vm293_vm6, %v355_v58  ;;  %v6769_v23 = vld [vmem:[#allocation3 + $0x1d0] sm:$0xf0] }
 0x10c   :  { %579 = vst.msk [vmem:[#allocation3 + $0x1c0] sm:$0xf] %vm310_vm7, %v10254_v2 }
 0x10d   :  { %626 = vst.msk [vmem:[#allocation3 + $0x1a0] sm:$0xf] %vm293_vm6, %v419_v59  ;;  %v5747_v28 = vld [vmem:[#allocation3 + $0x1d4] sm:$0xf0] }
 0x10e   :  { %643 = vst.msk [vmem:[#allocation3 + $0x1c4] sm:$0xf] %vm310_vm7, %v10254_v2  ;;  %1968 = vmatpush.bf16.msrb.mxu2 %v6800_v8  ;;  %v6852_v8 = vld [vmem:[%s10245_s1 + $0x228] sm:$0xff] }
 0x10f   :  { %706 = vst.msk [vmem:[#allocation3 + $0x180] sm:$0xf] %vm310_vm7, %v10254_v2 }
 0x110   :  { %770 = vst.msk [vmem:[#allocation3 + $0x184] sm:$0xf] %vm310_vm7, %v10254_v2 }
 0x111   :  { %834 = vst.msk [vmem:[#allocation3 + $0x188] sm:$0xf] %vm310_vm7, %v10254_v2 }
 0x112   :  { %323 = vst.msk [vmem:[#allocation3 + $0x1b0] sm:$0xf] %vm310_vm7, %v10254_v2  ;;  %1969 = vmatpush.bf16.msrb.mxu2 %v6799_v16 }
 0x113   :  { %387 = vst.msk [vmem:[#allocation3 + $0x1b4] sm:$0xf] %vm310_vm7, %v10254_v2 }
 0x114   :  { %451 = vst.msk [vmem:[#allocation3 + $0x1b8] sm:$0xf] %vm310_vm7, %v10254_v2 }
 0x115   :  { %514 = vst.msk [vmem:[#allocation3 + $0x198] sm:$0xf] %vm310_vm7, %v10254_v2 }
 0x116   :  { %578 = vst.msk [vmem:[#allocation3 + $0x19c] sm:$0xf] %vm310_vm7, %v10254_v2  ;;  %2158 = vmatpush.bf16.msra.mxu2 %v6838_v25  ;;  %v6851_v25 = vld [vmem:[%s10245_s1 + $0x220] sm:$0xff] }
 0x117   :  { %642 = vst.msk [vmem:[#allocation3 + $0x1a0] sm:$0xf] %vm310_vm7, %v10254_v2 }
 0x118   :  { %682 = vst.msk [vmem:[#allocation3 + $0x60] sm:$0xf] %vm293_vm6, %v281_v10 }
 0x119   :  { %746 = vst.msk [vmem:[#allocation3 + $0x64] sm:$0xf] %vm293_vm6, %v347_v11  ;;  %v5745_v22 = vld [vmem:[#allocation3 + $0x1b0] sm:$0xf] }
 0x11a   :  { %810 = vst.msk [vmem:[#allocation3 + $0x68] sm:$0xf] %vm293_vm6, %v411_v12  ;;  %v5746_v24 = vor.u32 %v6769_v23, %v5745_v22  ;;  %v6765_v27 = vld [vmem:[#allocation3 + $0x1b4] sm:$0xf]  ;;  %v6826_v22 = vld [vmem:[%s10245_s1 + $0x158] sm:$0xff]  ;;  %2159 = vmatpush.bf16.msra.mxu2 %v6837_v36 }
 0x11b   :  { %298 = vst.msk [vmem:[#allocation3 + $0x90] sm:$0xf] %vm293_vm6, %v281_v10  ;;  %v5750_v30 = vor.u32 %v6765_v27, %v5747_v28  ;;  %v6712_v23 = vld [vmem:[#allocation3 + $0xc] sm:$0xf]  ;;  %2113 = vmatpush.bf16.msrb.mxu1 %v6826_v22  ;;  %v6815_v27 = vld [vmem:[%s10245_s1 + $0x100] sm:$0xff]  ;;  %v6846_v28 = vld [vmem:[%s10245_s1 + $0x1f8] sm:$0xff] }
 0x11c   :  { %363 = vst.msk [vmem:[#allocation3 + $0x94] sm:$0xf] %vm293_vm6, %v347_v11  ;;  %1902 = vmatmul.bf16.gmra.mxu2 %v5746_v24  ;;  %v5539_v24 = vld [vmem:[#allocation3 + $0x2c] sm:$0xf0] }
 0x11d   :  { %427 = vst.msk [vmem:[#allocation3 + $0x98] sm:$0xf] %vm293_vm6, %v411_v12  ;;  %1951 = vmatmul.bf16.gmra.mxu3 %v5750_v30  ;;  %v5542_v29 = vor.u32 %v6712_v23, %v5539_v24  ;;  %v6824_v30 = vld [vmem:[%s10245_s1 + $0x148] sm:$0xff] }
 0x11e   :  { %490 = vst.msk [vmem:[#allocation3 + $0x78] sm:$0xf] %vm293_vm6, %v281_v10  ;;  %v6808_v10 = vld [vmem:[%s10245_s1 + $0xc8] sm:$0xff] }
 0x11f   :  { %554 = vst.msk [vmem:[#allocation3 + $0x7c] sm:$0xf] %vm293_vm6, %v347_v11  ;;  %v6817_v11 = vld [vmem:[%s10245_s1 + $0x110] sm:$0xff]  ;;  %2017 = vmatpush.bf16.msrb.mxu3 %v6808_v10  ;;  %2114 = vmatpush.bf16.msrb.mxu1 %v6825_v26  ;;  %v6835_v10 = vld [vmem:[%s10245_s1 + $0x1a0] sm:$0xff] }
 0x120   :  { %618 = vst.msk [vmem:[#allocation3 + $0x80] sm:$0xf] %vm293_vm6, %v411_v12  ;;  %2065 = vmatpush.bf16.msrb.mxu0 %v6817_v11  ;;  %v6843_v11 = vld [vmem:[%s10245_s1 + $0x1e0] sm:$0xff] }
 0x121   :  { %698 = vst.msk [vmem:[#allocation3 + $0x60] sm:$0xf] %vm310_vm7, %v10254_v2 }
 0x122   :  { %762 = vst.msk [vmem:[#allocation3 + $0x64] sm:$0xf] %vm310_vm7, %v10254_v2 }
 0x123   :  { %826 = vst.msk [vmem:[#allocation3 + $0x68] sm:$0xf] %vm310_vm7, %v10254_v2  ;;  %2018 = vmatpush.bf16.msrb.mxu3 %v6807_v17  ;;  %2115 = vmatpush.bf16.msrb.mxu1 %v6824_v30  ;;  %v6842_v30 = vld [vmem:[%s10245_s1 + $0x1d8] sm:$0xff] }
 0x124   :  { %683 = vst.msk [vmem:[#allocation3 + $0x84] sm:$0xf] %vm293_vm6, %v282_v19  ;;  %2066 = vmatpush.bf16.msrb.mxu0 %v6816_v18  ;;  %v399_v18 = vld [vmem:[#allocation2 + $0xa2] sm:$0xff] }
 0x125   :  { %747 = vst.msk [vmem:[#allocation3 + $0x88] sm:$0xf] %vm293_vm6, %v348_v21 }
 0x126   :  { %811 = vst.msk [vmem:[#allocation3 + $0x8c] sm:$0xf] %vm293_vm6, %v412_v20 }
 0x127   :  { %299 = vst.msk [vmem:[#allocation3 + $0xb4] sm:$0xf] %vm293_vm6, %v282_v19  ;;  %2207 = vmatpush.bf16.msra.mxu3 %v6846_v28  ;;  %v5683_v28 = vld [vmem:[#allocation3 + $0x14c] sm:$0xf0] }
 0x128   :  { %315 = vst.msk [vmem:[#allocation3 + $0x90] sm:$0xf] %vm310_vm7, %v10254_v2  ;;  %2067 = vmatpush.bf16.msrb.mxu0 %v6815_v27  ;;  %v6748_v27 = vld [vmem:[#allocation3 + $0x12c] sm:$0xf] }
 0x129   :  { %364 = vst.msk [vmem:[#allocation3 + $0xb8] sm:$0xf] %vm293_vm6, %v348_v21 }
 0x12a   :  { %379 = vst.msk [vmem:[#allocation3 + $0x94] sm:$0xf] %vm310_vm7, %v10254_v2 }
 0x12b   :  { %428 = vst.msk [vmem:[#allocation3 + $0xbc] sm:$0xf] %vm293_vm6, %v412_v20 }
 0x12c   :  { %443 = vst.msk [vmem:[#allocation3 + $0x98] sm:$0xf] %vm310_vm7, %v10254_v2 }
 0x12d   :  { %491 = vst.msk [vmem:[#allocation3 + $0x9c] sm:$0xf] %vm293_vm6, %v282_v19 }
 0x12e   :  { %506 = vst.msk [vmem:[#allocation3 + $0x78] sm:$0xf] %vm310_vm7, %v10254_v2 }
 0x12f   :  { %555 = vst.msk [vmem:[#allocation3 + $0xa0] sm:$0xf] %vm293_vm6, %v348_v21  ;;  %v5601_v46 = vld [vmem:[#allocation3 + $0x90] sm:$0xf] }
 0x130   :  { %570 = vst.msk [vmem:[#allocation3 + $0x7c] sm:$0xf] %vm310_vm7, %v10254_v2 }
 0x131   :  { %619 = vst.msk [vmem:[#allocation3 + $0xa4] sm:$0xf] %vm293_vm6, %v412_v20  ;;  %v6729_v49 = vld [vmem:[#allocation3 + $0x94] sm:$0xf] }
 0x132   :  { %634 = vst.msk [vmem:[#allocation3 + $0x80] sm:$0xf] %vm310_vm7, %v10254_v2 }
 0x133   :  { %699 = vst.msk [vmem:[#allocation3 + $0x84] sm:$0xf] %vm310_vm7, %v10254_v2  ;;  %v5609_v23 = vld [vmem:[#allocation3 + $0x98] sm:$0xf] }
 0x134   :  { %763 = vst.msk [vmem:[#allocation3 + $0x88] sm:$0xf] %vm310_vm7, %v10254_v2 }
 0x135   :  { %827 = vst.msk [vmem:[#allocation3 + $0x8c] sm:$0xf] %vm310_vm7, %v10254_v2  ;;  %v5575_v35 = vld [vmem:[#allocation3 + $0x74] sm:$0xf0] }
 0x136   :  { %316 = vst.msk [vmem:[#allocation3 + $0xb4] sm:$0xf] %vm310_vm7, %v10254_v2 }
 0x137   :  { %380 = vst.msk [vmem:[#allocation3 + $0xb8] sm:$0xf] %vm310_vm7, %v10254_v2 }
 0x138   :  { %444 = vst.msk [vmem:[#allocation3 + $0xbc] sm:$0xf] %vm310_vm7, %v10254_v2 }
 0x139   :  { %507 = vst.msk [vmem:[#allocation3 + $0x9c] sm:$0xf] %vm310_vm7, %v10254_v2  ;;  %v5583_v16 = vld [vmem:[#allocation3 + $0x7c] sm:$0xf0] }
 0x13a   :  { %571 = vst.msk [vmem:[#allocation3 + $0xa0] sm:$0xf] %vm310_vm7, %v10254_v2  ;;  %v5586_v22 = vor.u32 %v6722_v15, %v5583_v16  ;;  %v6766_v16 = vld [vmem:[#allocation3 + $0x1bc] sm:$0xf] }
 0x13b   :  { %635 = vst.msk [vmem:[#allocation3 + $0xa4] sm:$0xf] %vm310_vm7, %v10254_v2 }
 0x13c   :  { %692 = vst.msk [vmem:[#allocation3 + $0x1c8] sm:$0xf] %vm293_vm6, %v291_v31 }
 0x13d   :  { %756 = vst.msk [vmem:[#allocation3 + $0x1cc] sm:$0xf] %vm293_vm6, %v357_v32  ;;  %v6733_v47 = vld [vmem:[#allocation3 + $0xb0] sm:$0xf0] }
 0x13e   :  { %820 = vst.msk [vmem:[#allocation3 + $0x1d0] sm:$0xf] %vm293_vm6, %v421_v33  ;;  %v5602_v48 = vor.u32 %v6733_v47, %v5601_v46  ;;  %v5603_v50 = vld [vmem:[#allocation3 + $0xb4] sm:$0xf0]  ;;  %v210_v46 = vpop.permute.xlu2 %209  ;;  %v6853_v47 = vld [vmem:[%s10245_s1 + $0x230] sm:$0xff] }
 0x13f   :  { %308 = vst.msk [vmem:[#allocation3 + $0x1f8] sm:$0xf] %vm293_vm6, %v291_v31  ;;  %v5606_v52 = vor.u32 %v6729_v49, %v5603_v50  ;;  %v6734_v24 = vld [vmem:[#allocation3 + $0xb8] sm:$0xf0] }
 0x140   :  { %373 = vst.msk [vmem:[#allocation3 + $0x1fc] sm:$0xf] %vm293_vm6, %v357_v32  ;;  %1882 = vmatmul.bf16.gmra.mxu0 %v5602_v48  ;;  %v6716_v48 = vld [vmem:[#allocation3 + $0x28] sm:$0xf0]  ;;  %v6730_v51 = vld [vmem:[#allocation3 + $0x9c] sm:$0xf]  ;;  %v5610_v26 = vor.u32 %v6734_v24, %v5609_v23 }
 0x141   :  { %437 = vst.msk [vmem:[#allocation3 + $0x200] sm:$0xf] %vm293_vm6, %v421_v33  ;;  %1931 = vmatmul.bf16.gmra.mxu1 %v5606_v52  ;;  %v5617_v36 = vld [vmem:[#allocation3 + $0xa0] sm:$0xf]  ;;  %v6753_v23 = vld [vmem:[#allocation3 + $0x150] sm:$0xf0] }
 0x142   :  { %500 = vst.msk [vmem:[#allocation3 + $0x1e0] sm:$0xf] %vm293_vm6, %v291_v31  ;;  %v6823_v31 = vld [vmem:[%s10245_s1 + $0x140] sm:$0xff] }
 0x143   :  { %564 = vst.msk [vmem:[#allocation3 + $0x1e4] sm:$0xf] %vm293_vm6, %v357_v32  ;;  %v6854_v32 = vld [vmem:[%s10245_s1 + $0x238] sm:$0xff]  ;;  %2116 = vmatpush.bf16.msrb.mxu1 %v6823_v31 }
 0x144   :  { %628 = vst.msk [vmem:[#allocation3 + $0x1e8] sm:$0xf] %vm293_vm6, %v421_v33  ;;  %2256 = vmatpush.bf16.msra.mxu0 %v6854_v32  ;;  %v391_v33 = vld [vmem:[#allocation2 + $0x2] sm:$0xff] }
 0x145   :  { %708 = vst.msk [vmem:[#allocation3 + $0x1c8] sm:$0xf] %vm310_vm7, %v10254_v2 }
 0x146   :  { %772 = vst.msk [vmem:[#allocation3 + $0x1cc] sm:$0xf] %vm310_vm7, %v10254_v2 }
 0x147   :  { %836 = vst.msk [vmem:[#allocation3 + $0x1d0] sm:$0xf] %vm310_vm7, %v10254_v2 }
 0x148   :  { %259 = vst.msk [vmem:[#allocation2 + $0x111] sm:$0xff] %vm244_vm5, %v224_v37  ;;  %v6845_v37 = vld [vmem:[%s10245_s1 + $0x1f0] sm:$0xff]  ;;  %2257 = vmatpush.bf16.msra.mxu0 %v6853_v47 }
 0x149   :  { %325 = vst.msk [vmem:[#allocation3 + $0x1f8] sm:$0xf] %vm310_vm7, %v10254_v2  ;;  %2208 = vmatpush.bf16.msra.mxu3 %v6845_v37 }
 0x14a   :  { %389 = vst.msk [vmem:[#allocation3 + $0x1fc] sm:$0xf] %vm310_vm7, %v10254_v2 }
 0x14b   :  { %453 = vst.msk [vmem:[#allocation3 + $0x200] sm:$0xf] %vm310_vm7, %v10254_v2 }
 0x14c   :  { %516 = vst.msk [vmem:[#allocation3 + $0x1e0] sm:$0xf] %vm310_vm7, %v10254_v2  ;;  %2258 = vmatpush.bf16.msra.mxu0 %v6852_v8  ;;  %v6752_v8 = vld [vmem:[#allocation3 + $0x148] sm:$0xf0] }
 0x14d   :  { %580 = vst.msk [vmem:[#allocation3 + $0x1e4] sm:$0xf] %vm310_vm7, %v10254_v2 }
 0x14e   :  { %644 = vst.msk [vmem:[#allocation3 + $0x1e8] sm:$0xf] %vm310_vm7, %v10254_v2 }
 0x14f   :  { %v276_v40 = vld [vmem:[#allocation2 + $0x110] sm:$0xff]  ;;  %251 = vst.msk [vmem:[#allocation2 + $0x71] sm:$0xff] %vm244_vm5, %v208_v38  ;;  %v407_v38 = vpack.c.bf16 %v391_v33, %v391_v33  ;;  %v1893_v31 = vpop.f32.mrf.mxu2 }
 0x150   :  { %v342_v41 = vld [vmem:[#allocation2 + $0x111] sm:$0xff]  ;;  %v292_v43 = vpack.c.bf16 %v276_v40, %v276_v40  ;;  %250 = vst.msk [vmem:[#allocation2 + $0x61] sm:$0xff] %vm244_vm5, %v206_v39  ;;  %v5578_v39 = vor.u32 %v6721_v34, %v5575_v35  ;;  %2259 = vmatpush.bf16.msra.mxu0 %v6851_v25 }
 0x151   :  { %v406_v42 = vld [vmem:[#allocation2 + $0x112] sm:$0xff]  ;;  %v358_v44 = vpack.c.bf16 %v342_v41, %v342_v41  ;;  %v6774_v62 = vld [vmem:[#allocation3 + $0x1fc] sm:$0xf]  ;;  %423 = vst.msk [vmem:[#allocation3 + $0x8] sm:$0xf] %vm293_vm6, %v407_v38 }
 0x152   :  { %v422_v45 = vpack.c.bf16 %v406_v42, %v406_v42  ;;  %693 = vst.msk [vmem:[#allocation3 + $0x1ec] sm:$0xf] %vm293_vm6, %v292_v43  ;;  %v5781_v61 = vld [vmem:[#allocation3 + $0x1f8] sm:$0xf]  ;;  %v6749_v25 = vld [vmem:[#allocation3 + $0x134] sm:$0xf] }
 0x153   :  { %757 = vst.msk [vmem:[#allocation3 + $0x1f0] sm:$0xf] %vm293_vm6, %v358_v44 }
 0x154   :  { %821 = vst.msk [vmem:[#allocation3 + $0x1f4] sm:$0xf] %vm293_vm6, %v422_v45 }
 0x155   :  { %309 = vst.msk [vmem:[#allocation3 + $0x21c] sm:$0xf] %vm293_vm6, %v292_v43 }
 0x156   :  { %374 = vst.msk [vmem:[#allocation3 + $0x220] sm:$0xf] %vm293_vm6, %v358_v44  ;;  %v268_v53 = vld [vmem:[#allocation2 + $0x70] sm:$0xff]  ;;  %v1942_v32 = vpop.f32.mrf.mxu3 }
 0x157   :  { %438 = vst.msk [vmem:[#allocation3 + $0x224] sm:$0xf] %vm293_vm6, %v422_v45  ;;  %v398_v54 = vld [vmem:[#allocation2 + $0x72] sm:$0xff]  ;;  %v284_v58 = vpack.c.bf16 %v268_v53, %v268_v53  ;;  %v267_v12 = vld [vmem:[#allocation2 + $0x60] sm:$0xff]  ;;  %v6836_v53 = vld [vmem:[%s10245_s1 + $0x1a8] sm:$0xff]  ;;  %v8104_v33 = vadd.f32 %v1942_v32, %v1893_v31  ;;  %v8111_v47 = vpop.f32.mrf.mxu2 }
 0x158   :  { %501 = vst.msk [vmem:[#allocation3 + $0x204] sm:$0xf] %vm293_vm6, %v292_v43  ;;  %v334_v55 = vld [vmem:[#allocation2 + $0x71] sm:$0xff]  ;;  %v414_v59 = vpack.c.bf16 %v398_v54, %v398_v54  ;;  %v397_v13 = vld [vmem:[#allocation2 + $0x62] sm:$0xff]  ;;  %v283_v19 = vpack.c.bf16 %v267_v12, %v267_v12  ;;  %2160 = vmatpush.bf16.msra.mxu2 %v6836_v53 }
 0x159   :  { %565 = vst.msk [vmem:[#allocation3 + $0x208] sm:$0xf] %vm293_vm6, %v358_v44  ;;  %v350_v60 = vpack.c.bf16 %v334_v55, %v334_v55  ;;  %v333_v14 = vld [vmem:[#allocation2 + $0x61] sm:$0xff]  ;;  %v413_v20 = vpack.c.bf16 %v397_v13, %v397_v13  ;;  %v5581_v12 = vld [vmem:[#allocation3 + $0x58] sm:$0xf] }
 0x15a   :  { %629 = vst.msk [vmem:[#allocation3 + $0x20c] sm:$0xf] %vm293_vm6, %v422_v45  ;;  %v349_v21 = vpack.c.bf16 %v333_v14, %v333_v14  ;;  %v6844_v54 = vld [vmem:[%s10245_s1 + $0x1e8] sm:$0xff]  ;;  %v6726_v13 = vld [vmem:[#allocation3 + $0x78] sm:$0xf0] }
 0x15b   :  { %709 = vst.msk [vmem:[#allocation3 + $0x1ec] sm:$0xf] %vm310_vm7, %v10254_v2  ;;  %2209 = vmatpush.bf16.msra.mxu3 %v6844_v54  ;;  %v5719_v53 = vld [vmem:[#allocation3 + $0x194] sm:$0xf0]  ;;  %v6833_v54 = vld [vmem:[%s10245_s1 + $0x190] sm:$0xff] }
 0x15c   :  { %773 = vst.msk [vmem:[#allocation3 + $0x1f0] sm:$0xf] %vm310_vm7, %v10254_v2  ;;  %2161 = vmatpush.bf16.msra.mxu2 %v6835_v10 }
 0x15d   :  { %837 = vst.msk [vmem:[#allocation3 + $0x1f4] sm:$0xf] %vm310_vm7, %v10254_v2 }
 0x15e   :  { %326 = vst.msk [vmem:[#allocation3 + $0x21c] sm:$0xf] %vm310_vm7, %v10254_v2 }
 0x15f   :  { %390 = vst.msk [vmem:[#allocation3 + $0x220] sm:$0xf] %vm310_vm7, %v10254_v2  ;;  %2210 = vmatpush.bf16.msra.mxu3 %v6843_v11 }
 0x160   :  { %454 = vst.msk [vmem:[#allocation3 + $0x224] sm:$0xf] %vm310_vm7, %v10254_v2 }
 0x161   :  { %517 = vst.msk [vmem:[#allocation3 + $0x204] sm:$0xf] %vm310_vm7, %v10254_v2 }
 0x162   :  { %581 = vst.msk [vmem:[#allocation3 + $0x208] sm:$0xf] %vm310_vm7, %v10254_v2 }
 0x163   :  { %645 = vst.msk [vmem:[#allocation3 + $0x20c] sm:$0xf] %vm310_vm7, %v10254_v2  ;;  %2211 = vmatpush.bf16.msra.mxu3 %v6842_v30 }
 0x164   :  { %685 = vst.msk [vmem:[#allocation3 + $0xcc] sm:$0xf] %vm293_vm6, %v284_v58  ;;  %v1873_v34 = vpop.f32.mrf.mxu0 }
 0x165   :  { %749 = vst.msk [vmem:[#allocation3 + $0xd0] sm:$0xf] %vm293_vm6, %v350_v60  ;;  %v6778_v0 = vld [vmem:[#allocation3 + $0x218] sm:$0xf0] }
 0x166   :  { %813 = vst.msk [vmem:[#allocation3 + $0xd4] sm:$0xf] %vm293_vm6, %v414_v59  ;;  %v5782_v1 = vor.u32 %v6778_v0, %v5781_v61  ;;  %v5783_v4 = vld [vmem:[#allocation3 + $0x21c] sm:$0xf0]  ;;  %v5547_v0 = vld [vmem:[#allocation3 + $0x34] sm:$0xf0] }
 0x167   :  { %301 = vst.msk [vmem:[#allocation3 + $0xfc] sm:$0xf] %vm293_vm6, %v284_v58  ;;  %v5786_v7 = vor.u32 %v6774_v62, %v5783_v4  ;;  %v5550_v5 = vor.u32 %v6713_v63, %v5547_v0  ;;  %v1922_v35 = vpop.f32.mrf.mxu1 }
 0x168   :  { %366 = vst.msk [vmem:[#allocation3 + $0x100] sm:$0xf] %vm293_vm6, %v350_v60  ;;  %1907 = vmatmul.bf16.gmra.mxu2 %v5782_v1  ;;  %v8106_v38 = vadd.f32 %v1922_v35, %v1873_v34 }
 0x169   :  { %430 = vst.msk [vmem:[#allocation3 + $0x104] sm:$0xf] %vm293_vm6, %v414_v59  ;;  %1956 = vmatmul.bf16.gmra.mxu3 %v5786_v7  ;;  %v6725_v7 = vld [vmem:[#allocation3 + $0x70] sm:$0xf0] }
 0x16a   :  { %493 = vst.msk [vmem:[#allocation3 + $0xe4] sm:$0xf] %vm293_vm6, %v284_v58  ;;  %v5545_v58 = vld [vmem:[#allocation3 + $0x10] sm:$0xf]  ;;  %v5574_v9 = vor.u32 %v6725_v7, %v5573_v6 }
 0x16b   :  { %557 = vst.msk [vmem:[#allocation3 + $0xe8] sm:$0xf] %vm293_vm6, %v350_v60 }
 0x16c   :  { %621 = vst.msk [vmem:[#allocation3 + $0xec] sm:$0xf] %vm293_vm6, %v414_v59  ;;  %v6717_v59 = vld [vmem:[#allocation3 + $0x30] sm:$0xf0] }
 0x16d   :  { %701 = vst.msk [vmem:[#allocation3 + $0xcc] sm:$0xf] %vm310_vm7, %v10254_v2  ;;  %v5546_v4 = vor.u32 %v6717_v59, %v5545_v58 }
 0x16e   :  { %765 = vst.msk [vmem:[#allocation3 + $0xd0] sm:$0xf] %vm310_vm7, %v10254_v2 }
 0x16f   :  { %829 = vst.msk [vmem:[#allocation3 + $0xd4] sm:$0xf] %vm310_vm7, %v10254_v2 }
 0x170   :  { %684 = vst.msk [vmem:[#allocation3 + $0xa8] sm:$0xf] %vm293_vm6, %v283_v19 }
 0x171   :  { %748 = vst.msk [vmem:[#allocation3 + $0xac] sm:$0xf] %vm293_vm6, %v349_v21 }
 0x172   :  { %812 = vst.msk [vmem:[#allocation3 + $0xb0] sm:$0xf] %vm293_vm6, %v413_v20 }
 0x173   :  { %300 = vst.msk [vmem:[#allocation3 + $0xd8] sm:$0xf] %vm293_vm6, %v283_v19 }
 0x174   :  { %318 = vst.msk [vmem:[#allocation3 + $0xfc] sm:$0xf] %vm310_vm7, %v10254_v2 }
 0x175   :  { %365 = vst.msk [vmem:[#allocation3 + $0xdc] sm:$0xf] %vm293_vm6, %v349_v21 }
 0x176   :  { %382 = vst.msk [vmem:[#allocation3 + $0x100] sm:$0xf] %vm310_vm7, %v10254_v2 }
 0x177   :  { %429 = vst.msk [vmem:[#allocation3 + $0xe0] sm:$0xf] %vm293_vm6, %v413_v20 }
 0x178   :  { %446 = vst.msk [vmem:[#allocation3 + $0x104] sm:$0xf] %vm310_vm7, %v10254_v2 }
 0x179   :  { %492 = vst.msk [vmem:[#allocation3 + $0xc0] sm:$0xf] %vm293_vm6, %v283_v19  ;;  %2019 = vmatmul.bf16.vlgmr.msrb.gmra.mxu3 %v5542_v29  ;;  %v5582_v19 = vor.u32 %v6726_v13, %v5581_v12  ;;  %v6834_v29 = vld [vmem:[%s10245_s1 + $0x198] sm:$0xff]  ;;  %v226_v13 = vpop.permute.xlu0 %225 }
 0x17a   :  { %509 = vst.msk [vmem:[#allocation3 + $0xe4] sm:$0xf] %vm310_vm7, %v10254_v2  ;;  %2162 = vmatpush.bf16.msra.mxu2 %v6834_v29 }
 0x17b   :  { %556 = vst.msk [vmem:[#allocation3 + $0xc4] sm:$0xf] %vm293_vm6, %v349_v21  ;;  %v6742_v40 = vld [vmem:[#allocation3 + $0xf8] sm:$0xf0]  ;;  %v415_v21 = vpack.c.bf16 %v399_v18, %v399_v18  ;;  %v6832_v18 = vld [vmem:[%s10245_s1 + $0x188] sm:$0xff] }
 0x17c   :  { %573 = vst.msk [vmem:[#allocation3 + $0xe8] sm:$0xf] %vm310_vm7, %v10254_v2 }
 0x17d   :  { %620 = vst.msk [vmem:[#allocation3 + $0xc8] sm:$0xf] %vm293_vm6, %v413_v20  ;;  %v5639_v41 = vld [vmem:[#allocation3 + $0xfc] sm:$0xf0] }
 0x17e   :  { %637 = vst.msk [vmem:[#allocation3 + $0xec] sm:$0xf] %vm310_vm7, %v10254_v2  ;;  %2163 = vmatpush.bf16.msra.mxu2 %v6833_v54  ;;  %v6762_v54 = vld [vmem:[#allocation3 + $0x198] sm:$0xf0] }
 0x17f   :  { %700 = vst.msk [vmem:[#allocation3 + $0xa8] sm:$0xf] %vm310_vm7, %v10254_v2 }
 0x180   :  { %764 = vst.msk [vmem:[#allocation3 + $0xac] sm:$0xf] %vm310_vm7, %v10254_v2 }
 0x181   :  { %828 = vst.msk [vmem:[#allocation3 + $0xb0] sm:$0xf] %vm310_vm7, %v10254_v2  ;;  %v6739_v14 = vld [vmem:[#allocation3 + $0xe4] sm:$0xf] }
 0x182   :  { %317 = vst.msk [vmem:[#allocation3 + $0xd8] sm:$0xf] %vm310_vm7, %v10254_v2  ;;  %2164 = vmatpush.bf16.msra.mxu2 %v6832_v18  ;;  %v6714_v18 = vld [vmem:[#allocation3 + $0x1c] sm:$0xf] }
 0x183   :  { %381 = vst.msk [vmem:[#allocation3 + $0xdc] sm:$0xf] %vm310_vm7, %v10254_v2  ;;  %v5653_v58 = vld [vmem:[#allocation3 + $0xe8] sm:$0xf] }
 0x184   :  { %445 = vst.msk [vmem:[#allocation3 + $0xe0] sm:$0xf] %vm310_vm7, %v10254_v2 }
 0x185   :  { %508 = vst.msk [vmem:[#allocation3 + $0xc0] sm:$0xf] %vm310_vm7, %v10254_v2  ;;  %v6740_v63 = vld [vmem:[#allocation3 + $0xec] sm:$0xf] }
 0x186   :  { %572 = vst.msk [vmem:[#allocation3 + $0xc4] sm:$0xf] %vm310_vm7, %v10254_v2 }
 0x187   :  { %636 = vst.msk [vmem:[#allocation3 + $0xc8] sm:$0xf] %vm310_vm7, %v10254_v2 }
 0x188   :  { %439 = vst.msk [vmem:[#allocation3 + $0x8] sm:$0xf] %vm310_vm7, %v10254_v2 }
 0x189   :  { %v5637_v42 = vld [vmem:[#allocation3 + $0xd8] sm:$0xf]  ;;  %2024 = vmatmul.bf16.gmra.mxu3 %v5578_v39  ;;  %252 = vst.msk [vmem:[#allocation2 + $0x81] sm:$0xff] %vm244_vm5, %v210_v46  ;;  %v6731_v39 = vld [vmem:[#allocation3 + $0xa4] sm:$0xf] }
 0x18a   :  { %v5638_v43 = vor.u32 %v6742_v40, %v5637_v42  ;;  %v6738_v44 = vld [vmem:[#allocation3 + $0xdc] sm:$0xf]  ;;  %431 = vst.msk [vmem:[#allocation3 + $0x128] sm:$0xf] %vm293_vm6, %v415_v21 }
 0x18b   :  { %v5642_v45 = vor.u32 %v6738_v44, %v5639_v41  ;;  %447 = vst.msk [vmem:[#allocation3 + $0x128] sm:$0xf] %vm310_vm7, %v10254_v2  ;;  %v5686_v41 = vor.u32 %v6748_v27, %v5683_v28  ;;  %v5645_v44 = vld [vmem:[#allocation3 + $0xe0] sm:$0xf]  ;;  %v6850_v46 = vld [vmem:[%s10245_s1 + $0x218] sm:$0xff] }
 0x18c   :  { %1887 = vmatmul.bf16.gmra.mxu0 %v5638_v43  ;;  %v5611_v52 = vld [vmem:[#allocation3 + $0xbc] sm:$0xf0]  ;;  %260 = vst.msk [vmem:[#allocation2 + $0x121] sm:$0xff] %vm244_vm5, %v226_v13  ;;  %v6767_v13 = vld [vmem:[#allocation3 + $0x1c4] sm:$0xf] }
 0x18d   :  { %1936 = vmatmul.bf16.gmra.mxu1 %v5642_v45  ;;  %v5614_v1 = vor.u32 %v6730_v51, %v5611_v52  ;;  %v6735_v37 = vld [vmem:[#allocation3 + $0xc0] sm:$0xf0]  ;;  %2260 = vmatpush.bf16.msra.mxu0 %v6850_v46  ;;  %v6757_v52 = vld [vmem:[#allocation3 + $0x174] sm:$0xf] }
 0x18e   :  { %v5619_v40 = vld [vmem:[#allocation3 + $0xc4] sm:$0xf0]  ;;  %v5618_v42 = vor.u32 %v6735_v37, %v5617_v36  ;;  %v6743_v45 = vld [vmem:[#allocation3 + $0x100] sm:$0xf0]  ;;  %v5717_v37 = vld [vmem:[#allocation3 + $0x170] sm:$0xf] }
 0x18f   :  { %v5537_v49 = vld [vmem:[#allocation3 + $0x8] sm:$0xf]  ;;  %v5622_v43 = vor.u32 %v6731_v39, %v5619_v40  ;;  %v5646_v51 = vor.u32 %v6743_v45, %v5645_v44 }
 0x190   :  { %v5538_v50 = vor.u32 %v6716_v48, %v5537_v49  ;;  %v462_v55 = vld [vmem:[#allocation2 + $0x80] sm:$0xff]  ;;  %v8113_v48 = vpop.f32.mrf.mxu3  ;;  %v8115_v49 = vpop.f32.mrf.mxu0 }
 0x191   :  { %v526_v56 = vld [vmem:[#allocation2 + $0x81] sm:$0xff]  ;;  %v478_v60 = vpack.c.bf16 %v462_v55, %v462_v55  ;;  %v6841_v55 = vld [vmem:[%s10245_s1 + $0x1d0] sm:$0xff] }
 0x192   :  { %1970 = vmatmul.bf16.vlgmr.msrb.gmra.mxu2 %v5538_v50  ;;  %v590_v57 = vld [vmem:[#allocation2 + $0x82] sm:$0xff]  ;;  %v542_v61 = vpack.c.bf16 %v526_v56, %v526_v56  ;;  %v8117_v50 = vpop.f32.mrf.mxu1  ;;  %v1898_v56 = vpop.f32.mrf.mxu2  ;;  %2212 = vmatpush.bf16.msra.mxu3 %v6841_v55  ;;  %v6758_v55 = vld [vmem:[#allocation3 + $0x17c] sm:$0xf] }
 0x193   :  { %v606_v62 = vpack.c.bf16 %v590_v57, %v590_v57  ;;  %686 = vst.msk [vmem:[#allocation3 + $0xf0] sm:$0xf] %vm293_vm6, %v478_v60  ;;  %v5681_v7 = vld [vmem:[#allocation3 + $0x128] sm:$0xf]  ;;  %v470_v28 = vld [vmem:[#allocation2 + $0x120] sm:$0xff] }
 0x194   :  { %750 = vst.msk [vmem:[#allocation3 + $0xf4] sm:$0xf] %vm293_vm6, %v542_v61  ;;  %v5682_v12 = vor.u32 %v6752_v8, %v5681_v7  ;;  %v534_v29 = vld [vmem:[#allocation2 + $0x121] sm:$0xff]  ;;  %v486_v32 = vpack.c.bf16 %v470_v28, %v470_v28 }
 0x195   :  { %814 = vst.msk [vmem:[#allocation3 + $0xf8] sm:$0xf] %vm293_vm6, %v606_v62  ;;  %v598_v30 = vld [vmem:[#allocation2 + $0x122] sm:$0xff]  ;;  %v550_v34 = vpack.c.bf16 %v534_v29, %v534_v29 }
 0x196   :  { %494 = vst.msk [vmem:[#allocation3 + $0x108] sm:$0xf] %vm293_vm6, %v478_v60  ;;  %v614_v35 = vpack.c.bf16 %v598_v30, %v598_v30  ;;  %v5797_v30 = vld [vmem:[#allocation3 + $0x208] sm:$0xf] }
 0x197   :  { %558 = vst.msk [vmem:[#allocation3 + $0x10c] sm:$0xf] %vm293_vm6, %v542_v61 }
 0x198   :  { %622 = vst.msk [vmem:[#allocation3 + $0x110] sm:$0xf] %vm293_vm6, %v606_v62  ;;  %v1947_v57 = vpop.f32.mrf.mxu3  ;;  %v1878_v61 = vpop.f32.mrf.mxu0 }
 0x199   :  { %2029 = vmatmul.bf16.gmra.mxu3 %v5614_v1  ;;  %702 = vst.msk [vmem:[#allocation3 + $0xf0] sm:$0xf] %vm310_vm7, %v10254_v2  ;;  %v8125_v60 = vadd.f32 %v1947_v57, %v1898_v56  ;;  %v5722_v1 = vor.u32 %v6757_v52, %v5719_v53  ;;  %v6839_v52 = vld [vmem:[%s10245_s1 + $0x1c0] sm:$0xff]  ;;  %v5725_v53 = vld [vmem:[#allocation3 + $0x178] sm:$0xf] }
 0x19a   :  { %766 = vst.msk [vmem:[#allocation3 + $0xf4] sm:$0xf] %vm310_vm7, %v10254_v2  ;;  %v1927_v62 = vpop.f32.mrf.mxu1  ;;  %v8132_v10 = vpop.f32.mrf.mxu2  ;;  %v5727_v56 = vld [vmem:[#allocation3 + $0x19c] sm:$0xf0]  ;;  %v5726_v57 = vor.u32 %v6762_v54, %v5725_v53  ;;  %v5553_v53 = vld [vmem:[#allocation3 + $0x18] sm:$0xf] }
 0x19b   :  { %830 = vst.msk [vmem:[#allocation3 + $0xf8] sm:$0xf] %vm310_vm7, %v10254_v2  ;;  %v6718_v54 = vld [vmem:[#allocation3 + $0x38] sm:$0xf0] }
 0x19c   :  { %2068 = vmatmul.bf16.vlgmr.msrb.gmra.mxu0 %v5546_v4  ;;  %510 = vst.msk [vmem:[#allocation3 + $0x108] sm:$0xf] %vm310_vm7, %v10254_v2  ;;  %v8127_v4 = vadd.f32 %v1927_v62, %v1878_v61 }
 0x19d   :  { %2117 = vmatmul.bf16.vlgmr.msrb.gmra.mxu1 %v5550_v5  ;;  %574 = vst.msk [vmem:[#allocation3 + $0x10c] sm:$0xf] %vm310_vm7, %v10254_v2 }
 0x19e   :  { %638 = vst.msk [vmem:[#allocation3 + $0x110] sm:$0xf] %vm310_vm7, %v10254_v2 }
 0x19f   :  { %694 = vst.msk [vmem:[#allocation3 + $0x210] sm:$0xf] %vm293_vm6, %v486_v32 }
 0x1a0   :  { %v8134_v11 = vpop.f32.mrf.mxu3  ;;  %758 = vst.msk [vmem:[#allocation3 + $0x214] sm:$0xf] %vm293_vm6, %v550_v34 }
 0x1a1   :  { %822 = vst.msk [vmem:[#allocation3 + $0x218] sm:$0xf] %vm293_vm6, %v614_v35 }
 0x1a2   :  { %1975 = vmatmul.bf16.gmra.mxu2 %v5574_v9  ;;  %v6849_v9 = vld [vmem:[%s10245_s1 + $0x210] sm:$0xff]  ;;  %v8139_v15 = vpop.f32.mrf.mxu1  ;;  %502 = vst.msk [vmem:[#allocation3 + $0x228] sm:$0xf] %vm293_vm6, %v486_v32  ;;  %v6776_v32 = vld [vmem:[#allocation3 + $0x20c] sm:$0xf] }
 0x1a3   :  { %v5647_v17 = vld [vmem:[#allocation3 + $0x104] sm:$0xf0]  ;;  %2261 = vmatpush.bf16.msra.mxu0 %v6849_v9  ;;  %566 = vst.msk [vmem:[#allocation3 + $0x22c] sm:$0xf] %vm293_vm6, %v550_v34  ;;  %v5761_v9 = vld [vmem:[#allocation3 + $0x1c0] sm:$0xf] }
 0x1a4   :  { %v5650_v20 = vor.u32 %v6739_v14, %v5647_v17  ;;  %v6744_v59 = vld [vmem:[#allocation3 + $0x108] sm:$0xf0]  ;;  %v8137_v14 = vpop.f32.mrf.mxu0  ;;  %v5755_v17 = vld [vmem:[#allocation3 + $0x1dc] sm:$0xf0]  ;;  %630 = vst.msk [vmem:[#allocation3 + $0x230] sm:$0xf] %vm293_vm6, %v614_v35 }
 0x1a5   :  { %v5655_v0 = vld [vmem:[#allocation3 + $0x10c] sm:$0xf0]  ;;  %v5654_v5 = vor.u32 %v6744_v59, %v5653_v58  ;;  %v5758_v27 = vor.u32 %v6766_v16, %v5755_v17  ;;  %710 = vst.msk [vmem:[#allocation3 + $0x210] sm:$0xf] %vm310_vm7, %v10254_v2  ;;  %v6775_v58 = vld [vmem:[#allocation3 + $0x204] sm:$0xf]  ;;  %v5730_v59 = vor.u32 %v6758_v55, %v5727_v56  ;;  %v5554_v56 = vor.u32 %v6718_v54, %v5553_v53 }
 0x1a6   :  { %v5658_v6 = vor.u32 %v6740_v63, %v5655_v0  ;;  %774 = vst.msk [vmem:[#allocation3 + $0x214] sm:$0xf] %vm310_vm7, %v10254_v2  ;;  %v5753_v0 = vld [vmem:[#allocation3 + $0x1b8] sm:$0xf]  ;;  %v5763_v17 = vld [vmem:[#allocation3 + $0x1e4] sm:$0xf0] }
 0x1a7   :  { %838 = vst.msk [vmem:[#allocation3 + $0x218] sm:$0xf] %vm310_vm7, %v10254_v2 }
 0x1a8   :  { %v1952_v21 = vpop.f32.mrf.mxu3  ;;  %518 = vst.msk [vmem:[#allocation3 + $0x228] sm:$0xf] %vm310_vm7, %v10254_v2 }
 0x1a9   :  { %2034 = vmatmul.bf16.gmra.mxu3 %v5650_v20  ;;  %v1903_v20 = vpop.f32.mrf.mxu2  ;;  %582 = vst.msk [vmem:[#allocation3 + $0x22c] sm:$0xf] %vm310_vm7, %v10254_v2 }
 0x1aa   :  { %v8147_v24 = vadd.f32 %v1952_v21, %v1903_v20  ;;  %646 = vst.msk [vmem:[#allocation3 + $0x230] sm:$0xf] %vm310_vm7, %v10254_v2  ;;  %v5766_v21 = vor.u32 %v6767_v13, %v5763_v17 }
 0x1ac   :  { %2073 = vmatmul.bf16.gmra.mxu0 %v5582_v19  ;;  %v6840_v19 = vld [vmem:[%s10245_s1 + $0x1c8] sm:$0xff] }
 0x1ad   :  { %2122 = vmatmul.bf16.gmra.mxu1 %v5586_v22  ;;  %v5689_v22 = vld [vmem:[#allocation3 + $0x130] sm:$0xf]  ;;  %2213 = vmatpush.bf16.msra.mxu3 %v6840_v19  ;;  %v5555_v19 = vld [vmem:[#allocation3 + $0x3c] sm:$0xf0] }
 0x1ae   :  { %v5690_v31 = vor.u32 %v6753_v23, %v5689_v22  ;;  %v5558_v22 = vor.u32 %v6714_v18, %v5555_v19  ;;  %v5789_v23 = vld [vmem:[#allocation3 + $0x200] sm:$0xf] }
 0x1af   :  { %v5791_v61 = vld [vmem:[#allocation3 + $0x224] sm:$0xf0] }
 0x1b0   :  { %v8170_v46 = vpop.f32.mrf.mxu3  ;;  %v5794_v62 = vor.u32 %v6775_v58, %v5791_v61  ;;  %v6719_v61 = vld [vmem:[#allocation3 + $0x40] sm:$0xf0] }
 0x1b1   :  { %v8164_v45 = vpop.f32.mrf.mxu2  ;;  %2214 = vmatpush.bf16.msra.mxu3 %v6839_v52  ;;  %v5799_v35 = vld [vmem:[#allocation3 + $0x22c] sm:$0xf0] }
 0x1b2   :  { %1980 = vmatmul.bf16.gmra.mxu2 %v5610_v26  ;;  %v5691_v26 = vld [vmem:[#allocation3 + $0x154] sm:$0xf0] }
 0x1b3   :  { %v5694_v36 = vor.u32 %v6749_v25, %v5691_v26  ;;  %v6779_v25 = vld [vmem:[#allocation3 + $0x220] sm:$0xf0] }
 0x1b4   :  { %v5790_v28 = vor.u32 %v6779_v25, %v5789_v23  ;;  %v6727_v23 = vld [vmem:[#allocation3 + $0x80] sm:$0xf0] }
 0x1b9   :  { %2039 = vmatmul.bf16.gmra.mxu3 %v5686_v41  ;;  %v6761_v41 = vld [vmem:[#allocation3 + $0x190] sm:$0xf0] }
 0x1ba   :  { %v5718_v44 = vor.u32 %v6761_v41, %v5717_v37  ;;  %v5591_v37 = vld [vmem:[#allocation3 + $0x84] sm:$0xf0]  ;;  %v5802_v41 = vor.u32 %v6776_v32, %v5799_v35  ;;  %v783_v32 = vld [vmem:[#allocation2 + $0x92] sm:$0xff] }
 0x1bb   :  { %v799_v35 = vpack.c.bf16 %v783_v32, %v783_v32 }
 0x1bc   :  { %2078 = vmatmul.bf16.gmra.mxu0 %v5618_v42 }
 0x1bd   :  { %2127 = vmatmul.bf16.gmra.mxu1 %v5622_v43  ;;  %v1883_v39 = vpop.f32.mrf.mxu0  ;;  %v6848_v43 = vld [vmem:[%s10245_s1 + $0x208] sm:$0xff]  ;;  %815 = vst.msk [vmem:[#allocation3 + $0x11c] sm:$0xf] %vm293_vm6, %v799_v35 }
 0x1be   :  { %v1932_v40 = vpop.f32.mrf.mxu1  ;;  %2262 = vmatpush.bf16.msra.mxu0 %v6848_v43  ;;  %831 = vst.msk [vmem:[#allocation3 + $0x11c] sm:$0xf] %vm310_vm7, %v10254_v2 }
 0x1bf   :  { %v8152_v42 = vadd.f32 %v1932_v40, %v1883_v39 }
 0x1c2   :  { %1985 = vmatmul.bf16.gmra.mxu2 %v5646_v51  ;;  %v6831_v51 = vld [vmem:[%s10245_s1 + $0x180] sm:$0xff] }
 0x1c3   :  { %2165 = vmatpush.bf16.msra.mxu2 %v6831_v51 }
 0x1c6   :  { %v8191_v29 = vpop.f32.mrf.mxu1 }
 0x1c9   :  { %2044 = vmatmul.bf16.gmra.mxu3 %v5722_v1  ;;  %v6770_v1 = vld [vmem:[#allocation3 + $0x1d8] sm:$0xf0] }
 0x1ca   :  { %v5754_v8 = vor.u32 %v6770_v1, %v5753_v0  ;;  %v6732_v0 = vld [vmem:[#allocation3 + $0xac] sm:$0xf]  ;;  %v5627_v1 = vld [vmem:[#allocation3 + $0xcc] sm:$0xf0] }
 0x1cb   :  { %v5630_v19 = vor.u32 %v6732_v0, %v5627_v1  ;;  %v5625_v1 = vld [vmem:[#allocation3 + $0xa8] sm:$0xf] }
 0x1cc   :  { %2083 = vmatmul.bf16.gmra.mxu0 %v5654_v5  ;;  %v6847_v5 = vld [vmem:[%s10245_s1 + $0x200] sm:$0xff] }
 0x1cd   :  { %2132 = vmatmul.bf16.gmra.mxu1 %v5658_v6  ;;  %2263 = vmatpush.bf16.msra.mxu0 %v6847_v5 }
 0x1d2   :  { %1990 = vmatmul.bf16.gmra.mxu2 %v5682_v12  ;;  %v6771_v12 = vld [vmem:[#allocation3 + $0x1e0] sm:$0xf0] }
 0x1d3   :  { %v5762_v20 = vor.u32 %v6771_v12, %v5761_v9 }
 0x1d9   :  { %2049 = vmatmul.bf16.gmra.mxu3 %v5758_v27  ;;  %v8189_v27 = vpop.f32.mrf.mxu0 }
 0x1dc   :  { %2088 = vmatmul.bf16.gmra.mxu0 %v5690_v31  ;;  %v6780_v31 = vld [vmem:[#allocation3 + $0x228] sm:$0xf0] }
 0x1dd   :  { %2137 = vmatmul.bf16.gmra.mxu1 %v5694_v36  ;;  %v6723_v36 = vld [vmem:[#allocation3 + $0x64] sm:$0xf]  ;;  %v5798_v39 = vor.u32 %v6780_v31, %v5797_v30 }
 0x1de   :  { %v5594_v43 = vor.u32 %v6723_v36, %v5591_v37 }
 0x1e2   :  { %1995 = vmatmul.bf16.gmra.mxu2 %v5718_v44 }
 0x1e9   :  { %2054 = vmatmul.bf16.gmra.mxu3 %v5794_v62 }
 0x1eb   :  { %v1908_v63 = vpop.f32.mrf.mxu2 }
 0x1ec   :  { %2093 = vmatmul.bf16.gmra.mxu0 %v5726_v57  ;;  %v1957_v6 = vpop.f32.mrf.mxu3 }
 0x1ed   :  { %2142 = vmatmul.bf16.gmra.mxu1 %v5730_v59  ;;  %v8185_v7 = vadd.f32 %v1957_v6, %v1908_v63  ;;  %v5561_v59 = vld [vmem:[#allocation3 + $0x20] sm:$0xf]  ;;  %v655_v6 = vld [vmem:[#allocation2 + $0x90] sm:$0xff] }
 0x1ee   :  { %v5562_v9 = vor.u32 %v6719_v61, %v5561_v59  ;;  %v671_v12 = vpack.c.bf16 %v655_v6, %v655_v6  ;;  %v1930_v6 = vadd.f32 %v8139_v15, %v8137_v14  ;;  %v5699_v14 = vld [vmem:[#allocation3 + $0x15c] sm:$0xf0] }
 0x1f0   :  { %687 = vst.msk [vmem:[#allocation3 + $0x114] sm:$0xf] %vm293_vm6, %v671_v12 }
 0x1f1   :  { %703 = vst.msk [vmem:[#allocation3 + $0x114] sm:$0xf] %vm310_vm7, %v10254_v2 }
 0x1f2   :  { %2000 = vmatmul.bf16.gmra.mxu2 %v5754_v8  ;;  %v719_v8 = vld [vmem:[#allocation2 + $0x91] sm:$0xff] }
 0x1f3   :  { %v8195_v52 = vpop.f32.mrf.mxu2  ;;  %v735_v13 = vpack.c.bf16 %v719_v8, %v719_v8 }
 0x1f4   :  { %v8187_v16 = vpop.f32.mrf.mxu3 }
 0x1f5   :  { %751 = vst.msk [vmem:[#allocation3 + $0x118] sm:$0xf] %vm293_vm6, %v735_v13 }
 0x1f6   :  { %767 = vst.msk [vmem:[#allocation3 + $0x118] sm:$0xf] %vm310_vm7, %v10254_v2 }
 0x1f9   :  { %2215 = vmatmul.bf16.vlgmr.msra.gmra.mxu3 %v5558_v22  ;;  %v5589_v22 = vld [vmem:[#allocation3 + $0x60] sm:$0xf] }
 0x1fa   :  { %v5590_v31 = vor.u32 %v6727_v23, %v5589_v22 }
 0x1fc   :  { %2098 = vmatmul.bf16.gmra.mxu0 %v5762_v20  ;;  %v2020_v26 = vpop.f32.mrf.mxu3 }
 0x1fd   :  { %2147 = vmatmul.bf16.gmra.mxu1 %v5766_v21  ;;  %v5663_v53 = vld [vmem:[#allocation3 + $0x114] sm:$0xf0] }
 0x202   :  { %2005 = vmatmul.bf16.gmra.mxu2 %v5790_v28 }
 0x204   :  { %v2022_v34 = vpop.f32.mrf.mxu3 }
 0x209   :  { %v1888_v40 = vpop.f32.mrf.mxu0  ;;  %2220 = vmatmul.bf16.gmra.mxu3 %v5594_v43 }
 0x20a   :  { %v1937_v44 = vpop.f32.mrf.mxu1 }
 0x20b   :  { %v8193_v51 = vadd.f32 %v1937_v44, %v1888_v40  ;;  %v6741_v44 = vld [vmem:[#allocation3 + $0xf4] sm:$0xf] }
 0x20c   :  { %2103 = vmatmul.bf16.gmra.mxu0 %v5798_v39  ;;  %v2025_v55 = vpop.f32.mrf.mxu3  ;;  %v5666_v61 = vor.u32 %v6741_v44, %v5663_v53 }
 0x20d   :  { %2152 = vmatmul.bf16.gmra.mxu1 %v5802_v41 }
 0x211   :  { %v8197_v57 = vpop.f32.mrf.mxu0 }
 0x212   :  { %v8199_v58 = vpop.f32.mrf.mxu1  ;;  %2166 = vmatmul.bf16.vlgmr.msra.gmra.mxu2 %v5554_v56 }
 0x214   :  { %v2027_v62 = vpop.f32.mrf.mxu3 }
 0x215   :  { %v1971_v63 = vpop.f32.mrf.mxu2 }
 0x216   :  { %v1972_v5 = vadd.f32 %v1971_v63, %v8106_v38  ;;  %v1925_v38 = vadd.f32 %v8117_v50, %v8115_v49  ;;  %v5597_v49 = vld [vmem:[#allocation3 + $0x68] sm:$0xf]  ;;  %v6728_v50 = vld [vmem:[#allocation3 + $0x88] sm:$0xf0] }
 0x218   :  { %v2021_v17 = vadd.f32 %v2020_v26, %v1972_v5  ;;  %v6736_v5 = vld [vmem:[#allocation3 + $0xc8] sm:$0xf0] }
 0x219   :  { %v2069_v18 = vpop.f32.mrf.mxu0  ;;  %2225 = vmatmul.bf16.gmra.mxu3 %v5630_v19 }
 0x21a   :  { %v2118_v20 = vpop.f32.mrf.mxu1  ;;  %v2070_v21 = vadd.f32 %v2069_v18, %v2021_v17  ;;  %v5626_v17 = vor.u32 %v6736_v5, %v5625_v1  ;;  %v5735_v1 = vld [vmem:[#allocation3 + $0x1a4] sm:$0xf0] }
 0x21c   :  { %2264 = vmatmul.bf16.vlgmr.msra.gmra.mxu0 %v5562_v9  ;;  %v8208_v25 = vadd.f32 %v2118_v20, %v2070_v21  ;;  %v2030_v26 = vpop.f32.mrf.mxu3  ;;  %v5633_v20 = vld [vmem:[#allocation3 + $0xb0] sm:$0xf]  ;;  %v6737_v21 = vld [vmem:[#allocation3 + $0xd0] sm:$0xf0] }
 0x21d   :  { %v1973_v28 = vpop.f32.mrf.mxu2 }
 0x21e   :  { %v1974_v30 = vadd.f32 %v1973_v28, %v1925_v38  ;;  %v6750_v38 = vld [vmem:[#allocation3 + $0x13c] sm:$0xf]  ;;  %v5634_v28 = vor.u32 %v6737_v21, %v5633_v20 }
 0x21f   :  { %v5702_v32 = vor.u32 %v6750_v38, %v5699_v14 }
 0x220   :  { %v2023_v36 = vadd.f32 %v2022_v34, %v1974_v30  ;;  %v5598_v34 = vor.u32 %v6728_v50, %v5597_v49  ;;  %v1935_v49 = vadd.f32 %v8191_v29, %v8189_v27 }
 0x221   :  { %v2071_v37 = vpop.f32.mrf.mxu0 }
 0x222   :  { %v8212_v39 = vpop.f32.mrf.mxu1  ;;  %v8214_v40 = vadd.f32 %v2071_v37, %v2023_v36  ;;  %2171 = vmatmul.bf16.gmra.mxu2 %v5590_v31  ;;  %v5661_v36 = vld [vmem:[#allocation3 + $0xf0] sm:$0xf]  ;;  %v6745_v37 = vld [vmem:[#allocation3 + $0x110] sm:$0xf0] }
 0x224   :  { %v2032_v41 = vpop.f32.mrf.mxu3 }
 0x225   :  { %v1976_v43 = vpop.f32.mrf.mxu2 }
 0x226   :  { %v1977_v54 = vadd.f32 %v1976_v43, %v8127_v4 }
 0x228   :  { %v2026_v56 = vadd.f32 %v2025_v55, %v1977_v54  ;;  %v5662_v54 = vor.u32 %v6745_v37, %v5661_v36 }
 0x229   :  { %v2074_v59 = vpop.f32.mrf.mxu0  ;;  %2230 = vmatmul.bf16.gmra.mxu3 %v5666_v61 }
 0x22a   :  { %v2123_v63 = vpop.f32.mrf.mxu1  ;;  %v2075_v0 = vadd.f32 %v2074_v59, %v2026_v56  ;;  %v5669_v56 = vld [vmem:[#allocation3 + $0xf8] sm:$0xf]  ;;  %v6746_v59 = vld [vmem:[#allocation3 + $0x118] sm:$0xf0] }
 0x22b   :  { %v5670_v29 = vor.u32 %v6746_v59, %v5669_v56  ;;  %v791_v56 = vld [vmem:[#allocation2 + $0x132] sm:$0xff] }
 0x22c   :  { %2269 = vmatmul.bf16.gmra.mxu0 %v5598_v34  ;;  %v8222_v8 = vadd.f32 %v2123_v63, %v2075_v0  ;;  %v2035_v9 = vpop.f32.mrf.mxu3  ;;  %v6759_v0 = vld [vmem:[#allocation3 + $0x184] sm:$0xf]  ;;  %v807_v59 = vpack.c.bf16 %v791_v56, %v791_v56 }
 0x22d   :  { %v1978_v12 = vpop.f32.mrf.mxu2 }
 0x22e   :  { %v1979_v13 = vadd.f32 %v1978_v12, %v1930_v6  ;;  %v5738_v12 = vor.u32 %v6759_v0, %v5735_v1  ;;  %823 = vst.msk [vmem:[#allocation3 + $0x23c] sm:$0xf] %vm293_vm6, %v807_v59  ;;  %v5741_v0 = vld [vmem:[#allocation3 + $0x188] sm:$0xf]  ;;  %v6764_v1 = vld [vmem:[#allocation3 + $0x1a8] sm:$0xf0] }
 0x22f   :  { %839 = vst.msk [vmem:[#allocation3 + $0x23c] sm:$0xf] %vm310_vm7, %v10254_v2 }
 0x230   :  { %v2028_v4 = vadd.f32 %v2027_v62, %v1979_v13 }
 0x231   :  { %v2076_v18 = vpop.f32.mrf.mxu0 }
 0x232   :  { %v8224_v55 = vpop.f32.mrf.mxu1  ;;  %v8226_v19 = vadd.f32 %v2076_v18, %v2028_v4  ;;  %2176 = vmatmul.bf16.gmra.mxu2 %v5626_v17  ;;  %v6754_v17 = vld [vmem:[#allocation3 + $0x158] sm:$0xf0]  ;;  %v1940_v4 = vadd.f32 %v8199_v58, %v8197_v57  ;;  %v663_v57 = vld [vmem:[#allocation2 + $0x130] sm:$0xff] }
 0x233   :  { %v727_v58 = vld [vmem:[#allocation2 + $0x131] sm:$0xff]  ;;  %v679_v36 = vpack.c.bf16 %v663_v57, %v663_v57 }
 0x234   :  { %v2037_v22 = vpop.f32.mrf.mxu3  ;;  %v743_v37 = vpack.c.bf16 %v727_v58, %v727_v58 }
 0x235   :  { %v1981_v23 = vpop.f32.mrf.mxu2  ;;  %695 = vst.msk [vmem:[#allocation3 + $0x234] sm:$0xf] %vm293_vm6, %v679_v36 }
 0x236   :  { %v1982_v15 = vadd.f32 %v1981_v23, %v8152_v42  ;;  %711 = vst.msk [vmem:[#allocation3 + $0x234] sm:$0xf] %vm310_vm7, %v10254_v2  ;;  %v6782_v56 = vld [vmem:[#allocation3 + $0x238] sm:$0xf0] }
 0x237   :  { %759 = vst.msk [vmem:[#allocation3 + $0x238] sm:$0xf] %vm293_vm6, %v743_v37  ;;  %v5805_v37 = vld [vmem:[#allocation3 + $0x210] sm:$0xf] }
 0x238   :  { %v2031_v30 = vadd.f32 %v2030_v26, %v1982_v15  ;;  %v6755_v15 = vld [vmem:[#allocation3 + $0x160] sm:$0xf0]  ;;  %775 = vst.msk [vmem:[#allocation3 + $0x238] sm:$0xf] %vm310_vm7, %v10254_v2 }
 0x239   :  { %v2079_v31 = vpop.f32.mrf.mxu0  ;;  %2235 = vmatmul.bf16.gmra.mxu3 %v5702_v32  ;;  %v5771_v32 = vld [vmem:[#allocation3 + $0x1ec] sm:$0xf0] }
 0x23a   :  { %v2128_v35 = vpop.f32.mrf.mxu1  ;;  %v2080_v62 = vadd.f32 %v2079_v31, %v2031_v30  ;;  %v6768_v31 = vld [vmem:[#allocation3 + $0x1cc] sm:$0xf] }
 0x23c   :  { %2274 = vmatmul.bf16.gmra.mxu0 %v5634_v28  ;;  %v8231_v50 = vadd.f32 %v2128_v35, %v2080_v62  ;;  %v2040_v43 = vpop.f32.mrf.mxu3 }
 0x23d   :  { %v1983_v44 = vpop.f32.mrf.mxu2 }
 0x23e   :  { %v1984_v53 = vadd.f32 %v1983_v44, %v1935_v49  ;;  %v5774_v44 = vor.u32 %v6768_v31, %v5771_v32  ;;  %v5777_v31 = vld [vmem:[#allocation3 + $0x1d0] sm:$0xf]  ;;  %v6773_v32 = vld [vmem:[#allocation3 + $0x1f0] sm:$0xf0] }
 0x240   :  { %v2033_v42 = vadd.f32 %v2032_v41, %v1984_v53  ;;  %v5697_v41 = vld [vmem:[#allocation3 + $0x138] sm:$0xf] }
 0x241   :  { %v2081_v34 = vpop.f32.mrf.mxu0  ;;  %v5698_v23 = vor.u32 %v6754_v17, %v5697_v41  ;;  %v5742_v41 = vor.u32 %v6764_v1, %v5741_v0 }
 0x242   :  { %v8233_v26 = vadd.f32 %v2081_v34, %v2033_v42  ;;  %2181 = vmatmul.bf16.gmra.mxu2 %v5662_v54  ;;  %v5733_v54 = vld [vmem:[#allocation3 + $0x180] sm:$0xf]  ;;  %v6763_v42 = vld [vmem:[#allocation3 + $0x1a0] sm:$0xf0] }
 0x243   :  { %v5734_v34 = vor.u32 %v6763_v42, %v5733_v54 }
 0x244   :  { %v8235_v61 = vpop.f32.mrf.mxu3 }
 0x245   :  { %v1986_v63 = vpop.f32.mrf.mxu2 }
 0x246   :  { %v1987_v27 = vadd.f32 %v1986_v63, %v8193_v51 }
 0x248   :  { %v2036_v5 = vadd.f32 %v2035_v9, %v1987_v27  ;;  %v5705_v9 = vld [vmem:[#allocation3 + $0x140] sm:$0xf] }
 0x249   :  { %v2084_v6 = vpop.f32.mrf.mxu0  ;;  %2240 = vmatmul.bf16.gmra.mxu3 %v5738_v12  ;;  %v5706_v62 = vor.u32 %v6755_v15, %v5705_v9 }
 0x24a   :  { %v8238_v13 = vadd.f32 %v2084_v6, %v2036_v5  ;;  %v6777_v5 = vld [vmem:[#allocation3 + $0x214] sm:$0xf]  ;;  %v5807_v6 = vld [vmem:[#allocation3 + $0x234] sm:$0xf0] }
 0x24c   :  { %2279 = vmatmul.bf16.gmra.mxu0 %v5670_v29  ;;  %v2045_v18 = vpop.f32.mrf.mxu3 }
 0x24d   :  { %v1988_v20 = vpop.f32.mrf.mxu2 }
 0x24e   :  { %v1989_v21 = vadd.f32 %v1988_v20, %v1940_v4  ;;  %v5810_v20 = vor.u32 %v6777_v5, %v5807_v6 }
 0x250   :  { %v2038_v38 = vadd.f32 %v2037_v22, %v1989_v21 }
 0x251   :  { %v2086_v14 = vpop.f32.mrf.mxu0 }
 0x252   :  { %v8242_v51 = vadd.f32 %v2086_v14, %v2038_v38  ;;  %2186 = vmatmul.bf16.gmra.mxu2 %v5698_v23  ;;  %v5769_v23 = vld [vmem:[#allocation3 + $0x1c8] sm:$0xf]  ;;  %v6772_v38 = vld [vmem:[#allocation3 + $0x1e8] sm:$0xf0] }
 0x253   :  { %v5770_v9 = vor.u32 %v6772_v38, %v5769_v23 }
 0x254   :  { %v8244_v28 = vpop.f32.mrf.mxu3 }
 0x255   :  { %v1991_v30 = vpop.f32.mrf.mxu2 }
 0x256   :  { %v1992_v35 = vadd.f32 %v1991_v30, %v8104_v33 }
 0x258   :  { %v2041_v49 = vadd.f32 %v2040_v43, %v1992_v35  ;;  %v5778_v35 = vor.u32 %v6773_v32, %v5777_v31  ;;  %v2130_v32 = vpop.f32.mrf.mxu1 }
 0x259   :  { %v2089_v22 = vpop.f32.mrf.mxu0  ;;  %2245 = vmatmul.bf16.gmra.mxu3 %v5774_v44 }
 0x25a   :  { %v8248_v53 = vadd.f32 %v2089_v22, %v2041_v49  ;;  %v6781_v49 = vld [vmem:[#allocation3 + $0x230] sm:$0xf0] }
 0x25b   :  { %v5806_v44 = vor.u32 %v6781_v49, %v5805_v37 }
 0x25c   :  { %2284 = vmatmul.bf16.gmra.mxu0 %v5706_v62  ;;  %v2050_v33 = vpop.f32.mrf.mxu3 }
 0x25d   :  { %v8255_v43 = vpop.f32.mrf.mxu2 }
 0x260   :  { %v2133_v49 = vpop.f32.mrf.mxu1 }
 0x261   :  { %v8257_v63 = vpop.f32.mrf.mxu0 }
 0x262   :  { %2191 = vmatmul.bf16.gmra.mxu2 %v5734_v34  ;;  %v5813_v34 = vld [vmem:[#allocation3 + $0x218] sm:$0xf] }
 0x263   :  { %v5814_v0 = vor.u32 %v6782_v56, %v5813_v34 }
 0x264   :  { %v8262_v29 = vpop.f32.mrf.mxu3 }
 0x265   :  { %v1996_v27 = vpop.f32.mrf.mxu2 }
 0x266   :  { %v1997_v12 = vadd.f32 %v1996_v27, %v8125_v60 }
 0x268   :  { %v2046_v17 = vadd.f32 %v2045_v18, %v1997_v12 }
 0x269   :  { %v2094_v4 = vpop.f32.mrf.mxu0  ;;  %2250 = vmatmul.bf16.gmra.mxu3 %v5810_v20 }
 0x26a   :  { %v8265_v21 = vadd.f32 %v2094_v4, %v2046_v17 }
 0x26c   :  { %2289 = vmatmul.bf16.gmra.mxu0 %v5742_v41  ;;  %v2055_v15 = vpop.f32.mrf.mxu3 }
 0x26d   :  { %v8267_v14 = vpop.f32.mrf.mxu2 }
 0x271   :  { %v8269_v30 = vpop.f32.mrf.mxu0 }
 0x272   :  { %2196 = vmatmul.bf16.gmra.mxu2 %v5770_v9 }
 0x274   :  { %v8272_v57 = vpop.f32.mrf.mxu3 }
 0x275   :  { %v2001_v60 = vpop.f32.mrf.mxu2  ;;  %10258 = vst [vmem:[#allocation6_spill] sm:$0xff] %v8272_v57  ;;  %v2305_v57 = vlaneseq }
 0x276   :  { %v2002_v18 = vadd.f32 %v2001_v60, %v8147_v24 }
 0x278   :  { %v2051_v58 = vadd.f32 %v2050_v33, %v2002_v18 }
 0x279   :  { %v2099_v62 = vpop.f32.mrf.mxu0 }
 0x27a   :  { %v8274_v36 = vadd.f32 %v2099_v62, %v2051_v58 }
 0x27c   :  { %10259 = vst [vmem:[#allocation7_spill] sm:$0xff] %v8274_v36  ;;  %2294 = vmatmul.bf16.gmra.mxu0 %v5778_v35  ;;  %v2216_v54 = vpop.f32.mrf.mxu3 }
 0x27d   :  { %v8276_v22 = vpop.f32.mrf.mxu2 }
 0x281   :  { %v8278_v42 = vpop.f32.mrf.mxu0 }
 0x282   :  { %2201 = vmatmul.bf16.gmra.mxu2 %v5806_v44 }
 0x284   :  { %v8281_v33 = vpop.f32.mrf.mxu3 }
 0x285   :  { %v2006_v24 = vpop.f32.mrf.mxu2 }
 0x286   :  { %v2007_v59 = vadd.f32 %v2006_v24, %v8185_v7 }
 0x288   :  { %v2056_v1 = vadd.f32 %v2055_v15, %v2007_v59 }
 0x289   :  { %v2104_v27 = vpop.f32.mrf.mxu0 }
 0x28a   :  { %v8283_v5 = vadd.f32 %v2104_v27, %v2056_v1 }
 0x28c   :  { %10260 = vst [vmem:[#allocation8_spill] sm:$0xff] %v8283_v5  ;;  %2299 = vmatmul.bf16.gmra.mxu0 %v5814_v0  ;;  %v2221_v12 = vpop.f32.mrf.mxu3  ;;  %v2135_v0 = vpop.f32.mrf.mxu1  ;;  %v2121_v5 = vadd.f32 %v8212_v39, %v8214_v40  ;;  %v1950_v39 = vadd.f32 %v8134_v11, %v8132_v10 }
 0x28d   :  { %v8285_v6 = vpop.f32.mrf.mxu2 }
 0x28e   :  { %10261 = vst [vmem:[#allocation9_spill] sm:$0xff] %v8285_v6 }
 0x291   :  { %v8287_v41 = vpop.f32.mrf.mxu0 }
 0x292   :  { %10262 = vst [vmem:[#allocation10_spill] sm:$0xff] %v8287_v41 }
 0x294   :  { %v8290_v20 = vpop.f32.mrf.mxu3 }
 0x295   :  { %v2167_v17 = vpop.f32.mrf.mxu2 }
 0x296   :  { %v2168_v4 = vadd.f32 %v2167_v17, %v8208_v25  ;;  %v2138_v17 = vpop.f32.mrf.mxu1 }
 0x298   :  { %v2217_v23 = vadd.f32 %v2216_v54, %v2168_v4 }
 0x299   :  { %v2265_v7 = vpop.f32.mrf.mxu0 }
 0x29a   :  { %v8292_v38 = vadd.f32 %v2265_v7, %v2217_v23 }
 0x29c   :  { %v2226_v31 = vpop.f32.mrf.mxu3 }
 0x29d   :  { %v2169_v9 = vpop.f32.mrf.mxu2 }
 0x2a1   :  { %v8294_v15 = vpop.f32.mrf.mxu0 }
 0x2a4   :  { %v8299_v37 = vpop.f32.mrf.mxu3 }
 0x2a5   :  { %v2172_v60 = vpop.f32.mrf.mxu2 }
 0x2a6   :  { %v2173_v18 = vadd.f32 %v2172_v60, %v8222_v8  ;;  %v2140_v60 = vpop.f32.mrf.mxu1 }
 0x2a8   :  { %v2222_v35 = vadd.f32 %v2221_v12, %v2173_v18 }
 0x2a9   :  { %v2270_v58 = vpop.f32.mrf.mxu0 }
 0x2aa   :  { %v8297_v62 = vadd.f32 %v2270_v58, %v2222_v35 }
 0x2ac   :  { %v8303_v34 = vpop.f32.mrf.mxu3 }
 0x2ad   :  { %v2174_v25 = vpop.f32.mrf.mxu2 }
 0x2ae   :  { %v8320_v58 = vpop.f32.mrf.mxu1 }
 0x2b1   :  { %v8301_v44 = vpop.f32.mrf.mxu0 }
 0x2b4   :  { %v8308_v27 = vpop.f32.mrf.mxu3 }
 0x2b5   :  { %v2177_v54 = vpop.f32.mrf.mxu2 }
 0x2b6   :  { %v2178_v56 = vadd.f32 %v2177_v54, %v8231_v50  ;;  %v8330_v3 = vpop.f32.mrf.mxu1 }
 0x2b8   :  { %v2227_v24 = vadd.f32 %v2226_v31, %v2178_v56 }
 0x2b9   :  { %v2275_v59 = vpop.f32.mrf.mxu0 }
 0x2ba   :  { %v8306_v1 = vadd.f32 %v2275_v59, %v2227_v24 }
 0x2bc   :  { %v8314_v7 = vpop.f32.mrf.mxu3 }
 0x2bd   :  { %v2179_v8 = vpop.f32.mrf.mxu2 }
 0x2c1   :  { %v8310_v12 = vpop.f32.mrf.mxu0 }
 0x2c4   :  { %v8318_v50 = vpop.f32.mrf.mxu3 }
 0x2c5   :  { %v2182_v4 = vpop.f32.mrf.mxu2  ;;  %10264 = vst [vmem:[#allocation12_spill] sm:$0xff] %v8318_v50  ;;  %v8342_v50 = vand.u32 127, %v2305_v57 }
 0x2c7   :  { %10270 = vst [vmem:[#allocation18_spill] sm:$0xff] %v8342_v50  ;;  %v2310_v36 = vand.u32 65535, %v8342_v50 }
 0x2c9   :  { %v8312_v23 = vpop.f32.mrf.mxu0 }
 0x2cc   :  { %v8326_v24 = vpop.f32.mrf.mxu3 }
 0x2cd   :  { %v2184_v18 = vpop.f32.mrf.mxu2  ;;  %10266 = vst [vmem:[#allocation14_spill] sm:$0xff] %v8326_v24  ;;  %v2170_v24 = vadd.f32 %v2169_v9, %v2121_v5  ;;  %v1999_v9 = vadd.f32 %v8267_v14, %v1950_v39 }
 0x2cf   :  { %v2048_v14 = vadd.f32 %v8244_v28, %v1999_v9 }
 0x2d1   :  { %v8316_v35 = vpop.f32.mrf.mxu0 }
 0x2d2   :  { %10263 = vst [vmem:[#allocation11_spill] sm:$0xff] %v8316_v35  ;;  %v8345_v35 = vpop.f32.mrf.mxu1 }
 0x2d4   :  { %v8334_v41 = vpop.f32.mrf.mxu3 }
 0x2d5   :  { %v2187_v31 = vpop.f32.mrf.mxu2  ;;  %10268 = vst [vmem:[#allocation16_spill] sm:$0xff] %v8334_v41  ;;  %v2126_v41 = vadd.f32 %v8224_v55, %v8226_v19  ;;  %v2131_v55 = vadd.f32 %v2130_v32, %v8233_v26 }
 0x2d7   :  { %v2175_v57 = vadd.f32 %v2174_v25, %v2126_v41  ;;  %v2134_v41 = vadd.f32 %v2133_v49, %v8238_v13 }
 0x2d9   :  { %v8322_v54 = vpop.f32.mrf.mxu0  ;;  %v2183_v32 = vadd.f32 %v2182_v4, %v2134_v41 }
 0x2da   :  { %10265 = vst [vmem:[#allocation13_spill] sm:$0xff] %v8322_v54  ;;  %v1945_v54 = vadd.f32 %v8113_v48, %v8111_v47  ;;  %v8355_v47 = vmul.u32 43690, %v2310_v36  ;;  %v2219_v48 = vadd.f32 %v8281_v33, %v2170_v24  ;;  %v2150_v24 = vpop.f32.mrf.mxu1 }
 0x2db   :  { %v2232_v4 = vadd.f32 %v8303_v34, %v2183_v32 }
 0x2dc   :  { %v8366_v11 = vpop.f32.mrf.mxu3  ;;  %v2317_v33 = vshll.u32 %v8355_v47, 16 }
 0x2dd   :  { %v8324_v56 = vpop.f32.mrf.mxu2 }
 0x2e1   :  { %v8328_v59 = vpop.f32.mrf.mxu0  ;;  %v10276_v32 = vld [vmem:[#allocation13_spill] sm:$0xff] }
 0x2e2   :  { %10267 = vst [vmem:[#allocation15_spill] sm:$0xff] %v8328_v59  ;;  %v1994_v59 = vadd.f32 %v8255_v43, %v1945_v54  ;;  %v1955_v43 = vadd.f32 %v8170_v46, %v8164_v45  ;;  %v2313_v54 = vmul.u32 43691, %v2310_v36  ;;  %v8373_v45 = vadd.f32 %v8294_v15, %v2219_v48 }
 0x2e3   :  { %v2224_v46 = vadd.f32 %v8290_v20, %v2175_v57  ;;  %v2139_v36 = vadd.f32 %v2138_v17, %v8248_v53  ;;  %v2345_v17 = vsel %vm2341_vm10, %v8297_v62, 0.0  ;;  %v10271_v48 = vmov 0  }
 0x2e4   :  { %v2043_v5 = vadd.f32 %v8235_v61, %v1994_v59  ;;  %v2004_v10 = vadd.f32 %v8276_v22, %v1955_v43  ;;  %v2180_v61 = vadd.f32 %v2179_v8, %v2131_v55  ;;  %v2136_v22 = vadd.f32 %v2135_v0, %v8242_v51 }
 0x2e5   :  { %v8332_v2 = vpop.f32.mrf.mxu2  ;;  %vm2321_vm11 = vc.u32 %v2313_v54, %v2317_v33  ;;  %v2323_v49 = vadd.s32 %v2317_v33, %v2313_v54  ;;  %v2343_v20 = vsel %vm2341_vm10, %v8373_v45, 0.0  ;;  %v2097_v0 = vadd.f32 %v8269_v30, %v2048_v14  ;;  %v10275_v14 = vld [vmem:[#allocation9_spill] sm:$0xff] }
 0x2e6   :  { %v2092_v26 = vadd.f32 %v8257_v63, %v2043_v5  ;;  %v2053_v25 = vadd.f32 %v8262_v29, %v2004_v10  ;;  %v8385_v63 = vadd.f32 %v8301_v44, %v2224_v46  ;;  %v2229_v51 = vadd.f32 %v8299_v37, %v2180_v61 }
 0x2e7   :  { %v2185_v28 = vadd.f32 %v2184_v18, %v2136_v22  ;;  %v2342_v29 = vsel %vm2341_vm10, %v8292_v38, 0.0  ;;  %v2188_v59 = vadd.f32 %v2187_v31, %v2139_v36  ;;  %v2322_v44 = vsel %vm2321_vm11, 1, %v10271_v48 }
 0x2e8   :  { %v2141_v53 = vadd.f32 %v2140_v60, %v2092_v26  ;;  %v2144_v37 = vadd.f32 %v8320_v58, %v8265_v21  ;;  %v2102_v60 = vadd.f32 %v8278_v42, %v2053_v25  ;;  %v2344_v18 = vadd.f32 %v2343_v20, %v2342_v29  ;;  %v2248_v58 = vpop.f32.mrf.mxu3  ;;  %v2153_v26 = vpop.f32.mrf.mxu1 }
 0x2e9   :  { %v8338_v6 = vpop.f32.mrf.mxu0  ;;  %v2347_v30 = vsel %vm2341_vm10, %v8385_v63, 0.0  ;;  %v2234_v57 = vadd.f32 %v8308_v27, %v2185_v28  ;;  %v2146_v31 = vadd.f32 %v8330_v3, %v2097_v0  ;;  %v2349_v21 = vsel %vm2341_vm10, %v8306_v1, 0.0  ;;  %v10278_v28 = vld [vmem:[#allocation15_spill] sm:$0xff]  ;;  %v10279_v0 = vld [vmem:[#allocation16_spill] sm:$0xff] }
 0x2ea   :  { %10269 = vst [vmem:[#allocation17_spill] sm:$0xff] %v8338_v6  ;;  %v2311_v6 = vshrl.u32 %v8342_v50, 16  ;;  %v2190_v34 = vadd.f32 %v8324_v56, %v2141_v53  ;;  %v2346_v43 = vadd.f32 %v2345_v17, %v2344_v18  ;;  %v8409_v5 = vadd.f32 %v8312_v23, %v2232_v4  ;;  %v10272_v56 = vld [vmem:[#allocation7_spill] sm:$0xff] }
 0x2eb   :  { %v2237_v9 = vadd.f32 %v8314_v7, %v2188_v59  ;;  %v1960_v27 = vadd.f32 %v8187_v16, %v8195_v52  ;;  %v2149_v3 = vadd.f32 %v8345_v35, %v10272_v56  ;;  %v2151_v10 = vadd.f32 %v2150_v24, %v2102_v60  ;;  %v10273_v23 = vld [vmem:[#allocation11_spill] sm:$0xff]  ;;  %v10274_v7 = vld [vmem:[#allocation12_spill] sm:$0xff]  ;;  %v10277_v24 = vld [vmem:[#allocation14_spill] sm:$0xff] }
 0x2ec   :  { %v8368_v50 = vmul.u32 43691, %v2311_v6  ;;  %v2316_v8 = vmul.u32 43690, %v2311_v6  ;;  %v8401_v6 = vadd.f32 %v8310_v12, %v2229_v51  ;;  %v2193_v12 = vadd.f32 %v8332_v2, %v2144_v37  ;;  %v10281_v37 = vld [vmem:[#allocation6_spill] sm:$0xff] }
 0x2ed   :  { %v8352_v40 = vpop.f32.mrf.mxu2  ;;  %v2348_v54 = vadd.f32 %v2347_v30, %v2346_v43  ;;  %v8421_v46 = vadd.f32 %v10273_v23, %v2234_v57  ;;  %v2239_v61 = vadd.f32 %v10274_v7, %v2190_v34  ;;  %v2009_v22 = vadd.f32 %v10275_v14, %v1960_v27  ;;  %v10283_v27 = vld [vmem:[#allocation10_spill] sm:$0xff] }
 0x2ee   :  { %v2319_v15 = vshll.u32 %v8368_v50, 16  ;;  %v2324_v42 = vadd.s32 %v2322_v44, %v2316_v8  ;;  %v2351_v41 = vsel %vm2341_vm10, %v8401_v6, 0.0  ;;  %v2195_v2 = vadd.f32 %v8352_v40, %v2146_v31  ;;  %v10280_v8 = vld [vmem:[#allocation8_spill] sm:$0xff] }
 0x2ef   :  { %v2350_v16 = vadd.f32 %v2349_v21, %v2348_v54  ;;  %v2318_v52 = vshrl.u32 %v8355_v47, 16  ;;  %v2353_v36 = vsel %vm2341_vm10, %v8409_v5, 0.0  ;;  %v8430_v25 = vadd.f32 %v10276_v32, %v2237_v9 }
 0x2f0   :  { %vm2325_vm12 = vc.u32 %v2323_v49, %v2319_v15  ;;  %v2242_v15 = vadd.f32 %v10277_v24, %v2193_v12  ;;  %v2355_v40 = vsel %vm2341_vm10, %v8421_v46, 0.0  ;;  %v8436_v53 = vadd.f32 %v10278_v28, %v2239_v61  ;;  %v2251_v43 = vpop.f32.mrf.mxu3 }
 0x2f1   :  { %v8363_v19 = vpop.f32.mrf.mxu0  ;;  %v2326_v55 = vsel %vm2325_vm12, 1, %v10271_v48  ;;  %v2352_v51 = vadd.f32 %v2351_v41, %v2350_v16  ;;  %v2244_v47 = vadd.f32 %v10279_v0, %v2195_v2  ;;  %v2154_v17 = vadd.f32 %v2153_v26, %v10280_v8  ;;  %v10282_v18 = vld [vmem:[#allocation17_spill] sm:$0xff] }
 0x2f2   :  { %v2328_v35 = vadd.s32 %v2326_v55, %v2324_v42  ;;  %v2320_v59 = vshrl.u32 %v8368_v50, 16  ;;  %v2058_v60 = vadd.f32 %v10281_v37, %v2009_v22  ;;  %v8445_v30 = vadd.f32 %v10282_v18, %v2242_v15 }
 0x2f3   :  { %v2354_v4 = vadd.f32 %v2353_v36, %v2352_v51  ;;  %v2359_v21 = vsel %vm2341_vm10, %v8436_v53, 0.0  ;;  %v8451_v42 = vadd.f32 %v8363_v19, %v2244_v47 }
 0x2f4   :  { %v2329_v44 = vadd.s32 %v2328_v35, %v2318_v52  ;;  %v2107_v56 = vadd.f32 %v10283_v27, %v2058_v60 }
 0x2f5   :  { %v2197_v13 = vpop.f32.mrf.mxu2  ;;  %v2356_v34 = vadd.f32 %v2355_v40, %v2354_v4  ;;  %v2363_v23 = vsel %vm2341_vm10, %v8451_v42, 0.0  ;;  %v10284_v40 = vld [vmem:[#allocation18_spill] sm:$0xff] }
 0x2f6   :  { %v2198_v49 = vadd.f32 %v2197_v13, %v2149_v3  ;;  %v2357_v13 = vsel %vm2341_vm10, %v8430_v25, 0.0  ;;  %v2330_v55 = vadd.s32 %v2329_v44, %v2320_v59  ;;  %v2361_v3 = vsel %vm2341_vm10, %v8445_v30, 0.0 }
 0x2f7   :  { %v2358_v12 = vadd.f32 %v2357_v13, %v2356_v34 }
 0x2f8   :  { %v2247_v57 = vadd.f32 %v8366_v11, %v2198_v49  ;;  %v2331_v7 = vshrl.u32 %v2330_v55, 2  ;;  %v2253_v35 = vpop.f32.mrf.mxu3 }
 0x2f9   :  { %v2295_v39 = vpop.f32.mrf.mxu0  ;;  %v2360_v41 = vadd.f32 %v2359_v21, %v2358_v12 }
 0x2fa   :  { %v2332_v36 = vmul.u32 6, %v2331_v7 }
 0x2fc   :  { %v2333_v28 = vsub.s32 %v10284_v40, %v2332_v36 }
 0x2fd   :  { %v2199_v33 = vpop.f32.mrf.mxu2 }
 0x2fe   :  { %v2200_v29 = vadd.f32 %v2199_v33, %v2151_v10  ;;  %v8456_v10 = vadd.f32 %v2295_v39, %v2247_v57  ;;  %v2155_v33 = vpop.f32.mrf.mxu1  ;;  %vm2336_vm13 = vcmp.ne.s32.totalorder %v2333_v28, 0  ;;  %vm2337_vm14 = vcmp.lt.s32.totalorder %v2333_v28, 0 }
 0x2ff   :  { %v2156_v61 = vadd.f32 %v2155_v33, %v2107_v56  ;;  %vm2338_vm15 = vmand %vm2337_vm14, %vm2336_vm13 }
 0x300   :  { %v2249_v50 = vadd.f32 %v2248_v58, %v2200_v29  ;;  %v2362_v58 = vadd.f32 %v2361_v3, %v2360_v41  ;;  %v2365_v2 = vsel %vm2341_vm10, %v8456_v10, 0.0 }
 0x301   :  { %v2297_v20 = vpop.f32.mrf.mxu0 }
 0x302   :  { %v8460_v19 = vadd.f32 %v2297_v20, %v2249_v50  ;;  %v2364_v14 = vadd.f32 %v2363_v23, %v2362_v58 }
 0x304   :  { %v2367_v22 = vsel %vm2341_vm10, %v8460_v19, 0.0  ;;  %v2366_v52 = vadd.f32 %v2365_v2, %v2364_v14 }
 0x305   :  { %v2202_v31 = vpop.f32.mrf.mxu2 }
 0x306   :  { %v2203_v9 = vadd.f32 %v2202_v31, %v2154_v17  ;;  %v2368_v15 = vadd.f32 %v2367_v22, %v2366_v52  ;;  %v2339_v17 = vadd.s32 6, %v2333_v28 }
 0x308   :  { %v2252_v11 = vadd.f32 %v2251_v43, %v2203_v9  ;;  %v8475_v44 = vsel %vm2338_vm15, %v2339_v17, %v2333_v28 }
 0x309   :  { %v2300_v54 = vpop.f32.mrf.mxu0  ;;  %vm2408_vm0 = vcmp.eq.s32.totalorder %v8475_v44, 2  ;;  %vm2394_vm1 = vcmp.eq.s32.totalorder %v8475_v44, 1  ;;  %vm2379_vm2 = vcmp.eq.s32.totalorder %v8475_v44, 0  ;;  %vm2422_vm4 = vcmp.eq.s32.totalorder %v8475_v44, 3 }
 0x30a   :  { %v8464_v26 = vadd.f32 %v2300_v54, %v2252_v11  ;;  %vm2436_vm5 = vcmp.eq.s32.totalorder %v8475_v44, 4  ;;  %vm2450_vm6 = vcmp.eq.s32.totalorder %v8475_v44, 5  ;;  %v8645_v44 = vld [vmem:[%s10246_s2] ss:$0 sm:$0xff] }
 0x30c   :  { %v2369_v32 = vsel %vm2341_vm10, %v8464_v26, 0.0 }
 0x30d   :  { %v2204_v39 = vpop.f32.mrf.mxu2  ;;  %v2370_v51 = vadd.f32 %v2369_v32, %v2368_v15 }
 0x30e   :  { %v2205_v16 = vadd.f32 %v2204_v39, %v2156_v61 }
 0x310   :  { %v2254_v24 = vadd.f32 %v2253_v35, %v2205_v16 }
 0x311   :  { %v2302_v49 = vpop.f32.mrf.mxu0 }
 0x312   :  { %v8470_v20 = vadd.f32 %v2302_v49, %v2254_v24 }
 0x314   :  { %v2371_v0 = vsel %vm2341_vm10, %v8470_v20, 0.0 }
 0x315   :  { %v2372_v47 = vadd.f32 %v2371_v0, %v2370_v51 }
 0x317   :  { %v2373_v29 = vrot.slane %v2372_v47, 4 }
 0x319   :  { %v2374_v8 = vadd.f32 %v2373_v29, %v2372_v47 }
 0x31b   :  { %v2375_v4 = vrot.slane %v2374_v8, 2 }
 0x31d   :  { %v2376_v59 = vadd.f32 %v2375_v4, %v2374_v8 }
 0x31f   :  { %v2377_v37 = vrot.slane %v2376_v59, 1 }
 0x321   :  { %v2378_v60 = vadd.f32 %v2377_v37, %v2376_v59 }
 0x323   :  { %v2409_v13 = vsel %vm2408_vm0, %v2378_v60, 0.0  ;;  %v2395_v18 = vsel %vm2394_vm1, %v2378_v60, 0.0  ;;  %v2380_v57 = vsel %vm2379_vm2, %v2378_v60, 0.0  ;;  %v2423_v21 = vsel %vm2422_vm4, %v2378_v60, 0.0 }
 0x324   :  { %v2410_v34 = vsel %vm2381_vm3, %v2409_v13, 0.0  ;;  %v2396_v31 = vsel %vm2381_vm3, %v2395_v18, 0.0  ;;  %v2382_v43 = vsel %vm2381_vm3, %v2380_v57, 0.0  ;;  %v2437_v50 = vsel %vm2436_vm5, %v2378_v60, 0.0 }
 0x325   :  { %2411 = vadd.xlane.f32.xlu0 %v2410_v34  ;;  %2397 = vadd.xlane.f32.xlu2 %v2396_v31  ;;  %v2424_v9 = vsel %vm2381_vm3, %v2423_v21, 0.0  ;;  %v2438_v12 = vsel %vm2381_vm3, %v2437_v50, 0.0  ;;  %v2451_v55 = vsel %vm2450_vm6, %v2378_v60, 0.0 }
 0x326   :  { %2383 = vadd.xlane.f32.xlu1 %v2382_v43  ;;  %v2452_v27 = vsel %vm2381_vm3, %v2451_v55, 0.0 }
 0x32d   :  { %2425 = vadd.xlane.f32.xlu2 %v2424_v9 }
 0x32e   :  { %2439 = vadd.xlane.f32.xlu1 %v2438_v12 }
 0x335   :  { %2453 = vadd.xlane.f32.xlu2 %v2452_v27 }
 0x398   :  { %v2412_v56 = vpop.xlane.xlu0 %2411  ;;  %v2398_v3 = vpop.xlane.xlu2 %2397 }
 0x399   :  { %v2413_v11 = vrot.slane %v2412_v56, 4  ;;  %v2399_v54 = vrot.slane %v2398_v3, 4  ;;  %v2384_v33 = vpop.xlane.xlu1 %2383 }
 0x39a   :  { %v2385_v41 = vrot.slane %v2384_v33, 4 }
 0x39b   :  { %v2414_v23 = vadd.f32 %v2413_v11, %v2412_v56  ;;  %v2400_v58 = vadd.f32 %v2399_v54, %v2398_v3 }
 0x39c   :  { %v2386_v7 = vadd.f32 %v2385_v41, %v2384_v33 }
 0x39d   :  { %v2415_v61 = vrot.slane %v2414_v23, 2  ;;  %v2401_v2 = vrot.slane %v2400_v58, 2 }
 0x39e   :  { %v2387_v14 = vrot.slane %v2386_v7, 2 }
 0x39f   :  { %v2402_v39 = vadd.f32 %v2401_v2, %v2400_v58  ;;  %v2416_v22 = vadd.f32 %v2415_v61, %v2414_v23 }
 0x3a0   :  { %v2426_v16 = vpop.xlane.xlu2 %2425  ;;  %v2388_v52 = vadd.f32 %v2387_v14, %v2386_v7 }
 0x3a1   :  { %v2427_v35 = vrot.slane %v2426_v16, 4  ;;  %v2440_v36 = vpop.xlane.xlu1 %2439  ;;  %v2403_v32 = vrot.slane %v2402_v39, 1  ;;  %v2417_v24 = vrot.slane %v2416_v22, 1 }
 0x3a2   :  { %v2441_v15 = vrot.slane %v2440_v36, 4  ;;  %v2389_v49 = vrot.slane %v2388_v52, 1 }
 0x3a3   :  { %v2428_v51 = vadd.f32 %v2427_v35, %v2426_v16  ;;  %v2404_v28 = vadd.f32 %v2403_v32, %v2402_v39  ;;  %v2418_v29 = vadd.f32 %v2417_v24, %v2416_v22 }
 0x3a4   :  { %v2442_v0 = vadd.f32 %v2441_v15, %v2440_v36  ;;  %v2390_v47 = vadd.f32 %v2389_v49, %v2388_v52 }
 0x3a5   :  { %v2429_v8 = vrot.slane %v2428_v51, 2 }
 0x3a6   :  { %v2443_v17 = vrot.slane %v2442_v0, 2  ;;  %7015 = vpush %v2390_v47 }
 0x3a7   :  { %7017 = vpush %v2404_v28  ;;  %v2430_v4 = vadd.f32 %v2429_v8, %v2428_v51 }
 0x3a8   :  { %7019 = vpush %v2418_v29  ;;  %v2454_v59 = vpop.xlane.xlu2 %2453  ;;  %v2444_v37 = vadd.f32 %v2443_v17, %v2442_v0 }
 0x3a9   :  { %v2455_v60 = vrot.slane %v2454_v59, 4  ;;  %v2431_v13 = vrot.slane %v2430_v4, 1 }
 0x3aa   :  { %v2445_v18 = vrot.slane %v2444_v37, 1 }
 0x3ab   :  { %v2456_v57 = vadd.f32 %v2455_v60, %v2454_v59  ;;  %v2432_v34 = vadd.f32 %v2431_v13, %v2430_v4 }
 0x3ac   :  { %v2446_v31 = vadd.f32 %v2445_v18, %v2444_v37 }
 0x3ad   :  { %v2457_v43 = vrot.slane %v2456_v57, 2  ;;  %7021 = vpush %v2432_v34 }
 0x3ae   :  { %7023 = vpush %v2446_v31 }
 0x3af   :  { %v2458_v21 = vadd.f32 %v2457_v43, %v2456_v57 }
 0x3b1   :  { %v2459_v50 = vrot.slane %v2458_v21, 1 }
 0x3b3   :  { %v2460_v9 = vadd.f32 %v2459_v50, %v2458_v21 }
 0x3b5   :  { %7025 = vpush %v2460_v9 }
 0x3d7   :  { %s7016_s1 = spop %7015 }
 0x3d8   :  { %v2392_v12 = vstv %s7016_s1  ;;  %s7018_s16 = spop %7017 }
 0x3d9   :  { %v2393_v55 = vsel %vm2379_vm2, %v2392_v12, 0.0  ;;  %v2406_v27 = vstv %s7018_s16  ;;  %s7020_s17 = spop %7019 }
 0x3da   :  { %v2407_v56 = vsel %vm2394_vm1, %v2406_v27, %v2393_v55  ;;  %v2420_v11 = vstv %s7020_s17 }
 0x3db   :  { %v2421_v54 = vsel %vm2408_vm0, %v2420_v11, %v2407_v56 }
 0x3de   :  { %s7022_s18 = spop %7021 }
 0x3df   :  { %v2434_v3 = vstv %s7022_s18  ;;  %s7024_s19 = spop %7023 }
 0x3e0   :  { %v2435_v33 = vsel %vm2422_vm4, %v2434_v3, %v2421_v54  ;;  %v2448_v41 = vstv %s7024_s19 }
 0x3e1   :  { %v2449_v23 = vsel %vm2436_vm5, %v2448_v41, %v2435_v33 }
 0x3e6   :  { %s7026_s20 = spop %7025 }
 0x3e7   :  { %v2462_v58 = vstv %s7026_s20 }
 0x3e8   :  { %v2463_v7 = vsel %vm2450_vm6, %v2462_v58, %v2449_v23 }
 0x3e9   :  { %v2464_v61 = vmul.f32 0.0009765625, %v2463_v7 }
 0x3eb   :  { %v8514_v2 = vsub.f32 %v8292_v38, %v2464_v61  ;;  %v8517_v14 = vsub.f32 %v8373_v45, %v2464_v61  ;;  %v8520_v39 = vsub.f32 %v8297_v62, %v2464_v61  ;;  %v8523_v22 = vsub.f32 %v8385_v63, %v2464_v61 }
 0x3ec   :  { %v8530_v35 = vsub.f32 %v8306_v1, %v2464_v61  ;;  %v8535_v45 = vsub.f32 %v8401_v6, %v2464_v61  ;;  %v8542_v24 = vsub.f32 %v8409_v5, %v2464_v61  ;;  %v8548_v6 = vsub.f32 %v8421_v46, %v2464_v61 }
 0x3ed   :  { %v2481_v16 = vmul.f32 %v8514_v2, %v8514_v2  ;;  %v2482_v52 = vmul.f32 %v8517_v14, %v8517_v14  ;;  %v2483_v38 = vmul.f32 %v8520_v39, %v8520_v39  ;;  %v2484_v62 = vmul.f32 %v8523_v22, %v8523_v22 }
 0x3ee   :  { %v2485_v1 = vmul.f32 %v8530_v35, %v8530_v35  ;;  %v2486_v51 = vmul.f32 %v8535_v45, %v8535_v45  ;;  %v8554_v47 = vsub.f32 %v8430_v25, %v2464_v61  ;;  %v2487_v5 = vmul.f32 %v8542_v24, %v8542_v24 }
 0x3ef   :  { %v2497_v63 = vsel %vm2341_vm10, %v2481_v16, 0.0  ;;  %v2498_v36 = vsel %vm2341_vm10, %v2482_v52, 0.0  ;;  %v2500_v15 = vsel %vm2341_vm10, %v2483_v38, 0.0  ;;  %v2502_v28 = vsel %vm2341_vm10, %v2484_v62, 0.0 }
 0x3f0   :  { %v2499_v32 = vadd.f32 %v2498_v36, %v2497_v63  ;;  %v2504_v29 = vsel %vm2341_vm10, %v2485_v1, 0.0  ;;  %v8560_v17 = vsub.f32 %v8436_v53, %v2464_v61  ;;  %v2488_v46 = vmul.f32 %v8548_v6, %v8548_v6 }
 0x3f1   :  { %v2506_v4 = vsel %vm2341_vm10, %v2486_v51, 0.0  ;;  %v8566_v37 = vsub.f32 %v8445_v30, %v2464_v61  ;;  %v2489_v25 = vmul.f32 %v8554_v47, %v8554_v47  ;;  %v2508_v60 = vsel %vm2341_vm10, %v2487_v5, 0.0 }
 0x3f2   :  { %v2501_v49 = vadd.f32 %v2500_v15, %v2499_v32  ;;  %v8572_v18 = vsub.f32 %v8451_v42, %v2464_v61  ;;  %v2490_v53 = vmul.f32 %v8560_v17, %v8560_v17  ;;  %v2510_v57 = vsel %vm2341_vm10, %v2488_v46, 0.0 }
 0x3f3   :  { %v8578_v31 = vsub.f32 %v8456_v10, %v2464_v61  ;;  %v2491_v30 = vmul.f32 %v8566_v37, %v8566_v37  ;;  %v2512_v43 = vsel %vm2341_vm10, %v2489_v25, 0.0  ;;  %v8584_v50 = vsub.f32 %v8460_v19, %v2464_v61 }
 0x3f4   :  { %v2503_v0 = vadd.f32 %v2502_v28, %v2501_v49  ;;  %v2492_v42 = vmul.f32 %v8572_v18, %v8572_v18  ;;  %v2514_v9 = vsel %vm2341_vm10, %v2490_v53, 0.0  ;;  %v8590_v55 = vsub.f32 %v8464_v26, %v2464_v61 }
 0x3f5   :  { %v2493_v10 = vmul.f32 %v8578_v31, %v8578_v31  ;;  %v2516_v27 = vsel %vm2341_vm10, %v2491_v30, 0.0  ;;  %v8596_v3 = vsub.f32 %v8470_v20, %v2464_v61  ;;  %v2494_v19 = vmul.f32 %v8584_v50, %v8584_v50 }
 0x3f6   :  { %v2505_v8 = vadd.f32 %v2504_v29, %v2503_v0  ;;  %v2518_v11 = vsel %vm2341_vm10, %v2492_v42, 0.0  ;;  %v2495_v33 = vmul.f32 %v8590_v55, %v8590_v55 }
 0x3f7   :  { %v2520_v26 = vsel %vm2341_vm10, %v2493_v10, 0.0  ;;  %v2496_v23 = vmul.f32 %v8596_v3, %v8596_v3  ;;  %v2522_v58 = vsel %vm2341_vm10, %v2494_v19, 0.0 }
 0x3f8   :  { %v2507_v59 = vadd.f32 %v2506_v4, %v2505_v8  ;;  %v2524_v20 = vsel %vm2341_vm10, %v2495_v33, 0.0 }
 0x3f9   :  { %v2526_v16 = vsel %vm2341_vm10, %v2496_v23, 0.0 }
 0x3fa   :  { %v2509_v13 = vadd.f32 %v2508_v60, %v2507_v59 }
 0x3fc   :  { %v2511_v34 = vadd.f32 %v2510_v57, %v2509_v13 }
 0x3fe   :  { %v2513_v21 = vadd.f32 %v2512_v43, %v2511_v34 }
 0x400   :  { %v2515_v12 = vadd.f32 %v2514_v9, %v2513_v21 }
 0x402   :  { %v2517_v56 = vadd.f32 %v2516_v27, %v2515_v12 }
 0x404   :  { %v2519_v54 = vadd.f32 %v2518_v11, %v2517_v56 }
 0x406   :  { %v2521_v41 = vadd.f32 %v2520_v26, %v2519_v54 }
 0x408   :  { %v2523_v7 = vadd.f32 %v2522_v58, %v2521_v41 }
 0x40a   :  { %v2525_v61 = vadd.f32 %v2524_v20, %v2523_v7 }
 0x40c   :  { %v2527_v52 = vadd.f32 %v2526_v16, %v2525_v61 }
 0x40e   :  { %v2528_v38 = vrot.slane %v2527_v52, 4 }
 0x410   :  { %v2529_v62 = vadd.f32 %v2528_v38, %v2527_v52 }
 0x412   :  { %v2530_v63 = vrot.slane %v2529_v62, 2 }
 0x414   :  { %v2531_v36 = vadd.f32 %v2530_v63, %v2529_v62 }
 0x416   :  { %v2532_v32 = vrot.slane %v2531_v36, 1 }
 0x418   :  { %v2533_v1 = vadd.f32 %v2532_v32, %v2531_v36 }
 0x41a   :  { %v2560_v15 = vsel %vm2408_vm0, %v2533_v1, 0.0  ;;  %v2547_v49 = vsel %vm2394_vm1, %v2533_v1, 0.0  ;;  %v2534_v51 = vsel %vm2379_vm2, %v2533_v1, 0.0  ;;  %v2599_v29 = vsel %vm2450_vm6, %v2533_v1, 0.0 }
 0x41b   :  { %v2561_v28 = vsel %vm2381_vm3, %v2560_v15, 0.0  ;;  %v2548_v0 = vsel %vm2381_vm3, %v2547_v49, 0.0  ;;  %v2535_v5 = vsel %vm2381_vm3, %v2534_v51, 0.0  ;;  %v2586_v8 = vsel %vm2436_vm5, %v2533_v1, 0.0 }
 0x41c   :  { %2562 = vadd.xlane.f32.xlu2 %v2561_v28  ;;  %2549 = vadd.xlane.f32.xlu1 %v2548_v0  ;;  %v2573_v46 = vsel %vm2422_vm4, %v2533_v1, 0.0  ;;  %v2600_v4 = vsel %vm2381_vm3, %v2599_v29, 0.0  ;;  %v2587_v59 = vsel %vm2381_vm3, %v2586_v8, 0.0 }
 0x41d   :  { %2536 = vadd.xlane.f32.xlu0 %v2535_v5  ;;  %v2574_v25 = vsel %vm2381_vm3, %v2573_v46, 0.0  ;;  %vm2854_vm3 = vcmask 490928  }
 0x424   :  { %2601 = vadd.xlane.f32.xlu2 %v2600_v4  ;;  %2588 = vadd.xlane.f32.xlu1 %v2587_v59 }
 0x425   :  { %2575 = vadd.xlane.f32.xlu0 %v2574_v25 }
 0x48f   :  { %v2563_v60 = vpop.xlane.xlu2 %2562  ;;  %v2550_v13 = vpop.xlane.xlu1 %2549 }
 0x490   :  { %v2564_v53 = vrot.slane %v2563_v60, 4  ;;  %v2551_v57 = vrot.slane %v2550_v13, 4  ;;  %v2537_v34 = vpop.xlane.xlu0 %2536 }
 0x491   :  { %v2538_v30 = vrot.slane %v2537_v34, 4 }
 0x492   :  { %v2565_v43 = vadd.f32 %v2564_v53, %v2563_v60  ;;  %v2552_v21 = vadd.f32 %v2551_v57, %v2550_v13 }
 0x493   :  { %v2539_v42 = vadd.f32 %v2538_v30, %v2537_v34 }
 0x494   :  { %v2566_v9 = vrot.slane %v2565_v43, 2  ;;  %v2553_v12 = vrot.slane %v2552_v21, 2 }
 0x495   :  { %v2540_v10 = vrot.slane %v2539_v42, 2 }
 0x496   :  { %v2554_v27 = vadd.f32 %v2553_v12, %v2552_v21  ;;  %v2567_v56 = vadd.f32 %v2566_v9, %v2565_v43 }
 0x497   :  { %v2602_v19 = vpop.xlane.xlu2 %2601  ;;  %v2589_v11 = vpop.xlane.xlu1 %2588  ;;  %v2541_v54 = vadd.f32 %v2540_v10, %v2539_v42 }
 0x498   :  { %v2603_v33 = vrot.slane %v2602_v19, 4  ;;  %v2590_v26 = vrot.slane %v2589_v11, 4  ;;  %v2576_v41 = vpop.xlane.xlu0 %2575  ;;  %v2555_v23 = vrot.slane %v2554_v27, 1  ;;  %v2568_v58 = vrot.slane %v2567_v56, 1 }
 0x499   :  { %v2577_v7 = vrot.slane %v2576_v41, 4  ;;  %v2542_v20 = vrot.slane %v2541_v54, 1 }
 0x49a   :  { %v2604_v61 = vadd.f32 %v2603_v33, %v2602_v19  ;;  %v2591_v16 = vadd.f32 %v2590_v26, %v2589_v11  ;;  %v2556_v52 = vadd.f32 %v2555_v23, %v2554_v27  ;;  %v2569_v63 = vadd.f32 %v2568_v58, %v2567_v56  ;;  %v6934_v27 = vld [vmem:[%s10248_s4 + $0x38] sm:$0xff]  ;;  %v8654_v23 = vld [vmem:[%s10247_s3] ss:$0 sm:$0xff] }
 0x49b   :  { %v2578_v38 = vadd.f32 %v2577_v7, %v2576_v41  ;;  %v2543_v62 = vadd.f32 %v2542_v20, %v2541_v54  ;;  %4581 = vmatpush.bf16.msra.mxu1 %v6934_v27 }
 0x49c   :  { %v2605_v36 = vrot.slane %v2604_v61, 2  ;;  %v2592_v32 = vrot.slane %v2591_v16, 2 }
 0x49d   :  { %v2579_v1 = vrot.slane %v2578_v38, 2  ;;  %7027 = vpush %v2543_v62 }
 0x49e   :  { %7029 = vpush %v2556_v52  ;;  %v2593_v15 = vadd.f32 %v2592_v32, %v2591_v16  ;;  %v2606_v49 = vadd.f32 %v2605_v36, %v2604_v61 }
 0x49f   :  { %7031 = vpush %v2569_v63  ;;  %v2580_v51 = vadd.f32 %v2579_v1, %v2578_v38  ;;  %v6933_v1 = vld [vmem:[%s10248_s4 + $0x30] sm:$0xff] }
 0x4a0   :  { %v2594_v28 = vrot.slane %v2593_v15, 1  ;;  %v2607_v0 = vrot.slane %v2606_v49, 1  ;;  %4582 = vmatpush.bf16.msra.mxu1 %v6933_v1 }
 0x4a1   :  { %v2581_v5 = vrot.slane %v2580_v51, 1 }
 0x4a2   :  { %v2595_v29 = vadd.f32 %v2594_v28, %v2593_v15  ;;  %v2608_v46 = vadd.f32 %v2607_v0, %v2606_v49 }
 0x4a3   :  { %v2582_v8 = vadd.f32 %v2581_v5, %v2580_v51 }
 0x4a5   :  { %7033 = vpush %v2582_v8 }
 0x4a6   :  { %7035 = vpush %v2595_v29 }
 0x4a7   :  { %7037 = vpush %v2608_v46 }
 0x4ce   :  { %s7028_s21 = spop %7027 }
 0x4cf   :  { %v2545_v4 = vstv %s7028_s21  ;;  %s7030_s22 = spop %7029 }
 0x4d0   :  { %v2546_v59 = vsel %vm2379_vm2, %v2545_v4, 0.0  ;;  %v2558_v25 = vstv %s7030_s22  ;;  %s7032_s23 = spop %7031  ;;  %vm2814_vm2 = vcmask 41984  }
 0x4d1   :  { %v2559_v60 = vsel %vm2394_vm1, %v2558_v25, %v2546_v59  ;;  %v2571_v13 = vstv %s7032_s23  ;;  %vm2812_vm1 = vcmask 48128  }
 0x4d2   :  { %v2572_v53 = vsel %vm2408_vm0, %v2571_v13, %v2559_v60  ;;  %vm2771_vm0 = vcmask 483328  }
 0x4d6   :  { %s7034_s24 = spop %7033 }
 0x4d7   :  { %v2584_v57 = vstv %s7034_s24  ;;  %s7036_s25 = spop %7035 }
 0x4d8   :  { %v2585_v34 = vsel %vm2422_vm4, %v2584_v57, %v2572_v53  ;;  %v2597_v30 = vstv %s7036_s25  ;;  %s7038_s26 = spop %7037 }
 0x4d9   :  { %v2598_v43 = vsel %vm2436_vm5, %v2597_v30, %v2585_v34  ;;  %v2610_v21 = vstv %s7038_s26  ;;  %vm2856_vm5 = vcmask 484784  }
 0x4da   :  { %v2611_v42 = vsel %vm2450_vm6, %v2610_v21, %v2598_v43 }
 0x4db   :  { %v2612_v9 = vmul.f32 0.0009765625, %v2611_v42 }
 0x4dd   :  { %v2613_v12 = vadd.f32 1e-05, %v2612_v9 }
 0x4df   :  { %7079 = vrsqrt.f32 %v2613_v12  ;;  %vm2620_vm8 = vweird.f32 %v2613_v12 }
 0x4e5   :  { %v7080_v10 = vpop.eup %7079 }
 0x4e6   :  { %v2615_v56 = vmul.f32 %v7080_v10, %v2613_v12  ;;  %vm2621_vm7 = vweird.f32 %v7080_v10 }
 0x4e7   :  { %vm2622_vm9 = vmor %vm2620_vm8, %vm2621_vm7 }
 0x4e8   :  { %v2616_v19 = vmul.f32 %v7080_v10, %v2615_v56 }
 0x4ea   :  { %v2617_v11 = vmul.f32 0.5, %v2616_v19 }
 0x4ec   :  { %v2618_v54 = vsub.f32 1.5, %v2617_v11 }
 0x4ee   :  { %v2619_v33 = vmul.f32 %v7080_v10, %v2618_v54 }
 0x4f0   :  { %v8647_v26 = vsel %vm2622_vm9, %v7080_v10, %v2619_v33 }
 0x4f1   :  { %v2626_v41 = vmul.f32 %v8647_v26, %v8520_v39  ;;  %v2625_v58 = vmul.f32 %v8647_v26, %v8517_v14  ;;  %v2624_v7 = vmul.f32 %v8647_v26, %v8514_v2  ;;  %v2630_v20 = vmul.f32 %v8647_v26, %v8542_v24 }
 0x4f2   :  { %v2628_v61 = vmul.f32 %v8647_v26, %v8530_v35  ;;  %v2627_v39 = vmul.f32 %v8647_v26, %v8523_v22  ;;  %v2634_v24 = vmul.f32 %v8647_v26, %v8566_v37  ;;  %v2632_v35 = vmul.f32 %v8647_v26, %v8554_v47 }
 0x4f3   :  { %v2646_v16 = vmul.f32 %v8645_v44, %v2626_v41  ;;  %v2645_v52 = vmul.f32 %v8645_v44, %v2625_v58  ;;  %v2644_v38 = vmul.f32 %v8645_v44, %v2624_v7  ;;  %v2650_v14 = vmul.f32 %v8645_v44, %v2630_v20  ;;  %v6932_v7 = vld [vmem:[%s10248_s4 + $0x28] sm:$0xff] }
 0x4f4   :  { %v2648_v62 = vmul.f32 %v8645_v44, %v2628_v61  ;;  %v2647_v2 = vmul.f32 %v8645_v44, %v2627_v39  ;;  %v2654_v28 = vmul.f32 %v8645_v44, %v2634_v24  ;;  %v2652_v5 = vmul.f32 %v8645_v44, %v2632_v35  ;;  %4583 = vmatpush.bf16.msra.mxu1 %v6932_v7  ;;  %v6942_v7 = vld [vmem:[%s10248_s4 + $0x78] sm:$0xff] }
 0x4f5   :  { %v2666_v22 = vadd.f32 %v8654_v23, %v2646_v16  ;;  %v2665_v63 = vadd.f32 %v8654_v23, %v2645_v52  ;;  %v2664_v36 = vadd.f32 %v8654_v23, %v2644_v38  ;;  %v8680_v32 = vadd.f32 %v8654_v23, %v2650_v14  ;;  %4630 = vmatpush.bf16.msrb.mxu2 %v6942_v7 }
 0x4f6   :  { %v8686_v15 = vadd.f32 %v8654_v23, %v2648_v62  ;;  %v8689_v47 = vadd.f32 %v8654_v23, %v2647_v2  ;;  %v2629_v46 = vmul.f32 %v8647_v26, %v8535_v45  ;;  %v8699_v4 = vadd.f32 %v8654_v23, %v2654_v28 }
 0x4f7   :  { %v2700_v37 = vmul.f32 1.442695, %v2666_v22  ;;  %v2698_v49 = vmul.f32 1.442695, %v2665_v63  ;;  %v2696_v51 = vmul.f32 1.442695, %v2664_v36  ;;  %v8702_v59 = vadd.f32 %v8654_v23, %v2652_v5 }
 0x4f8   :  { %v2708_v0 = vmul.f32 1.442695, %v8680_v32  ;;  %v2704_v29 = vmul.f32 1.442695, %v8686_v15  ;;  %v2702_v8 = vmul.f32 1.442695, %v8689_v47  ;;  %v2649_v25 = vmul.f32 %v8645_v44, %v2629_v46 }
 0x4f9   :  { %7081 = vpow2.f32 %v2700_v37  ;;  %v2637_v60 = vmul.f32 %v8647_v26, %v8584_v50  ;;  %v2635_v13 = vmul.f32 %v8647_v26, %v8572_v18  ;;  %v2633_v57 = vmul.f32 %v8647_v26, %v8560_v17 }
 0x4fa   :  { %7083 = vpow2.f32 %v2698_v49  ;;  %v8710_v45 = vadd.f32 %v8654_v23, %v2649_v25  ;;  %v2716_v43 = vmul.f32 1.442695, %v8699_v4  ;;  %vm2682_vm10 = vcmp.gt.f32.partialorder %v2666_v22, 0.0 }
 0x4fb   :  { %7085 = vpow2.f32 %v2696_v51  ;;  %v2712_v50 = vmul.f32 1.442695, %v8702_v59  ;;  %v2657_v9 = vmul.f32 %v8645_v44, %v2637_v60  ;;  %vm2681_vm11 = vcmp.gt.f32.partialorder %v2665_v63, 0.0 }
 0x4fc   :  { %7087 = vpow2.f32 %v2708_v0  ;;  %v2655_v10 = vmul.f32 %v8645_v44, %v2635_v13  ;;  %vm2680_vm12 = vcmp.gt.f32.partialorder %v2664_v36, 0.0  ;;  %v2706_v56 = vmul.f32 1.442695, %v8710_v45 }
 0x4fd   :  { %7089 = vpow2.f32 %v2704_v29  ;;  %v2653_v19 = vmul.f32 %v8645_v44, %v2633_v57  ;;  %v8724_v41 = vadd.f32 %v8654_v23, %v2657_v9  ;;  %v2639_v58 = vmul.f32 %v8647_v26, %v8596_v3  ;;  %v6930_v29 = vld [vmem:[%s10248_s4 + $0x18] sm:$0xff] }
 0x4fe   :  { %7091 = vpow2.f32 %v2702_v8  ;;  %v8732_v61 = vadd.f32 %v8654_v23, %v2655_v10  ;;  %v2638_v39 = vmul.f32 %v8647_v26, %v8590_v55  ;;  %v2636_v3 = vmul.f32 %v8647_v26, %v8578_v31 }
 0x4ff   :  { %v7082_v53 = vpop.eup %7081  ;;  %7093 = vpow2.f32 %v2716_v43  ;;  %v8737_v52 = vadd.f32 %v8654_v23, %v2653_v19  ;;  %vm2686_vm13 = vcmp.gt.f32.partialorder %v8680_v32, 0.0  ;;  %v2722_v14 = vmul.f32 1.442695, %v8724_v41 }
 0x500   :  { %v7084_v34 = vpop.eup %7083  ;;  %v6105_v30 = vadd.f32 -1.0, %v7082_v53  ;;  %7095 = vpow2.f32 %v2712_v50  ;;  %v2659_v62 = vmul.f32 %v8645_v44, %v2639_v58  ;;  %vm2684_vm14 = vcmp.gt.f32.partialorder %v8686_v15, 0.0 }
 0x501   :  { %v7086_v21 = vpop.eup %7085  ;;  %v6104_v42 = vadd.f32 -1.0, %v7084_v34  ;;  %7097 = vpow2.f32 %v2706_v56  ;;  %v2718_v55 = vmul.f32 1.442695, %v8732_v61  ;;  %v2658_v35 = vmul.f32 %v8645_v44, %v2638_v39 }
 0x502   :  { %v2746_v18 = vsel %vm2682_vm10, %v2666_v22, %v6105_v30  ;;  %v6103_v12 = vadd.f32 -1.0, %v7086_v21  ;;  %v7088_v27 = vpop.eup %7087  ;;  %vm2683_vm15 = vcmp.gt.f32.partialorder %v8689_v47, 0.0  ;;  %7099 = vpow2.f32 %v2722_v14  ;;  %v6928_v14 = vld [vmem:[%s10248_s4 + $0x8] sm:$0xff] }
 0x503   :  { %2916 = vrot.lane.b32.xlu2 %v2746_v18, %s7150_s9  ;;  %v2745_v17 = vsel %vm2681_vm11, %v2665_v63, %v6104_v42  ;;  %v7090_v11 = vpop.eup %7089  ;;  %v6109_v20 = vadd.f32 -1.0, %v7088_v27  ;;  %v2714_v63 = vmul.f32 1.442695, %v8737_v52  ;;  %v8757_v37 = vadd.f32 %v8654_v23, %v2659_v62 }
 0x504   :  { %2914 = vrot.lane.b32.xlu1 %v2745_v17, %s7150_s9  ;;  %v2744_v54 = vsel %vm2680_vm12, %v2664_v36, %v6103_v12  ;;  %v7092_v33 = vpop.eup %7091  ;;  %v6107_v16 = vadd.f32 -1.0, %v7090_v11  ;;  %v2656_v36 = vmul.f32 %v8645_v44, %v2636_v3  ;;  %7101 = vpow2.f32 %v2718_v55 }
 0x505   :  { %2912 = vrot.lane.b32.xlu0 %v2744_v54, %s7150_s9  ;;  %v6106_v38 = vadd.f32 -1.0, %v7092_v33  ;;  %v7094_v2 = vpop.eup %7093  ;;  %v2750_v24 = vsel %vm2686_vm13, %v8680_v32, %v6109_v20  ;;  %v8763_v28 = vadd.f32 %v8654_v23, %v2658_v35  ;;  %v10285_v0 = vmov 0.0  }
 0x506   :  { %v7096_v22 = vpop.eup %7095  ;;  %v2748_v31 = vsel %vm2684_vm14, %v8686_v15, %v6107_v16  ;;  %v6931_v15 = vld [vmem:[%s10248_s4 + $0x20] sm:$0xff]  ;;  %v6113_v49 = vadd.f32 -1.0, %v7094_v2  ;;  %2775 = vst.msk [vmem:[#allocation4 + $0x30] sm:$0x1] %vm2771_vm0, %v10285_v0  ;;  %7103 = vpow2.f32 %v2714_v63  ;;  %v2631_v5 = vmul.f32 %v8647_v26, %v8548_v6  ;;  %v6941_v63 = vld [vmem:[%s10248_s4 + $0x70] sm:$0xff] }
 0x507   :  { %v2747_v32 = vsel %vm2683_vm15, %v8689_v47, %v6106_v38  ;;  %v7098_v1 = vpop.eup %7097  ;;  %v6111_v51 = vadd.f32 -1.0, %v7096_v22  ;;  %v8768_v47 = vadd.f32 %v8654_v23, %v2656_v36  ;;  %4584 = vmatpush.bf16.msra.mxu1 %v6931_v15  ;;  %2795 = vst.msk [vmem:[#allocation4 + $0x39] sm:$0x1] %vm2771_vm0, %v10285_v0  ;;  %vm2690_vm4 = vcmp.gt.f32.partialorder %v8699_v4, 0.0  ;;  %4631 = vmatpush.bf16.msrb.mxu2 %v6941_v63  ;;  %v6949_v36 = vld [vmem:[%s10248_s4 + $0xb0] sm:$0xff] }
 0x508   :  { %v6108_v8 = vadd.f32 -1.0, %v7098_v1  ;;  %2820 = vst.msk [vmem:[#allocation4 + $0x30] sm:$0xff] %vm2812_vm1, %v10285_v0  ;;  %v2726_v46 = vmul.f32 1.442695, %v8757_v37  ;;  %v2754_v6 = vsel %vm2690_vm4, %v8699_v4, %v6113_v49  ;;  %vm2688_vm6 = vcmp.gt.f32.partialorder %v8702_v59, 0.0  ;;  %v7100_v25 = vpop.eup %7099  ;;  %v6929_v4 = vld [vmem:[%s10248_s4 + $0x10] sm:$0xff] }
 0x509   :  { %2821 = vst.msk [vmem:[#allocation4 + $0x38] sm:$0x3] %vm2814_vm2, %v10285_v0  ;;  %v2724_v26 = vmul.f32 1.442695, %v8763_v28  ;;  %v2752_v60 = vsel %vm2688_vm6, %v8702_v59, %v6111_v51  ;;  %vm2685_vm7 = vcmp.gt.f32.partialorder %v8710_v45, 0.0  ;;  %v2651_v53 = vmul.f32 %v8645_v44, %v2631_v5 }
 0x50a   :  { %2862 = vst.msk [vmem:[#allocation4 + $0x30] sm:$0xff] %vm2854_vm3, %v10285_v0  ;;  %v2720_v13 = vmul.f32 1.442695, %v8768_v47  ;;  %v7102_v57 = vpop.eup %7101  ;;  %v2749_v34 = vsel %vm2685_vm7, %v8710_v45, %v6108_v8  ;;  %7105 = vpow2.f32 %v2726_v46  ;;  %v6116_v44 = vadd.f32 -1.0, %v7100_v25 }
 0x50b   :  { %2924 = vrot.lane.b32.xlu2 %v2750_v24, %s7150_s9  ;;  %4585 = vmatpush.bf16.msra.mxu1 %v6930_v29  ;;  %2863 = vst.msk [vmem:[#allocation4 + $0x38] sm:$0x3] %vm2856_vm5, %v10285_v0  ;;  %7107 = vpow2.f32 %v2724_v26  ;;  %v6114_v30 = vadd.f32 -1.0, %v7102_v57  ;;  %v2671_v43 = vadd.f32 %v8654_v23, %v2651_v53  ;;  %vm2693_vm8 = vcmp.gt.f32.partialorder %v8724_v41, 0.0  ;;  %v6958_v57 = vld [vmem:[%s10248_s4 + $0xf8] sm:$0xff] }
 0x50c   :  { %2920 = vrot.lane.b32.xlu1 %v2748_v31, %s7150_s9  ;;  %2773 = vst.msk [vmem:[#allocation4 + $0x10] sm:$0x1] %vm2771_vm0, %v10285_v0  ;;  %v7104_v59 = vpop.eup %7103  ;;  %7109 = vpow2.f32 %v2720_v13  ;;  %v2757_v21 = vsel %vm2693_vm8, %v8724_v41, %v6116_v44  ;;  %vm2691_vm9 = vcmp.gt.f32.partialorder %v8732_v61, 0.0  ;;  %vm2689_vm10 = vcmp.gt.f32.partialorder %v8737_v52, 0.0  ;;  %v6950_v31 = vld [vmem:[%s10248_s4 + $0xb8] sm:$0xff]  ;;  %4728 = vmatpush.bf16.msrb.mxu0 %v6958_v57  ;;  %v6939_v44 = vld [vmem:[%s10248_s4 + $0x60] sm:$0xff] }
 0x50d   :  { %2918 = vrot.lane.b32.xlu0 %v2747_v32, %s7150_s9  ;;  %2774 = vst.msk [vmem:[#allocation4 + $0x20] sm:$0x1] %vm2771_vm0, %v10285_v0  ;;  %v6112_v45 = vadd.f32 -1.0, %v7104_v59  ;;  %v2755_v42 = vsel %vm2691_vm9, %v8732_v61, %v6114_v30  ;;  %v2710_v50 = vmul.f32 1.442695, %v2671_v43  ;;  %vm2695_vm11 = vcmp.gt.f32.partialorder %v8757_v37, 0.0  ;;  %4679 = vmatpush.bf16.msrb.mxu3 %v6950_v31 }
 0x50e   :  { %2776 = vst.msk [vmem:[#allocation4 + $0x40] sm:$0x1] %vm2771_vm0, %v10285_v0  ;;  %vm2694_vm12 = vcmp.gt.f32.partialorder %v8763_v28, 0.0  ;;  %vm2692_vm13 = vcmp.gt.f32.partialorder %v8768_v47, 0.0  ;;  %vm2687_vm14 = vcmp.gt.f32.partialorder %v2671_v43, 0.0  ;;  %vm2961_vm15 = vcmask 441392  }
 0x50f   :  { %4586 = vmatpush.bf16.msra.mxu1 %v6929_v4  ;;  %2777 = vst.msk [vmem:[#allocation4 + $0x50] sm:$0x1] %vm2771_vm0, %v10285_v0  ;;  %v2753_v18 = vsel %vm2689_vm10, %v8737_v52, %v6112_v45  ;;  %7111 = vpow2.f32 %v2710_v50  ;;  %vm3010_vm4 = vcmask 486400   ;;  %vm3027_vm6 = vcmask 1043936   ;;  %v6940_v32 = vld [vmem:[%s10248_s4 + $0x68] sm:$0xff]  ;;  %v6947_v45 = vld [vmem:[%s10248_s4 + $0xa0] sm:$0xff] }
 0x510   :  { %2778 = vst.msk [vmem:[#allocation4 + $0x60] sm:$0x1] %vm2771_vm0, %v10285_v0  ;;  %v7106_v23 = vpop.eup %7105  ;;  %4632 = vmatpush.bf16.msrb.mxu2 %v6940_v32  ;;  %v6948_v4 = vld [vmem:[%s10248_s4 + $0xa8] sm:$0xff]  ;;  %vm2760_vm7 = vcmask 490496   ;;  %vm2762_vm8 = vcmask 484352  }
 0x511   :  { %2779 = vst.msk [vmem:[#allocation4 + $0x70] sm:$0x1] %vm2771_vm0, %v10285_v0  ;;  %v7108_v9 = vpop.eup %7107  ;;  %v6118_v10 = vadd.f32 -1.0, %v7106_v23  ;;  %4680 = vmatpush.bf16.msrb.mxu3 %v6949_v36  ;;  %v6938_v23 = vld [vmem:[%s10248_s4 + $0x58] sm:$0xff] }
 0x512   :  { %2780 = vst.msk [vmem:[#allocation4 + $0x80] sm:$0x1] %vm2771_vm0, %v10285_v0  ;;  %v7110_v12 = vpop.eup %7109  ;;  %v6117_v27 = vadd.f32 -1.0, %v7108_v9 }
 0x513   :  { %2932 = vrot.lane.b32.xlu2 %v2754_v6, %s7150_s9  ;;  %2783 = vst.msk [vmem:[#allocation4 + $0xb0] sm:$0x1] %vm2771_vm0, %v10285_v0  ;;  %v6115_v17 = vadd.f32 -1.0, %v7110_v12  ;;  %v2759_v56 = vsel %vm2695_vm11, %v8757_v37, %v6118_v10  ;;  %4587 = vmatpush.bf16.msra.mxu1 %v6928_v14 }
 0x514   :  { %2928 = vrot.lane.b32.xlu1 %v2752_v60, %s7150_s9  ;;  %2784 = vst.msk [vmem:[#allocation4 + $0xc0] sm:$0x1] %vm2771_vm0, %v10285_v0  ;;  %v2758_v19 = vsel %vm2694_vm12, %v8763_v28, %v6117_v27  ;;  %4633 = vmatpush.bf16.msrb.mxu2 %v6939_v44  ;;  %v6966_v44 = vld [vmem:[%s10248_s4 + $0x138] sm:$0xff] }
 0x515   :  { %2922 = vrot.lane.b32.xlu0 %v2749_v34, %s7150_s9  ;;  %2785 = vst.msk [vmem:[#allocation4 + $0xd0] sm:$0x1] %vm2771_vm0, %v10285_v0  ;;  %v2756_v11 = vsel %vm2692_vm13, %v8768_v47, %v6115_v17  ;;  %v7112_v54 = vpop.eup %7111  ;;  %4681 = vmatpush.bf16.msrb.mxu3 %v6948_v4 }
 0x516   :  { %2786 = vst.msk [vmem:[#allocation4 + $0xe0] sm:$0x1] %vm2771_vm0, %v10285_v0  ;;  %v6110_v33 = vadd.f32 -1.0, %v7112_v54 }
 0x517   :  { %2787 = vst.msk [vmem:[#allocation4 + $0xf0] sm:$0x1] %vm2771_vm0, %v10285_v0 }
 0x518   :  { %2788 = vst.msk [vmem:[#allocation4 + $0x100] sm:$0x1] %vm2771_vm0, %v10285_v0  ;;  %v2751_v41 = vsel %vm2687_vm14, %v2671_v43, %v6110_v33  ;;  %4634 = vmatpush.bf16.msrb.mxu2 %v6938_v23 }
 0x519   :  { %2789 = vst.msk [vmem:[#allocation4 + $0x110] sm:$0x1] %vm2771_vm0, %v10285_v0  ;;  %4682 = vmatpush.bf16.msrb.mxu3 %v6947_v45 }
 0x51a   :  { %2790 = vst.msk [vmem:[#allocation4 + $0x120] sm:$0x1] %vm2771_vm0, %v10285_v0 }
 0x51b   :  { %2938 = vrot.lane.b32.xlu2 %v2757_v21, %s7150_s9  ;;  %2793 = vst.msk [vmem:[#allocation4 + $0x19] sm:$0x1] %vm2771_vm0, %v10285_v0  ;;  %v6957_v21 = vld [vmem:[%s10248_s4 + $0xf0] sm:$0xff] }
 0x51c   :  { %2934 = vrot.lane.b32.xlu1 %v2755_v42, %s7150_s9  ;;  %2794 = vst.msk [vmem:[#allocation4 + $0x29] sm:$0x1] %vm2771_vm0, %v10285_v0  ;;  %4729 = vmatpush.bf16.msrb.mxu0 %v6957_v21  ;;  %v6927_v42 = vld [vmem:[%s10248_s4] sm:$0xff] }
 0x51d   :  { %2930 = vrot.lane.b32.xlu0 %v2753_v18, %s7150_s9  ;;  %2796 = vst.msk [vmem:[#allocation4 + $0x49] sm:$0x1] %vm2771_vm0, %v10285_v0  ;;  %4588 = vmatpush.bf16.msra.mxu1 %v6927_v42 }
 0x51e   :  { %2797 = vst.msk [vmem:[#allocation4 + $0x59] sm:$0x1] %vm2771_vm0, %v10285_v0 }
 0x51f   :  { %2798 = vst.msk [vmem:[#allocation4 + $0x69] sm:$0x1] %vm2771_vm0, %v10285_v0 }
 0x520   :  { %2799 = vst.msk [vmem:[#allocation4 + $0x79] sm:$0x1] %vm2771_vm0, %v10285_v0 }
 0x521   :  { %2800 = vst.msk [vmem:[#allocation4 + $0x89] sm:$0x1] %vm2771_vm0, %v10285_v0  ;;  %4777 = vmatpush.bf16.msrb.mxu1 %v6966_v44 }
 0x522   :  { %2803 = vst.msk [vmem:[#allocation4 + $0xb9] sm:$0x1] %vm2771_vm0, %v10285_v0 }
 0x523   :  { %2942 = vrot.lane.b32.xlu2 %v2759_v56, %s7150_s9  ;;  %2804 = vst.msk [vmem:[#allocation4 + $0xc9] sm:$0x1] %vm2771_vm0, %v10285_v0 }
 0x524   :  { %2940 = vrot.lane.b32.xlu1 %v2758_v19, %s7150_s9  ;;  %2805 = vst.msk [vmem:[#allocation4 + $0xd9] sm:$0x1] %vm2771_vm0, %v10285_v0 }
 0x525   :  { %2936 = vrot.lane.b32.xlu0 %v2756_v11, %s7150_s9  ;;  %2806 = vst.msk [vmem:[#allocation4 + $0xe9] sm:$0x1] %vm2771_vm0, %v10285_v0 }
 0x526   :  { %2807 = vst.msk [vmem:[#allocation4 + $0xf9] sm:$0x1] %vm2771_vm0, %v10285_v0 }
 0x527   :  { %2808 = vst.msk [vmem:[#allocation4 + $0x109] sm:$0x1] %vm2771_vm0, %v10285_v0 }
 0x528   :  { %2809 = vst.msk [vmem:[#allocation4 + $0x119] sm:$0x1] %vm2771_vm0, %v10285_v0 }
 0x529   :  { %2810 = vst.msk [vmem:[#allocation4 + $0x129] sm:$0x1] %vm2771_vm0, %v10285_v0 }
 0x52a   :  { %2828 = vst.msk [vmem:[#allocation4 + $0x70] sm:$0xff] %vm2812_vm1, %v10285_v0 }
 0x52b   :  { %2829 = vst.msk [vmem:[#allocation4 + $0x78] sm:$0x3] %vm2814_vm2, %v10285_v0 }
 0x52c   :  { %2870 = vst.msk [vmem:[#allocation4 + $0x70] sm:$0xff] %vm2854_vm3, %v10285_v0 }
 0x52d   :  { %2926 = vrot.lane.b32.xlu0 %v2751_v41, %s7150_s9  ;;  %2871 = vst.msk [vmem:[#allocation4 + $0x78] sm:$0x3] %vm2856_vm5, %v10285_v0  ;;  %v6946_v41 = vld [vmem:[%s10248_s4 + $0x98] sm:$0xff] }
 0x52e   :  { %2816 = vst.msk [vmem:[#allocation4 + $0x10] sm:$0xff] %vm2812_vm1, %v10285_v0  ;;  %4683 = vmatpush.bf16.msrb.mxu3 %v6946_v41 }
 0x52f   :  { %2817 = vst.msk [vmem:[#allocation4 + $0x18] sm:$0x3] %vm2814_vm2, %v10285_v0 }
 0x530   :  { %2818 = vst.msk [vmem:[#allocation4 + $0x20] sm:$0xff] %vm2812_vm1, %v10285_v0 }
 0x531   :  { %2819 = vst.msk [vmem:[#allocation4 + $0x28] sm:$0x3] %vm2814_vm2, %v10285_v0 }
 0x532   :  { %2822 = vst.msk [vmem:[#allocation4 + $0x40] sm:$0xff] %vm2812_vm1, %v10285_v0 }
 0x533   :  { %2823 = vst.msk [vmem:[#allocation4 + $0x48] sm:$0x3] %vm2814_vm2, %v10285_v0 }
 0x534   :  { %2824 = vst.msk [vmem:[#allocation4 + $0x50] sm:$0xff] %vm2812_vm1, %v10285_v0 }
 0x535   :  { %2825 = vst.msk [vmem:[#allocation4 + $0x58] sm:$0x3] %vm2814_vm2, %v10285_v0 }
 0x536   :  { %2826 = vst.msk [vmem:[#allocation4 + $0x60] sm:$0xff] %vm2812_vm1, %v10285_v0 }
 0x537   :  { %2827 = vst.msk [vmem:[#allocation4 + $0x68] sm:$0x3] %vm2814_vm2, %v10285_v0 }
 0x538   :  { %2830 = vst.msk [vmem:[#allocation4 + $0x80] sm:$0xff] %vm2812_vm1, %v10285_v0 }
 0x539   :  { %2831 = vst.msk [vmem:[#allocation4 + $0x88] sm:$0x3] %vm2814_vm2, %v10285_v0 }
 0x53a   :  { %2836 = vst.msk [vmem:[#allocation4 + $0xb0] sm:$0xff] %vm2812_vm1, %v10285_v0 }
 0x53b   :  { %2837 = vst.msk [vmem:[#allocation4 + $0xb8] sm:$0x3] %vm2814_vm2, %v10285_v0 }
 0x53c   :  { %2838 = vst.msk [vmem:[#allocation4 + $0xc0] sm:$0xff] %vm2812_vm1, %v10285_v0 }
 0x53d   :  { %2839 = vst.msk [vmem:[#allocation4 + $0xc8] sm:$0x3] %vm2814_vm2, %v10285_v0 }
 0x53e   :  { %2840 = vst.msk [vmem:[#allocation4 + $0xd0] sm:$0xff] %vm2812_vm1, %v10285_v0 }
 0x53f   :  { %2841 = vst.msk [vmem:[#allocation4 + $0xd8] sm:$0x3] %vm2814_vm2, %v10285_v0 }
 0x540   :  { %2842 = vst.msk [vmem:[#allocation4 + $0xe0] sm:$0xff] %vm2812_vm1, %v10285_v0 }
 0x541   :  { %2843 = vst.msk [vmem:[#allocation4 + $0xe8] sm:$0x3] %vm2814_vm2, %v10285_v0 }
 0x542   :  { %2844 = vst.msk [vmem:[#allocation4 + $0xf0] sm:$0xff] %vm2812_vm1, %v10285_v0 }
 0x543   :  { %2845 = vst.msk [vmem:[#allocation4 + $0xf8] sm:$0x3] %vm2814_vm2, %v10285_v0 }
 0x544   :  { %2846 = vst.msk [vmem:[#allocation4 + $0x100] sm:$0xff] %vm2812_vm1, %v10285_v0 }
 0x545   :  { %2847 = vst.msk [vmem:[#allocation4 + $0x108] sm:$0x3] %vm2814_vm2, %v10285_v0 }
 0x546   :  { %2848 = vst.msk [vmem:[#allocation4 + $0x110] sm:$0xff] %vm2812_vm1, %v10285_v0 }
 0x547   :  { %2849 = vst.msk [vmem:[#allocation4 + $0x118] sm:$0x3] %vm2814_vm2, %v10285_v0 }
 0x548   :  { %2850 = vst.msk [vmem:[#allocation4 + $0x120] sm:$0xff] %vm2812_vm1, %v10285_v0 }
 0x549   :  { %2851 = vst.msk [vmem:[#allocation4 + $0x128] sm:$0x3] %vm2814_vm2, %v10285_v0 }
 0x54a   :  { %2858 = vst.msk [vmem:[#allocation4 + $0x10] sm:$0xff] %vm2854_vm3, %v10285_v0 }
 0x54b   :  { %2859 = vst.msk [vmem:[#allocation4 + $0x18] sm:$0x3] %vm2856_vm5, %v10285_v0 }
 0x54c   :  { %2860 = vst.msk [vmem:[#allocation4 + $0x20] sm:$0xff] %vm2854_vm3, %v10285_v0 }
 0x54d   :  { %2861 = vst.msk [vmem:[#allocation4 + $0x28] sm:$0x3] %vm2856_vm5, %v10285_v0 }
 0x54e   :  { %2864 = vst.msk [vmem:[#allocation4 + $0x40] sm:$0xff] %vm2854_vm3, %v10285_v0 }
 0x54f   :  { %2865 = vst.msk [vmem:[#allocation4 + $0x48] sm:$0x3] %vm2856_vm5, %v10285_v0 }
 0x550   :  { %2866 = vst.msk [vmem:[#allocation4 + $0x50] sm:$0xff] %vm2854_vm3, %v10285_v0 }
 0x551   :  { %2867 = vst.msk [vmem:[#allocation4 + $0x58] sm:$0x3] %vm2856_vm5, %v10285_v0 }
 0x552   :  { %2868 = vst.msk [vmem:[#allocation4 + $0x60] sm:$0xff] %vm2854_vm3, %v10285_v0 }
 0x553   :  { %2869 = vst.msk [vmem:[#allocation4 + $0x68] sm:$0x3] %vm2856_vm5, %v10285_v0 }
 0x554   :  { %2872 = vst.msk [vmem:[#allocation4 + $0x80] sm:$0xff] %vm2854_vm3, %v10285_v0 }
 0x555   :  { %2873 = vst.msk [vmem:[#allocation4 + $0x88] sm:$0x3] %vm2856_vm5, %v10285_v0 }
 0x556   :  { %2878 = vst.msk [vmem:[#allocation4 + $0xb0] sm:$0xff] %vm2854_vm3, %v10285_v0 }
 0x557   :  { %2879 = vst.msk [vmem:[#allocation4 + $0xb8] sm:$0x3] %vm2856_vm5, %v10285_v0 }
 0x558   :  { %2880 = vst.msk [vmem:[#allocation4 + $0xc0] sm:$0xff] %vm2854_vm3, %v10285_v0 }
 0x559   :  { %2881 = vst.msk [vmem:[#allocation4 + $0xc8] sm:$0x3] %vm2856_vm5, %v10285_v0 }
 0x55a   :  { %2882 = vst.msk [vmem:[#allocation4 + $0xd0] sm:$0xff] %vm2854_vm3, %v10285_v0 }
 0x55b   :  { %2883 = vst.msk [vmem:[#allocation4 + $0xd8] sm:$0x3] %vm2856_vm5, %v10285_v0 }
 0x55c   :  { %2884 = vst.msk [vmem:[#allocation4 + $0xe0] sm:$0xff] %vm2854_vm3, %v10285_v0 }
 0x55d   :  { %v2917_v58 = vpop.permute.xlu2 %2916  ;;  %2885 = vst.msk [vmem:[#allocation4 + $0xe8] sm:$0x3] %vm2856_vm5, %v10285_v0 }
 0x55e   :  { %2964 = vst.msk [vmem:[#allocation4 + $0x31] sm:$0xff] %vm2961_vm15, %v2917_v58  ;;  %v6956_v58 = vld [vmem:[%s10248_s4 + $0xe8] sm:$0xff] }
 0x55f   :  { %2886 = vst.msk [vmem:[#allocation4 + $0xf0] sm:$0xff] %vm2854_vm3, %v10285_v0  ;;  %4730 = vmatpush.bf16.msrb.mxu0 %v6956_v58  ;;  %v6951_v58 = vld [vmem:[%s10248_s4 + $0xc0] sm:$0xff] }
 0x560   :  { %2887 = vst.msk [vmem:[#allocation4 + $0xf8] sm:$0x3] %vm2856_vm5, %v10285_v0 }
 0x561   :  { %2888 = vst.msk [vmem:[#allocation4 + $0x100] sm:$0xff] %vm2854_vm3, %v10285_v0 }
 0x562   :  { %2889 = vst.msk [vmem:[#allocation4 + $0x108] sm:$0x3] %vm2856_vm5, %v10285_v0 }
 0x563   :  { %2890 = vst.msk [vmem:[#allocation4 + $0x110] sm:$0xff] %vm2854_vm3, %v10285_v0 }
 0x564   :  { %2891 = vst.msk [vmem:[#allocation4 + $0x118] sm:$0x3] %vm2856_vm5, %v10285_v0 }
 0x565   :  { %v2981_v20 = vld [vmem:[#allocation4 + $0x30] sm:$0xff]  ;;  %v2925_v16 = vpop.permute.xlu2 %2924  ;;  %2892 = vst.msk [vmem:[#allocation4 + $0x120] sm:$0xff] %vm2854_vm3, %v10285_v0 }
 0x566   :  { %v3047_v61 = vld [vmem:[#allocation4 + $0x31] sm:$0xff]  ;;  %v2997_v52 = vpack.c.bf16 %v2981_v20, %v2981_v20  ;;  %2968 = vst.msk [vmem:[#allocation4 + $0x71] sm:$0xff] %vm2961_vm15, %v2925_v16 }
 0x567   :  { %v3111_v39 = vld [vmem:[#allocation4 + $0x32] sm:$0xff]  ;;  %v3063_v38 = vpack.c.bf16 %v3047_v61, %v3047_v61  ;;  %2893 = vst.msk [vmem:[#allocation4 + $0x128] sm:$0x3] %vm2856_vm5, %v10285_v0 }
 0x568   :  { %v3127_v3 = vpack.c.bf16 %v3111_v39, %v3111_v39  ;;  %3014 = vst.msk [vmem:[#allocation5 + $0x6c] sm:$0xf] %vm3010_vm4, %v2997_v52  ;;  %v6937_v61 = vld [vmem:[%s10248_s4 + $0x50] sm:$0xff] }
 0x569   :  { %3079 = vst.msk [vmem:[#allocation5 + $0x70] sm:$0xf] %vm3010_vm4, %v3063_v38  ;;  %4635 = vmatpush.bf16.msrb.mxu2 %v6937_v61 }
 0x56a   :  { %3143 = vst.msk [vmem:[#allocation5 + $0x74] sm:$0xf] %vm3010_vm4, %v3127_v3 }
 0x56b   :  { %3206 = vst.msk [vmem:[#allocation5 + $0x54] sm:$0xf] %vm3010_vm4, %v2997_v52 }
 0x56c   :  { %3270 = vst.msk [vmem:[#allocation5 + $0x58] sm:$0xf] %vm3010_vm4, %v3063_v38 }
 0x56d   :  { %3334 = vst.msk [vmem:[#allocation5 + $0x5c] sm:$0xf] %vm3010_vm4, %v3127_v3  ;;  %v2985_v62 = vld [vmem:[#allocation4 + $0x70] sm:$0xff]  ;;  %v2933_v1 = vpop.permute.xlu2 %2932 }
 0x56e   :  { %3398 = vst.msk [vmem:[#allocation5 + $0x3c] sm:$0xf] %vm3010_vm4, %v2997_v52  ;;  %v3051_v2 = vld [vmem:[#allocation4 + $0x71] sm:$0xff]  ;;  %v3001_v55 = vpack.c.bf16 %v2985_v62, %v2985_v62 }
 0x56f   :  { %3414 = vst.msk [vmem:[#allocation5 + $0x3c] sm:$0xf] %vm3027_vm6, %v10271_v48  ;;  %v3115_v24 = vld [vmem:[#allocation4 + $0x72] sm:$0xff]  ;;  %v3067_v35 = vpack.c.bf16 %v3051_v2, %v3051_v2 }
 0x570   :  { %3462 = vst.msk [vmem:[#allocation5 + $0x40] sm:$0xf] %vm3010_vm4, %v3063_v38  ;;  %v3131_v22 = vpack.c.bf16 %v3115_v24, %v3115_v24  ;;  %v6945_v52 = vld [vmem:[%s10248_s4 + $0x90] sm:$0xff]  ;;  %v6955_v38 = vld [vmem:[%s10248_s4 + $0xe0] sm:$0xff] }
 0x571   :  { %3478 = vst.msk [vmem:[#allocation5 + $0x40] sm:$0xf] %vm3027_vm6, %v10271_v48  ;;  %4684 = vmatpush.bf16.msrb.mxu3 %v6945_v52  ;;  %4731 = vmatpush.bf16.msrb.mxu0 %v6955_v38 }
 0x572   :  { %3526 = vst.msk [vmem:[#allocation5 + $0x44] sm:$0xf] %vm3010_vm4, %v3127_v3  ;;  %v6936_v3 = vld [vmem:[%s10248_s4 + $0x48] sm:$0xff] }
 0x573   :  { %3542 = vst.msk [vmem:[#allocation5 + $0x44] sm:$0xf] %vm3027_vm6, %v10271_v48  ;;  %4636 = vmatpush.bf16.msrb.mxu2 %v6936_v3 }
 0x574   :  { %3031 = vst.msk [vmem:[#allocation5 + $0x6c] sm:$0xf] %vm3027_vm6, %v10271_v48 }
 0x575   :  { %3095 = vst.msk [vmem:[#allocation5 + $0x70] sm:$0xf] %vm3027_vm6, %v10271_v48  ;;  %v2939_v37 = vpop.permute.xlu2 %2938 }
 0x576   :  { %3159 = vst.msk [vmem:[#allocation5 + $0x74] sm:$0xf] %vm3027_vm6, %v10271_v48  ;;  %v2915_v15 = vpop.permute.xlu1 %2914 }
 0x577   :  { %3222 = vst.msk [vmem:[#allocation5 + $0x54] sm:$0xf] %vm3027_vm6, %v10271_v48  ;;  %v2913_v50 = vpop.permute.xlu0 %2912 }
 0x578   :  { %3286 = vst.msk [vmem:[#allocation5 + $0x58] sm:$0xf] %vm3027_vm6, %v10271_v48 }
 0x579   :  { %3350 = vst.msk [vmem:[#allocation5 + $0x5c] sm:$0xf] %vm3027_vm6, %v10271_v48 }
 0x57a   :  { %3018 = vst.msk [vmem:[#allocation5 + $0xfc] sm:$0xf] %vm3010_vm4, %v3001_v55 }
 0x57b   :  { %3083 = vst.msk [vmem:[#allocation5 + $0x100] sm:$0xf] %vm3010_vm4, %v3067_v35 }
 0x57c   :  { %3147 = vst.msk [vmem:[#allocation5 + $0x104] sm:$0xf] %vm3010_vm4, %v3131_v22 }
 0x57d   :  { %3210 = vst.msk [vmem:[#allocation5 + $0xe4] sm:$0xf] %vm3010_vm4, %v3001_v55  ;;  %v2943_v9 = vpop.permute.xlu2 %2942 }
 0x57e   :  { %3274 = vst.msk [vmem:[#allocation5 + $0xe8] sm:$0xf] %vm3010_vm4, %v3067_v35  ;;  %v2921_v18 = vpop.permute.xlu1 %2920 }
 0x57f   :  { %3338 = vst.msk [vmem:[#allocation5 + $0xec] sm:$0xf] %vm3010_vm4, %v3131_v22  ;;  %v2919_v12 = vpop.permute.xlu0 %2918 }
 0x580   :  { %3402 = vst.msk [vmem:[#allocation5 + $0xcc] sm:$0xf] %vm3010_vm4, %v3001_v55 }
 0x581   :  { %3466 = vst.msk [vmem:[#allocation5 + $0xd0] sm:$0xf] %vm3010_vm4, %v3067_v35 }
 0x582   :  { %3530 = vst.msk [vmem:[#allocation5 + $0xd4] sm:$0xf] %vm3010_vm4, %v3131_v22 }
 0x583   :  { %3035 = vst.msk [vmem:[#allocation5 + $0xfc] sm:$0xf] %vm3027_vm6, %v10271_v48 }
 0x584   :  { %3099 = vst.msk [vmem:[#allocation5 + $0x100] sm:$0xf] %vm3027_vm6, %v10271_v48 }
 0x585   :  { %3163 = vst.msk [vmem:[#allocation5 + $0x104] sm:$0xf] %vm3027_vm6, %v10271_v48 }
 0x586   :  { %3226 = vst.msk [vmem:[#allocation5 + $0xe4] sm:$0xf] %vm3027_vm6, %v10271_v48 }
 0x587   :  { %3290 = vst.msk [vmem:[#allocation5 + $0xe8] sm:$0xf] %vm3027_vm6, %v10271_v48 }
 0x588   :  { %3354 = vst.msk [vmem:[#allocation5 + $0xec] sm:$0xf] %vm3027_vm6, %v10271_v48 }
 0x589   :  { %3418 = vst.msk [vmem:[#allocation5 + $0xcc] sm:$0xf] %vm3027_vm6, %v10271_v48 }
 0x58a   :  { %3482 = vst.msk [vmem:[#allocation5 + $0xd0] sm:$0xf] %vm3027_vm6, %v10271_v48 }
 0x58b   :  { %3546 = vst.msk [vmem:[#allocation5 + $0xd4] sm:$0xf] %vm3027_vm6, %v10271_v48 }
 0x58c   :  { %2972 = vst.msk [vmem:[#allocation4 + $0xd1] sm:$0xff] %vm2961_vm15, %v2933_v1 }
 0x58d   :  { %2975 = vst.msk [vmem:[#allocation4 + $0x101] sm:$0xff] %vm2961_vm15, %v2939_v37  ;;  %v6944_v37 = vld [vmem:[%s10248_s4 + $0x88] sm:$0xff] }
 0x58e   :  { %2963 = vst.msk [vmem:[#allocation4 + $0x21] sm:$0xff] %vm2961_vm15, %v2915_v15  ;;  %v6954_v15 = vld [vmem:[%s10248_s4 + $0xd8] sm:$0xff]  ;;  %4685 = vmatpush.bf16.msrb.mxu3 %v6944_v37 }
 0x58f   :  { %2962 = vst.msk [vmem:[#allocation4 + $0x11] sm:$0xff] %vm2961_vm15, %v2913_v50  ;;  %4732 = vmatpush.bf16.msrb.mxu0 %v6954_v15  ;;  %v6869_v15 = vld [vmem:[#allocation5 + $0x70] sm:$0xf0] }
 0x590   :  { %2977 = vst.msk [vmem:[#allocation4 + $0x121] sm:$0xff] %vm2961_vm15, %v2943_v9 }
 0x591   :  { %2966 = vst.msk [vmem:[#allocation4 + $0x51] sm:$0xff] %vm2961_vm15, %v2921_v18 }
 0x592   :  { %2965 = vst.msk [vmem:[#allocation4 + $0x41] sm:$0xff] %vm2961_vm15, %v2919_v12 }
 0x593   :  { %v2989_v49 = vld [vmem:[#allocation4 + $0xd0] sm:$0xff]  ;;  %2761 = vst.msk [vmem:[#allocation4] sm:$0xff] %vm2760_vm7, %v10285_v0 }
 0x594   :  { %v3055_v51 = vld [vmem:[#allocation4 + $0xd1] sm:$0xff]  ;;  %v3005_v47 = vpack.c.bf16 %v2989_v49, %v2989_v49  ;;  %v2992_v8 = vld [vmem:[#allocation4 + $0x100] sm:$0xff]  ;;  %2772 = vst.msk [vmem:[#allocation4] sm:$0x1] %vm2771_vm0, %v10285_v0 }
 0x595   :  { %v3119_v28 = vld [vmem:[#allocation4 + $0xd2] sm:$0xff]  ;;  %v3071_v5 = vpack.c.bf16 %v3055_v51, %v3055_v51  ;;  %v3058_v46 = vld [vmem:[#allocation4 + $0x101] sm:$0xff]  ;;  %v3008_v26 = vpack.c.bf16 %v2992_v8, %v2992_v8  ;;  %2813 = vst.msk [vmem:[#allocation4] sm:$0xff] %vm2812_vm1, %v10285_v0 }
 0x596   :  { %v3135_v29 = vpack.c.bf16 %v3119_v28, %v3119_v28  ;;  %3022 = vst.msk [vmem:[#allocation5 + $0x18c] sm:$0xf] %vm3010_vm4, %v3005_v47  ;;  %v3122_v6 = vld [vmem:[#allocation4 + $0x102] sm:$0xff]  ;;  %v3074_v25 = vpack.c.bf16 %v3058_v46, %v3058_v46  ;;  %v2979_v10 = vld [vmem:[#allocation4 + $0x10] sm:$0xff] }
 0x597   :  { %3087 = vst.msk [vmem:[#allocation5 + $0x190] sm:$0xf] %vm3010_vm4, %v3071_v5  ;;  %v3138_v60 = vpack.c.bf16 %v3122_v6, %v3122_v6  ;;  %v2980_v13 = vld [vmem:[#allocation4 + $0x20] sm:$0xff]  ;;  %v3045_v27 = vld [vmem:[#allocation4 + $0x11] sm:$0xff]  ;;  %v2995_v56 = vpack.c.bf16 %v2979_v10, %v2979_v10 }
 0x598   :  { %3151 = vst.msk [vmem:[#allocation5 + $0x194] sm:$0xf] %vm3010_vm4, %v3135_v29  ;;  %v3046_v53 = vld [vmem:[#allocation4 + $0x21] sm:$0xff]  ;;  %v2996_v59 = vpack.c.bf16 %v2980_v13, %v2980_v13  ;;  %v3109_v17 = vld [vmem:[#allocation4 + $0x12] sm:$0xff]  ;;  %v3061_v19 = vpack.c.bf16 %v3045_v27, %v3045_v27 }
 0x599   :  { %3214 = vst.msk [vmem:[#allocation5 + $0x174] sm:$0xf] %vm3010_vm4, %v3005_v47  ;;  %v3110_v34 = vld [vmem:[#allocation4 + $0x22] sm:$0xff]  ;;  %v3062_v30 = vpack.c.bf16 %v3046_v53, %v3046_v53  ;;  %v3125_v11 = vpack.c.bf16 %v3109_v17, %v3109_v17  ;;  %v2983_v14 = vld [vmem:[#allocation4 + $0x50] sm:$0xff] }
 0x59a   :  { %3278 = vst.msk [vmem:[#allocation5 + $0x178] sm:$0xf] %vm3010_vm4, %v3071_v5  ;;  %v3126_v43 = vpack.c.bf16 %v3110_v34, %v3110_v34  ;;  %v3187_v54 = vld [vmem:[#allocation4 + $0x120] sm:$0xff]  ;;  %v3049_v62 = vld [vmem:[#allocation4 + $0x51] sm:$0xff]  ;;  %v2999_v24 = vpack.c.bf16 %v2983_v14, %v2983_v14  ;;  %v6952_v17 = vld [vmem:[%s10248_s4 + $0xc8] sm:$0xff] }
 0x59b   :  { %3342 = vst.msk [vmem:[#allocation5 + $0x17c] sm:$0xf] %vm3010_vm4, %v3135_v29  ;;  %v3251_v33 = vld [vmem:[#allocation4 + $0x121] sm:$0xff]  ;;  %v3203_v20 = vpack.c.bf16 %v3187_v54, %v3187_v54  ;;  %v3113_v2 = vld [vmem:[#allocation4 + $0x52] sm:$0xff]  ;;  %v3065_v55 = vpack.c.bf16 %v3049_v62, %v3049_v62 }
 0x59c   :  { %3406 = vst.msk [vmem:[#allocation5 + $0x15c] sm:$0xf] %vm3010_vm4, %v3005_v47  ;;  %v3315_v7 = vld [vmem:[#allocation4 + $0x122] sm:$0xff]  ;;  %v3267_v39 = vpack.c.bf16 %v3251_v33, %v3251_v33  ;;  %v3129_v35 = vpack.c.bf16 %v3113_v2, %v3113_v2  ;;  %v6953_v28 = vld [vmem:[%s10248_s4 + $0xd0] sm:$0xff]  ;;  %v2929_v47 = vpop.permute.xlu1 %2928 }
 0x59d   :  { %3470 = vst.msk [vmem:[#allocation5 + $0x160] sm:$0xf] %vm3010_vm4, %v3071_v5  ;;  %v3331_v16 = vpack.c.bf16 %v3315_v7, %v3315_v7  ;;  %v2982_v22 = vld [vmem:[#allocation4 + $0x40] sm:$0xff]  ;;  %4733 = vmatpush.bf16.msrb.mxu0 %v6953_v28  ;;  %v2923_v5 = vpop.permute.xlu0 %2922 }
 0x59e   :  { %3534 = vst.msk [vmem:[#allocation5 + $0x164] sm:$0xf] %vm3010_vm4, %v3135_v29  ;;  %v3048_v31 = vld [vmem:[#allocation4 + $0x41] sm:$0xff]  ;;  %v2998_v36 = vpack.c.bf16 %v2982_v22, %v2982_v22 }
 0x59f   :  { %3039 = vst.msk [vmem:[#allocation5 + $0x18c] sm:$0xf] %vm3027_vm6, %v10271_v48  ;;  %v3112_v63 = vld [vmem:[#allocation4 + $0x42] sm:$0xff]  ;;  %v3064_v32 = vpack.c.bf16 %v3048_v31, %v3048_v31  ;;  %v6868_v31 = vld [vmem:[#allocation5 + $0x68] sm:$0xf0] }
 0x5a0   :  { %3103 = vst.msk [vmem:[#allocation5 + $0x190] sm:$0xf] %vm3027_vm6, %v10271_v48  ;;  %v3128_v1 = vpack.c.bf16 %v3112_v63, %v3112_v63  ;;  %v6935_v49 = vld [vmem:[%s10248_s4 + $0x40] sm:$0xff] }
 0x5a1   :  { %3167 = vst.msk [vmem:[#allocation5 + $0x194] sm:$0xf] %vm3027_vm6, %v10271_v48  ;;  %4637 = vmatpush.bf16.msrb.mxu2 %v6935_v49  ;;  %v6943_v51 = vld [vmem:[%s10248_s4 + $0x80] sm:$0xff]  ;;  %4734 = vmatpush.bf16.msrb.mxu0 %v6952_v17 }
 0x5a2   :  { %3230 = vst.msk [vmem:[#allocation5 + $0x174] sm:$0xf] %vm3027_vm6, %v10271_v48  ;;  %4686 = vmatpush.bf16.msrb.mxu3 %v6943_v51 }
 0x5a3   :  { %3294 = vst.msk [vmem:[#allocation5 + $0x178] sm:$0xf] %vm3027_vm6, %v10271_v48 }
 0x5a4   :  { %3358 = vst.msk [vmem:[#allocation5 + $0x17c] sm:$0xf] %vm3027_vm6, %v10271_v48  ;;  %v2935_v50 = vpop.permute.xlu1 %2934 }
 0x5a5   :  { %3422 = vst.msk [vmem:[#allocation5 + $0x15c] sm:$0xf] %vm3027_vm6, %v10271_v48  ;;  %4735 = vmatpush.bf16.msrb.mxu0 %v6951_v58 }
 0x5a6   :  { %3486 = vst.msk [vmem:[#allocation5 + $0x160] sm:$0xf] %vm3027_vm6, %v10271_v48 }
 0x5a7   :  { %3550 = vst.msk [vmem:[#allocation5 + $0x164] sm:$0xf] %vm3027_vm6, %v10271_v48 }
 0x5a8   :  { %3025 = vst.msk [vmem:[#allocation5 + $0x1f8] sm:$0xf] %vm3010_vm4, %v3008_v26 }
 0x5a9   :  { %3090 = vst.msk [vmem:[#allocation5 + $0x1fc] sm:$0xf] %vm3010_vm4, %v3074_v25 }
 0x5aa   :  { %3154 = vst.msk [vmem:[#allocation5 + $0x200] sm:$0xf] %vm3010_vm4, %v3138_v60 }
 0x5ab   :  { %3217 = vst.msk [vmem:[#allocation5 + $0x1e0] sm:$0xf] %vm3010_vm4, %v3008_v26 }
 0x5ac   :  { %3281 = vst.msk [vmem:[#allocation5 + $0x1e4] sm:$0xf] %vm3010_vm4, %v3074_v25  ;;  %v2941_v3 = vpop.permute.xlu1 %2940 }
 0x5ad   :  { %3345 = vst.msk [vmem:[#allocation5 + $0x1e8] sm:$0xf] %vm3010_vm4, %v3138_v60 }
 0x5ae   :  { %3409 = vst.msk [vmem:[#allocation5 + $0x1c8] sm:$0xf] %vm3010_vm4, %v3008_v26 }
 0x5af   :  { %3473 = vst.msk [vmem:[#allocation5 + $0x1cc] sm:$0xf] %vm3010_vm4, %v3074_v25 }
 0x5b0   :  { %3537 = vst.msk [vmem:[#allocation5 + $0x1d0] sm:$0xf] %vm3010_vm4, %v3138_v60 }
 0x5b1   :  { %3042 = vst.msk [vmem:[#allocation5 + $0x1f8] sm:$0xf] %vm3027_vm6, %v10271_v48 }
 0x5b2   :  { %3106 = vst.msk [vmem:[#allocation5 + $0x1fc] sm:$0xf] %vm3027_vm6, %v10271_v48 }
 0x5b3   :  { %3170 = vst.msk [vmem:[#allocation5 + $0x200] sm:$0xf] %vm3027_vm6, %v10271_v48 }
 0x5b4   :  { %3233 = vst.msk [vmem:[#allocation5 + $0x1e0] sm:$0xf] %vm3027_vm6, %v10271_v48 }
 0x5b5   :  { %3297 = vst.msk [vmem:[#allocation5 + $0x1e4] sm:$0xf] %vm3027_vm6, %v10271_v48 }
 0x5b6   :  { %3361 = vst.msk [vmem:[#allocation5 + $0x1e8] sm:$0xf] %vm3027_vm6, %v10271_v48 }
 0x5b7   :  { %3425 = vst.msk [vmem:[#allocation5 + $0x1c8] sm:$0xf] %vm3027_vm6, %v10271_v48 }
 0x5b8   :  { %3489 = vst.msk [vmem:[#allocation5 + $0x1cc] sm:$0xf] %vm3027_vm6, %v10271_v48 }
 0x5b9   :  { %3553 = vst.msk [vmem:[#allocation5 + $0x1d0] sm:$0xf] %vm3027_vm6, %v10271_v48 }
 0x5ba   :  { %3013 = vst.msk [vmem:[#allocation5 + $0x48] sm:$0xf] %vm3010_vm4, %v2996_v59 }
 0x5bb   :  { %3078 = vst.msk [vmem:[#allocation5 + $0x4c] sm:$0xf] %vm3010_vm4, %v3062_v30 }
 0x5bc   :  { %3142 = vst.msk [vmem:[#allocation5 + $0x50] sm:$0xf] %vm3010_vm4, %v3126_v43 }
 0x5bd   :  { %3205 = vst.msk [vmem:[#allocation5 + $0x30] sm:$0xf] %vm3010_vm4, %v2996_v59 }
 0x5be   :  { %3221 = vst.msk [vmem:[#allocation5 + $0x30] sm:$0xf] %vm3027_vm6, %v10271_v48 }
 0x5bf   :  { %3269 = vst.msk [vmem:[#allocation5 + $0x34] sm:$0xf] %vm3010_vm4, %v3062_v30 }
 0x5c0   :  { %3285 = vst.msk [vmem:[#allocation5 + $0x34] sm:$0xf] %vm3027_vm6, %v10271_v48 }
 0x5c1   :  { %3333 = vst.msk [vmem:[#allocation5 + $0x38] sm:$0xf] %vm3010_vm4, %v3126_v43 }
 0x5c2   :  { %3349 = vst.msk [vmem:[#allocation5 + $0x38] sm:$0xf] %vm3027_vm6, %v10271_v48 }
 0x5c3   :  { %3397 = vst.msk [vmem:[#allocation5 + $0x18] sm:$0xf] %vm3010_vm4, %v2996_v59 }
 0x5c4   :  { %3413 = vst.msk [vmem:[#allocation5 + $0x18] sm:$0xf] %vm3027_vm6, %v10271_v48 }
 0x5c5   :  { %3461 = vst.msk [vmem:[#allocation5 + $0x1c] sm:$0xf] %vm3010_vm4, %v3062_v30  ;;  %v6131_v52 = vld [vmem:[#allocation5 + $0x2c] sm:$0xf0] }
 0x5c6   :  { %3477 = vst.msk [vmem:[#allocation5 + $0x1c] sm:$0xf] %vm3027_vm6, %v10271_v48 }
 0x5c7   :  { %3525 = vst.msk [vmem:[#allocation5 + $0x20] sm:$0xf] %vm3010_vm4, %v3126_v43 }
 0x5c8   :  { %3541 = vst.msk [vmem:[#allocation5 + $0x20] sm:$0xf] %vm3027_vm6, %v10271_v48 }
 0x5c9   :  { %3030 = vst.msk [vmem:[#allocation5 + $0x48] sm:$0xf] %vm3027_vm6, %v10271_v48 }
 0x5ca   :  { %3094 = vst.msk [vmem:[#allocation5 + $0x4c] sm:$0xf] %vm3027_vm6, %v10271_v48 }
 0x5cb   :  { %3158 = vst.msk [vmem:[#allocation5 + $0x50] sm:$0xf] %vm3027_vm6, %v10271_v48 }
 0x5cc   :  { %3012 = vst.msk [vmem:[#allocation5 + $0x24] sm:$0xf] %vm3010_vm4, %v2995_v56 }
 0x5cd   :  { %3029 = vst.msk [vmem:[#allocation5 + $0x24] sm:$0xf] %vm3027_vm6, %v10271_v48 }
 0x5ce   :  { %3077 = vst.msk [vmem:[#allocation5 + $0x28] sm:$0xf] %vm3010_vm4, %v3061_v19 }
 0x5cf   :  { %3093 = vst.msk [vmem:[#allocation5 + $0x28] sm:$0xf] %vm3027_vm6, %v10271_v48 }
 0x5d0   :  { %3141 = vst.msk [vmem:[#allocation5 + $0x2c] sm:$0xf] %vm3010_vm4, %v3125_v11 }
 0x5d1   :  { %3157 = vst.msk [vmem:[#allocation5 + $0x2c] sm:$0xf] %vm3027_vm6, %v10271_v48 }
 0x5d2   :  { %3204 = vst.msk [vmem:[#allocation5 + $0xc] sm:$0xf] %vm3010_vm4, %v2995_v56  ;;  %v6165_v37 = vld [vmem:[#allocation5 + $0x50] sm:$0xf] }
 0x5d3   :  { %3220 = vst.msk [vmem:[#allocation5 + $0xc] sm:$0xf] %vm3027_vm6, %v10271_v48  ;;  %v6166_v49 = vor.u32 %v6869_v15, %v6165_v37 }
 0x5d4   :  { %3268 = vst.msk [vmem:[#allocation5 + $0x10] sm:$0xf] %vm3010_vm4, %v3061_v19  ;;  %v6859_v43 = vld [vmem:[#allocation5 + $0x20] sm:$0xf0] }
 0x5d5   :  { %3284 = vst.msk [vmem:[#allocation5 + $0x10] sm:$0xf] %vm3027_vm6, %v10271_v48 }
 0x5d6   :  { %3332 = vst.msk [vmem:[#allocation5 + $0x14] sm:$0xf] %vm3010_vm4, %v3125_v11  ;;  %v6123_v18 = vld [vmem:[#allocation5 + $0x24] sm:$0xf0] }
 0x5d7   :  { %3348 = vst.msk [vmem:[#allocation5 + $0x14] sm:$0xf] %vm3027_vm6, %v10271_v48 }
 0x5d8   :  { %3219 = vst.msk [vmem:[#allocation5 + $0x228] sm:$0xf] %vm3010_vm4, %v3203_v20  ;;  %v6860_v7 = vld [vmem:[#allocation5 + $0x28] sm:$0xf0] }
 0x5d9   :  { %3283 = vst.msk [vmem:[#allocation5 + $0x22c] sm:$0xf] %vm3010_vm4, %v3267_v39 }
 0x5da   :  { %3347 = vst.msk [vmem:[#allocation5 + $0x230] sm:$0xf] %vm3010_vm4, %v3331_v16 }
 0x5db   :  { %3411 = vst.msk [vmem:[#allocation5 + $0x210] sm:$0xf] %vm3010_vm4, %v3203_v20 }
 0x5dc   :  { %3475 = vst.msk [vmem:[#allocation5 + $0x214] sm:$0xf] %vm3010_vm4, %v3267_v39  ;;  %v2931_v39 = vpop.permute.xlu0 %2930 }
 0x5dd   :  { %3539 = vst.msk [vmem:[#allocation5 + $0x218] sm:$0xf] %vm3010_vm4, %v3331_v16  ;;  %v6856_v16 = vld [vmem:[#allocation5 + $0xc] sm:$0xf] }
 0x5de   :  { %3235 = vst.msk [vmem:[#allocation5 + $0x228] sm:$0xf] %vm3027_vm6, %v10271_v48  ;;  %v6134_v38 = vor.u32 %v6856_v16, %v6131_v52 }
 0x5df   :  { %3299 = vst.msk [vmem:[#allocation5 + $0x22c] sm:$0xf] %vm3027_vm6, %v10271_v48 }
 0x5e0   :  { %3363 = vst.msk [vmem:[#allocation5 + $0x230] sm:$0xf] %vm3027_vm6, %v10271_v48  ;;  %4736 = vmatmul.bf16.vlgmr.msrb.gmra.mxu0 %v6134_v38 }
 0x5e1   :  { %3427 = vst.msk [vmem:[#allocation5 + $0x210] sm:$0xf] %vm3027_vm6, %v10271_v48 }
 0x5e2   :  { %3491 = vst.msk [vmem:[#allocation5 + $0x214] sm:$0xf] %vm3027_vm6, %v10271_v48 }
 0x5e3   :  { %3555 = vst.msk [vmem:[#allocation5 + $0x218] sm:$0xf] %vm3027_vm6, %v10271_v48 }
 0x5e4   :  { %3016 = vst.msk [vmem:[#allocation5 + $0xb4] sm:$0xf] %vm3010_vm4, %v2999_v24  ;;  %v2937_v14 = vpop.permute.xlu0 %2936 }
 0x5e5   :  { %3081 = vst.msk [vmem:[#allocation5 + $0xb8] sm:$0xf] %vm3010_vm4, %v3065_v55 }
 0x5e6   :  { %3145 = vst.msk [vmem:[#allocation5 + $0xbc] sm:$0xf] %vm3010_vm4, %v3129_v35 }
 0x5e7   :  { %3208 = vst.msk [vmem:[#allocation5 + $0x9c] sm:$0xf] %vm3010_vm4, %v2999_v24 }
 0x5e8   :  { %3272 = vst.msk [vmem:[#allocation5 + $0xa0] sm:$0xf] %vm3010_vm4, %v3065_v55 }
 0x5e9   :  { %3336 = vst.msk [vmem:[#allocation5 + $0xa4] sm:$0xf] %vm3010_vm4, %v3129_v35 }
 0x5ea   :  { %3400 = vst.msk [vmem:[#allocation5 + $0x84] sm:$0xf] %vm3010_vm4, %v2999_v24 }
 0x5eb   :  { %3464 = vst.msk [vmem:[#allocation5 + $0x88] sm:$0xf] %vm3010_vm4, %v3065_v55 }
 0x5ec   :  { %3528 = vst.msk [vmem:[#allocation5 + $0x8c] sm:$0xf] %vm3010_vm4, %v3129_v35  ;;  %v2927_v58 = vpop.permute.xlu0 %2926 }
 0x5ed   :  { %3033 = vst.msk [vmem:[#allocation5 + $0xb4] sm:$0xf] %vm3027_vm6, %v10271_v48 }
 0x5ee   :  { %3097 = vst.msk [vmem:[#allocation5 + $0xb8] sm:$0xf] %vm3027_vm6, %v10271_v48 }
 0x5ef   :  { %3161 = vst.msk [vmem:[#allocation5 + $0xbc] sm:$0xf] %vm3027_vm6, %v10271_v48 }
 0x5f0   :  { %3224 = vst.msk [vmem:[#allocation5 + $0x9c] sm:$0xf] %vm3027_vm6, %v10271_v48 }
 0x5f1   :  { %3288 = vst.msk [vmem:[#allocation5 + $0xa0] sm:$0xf] %vm3027_vm6, %v10271_v48 }
 0x5f2   :  { %3352 = vst.msk [vmem:[#allocation5 + $0xa4] sm:$0xf] %vm3027_vm6, %v10271_v48 }
 0x5f3   :  { %3416 = vst.msk [vmem:[#allocation5 + $0x84] sm:$0xf] %vm3027_vm6, %v10271_v48 }
 0x5f4   :  { %3480 = vst.msk [vmem:[#allocation5 + $0x88] sm:$0xf] %vm3027_vm6, %v10271_v48  ;;  %v6877_v44 = vld [vmem:[#allocation5 + $0xb0] sm:$0xf0] }
 0x5f5   :  { %3544 = vst.msk [vmem:[#allocation5 + $0x8c] sm:$0xf] %vm3027_vm6, %v10271_v48 }
 0x5f6   :  { %3015 = vst.msk [vmem:[#allocation5 + $0x90] sm:$0xf] %vm3010_vm4, %v2998_v36 }
 0x5f7   :  { %3080 = vst.msk [vmem:[#allocation5 + $0x94] sm:$0xf] %vm3010_vm4, %v3064_v32 }
 0x5f8   :  { %3144 = vst.msk [vmem:[#allocation5 + $0x98] sm:$0xf] %vm3010_vm4, %v3128_v1 }
 0x5f9   :  { %3207 = vst.msk [vmem:[#allocation5 + $0x78] sm:$0xf] %vm3010_vm4, %v2998_v36 }
 0x5fa   :  { %3271 = vst.msk [vmem:[#allocation5 + $0x7c] sm:$0xf] %vm3010_vm4, %v3064_v32 }
 0x5fb   :  { %3335 = vst.msk [vmem:[#allocation5 + $0x80] sm:$0xf] %vm3010_vm4, %v3128_v1 }
 0x5fc   :  { %3399 = vst.msk [vmem:[#allocation5 + $0x60] sm:$0xf] %vm3010_vm4, %v2998_v36  ;;  %v6864_v36 = vld [vmem:[#allocation5 + $0x4c] sm:$0xf] }
 0x5fd   :  { %3463 = vst.msk [vmem:[#allocation5 + $0x64] sm:$0xf] %vm3010_vm4, %v3064_v32  ;;  %v6159_v32 = vld [vmem:[#allocation5 + $0x6c] sm:$0xf0] }
 0x5fe   :  { %3527 = vst.msk [vmem:[#allocation5 + $0x68] sm:$0xf] %vm3010_vm4, %v3128_v1  ;;  %v6162_v1 = vor.u32 %v6864_v36, %v6159_v32  ;;  %v6961_v32 = vld [vmem:[%s10248_s4 + $0x110] sm:$0xff] }
 0x5ff   :  { %3032 = vst.msk [vmem:[#allocation5 + $0x90] sm:$0xf] %vm3027_vm6, %v10271_v48 }
 0x600   :  { %3096 = vst.msk [vmem:[#allocation5 + $0x94] sm:$0xf] %vm3027_vm6, %v10271_v48 }
 0x601   :  { %3160 = vst.msk [vmem:[#allocation5 + $0x98] sm:$0xf] %vm3027_vm6, %v10271_v48 }
 0x602   :  { %3223 = vst.msk [vmem:[#allocation5 + $0x78] sm:$0xf] %vm3027_vm6, %v10271_v48 }
 0x603   :  { %3287 = vst.msk [vmem:[#allocation5 + $0x7c] sm:$0xf] %vm3027_vm6, %v10271_v48 }
 0x604   :  { %3351 = vst.msk [vmem:[#allocation5 + $0x80] sm:$0xf] %vm3027_vm6, %v10271_v48 }
 0x605   :  { %3415 = vst.msk [vmem:[#allocation5 + $0x60] sm:$0xf] %vm3027_vm6, %v10271_v48 }
 0x606   :  { %3479 = vst.msk [vmem:[#allocation5 + $0x64] sm:$0xf] %vm3027_vm6, %v10271_v48 }
 0x607   :  { %3543 = vst.msk [vmem:[#allocation5 + $0x68] sm:$0xf] %vm3027_vm6, %v10271_v48 }
 0x608   :  { %2970 = vst.msk [vmem:[#allocation4 + $0xb1] sm:$0xff] %vm2961_vm15, %v2929_v47 }
 0x609   :  { %2967 = vst.msk [vmem:[#allocation4 + $0x61] sm:$0xff] %vm2961_vm15, %v2923_v5 }
 0x60a   :  { %2855 = vst.msk [vmem:[#allocation4] sm:$0xff] %vm2854_vm3, %v10285_v0 }
 0x60b   :  { %2764 = vst.msk [vmem:[#allocation4 + $0xa0] sm:$0xff] %vm2760_vm7, %v10285_v0 }
 0x60c   :  { %2767 = vst.msk [vmem:[#allocation4 + $0x90] sm:$0xff] %vm2760_vm7, %v10285_v0 }
 0x60d   :  { %2769 = vst.msk [vmem:[#allocation4 + $0x130] sm:$0xff] %vm2760_vm7, %v10285_v0 }
 0x60e   :  { %2763 = vst.msk [vmem:[#allocation4 + $0x8] sm:$0x3] %vm2762_vm8, %v10285_v0 }
 0x60f   :  { %v2987_v29 = vld [vmem:[#allocation4 + $0xb0] sm:$0xff]  ;;  %2792 = vst.msk [vmem:[#allocation4 + $0x9] sm:$0x1] %vm2771_vm0, %v10285_v0 }
 0x610   :  { %v3053_v8 = vld [vmem:[#allocation4 + $0xb1] sm:$0xff]  ;;  %v3003_v6 = vpack.c.bf16 %v2987_v29, %v2987_v29  ;;  %v2984_v60 = vld [vmem:[#allocation4 + $0x60] sm:$0xff]  ;;  %2815 = vst.msk [vmem:[#allocation4 + $0x8] sm:$0x3] %vm2814_vm2, %v10285_v0 }
 0x611   :  { %v3117_v46 = vld [vmem:[#allocation4 + $0xb2] sm:$0xff]  ;;  %v3069_v26 = vpack.c.bf16 %v3053_v8, %v3053_v8  ;;  %v3050_v13 = vld [vmem:[#allocation4 + $0x61] sm:$0xff]  ;;  %v3000_v4 = vpack.c.bf16 %v2984_v60, %v2984_v60  ;;  %2857 = vst.msk [vmem:[#allocation4 + $0x8] sm:$0x3] %vm2856_vm5, %v10285_v0 }
 0x612   :  { %v3133_v25 = vpack.c.bf16 %v3117_v46, %v3117_v46  ;;  %3020 = vst.msk [vmem:[#allocation5 + $0x144] sm:$0xf] %vm3010_vm4, %v3003_v6  ;;  %v3114_v53 = vld [vmem:[#allocation4 + $0x62] sm:$0xff]  ;;  %v3066_v57 = vpack.c.bf16 %v3050_v13, %v3050_v13  ;;  %v6965_v46 = vld [vmem:[%s10248_s4 + $0x130] sm:$0xff]  ;;  %v6167_v13 = vld [vmem:[#allocation5 + $0x74] sm:$0xf0] }
 0x613   :  { %3085 = vst.msk [vmem:[#allocation5 + $0x148] sm:$0xf] %vm3010_vm4, %v3069_v26  ;;  %v3130_v34 = vpack.c.bf16 %v3114_v53, %v3114_v53  ;;  %v2978_v59 = vld [vmem:[#allocation4] sm:$0xff]  ;;  %4778 = vmatpush.bf16.msrb.mxu1 %v6965_v46  ;;  %v6865_v60 = vld [vmem:[#allocation5 + $0x54] sm:$0xf]  ;;  %v6960_v46 = vld [vmem:[%s10248_s4 + $0x108] sm:$0xff] }
 0x614   :  { %3149 = vst.msk [vmem:[#allocation5 + $0x14c] sm:$0xf] %vm3010_vm4, %v3133_v25  ;;  %v2994_v30 = vpack.c.bf16 %v2978_v59, %v2978_v59  ;;  %v6193_v59 = vld [vmem:[#allocation5 + $0x90] sm:$0xf] }
 0x615   :  { %3212 = vst.msk [vmem:[#allocation5 + $0x12c] sm:$0xf] %vm3010_vm4, %v3003_v6 }
 0x616   :  { %3276 = vst.msk [vmem:[#allocation5 + $0x130] sm:$0xf] %vm3010_vm4, %v3069_v26 }
 0x617   :  { %3340 = vst.msk [vmem:[#allocation5 + $0x134] sm:$0xf] %vm3010_vm4, %v3133_v25 }
 0x618   :  { %3037 = vst.msk [vmem:[#allocation5 + $0x144] sm:$0xf] %vm3027_vm6, %v10271_v48  ;;  %v3044_v23 = vld [vmem:[#allocation4 + $0x1] sm:$0xff] }
 0x619   :  { %3101 = vst.msk [vmem:[#allocation5 + $0x148] sm:$0xf] %vm3027_vm6, %v10271_v48  ;;  %v3060_v42 = vpack.c.bf16 %v3044_v23, %v3044_v23  ;;  %v3108_v9 = vld [vmem:[#allocation4 + $0x2] sm:$0xff]  ;;  %v6201_v23 = vld [vmem:[#allocation5 + $0x98] sm:$0xf] }
 0x61a   :  { %3165 = vst.msk [vmem:[#allocation5 + $0x14c] sm:$0xf] %vm3027_vm6, %v10271_v48  ;;  %v3124_v10 = vpack.c.bf16 %v3108_v9, %v3108_v9  ;;  %v6964_v9 = vld [vmem:[%s10248_s4 + $0x128] sm:$0xff] }
 0x61b   :  { %3228 = vst.msk [vmem:[#allocation5 + $0x12c] sm:$0xf] %vm3027_vm6, %v10271_v48  ;;  %4779 = vmatpush.bf16.msrb.mxu1 %v6964_v9  ;;  %v6971_v9 = vld [vmem:[%s10248_s4 + $0x160] sm:$0xff] }
 0x61c   :  { %3292 = vst.msk [vmem:[#allocation5 + $0x130] sm:$0xf] %vm3027_vm6, %v10271_v48 }
 0x61d   :  { %3356 = vst.msk [vmem:[#allocation5 + $0x134] sm:$0xf] %vm3027_vm6, %v10271_v48 }
 0x61e   :  { %3017 = vst.msk [vmem:[#allocation5 + $0xd8] sm:$0xf] %vm3010_vm4, %v3000_v4 }
 0x61f   :  { %3082 = vst.msk [vmem:[#allocation5 + $0xdc] sm:$0xf] %vm3010_vm4, %v3066_v57 }
 0x620   :  { %3146 = vst.msk [vmem:[#allocation5 + $0xe0] sm:$0xf] %vm3010_vm4, %v3130_v34 }
 0x621   :  { %3209 = vst.msk [vmem:[#allocation5 + $0xc0] sm:$0xf] %vm3010_vm4, %v3000_v4  ;;  %v6896_v37 = vld [vmem:[#allocation5 + $0x148] sm:$0xf0] }
 0x622   :  { %3273 = vst.msk [vmem:[#allocation5 + $0xc4] sm:$0xf] %vm3010_vm4, %v3066_v57 }
 0x623   :  { %3337 = vst.msk [vmem:[#allocation5 + $0xc8] sm:$0xf] %vm3010_vm4, %v3130_v34 }
 0x624   :  { %3401 = vst.msk [vmem:[#allocation5 + $0xa8] sm:$0xf] %vm3010_vm4, %v3000_v4  ;;  %v6170_v4 = vor.u32 %v6865_v60, %v6167_v13  ;;  %v6982_v60 = vld [vmem:[%s10248_s4 + $0x1b8] sm:$0xff] }
 0x625   :  { %3465 = vst.msk [vmem:[#allocation5 + $0xac] sm:$0xf] %vm3010_vm4, %v3066_v57  ;;  %4875 = vmatpush.bf16.msra.mxu3 %v6982_v60  ;;  %v6983_v60 = vld [vmem:[%s10248_s4 + $0x1c0] sm:$0xff] }
 0x626   :  { %3529 = vst.msk [vmem:[#allocation5 + $0xb0] sm:$0xf] %vm3010_vm4, %v3130_v34  ;;  %4741 = vmatmul.bf16.gmra.mxu0 %v6170_v4  ;;  %v6973_v4 = vld [vmem:[%s10248_s4 + $0x170] sm:$0xff] }
 0x627   :  { %3034 = vst.msk [vmem:[#allocation5 + $0xd8] sm:$0xf] %vm3027_vm6, %v10271_v48 }
 0x628   :  { %3098 = vst.msk [vmem:[#allocation5 + $0xdc] sm:$0xf] %vm3027_vm6, %v10271_v48 }
 0x629   :  { %3162 = vst.msk [vmem:[#allocation5 + $0xe0] sm:$0xf] %vm3027_vm6, %v10271_v48 }
 0x62a   :  { %3225 = vst.msk [vmem:[#allocation5 + $0xc0] sm:$0xf] %vm3027_vm6, %v10271_v48 }
 0x62b   :  { %3289 = vst.msk [vmem:[#allocation5 + $0xc4] sm:$0xf] %vm3027_vm6, %v10271_v48 }
 0x62c   :  { %3353 = vst.msk [vmem:[#allocation5 + $0xc8] sm:$0xf] %vm3027_vm6, %v10271_v48 }
 0x62d   :  { %3417 = vst.msk [vmem:[#allocation5 + $0xa8] sm:$0xf] %vm3027_vm6, %v10271_v48 }
 0x62e   :  { %3481 = vst.msk [vmem:[#allocation5 + $0xac] sm:$0xf] %vm3027_vm6, %v10271_v48  ;;  %v6229_v17 = vld [vmem:[#allocation5 + $0xd8] sm:$0xf] }
 0x62f   :  { %3545 = vst.msk [vmem:[#allocation5 + $0xb0] sm:$0xf] %vm3027_vm6, %v10271_v48 }
 0x630   :  { %3011 = vst.msk [vmem:[#allocation5] sm:$0xf] %vm3010_vm4, %v2994_v30  ;;  %v6194_v30 = vor.u32 %v6877_v44, %v6193_v59 }
 0x631   :  { %3028 = vst.msk [vmem:[#allocation5] sm:$0xf] %vm3027_vm6, %v10271_v48 }
 0x632   :  { %2765 = vst.msk [vmem:[#allocation4 + $0xa8] sm:$0x3] %vm2762_vm8, %v10285_v0 }
 0x633   :  { %2768 = vst.msk [vmem:[#allocation4 + $0x98] sm:$0x3] %vm2762_vm8, %v10285_v0 }
 0x634   :  { %2770 = vst.msk [vmem:[#allocation4 + $0x138] sm:$0x3] %vm2762_vm8, %v10285_v0 }
 0x635   :  { %2781 = vst.msk [vmem:[#allocation4 + $0x90] sm:$0x1] %vm2771_vm0, %v10285_v0 }
 0x636   :  { %2782 = vst.msk [vmem:[#allocation4 + $0xa0] sm:$0x1] %vm2771_vm0, %v10285_v0 }
 0x637   :  { %2791 = vst.msk [vmem:[#allocation4 + $0x130] sm:$0x1] %vm2771_vm0, %v10285_v0 }
 0x638   :  { %v6121_v45 = vld [vmem:[#allocation5] sm:$0xf]  ;;  %2801 = vst.msk [vmem:[#allocation4 + $0x99] sm:$0x1] %vm2771_vm0, %v10285_v0 }
 0x639   :  { %v6122_v21 = vor.u32 %v6859_v43, %v6121_v45  ;;  %2802 = vst.msk [vmem:[#allocation4 + $0xa9] sm:$0x1] %vm2771_vm0, %v10285_v0  ;;  %v6873_v43 = vld [vmem:[#allocation5 + $0x94] sm:$0xf]  ;;  %v6195_v45 = vld [vmem:[#allocation5 + $0xb4] sm:$0xf0] }
 0x63a   :  { %2811 = vst.msk [vmem:[#allocation4 + $0x139] sm:$0x1] %vm2771_vm0, %v10285_v0  ;;  %vm5034_vm0 = vcmask 523264  }
 0x63b   :  { %4589 = vmatmul.bf16.vlgmr.msra.gmra.mxu1 %v6122_v21  ;;  %3076 = vst.msk [vmem:[#allocation5 + $0x4] sm:$0xf] %vm3010_vm4, %v3060_v42  ;;  %v6198_v21 = vor.u32 %v6873_v43, %v6195_v45  ;;  %v6878_v42 = vld [vmem:[#allocation5 + $0xb8] sm:$0xf0]  ;;  %v6892_v43 = vld [vmem:[#allocation5 + $0x12c] sm:$0xf] }
 0x63c   :  { %3092 = vst.msk [vmem:[#allocation5 + $0x4] sm:$0xf] %vm3027_vm6, %v10271_v48 }
 0x63d   :  { %2832 = vst.msk [vmem:[#allocation4 + $0x90] sm:$0xff] %vm2812_vm1, %v10285_v0 }
 0x63e   :  { %2834 = vst.msk [vmem:[#allocation4 + $0xa0] sm:$0xff] %vm2812_vm1, %v10285_v0 }
 0x63f   :  { %2852 = vst.msk [vmem:[#allocation4 + $0x130] sm:$0xff] %vm2812_vm1, %v10285_v0 }
 0x640   :  { %2973 = vst.msk [vmem:[#allocation4 + $0xe1] sm:$0xff] %vm2961_vm15, %v2935_v50  ;;  %v6202_v50 = vor.u32 %v6878_v42, %v6201_v23  ;;  %v6980_v42 = vld [vmem:[%s10248_s4 + $0x1a8] sm:$0xff] }
 0x641   :  { %2833 = vst.msk [vmem:[#allocation4 + $0x98] sm:$0x3] %vm2814_vm2, %v10285_v0 }
 0x642   :  { %2835 = vst.msk [vmem:[#allocation4 + $0xa8] sm:$0x3] %vm2814_vm2, %v10285_v0 }
 0x643   :  { %v6855_v12 = vld [vmem:[#allocation5 + $0x4] sm:$0xf]  ;;  %2853 = vst.msk [vmem:[#allocation4 + $0x138] sm:$0x3] %vm2814_vm2, %v10285_v0 }
 0x644   :  { %v6126_v27 = vor.u32 %v6855_v12, %v6123_v18  ;;  %2874 = vst.msk [vmem:[#allocation4 + $0x90] sm:$0xff] %vm2854_vm3, %v10285_v0  ;;  %v6874_v18 = vld [vmem:[#allocation5 + $0x9c] sm:$0xf]  ;;  %v6203_v12 = vld [vmem:[#allocation5 + $0xbc] sm:$0xf0] }
 0x645   :  { %2876 = vst.msk [vmem:[#allocation4 + $0xa0] sm:$0xff] %vm2854_vm3, %v10285_v0 }
 0x646   :  { %4638 = vmatmul.bf16.vlgmr.msrb.gmra.mxu2 %v6126_v27  ;;  %2894 = vst.msk [vmem:[#allocation4 + $0x130] sm:$0xff] %vm2854_vm3, %v10285_v0  ;;  %v6206_v27 = vor.u32 %v6874_v18, %v6203_v12 }
 0x647   :  { %v2990_v56 = vld [vmem:[#allocation4 + $0xe0] sm:$0xff]  ;;  %3140 = vst.msk [vmem:[#allocation5 + $0x8] sm:$0xf] %vm3010_vm4, %v3124_v10 }
 0x648   :  { %v3056_v19 = vld [vmem:[#allocation4 + $0xe1] sm:$0xff]  ;;  %v3006_v54 = vpack.c.bf16 %v2990_v56, %v2990_v56  ;;  %3156 = vst.msk [vmem:[#allocation5 + $0x8] sm:$0xf] %vm3027_vm6, %v10271_v48  ;;  %v6886_v56 = vld [vmem:[#allocation5 + $0xf8] sm:$0xf0]  ;;  %4746 = vmatmul.bf16.gmra.mxu0 %v6206_v27 }
 0x649   :  { %v3120_v11 = vld [vmem:[#allocation4 + $0xe2] sm:$0xff]  ;;  %v3072_v33 = vpack.c.bf16 %v3056_v19, %v3056_v19  ;;  %2875 = vst.msk [vmem:[#allocation4 + $0x98] sm:$0x3] %vm2856_vm5, %v10285_v0 }
 0x64a   :  { %v3136_v41 = vpack.c.bf16 %v3120_v11, %v3120_v11  ;;  %3023 = vst.msk [vmem:[#allocation5 + $0x1b0] sm:$0xf] %vm3010_vm4, %v3006_v54  ;;  %v6963_v10 = vld [vmem:[%s10248_s4 + $0x120] sm:$0xff]  ;;  %v6882_v11 = vld [vmem:[#allocation5 + $0xdc] sm:$0xf] }
 0x64b   :  { %3088 = vst.msk [vmem:[#allocation5 + $0x1b4] sm:$0xf] %vm3010_vm4, %v3072_v33  ;;  %4780 = vmatpush.bf16.msrb.mxu1 %v6963_v10 }
 0x64c   :  { %3152 = vst.msk [vmem:[#allocation5 + $0x1b8] sm:$0xf] %vm3010_vm4, %v3136_v41  ;;  %v2986_v19 = vld [vmem:[#allocation4 + $0xa0] sm:$0xff] }
 0x64d   :  { %3215 = vst.msk [vmem:[#allocation5 + $0x198] sm:$0xf] %vm3010_vm4, %v3006_v54 }
 0x64e   :  { %3279 = vst.msk [vmem:[#allocation5 + $0x19c] sm:$0xf] %vm3010_vm4, %v3072_v33 }
 0x64f   :  { %3343 = vst.msk [vmem:[#allocation5 + $0x1a0] sm:$0xf] %vm3010_vm4, %v3136_v41  ;;  %v6129_v20 = vld [vmem:[#allocation5 + $0x8] sm:$0xf] }
 0x650   :  { %3407 = vst.msk [vmem:[#allocation5 + $0x180] sm:$0xf] %vm3010_vm4, %v3006_v54  ;;  %v6130_v61 = vor.u32 %v6860_v7, %v6129_v20  ;;  %v6962_v54 = vld [vmem:[%s10248_s4 + $0x118] sm:$0xff]  ;;  %v6237_v7 = vld [vmem:[#allocation5 + $0xe0] sm:$0xf] }
 0x651   :  { %3471 = vst.msk [vmem:[#allocation5 + $0x184] sm:$0xf] %vm3010_vm4, %v3072_v33  ;;  %v6231_v33 = vld [vmem:[#allocation5 + $0xfc] sm:$0xf0]  ;;  %v6887_v20 = vld [vmem:[#allocation5 + $0x100] sm:$0xf0]  ;;  %4781 = vmatpush.bf16.msrb.mxu1 %v6962_v54 }
 0x652   :  { %3535 = vst.msk [vmem:[#allocation5 + $0x188] sm:$0xf] %vm3010_vm4, %v3136_v41  ;;  %4687 = vmatmul.bf16.vlgmr.msrb.gmra.mxu3 %v6130_v61  ;;  %v3002_v61 = vpack.c.bf16 %v2986_v19, %v2986_v19  ;;  %v6234_v52 = vor.u32 %v6882_v11, %v6231_v33  ;;  %v6959_v11 = vld [vmem:[%s10248_s4 + $0x100] sm:$0xff]  ;;  %v6970_v54 = vld [vmem:[%s10248_s4 + $0x158] sm:$0xff] }
 0x653   :  { %3040 = vst.msk [vmem:[#allocation5 + $0x1b0] sm:$0xf] %vm3027_vm6, %v10271_v48 }
 0x654   :  { %3104 = vst.msk [vmem:[#allocation5 + $0x1b4] sm:$0xf] %vm3027_vm6, %v10271_v48 }
 0x655   :  { %3168 = vst.msk [vmem:[#allocation5 + $0x1b8] sm:$0xf] %vm3027_vm6, %v10271_v48  ;;  %4782 = vmatpush.bf16.msrb.mxu1 %v6961_v32 }
 0x656   :  { %3231 = vst.msk [vmem:[#allocation5 + $0x198] sm:$0xf] %vm3027_vm6, %v10271_v48  ;;  %4643 = vmatmul.bf16.gmra.mxu2 %v6162_v1 }
 0x657   :  { %3295 = vst.msk [vmem:[#allocation5 + $0x19c] sm:$0xf] %vm3027_vm6, %v10271_v48 }
 0x658   :  { %3359 = vst.msk [vmem:[#allocation5 + $0x1a0] sm:$0xf] %vm3027_vm6, %v10271_v48 }
 0x659   :  { %3423 = vst.msk [vmem:[#allocation5 + $0x180] sm:$0xf] %vm3027_vm6, %v10271_v48  ;;  %4783 = vmatpush.bf16.msrb.mxu1 %v6960_v46 }
 0x65a   :  { %3487 = vst.msk [vmem:[#allocation5 + $0x184] sm:$0xf] %vm3027_vm6, %v10271_v48  ;;  %v6337_v23 = vld [vmem:[#allocation5 + $0x1b0] sm:$0xf] }
 0x65b   :  { %3551 = vst.msk [vmem:[#allocation5 + $0x188] sm:$0xf] %vm3027_vm6, %v10271_v48  ;;  %v6909_v12 = vld [vmem:[#allocation5 + $0x1b4] sm:$0xf] }
 0x65c   :  { %2877 = vst.msk [vmem:[#allocation4 + $0xa8] sm:$0x3] %vm2856_vm5, %v10285_v0  ;;  %v6345_v27 = vld [vmem:[#allocation5 + $0x1b8] sm:$0xf] }
 0x65d   :  { %2895 = vst.msk [vmem:[#allocation4 + $0x138] sm:$0x3] %vm2856_vm5, %v10285_v0  ;;  %v6157_v0 = vld [vmem:[#allocation5 + $0x48] sm:$0xf]  ;;  %4784 = vmatpush.bf16.msrb.mxu1 %v6959_v11  ;;  %v6173_v11 = vld [vmem:[#allocation5 + $0x58] sm:$0xf] }
 0x65e   :  { %2971 = vst.msk [vmem:[#allocation4 + $0xc1] sm:$0xff] %vm2961_vm15, %v2931_v39  ;;  %v6158_v63 = vor.u32 %v6868_v31, %v6157_v0  ;;  %v6230_v39 = vor.u32 %v6886_v56, %v6229_v17  ;;  %v6895_v0 = vld [vmem:[#allocation5 + $0x140] sm:$0xf0]  ;;  %v6989_v56 = vld [vmem:[%s10248_s4 + $0x1f0] sm:$0xff]  ;;  %vm5074_vm5 = vcmask 516096  }
 0x65f   :  { %2976 = vst.msk [vmem:[#allocation4 + $0x111] sm:$0xff] %vm2961_vm15, %v2941_v3  ;;  %v6238_v3 = vor.u32 %v6887_v20, %v6237_v7  ;;  %v6979_v17 = vld [vmem:[%s10248_s4 + $0x1a0] sm:$0xff]  ;;  %v6988_v7 = vld [vmem:[%s10248_s4 + $0x1e8] sm:$0xff]  ;;  %v6978_v20 = vld [vmem:[%s10248_s4 + $0x198] sm:$0xff] }
 0x660   :  { %2974 = vst.msk [vmem:[#allocation4 + $0xf1] sm:$0xff] %vm2961_vm15, %v2937_v14  ;;  %4594 = vmatmul.bf16.gmra.mxu1 %v6158_v63  ;;  %v6267_v63 = vld [vmem:[#allocation5 + $0x144] sm:$0xf0] }
 0x661   :  { %2969 = vst.msk [vmem:[#allocation4 + $0x81] sm:$0xff] %vm2961_vm15, %v2927_v58 }
 0x662   :  { %4692 = vmatmul.bf16.gmra.mxu3 %v6166_v49  ;;  %3019 = vst.msk [vmem:[#allocation5 + $0x120] sm:$0xf] %vm3010_vm4, %v3002_v61  ;;  %v6969_v61 = vld [vmem:[%s10248_s4 + $0x150] sm:$0xff] }
 0x663   :  { %v3052_v41 = vld [vmem:[#allocation4 + $0xa1] sm:$0xff]  ;;  %3036 = vst.msk [vmem:[#allocation5 + $0x120] sm:$0xf] %vm3027_vm6, %v10271_v48 }
 0x664   :  { %v3116_v16 = vld [vmem:[#allocation4 + $0xa2] sm:$0xff]  ;;  %v3068_v38 = vpack.c.bf16 %v3052_v41, %v3052_v41 }
 0x665   :  { %v2988_v62 = vld [vmem:[#allocation4 + $0xc0] sm:$0xff]  ;;  %v3132_v14 = vpack.c.bf16 %v3116_v16, %v3116_v16  ;;  %v6311_v16 = vld [vmem:[#allocation5 + $0x194] sm:$0xf0] }
 0x666   :  { %v3054_v2 = vld [vmem:[#allocation4 + $0xc1] sm:$0xff]  ;;  %v3004_v55 = vpack.c.bf16 %v2988_v62, %v2988_v62  ;;  %v2993_v51 = vld [vmem:[#allocation4 + $0x110] sm:$0xff]  ;;  %4648 = vmatmul.bf16.gmra.mxu2 %v6198_v21  ;;  %3084 = vst.msk [vmem:[#allocation5 + $0x124] sm:$0xf] %vm3010_vm4, %v3068_v38 }
 0x667   :  { %v3118_v24 = vld [vmem:[#allocation4 + $0xc2] sm:$0xff]  ;;  %v3070_v35 = vpack.c.bf16 %v3054_v2, %v3054_v2  ;;  %v3059_v28 = vld [vmem:[#allocation4 + $0x111] sm:$0xff]  ;;  %v3009_v5 = vpack.c.bf16 %v2993_v51, %v2993_v51  ;;  %3100 = vst.msk [vmem:[#allocation5 + $0x124] sm:$0xf] %vm3027_vm6, %v10271_v48 }
 0x668   :  { %v3134_v22 = vpack.c.bf16 %v3118_v24, %v3118_v24  ;;  %3021 = vst.msk [vmem:[#allocation5 + $0x168] sm:$0xf] %vm3010_vm4, %v3004_v55  ;;  %v3123_v47 = vld [vmem:[#allocation4 + $0x112] sm:$0xff]  ;;  %v3075_v29 = vpack.c.bf16 %v3059_v28, %v3059_v28  ;;  %v3179_v62 = vld [vmem:[#allocation4 + $0x80] sm:$0xff] }
 0x669   :  { %3086 = vst.msk [vmem:[#allocation5 + $0x16c] sm:$0xf] %vm3010_vm4, %v3070_v35  ;;  %v3139_v8 = vpack.c.bf16 %v3123_v47, %v3123_v47  ;;  %v2991_v6 = vld [vmem:[#allocation4 + $0xf0] sm:$0xff]  ;;  %v3243_v2 = vld [vmem:[#allocation4 + $0x81] sm:$0xff] }
 0x66a   :  { %3150 = vst.msk [vmem:[#allocation5 + $0x170] sm:$0xf] %vm3010_vm4, %v3134_v22  ;;  %v3057_v26 = vld [vmem:[#allocation4 + $0xf1] sm:$0xff]  ;;  %v3007_v53 = vpack.c.bf16 %v2991_v6, %v2991_v6  ;;  %v3307_v24 = vld [vmem:[#allocation4 + $0x82] sm:$0xff] }
 0x66b   :  { %3213 = vst.msk [vmem:[#allocation5 + $0x150] sm:$0xf] %vm3010_vm4, %v3004_v55  ;;  %v3121_v25 = vld [vmem:[#allocation4 + $0xf2] sm:$0xff]  ;;  %v3073_v57 = vpack.c.bf16 %v3057_v26, %v3057_v26  ;;  %v6265_v31 = vld [vmem:[#allocation5 + $0x120] sm:$0xf] }
 0x66c   :  { %3277 = vst.msk [vmem:[#allocation5 + $0x154] sm:$0xf] %vm3010_vm4, %v3070_v35  ;;  %v3137_v34 = vpack.c.bf16 %v3121_v25, %v3121_v25  ;;  %v6266_v15 = vor.u32 %v6895_v0, %v6265_v31  ;;  %v6883_v28 = vld [vmem:[#allocation5 + $0xe4] sm:$0xf]  ;;  %v6974_v6 = vld [vmem:[%s10248_s4 + $0x178] sm:$0xff]  ;;  %v6977_v38 = vld [vmem:[%s10248_s4 + $0x190] sm:$0xff] }
 0x66d   :  { %3341 = vst.msk [vmem:[#allocation5 + $0x158] sm:$0xf] %vm3010_vm4, %v3134_v22  ;;  %v6303_v25 = vld [vmem:[#allocation5 + $0x18c] sm:$0xf0]  ;;  %4826 = vmatpush.bf16.msra.mxu2 %v6974_v6  ;;  %v6918_v31 = vld [vmem:[#allocation5 + $0x1fc] sm:$0xf] }
 0x66e   :  { %3405 = vst.msk [vmem:[#allocation5 + $0x138] sm:$0xf] %vm3010_vm4, %v3004_v55  ;;  %v3195_v55 = vpack.c.bf16 %v3179_v62, %v3179_v62  ;;  %v6891_v36 = vld [vmem:[#allocation5 + $0x124] sm:$0xf]  ;;  %v6976_v62 = vld [vmem:[%s10248_s4 + $0x188] sm:$0xff] }
 0x66f   :  { %3469 = vst.msk [vmem:[#allocation5 + $0x13c] sm:$0xf] %vm3010_vm4, %v3070_v35  ;;  %v3259_v35 = vpack.c.bf16 %v3243_v2, %v3243_v2  ;;  %v6270_v49 = vor.u32 %v6891_v36, %v6267_v63  ;;  %v6986_v2 = vld [vmem:[%s10248_s4 + $0x1d8] sm:$0xff]  ;;  %v6984_v6 = vld [vmem:[%s10248_s4 + $0x1c8] sm:$0xff] }
 0x670   :  { %3533 = vst.msk [vmem:[#allocation5 + $0x140] sm:$0xf] %vm3010_vm4, %v3134_v22  ;;  %4599 = vmatmul.bf16.gmra.mxu1 %v6194_v30  ;;  %v3323_v22 = vpack.c.bf16 %v3307_v24, %v3307_v24  ;;  %v6972_v30 = vld [vmem:[%s10248_s4 + $0x168] sm:$0xff] }
 0x671   :  { %3038 = vst.msk [vmem:[#allocation5 + $0x168] sm:$0xf] %vm3027_vm6, %v10271_v48  ;;  %4827 = vmatpush.bf16.msra.mxu2 %v6973_v4  ;;  %v6861_v4 = vld [vmem:[#allocation5 + $0x30] sm:$0xf0] }
 0x672   :  { %3102 = vst.msk [vmem:[#allocation5 + $0x16c] sm:$0xf] %vm3027_vm6, %v10271_v48  ;;  %4697 = vmatmul.bf16.gmra.mxu3 %v6202_v50  ;;  %v6990_v50 = vld [vmem:[%s10248_s4 + $0x1f8] sm:$0xff] }
 0x673   :  { %3166 = vst.msk [vmem:[#allocation5 + $0x170] sm:$0xf] %vm3027_vm6, %v10271_v48  ;;  %4924 = vmatpush.bf16.msra.mxu0 %v6990_v50 }
 0x674   :  { %3229 = vst.msk [vmem:[#allocation5 + $0x150] sm:$0xf] %vm3027_vm6, %v10271_v48 }
 0x675   :  { %3293 = vst.msk [vmem:[#allocation5 + $0x154] sm:$0xf] %vm3027_vm6, %v10271_v48  ;;  %4828 = vmatpush.bf16.msra.mxu2 %v6972_v30  ;;  %v6139_v30 = vld [vmem:[#allocation5 + $0x34] sm:$0xf0] }
 0x676   :  { %3357 = vst.msk [vmem:[#allocation5 + $0x158] sm:$0xf] %vm3027_vm6, %v10271_v48  ;;  %4653 = vmatmul.bf16.gmra.mxu2 %v6234_v52  ;;  %v6987_v52 = vld [vmem:[%s10248_s4 + $0x1e0] sm:$0xff] }
 0x677   :  { %3421 = vst.msk [vmem:[#allocation5 + $0x138] sm:$0xf] %vm3027_vm6, %v10271_v48  ;;  %4925 = vmatpush.bf16.msra.mxu0 %v6989_v56 }
 0x678   :  { %3485 = vst.msk [vmem:[#allocation5 + $0x13c] sm:$0xf] %vm3027_vm6, %v10271_v48 }
 0x679   :  { %3549 = vst.msk [vmem:[#allocation5 + $0x140] sm:$0xf] %vm3027_vm6, %v10271_v48  ;;  %v6900_v26 = vld [vmem:[#allocation5 + $0x16c] sm:$0xf]  ;;  %4829 = vmatpush.bf16.msra.mxu2 %v6971_v9 }
 0x67a   :  { %3026 = vst.msk [vmem:[#allocation5 + $0x21c] sm:$0xf] %vm3010_vm4, %v3009_v5  ;;  %v6309_v13 = vld [vmem:[#allocation5 + $0x170] sm:$0xf]  ;;  %v6306_v59 = vor.u32 %v6900_v26, %v6303_v25  ;;  %v6347_v25 = vld [vmem:[#allocation5 + $0x1dc] sm:$0xf0] }
 0x67b   :  { %3091 = vst.msk [vmem:[#allocation5 + $0x220] sm:$0xf] %vm3010_vm4, %v3075_v29  ;;  %v6275_v45 = vld [vmem:[#allocation5 + $0x14c] sm:$0xf0]  ;;  %4926 = vmatpush.bf16.msra.mxu0 %v6988_v7  ;;  %v6181_v7 = vld [vmem:[#allocation5 + $0x60] sm:$0xf] }
 0x67c   :  { %3155 = vst.msk [vmem:[#allocation5 + $0x224] sm:$0xf] %vm3010_vm4, %v3139_v8  ;;  %v6278_v21 = vor.u32 %v6892_v43, %v6275_v45  ;;  %v6145_v45 = vld [vmem:[#allocation5 + $0x18] sm:$0xf] }
 0x67d   :  { %3218 = vst.msk [vmem:[#allocation5 + $0x204] sm:$0xf] %vm3010_vm4, %v3009_v5  ;;  %4830 = vmatpush.bf16.msra.mxu2 %v6970_v54  ;;  %v6870_v54 = vld [vmem:[#allocation5 + $0x78] sm:$0xf0] }
 0x67e   :  { %3282 = vst.msk [vmem:[#allocation5 + $0x208] sm:$0xf] %vm3010_vm4, %v3075_v29 }
 0x67f   :  { %3346 = vst.msk [vmem:[#allocation5 + $0x20c] sm:$0xf] %vm3010_vm4, %v3139_v8  ;;  %4927 = vmatpush.bf16.msra.mxu0 %v6987_v52 }
 0x680   :  { %3410 = vst.msk [vmem:[#allocation5 + $0x1ec] sm:$0xf] %vm3010_vm4, %v3009_v5  ;;  %4604 = vmatmul.bf16.gmra.mxu1 %v6230_v39  ;;  %v6901_v39 = vld [vmem:[#allocation5 + $0x174] sm:$0xf] }
 0x681   :  { %3474 = vst.msk [vmem:[#allocation5 + $0x1f0] sm:$0xf] %vm3010_vm4, %v3075_v29  ;;  %v6301_v29 = vld [vmem:[#allocation5 + $0x168] sm:$0xf]  ;;  %4831 = vmatpush.bf16.msra.mxu2 %v6969_v61  ;;  %v6174_v61 = vor.u32 %v6870_v54, %v6173_v11  ;;  %v6994_v54 = vld [vmem:[%s10248_s4 + $0x218] sm:$0xff] }
 0x682   :  { %3538 = vst.msk [vmem:[#allocation5 + $0x1f4] sm:$0xf] %vm3010_vm4, %v3139_v8  ;;  %4702 = vmatmul.bf16.gmra.mxu3 %v6238_v3  ;;  %v6904_v8 = vld [vmem:[#allocation5 + $0x188] sm:$0xf0] }
 0x683   :  { %3043 = vst.msk [vmem:[#allocation5 + $0x21c] sm:$0xf] %vm3027_vm6, %v10271_v48  ;;  %v6968_v3 = vld [vmem:[%s10248_s4 + $0x148] sm:$0xff]  ;;  %4928 = vmatpush.bf16.msra.mxu0 %v6986_v2 }
 0x684   :  { %3107 = vst.msk [vmem:[#allocation5 + $0x220] sm:$0xf] %vm3027_vm6, %v10271_v48 }
 0x685   :  { %3171 = vst.msk [vmem:[#allocation5 + $0x224] sm:$0xf] %vm3027_vm6, %v10271_v48  ;;  %4832 = vmatpush.bf16.msra.mxu2 %v6968_v3  ;;  %v6147_v3 = vld [vmem:[#allocation5 + $0x3c] sm:$0xf0] }
 0x686   :  { %3234 = vst.msk [vmem:[#allocation5 + $0x204] sm:$0xf] %vm3027_vm6, %v10271_v48  ;;  %4658 = vmatmul.bf16.gmra.mxu2 %v6270_v49 }
 0x687   :  { %3298 = vst.msk [vmem:[#allocation5 + $0x208] sm:$0xf] %vm3027_vm6, %v10271_v48 }
 0x688   :  { %3362 = vst.msk [vmem:[#allocation5 + $0x20c] sm:$0xf] %vm3027_vm6, %v10271_v48 }
 0x689   :  { %3426 = vst.msk [vmem:[#allocation5 + $0x1ec] sm:$0xf] %vm3027_vm6, %v10271_v48 }
 0x68a   :  { %3490 = vst.msk [vmem:[#allocation5 + $0x1f0] sm:$0xf] %vm3027_vm6, %v10271_v48  ;;  %v6922_v0 = vld [vmem:[#allocation5 + $0x218] sm:$0xf0] }
 0x68b   :  { %3554 = vst.msk [vmem:[#allocation5 + $0x1f4] sm:$0xf] %vm3027_vm6, %v10271_v48  ;;  %v6375_v32 = vld [vmem:[#allocation5 + $0x21c] sm:$0xf0] }
 0x68c   :  { %3024 = vst.msk [vmem:[#allocation5 + $0x1d4] sm:$0xf] %vm3010_vm4, %v3007_v53  ;;  %v6923_v49 = vld [vmem:[#allocation5 + $0x220] sm:$0xf0] }
 0x68d   :  { %3089 = vst.msk [vmem:[#allocation5 + $0x1d8] sm:$0xf] %vm3010_vm4, %v3073_v57  ;;  %v6919_v9 = vld [vmem:[#allocation5 + $0x204] sm:$0xf] }
 0x68e   :  { %3153 = vst.msk [vmem:[#allocation5 + $0x1dc] sm:$0xf] %vm3010_vm4, %v3137_v34 }
 0x68f   :  { %3216 = vst.msk [vmem:[#allocation5 + $0x1bc] sm:$0xf] %vm3010_vm4, %v3007_v53 }
 0x690   :  { %3280 = vst.msk [vmem:[#allocation5 + $0x1c0] sm:$0xf] %vm3010_vm4, %v3073_v57  ;;  %4609 = vmatmul.bf16.gmra.mxu1 %v6266_v15  ;;  %v4737_v15 = vpop.f32.mrf.mxu0 }
 0x691   :  { %3344 = vst.msk [vmem:[#allocation5 + $0x1c4] sm:$0xf] %vm3010_vm4, %v3137_v34 }
 0x692   :  { %3408 = vst.msk [vmem:[#allocation5 + $0x1a4] sm:$0xf] %vm3010_vm4, %v3007_v53  ;;  %v6905_v53 = vld [vmem:[#allocation5 + $0x190] sm:$0xf0] }
 0x693   :  { %3472 = vst.msk [vmem:[#allocation5 + $0x1a8] sm:$0xf] %vm3010_vm4, %v3073_v57  ;;  %v6302_v57 = vor.u32 %v6904_v8, %v6301_v29  ;;  %v6310_v44 = vor.u32 %v6905_v53, %v6309_v13  ;;  %v6378_v29 = vor.u32 %v6918_v31, %v6375_v32  ;;  %v6137_v53 = vld [vmem:[#allocation5 + $0x10] sm:$0xf] }
 0x694   :  { %3536 = vst.msk [vmem:[#allocation5 + $0x1ac] sm:$0xf] %vm3010_vm4, %v3137_v34  ;;  %v6981_v34 = vld [vmem:[%s10248_s4 + $0x1b0] sm:$0xff] }
 0x695   :  { %3041 = vst.msk [vmem:[#allocation5 + $0x1d4] sm:$0xf] %vm3027_vm6, %v10271_v48  ;;  %4876 = vmatpush.bf16.msra.mxu3 %v6981_v34 }
 0x696   :  { %3105 = vst.msk [vmem:[#allocation5 + $0x1d8] sm:$0xf] %vm3027_vm6, %v10271_v48  ;;  %4663 = vmatmul.bf16.gmra.mxu2 %v6306_v59  ;;  %v6997_v59 = vld [vmem:[%s10248_s4 + $0x230] sm:$0xff] }
 0x697   :  { %3169 = vst.msk [vmem:[#allocation5 + $0x1dc] sm:$0xf] %vm3027_vm6, %v10271_v48 }
 0x698   :  { %3232 = vst.msk [vmem:[#allocation5 + $0x1bc] sm:$0xf] %vm3027_vm6, %v10271_v48 }
 0x699   :  { %3296 = vst.msk [vmem:[#allocation5 + $0x1c0] sm:$0xf] %vm3027_vm6, %v10271_v48  ;;  %4877 = vmatpush.bf16.msra.mxu3 %v6980_v42 }
 0x69a   :  { %3360 = vst.msk [vmem:[#allocation5 + $0x1c4] sm:$0xf] %vm3027_vm6, %v10271_v48 }
 0x69b   :  { %3424 = vst.msk [vmem:[#allocation5 + $0x1a4] sm:$0xf] %vm3027_vm6, %v10271_v48 }
 0x69c   :  { %3488 = vst.msk [vmem:[#allocation5 + $0x1a8] sm:$0xf] %vm3027_vm6, %v10271_v48  ;;  %v6913_v18 = vld [vmem:[#allocation5 + $0x1d0] sm:$0xf0] }
 0x69d   :  { %3552 = vst.msk [vmem:[#allocation5 + $0x1ac] sm:$0xf] %vm3027_vm6, %v10271_v48  ;;  %v6339_v10 = vld [vmem:[#allocation5 + $0x1d4] sm:$0xf0]  ;;  %v6338_v33 = vor.u32 %v6913_v18, %v6337_v23  ;;  %4878 = vmatpush.bf16.msra.mxu3 %v6979_v17  ;;  %v6138_v23 = vor.u32 %v6861_v4, %v6137_v53  ;;  %v6383_v18 = vld [vmem:[#allocation5 + $0x224] sm:$0xf0] }
 0x69e   :  { %3148 = vst.msk [vmem:[#allocation5 + $0x128] sm:$0xf] %vm3010_vm4, %v3132_v14  ;;  %v6914_v19 = vld [vmem:[#allocation5 + $0x1d8] sm:$0xf0]  ;;  %v6342_v41 = vor.u32 %v6909_v12, %v6339_v10  ;;  %v6314_v14 = vor.u32 %v6901_v39, %v6311_v16  ;;  %v9686_v39 = vpop.f32.mrf.mxu0  ;;  %v3436_v53 = vld [vmem:[#allocation4 + $0x91] sm:$0xff] }
 0x69f   :  { %3164 = vst.msk [vmem:[#allocation5 + $0x128] sm:$0xf] %vm3027_vm6, %v10271_v48  ;;  %v6346_v58 = vor.u32 %v6914_v19, %v6345_v27  ;;  %v6910_v26 = vld [vmem:[#allocation5 + $0x1bc] sm:$0xf]  ;;  %v6386_v27 = vor.u32 %v6919_v9, %v6383_v18 }
 0x6a0   :  { %3211 = vst.msk [vmem:[#allocation5 + $0x108] sm:$0xf] %vm3010_vm4, %v3195_v55  ;;  %4614 = vmatmul.bf16.gmra.mxu1 %v6302_v57  ;;  %v6350_v13 = vor.u32 %v6910_v26, %v6347_v25 }
 0x6a1   :  { %3275 = vst.msk [vmem:[#allocation5 + $0x10c] sm:$0xf] %vm3010_vm4, %v3259_v35  ;;  %4879 = vmatpush.bf16.msra.mxu3 %v6978_v20  ;;  %v6871_v20 = vld [vmem:[#allocation5 + $0x80] sm:$0xf0] }
 0x6a2   :  { %3339 = vst.msk [vmem:[#allocation5 + $0x110] sm:$0xf] %vm3010_vm4, %v3323_v22  ;;  %v6182_v52 = vor.u32 %v6871_v20, %v6181_v7 }
 0x6a3   :  { %3403 = vst.msk [vmem:[#allocation5 + $0xf0] sm:$0xf] %vm3010_vm4, %v3195_v55  ;;  %v6967_v55 = vld [vmem:[%s10248_s4 + $0x140] sm:$0xff] }
 0x6a4   :  { %3467 = vst.msk [vmem:[#allocation5 + $0xf4] sm:$0xf] %vm3010_vm4, %v3259_v35  ;;  %4833 = vmatpush.bf16.msra.mxu2 %v6967_v55  ;;  %v6209_v55 = vld [vmem:[#allocation5 + $0xa0] sm:$0xf] }
 0x6a5   :  { %3531 = vst.msk [vmem:[#allocation5 + $0xf8] sm:$0xf] %vm3010_vm4, %v3323_v22  ;;  %4880 = vmatpush.bf16.msra.mxu3 %v6977_v38  ;;  %v6373_v22 = vld [vmem:[#allocation5 + $0x1f8] sm:$0xf]  ;;  %v6858_v38 = vld [vmem:[#allocation5 + $0x1c] sm:$0xf] }
 0x6a6   :  { %v6273_v1 = vld [vmem:[#allocation5 + $0x128] sm:$0xf]  ;;  %3227 = vst.msk [vmem:[#allocation5 + $0x108] sm:$0xf] %vm3027_vm6, %v10271_v48  ;;  %4668 = vmatmul.bf16.gmra.mxu2 %v6342_v41  ;;  %v6866_v41 = vld [vmem:[#allocation5 + $0x5c] sm:$0xf]  ;;  %v4742_v2 = vpop.f32.mrf.mxu0 }
 0x6a7   :  { %v6274_v51 = vor.u32 %v6896_v37, %v6273_v1  ;;  %3291 = vst.msk [vmem:[#allocation5 + $0x10c] sm:$0xf] %vm3027_vm6, %v10271_v48  ;;  %v6381_v1 = vld [vmem:[#allocation5 + $0x200] sm:$0xf]  ;;  %v6985_v37 = vld [vmem:[%s10248_s4 + $0x1d0] sm:$0xff] }
 0x6a8   :  { %3355 = vst.msk [vmem:[#allocation5 + $0x110] sm:$0xf] %vm3027_vm6, %v10271_v48  ;;  %v6382_v46 = vor.u32 %v6923_v49, %v6381_v1  ;;  %4929 = vmatpush.bf16.msra.mxu0 %v6985_v37  ;;  %v6217_v37 = vld [vmem:[#allocation5 + $0xa8] sm:$0xf] }
 0x6a9   :  { %3419 = vst.msk [vmem:[#allocation5 + $0xf0] sm:$0xf] %vm3027_vm6, %v10271_v48  ;;  %4707 = vmatmul.bf16.gmra.mxu3 %v6274_v51  ;;  %v6975_v51 = vld [vmem:[%s10248_s4 + $0x180] sm:$0xff] }
 0x6aa   :  { %3483 = vst.msk [vmem:[#allocation5 + $0xf4] sm:$0xf] %vm3027_vm6, %v10271_v48  ;;  %4881 = vmatpush.bf16.msra.mxu3 %v6976_v62  ;;  %v6150_v62 = vor.u32 %v6858_v38, %v6147_v3  ;;  %v6281_v38 = vld [vmem:[#allocation5 + $0x130] sm:$0xf]  ;;  %v6897_v3 = vld [vmem:[#allocation5 + $0x150] sm:$0xf0] }
 0x6ab   :  { %3547 = vst.msk [vmem:[#allocation5 + $0xf8] sm:$0xf] %vm3027_vm6, %v10271_v48 }
 0x6ac   :  { %4930 = vmatpush.bf16.msra.mxu0 %v6984_v6 }
 0x6ad   :  { %v6239_v47 = vld [vmem:[#allocation5 + $0x104] sm:$0xf0] }
 0x6ae   :  { %v6242_v5 = vor.u32 %v6883_v28, %v6239_v47  ;;  %v6998_v28 = vld [vmem:[%s10248_s4 + $0x238] sm:$0xff]  ;;  %4882 = vmatpush.bf16.msra.mxu3 %v6975_v51 }
 0x6af   :  { %4973 = vmatpush.bf16.msra.mxu1 %v6998_v28 }
 0x6b0   :  { %4751 = vmatmul.bf16.gmra.mxu0 %v6242_v5  ;;  %4619 = vmatmul.bf16.gmra.mxu1 %v6338_v33  ;;  %v6374_v5 = vor.u32 %v6922_v0, %v6373_v22  ;;  %v6996_v33 = vld [vmem:[%s10248_s4 + $0x228] sm:$0xff]  ;;  %v6995_v22 = vld [vmem:[%s10248_s4 + $0x220] sm:$0xff]  ;;  %v3372_v0 = vld [vmem:[#allocation4 + $0x90] sm:$0xff] }
 0x6b1   :  { %4931 = vmatpush.bf16.msra.mxu0 %v6983_v60  ;;  %v3388_v32 = vpack.c.bf16 %v3372_v0, %v3372_v0 }
 0x6b3   :  { %4974 = vmatpush.bf16.msra.mxu1 %v6997_v59  ;;  %3404 = vst.msk [vmem:[#allocation5 + $0x114] sm:$0xf] %vm3010_vm4, %v3388_v32 }
 0x6b4   :  { %3420 = vst.msk [vmem:[#allocation5 + $0x114] sm:$0xf] %vm3027_vm6, %v10271_v48 }
 0x6b6   :  { %4673 = vmatmul.bf16.gmra.mxu2 %v6378_v29  ;;  %v6867_v29 = vld [vmem:[#allocation5 + $0x64] sm:$0xf] }
 0x6b7   :  { %4975 = vmatpush.bf16.msra.mxu1 %v6996_v33  ;;  %v6876_v33 = vld [vmem:[#allocation5 + $0xac] sm:$0xf] }
 0x6b8   :  { %v4590_v24 = vpop.f32.mrf.mxu1 }
 0x6b9   :  { %4712 = vmatmul.bf16.gmra.mxu3 %v6310_v44  ;;  %v6857_v44 = vld [vmem:[#allocation5 + $0x14] sm:$0xf] }
 0x6ba   :  { %v6142_v42 = vor.u32 %v6857_v44, %v6139_v30  ;;  %v3452_v44 = vpack.c.bf16 %v3436_v53, %v3436_v53 }
 0x6bb   :  { %4976 = vmatpush.bf16.msra.mxu1 %v6995_v22  ;;  %v6889_v9 = vld [vmem:[#allocation5 + $0x110] sm:$0xf0]  ;;  %v6898_v22 = vld [vmem:[#allocation5 + $0x158] sm:$0xf0] }
 0x6bc   :  { %3468 = vst.msk [vmem:[#allocation5 + $0x118] sm:$0xf] %vm3010_vm4, %v3452_v44  ;;  %v6906_v44 = vld [vmem:[#allocation5 + $0x198] sm:$0xf0] }
 0x6bd   :  { %3484 = vst.msk [vmem:[#allocation5 + $0x118] sm:$0xf] %vm3027_vm6, %v10271_v48 }
 0x6bf   :  { %4977 = vmatpush.bf16.msra.mxu1 %v6994_v54 }
 0x6c0   :  { %4756 = vmatmul.bf16.gmra.mxu0 %v6278_v21  ;;  %4624 = vmatmul.bf16.gmra.mxu1 %v6374_v5  ;;  %v9674_v57 = vpop.f32.mrf.mxu1  ;;  %v6862_v21 = vld [vmem:[#allocation5 + $0x38] sm:$0xf0]  ;;  %v9702_v5 = vpop.f32.mrf.mxu0 }
 0x6c1   :  { %v6146_v50 = vor.u32 %v6862_v21, %v6145_v45  ;;  %v6245_v45 = vld [vmem:[#allocation5 + $0xe8] sm:$0xf]  ;;  %v6888_v21 = vld [vmem:[#allocation5 + $0x108] sm:$0xf0] }
 0x6c6   :  { %4834 = vmatmul.bf16.vlgmr.msra.gmra.mxu2 %v6142_v42  ;;  %v6247_v42 = vld [vmem:[#allocation5 + $0x10c] sm:$0xf0] }
 0x6c8   :  { %v4747_v59 = vpop.f32.mrf.mxu0 }
 0x6c9   :  { %4717 = vmatmul.bf16.gmra.mxu3 %v6346_v58  ;;  %v4639_v35 = vpop.f32.mrf.mxu2  ;;  %v6175_v58 = vld [vmem:[#allocation5 + $0x7c] sm:$0xf0] }
 0x6ca   :  { %v4640_v63 = vadd.f32 %v4639_v35, %v4590_v24  ;;  %v6178_v16 = vor.u32 %v6866_v41, %v6175_v58  ;;  %v6879_v35 = vld [vmem:[#allocation5 + $0xc0] sm:$0xf0]  ;;  %v6219_v41 = vld [vmem:[#allocation5 + $0xcc] sm:$0xf0] }
 0x6cb   :  { %v6210_v49 = vor.u32 %v6879_v35, %v6209_v55  ;;  %v6222_v58 = vor.u32 %v6876_v33, %v6219_v41  ;;  %v6289_v35 = vld [vmem:[#allocation5 + $0x138] sm:$0xf]  ;;  %v6992_v33 = vld [vmem:[%s10248_s4 + $0x208] sm:$0xff]  ;;  %v6894_v41 = vld [vmem:[#allocation5 + $0x13c] sm:$0xf] }
 0x6d0   :  { %4761 = vmatmul.bf16.gmra.mxu0 %v6314_v14  ;;  %4785 = vmatmul.bf16.vlgmr.msrb.gmra.mxu1 %v6138_v23  ;;  %v6884_v23 = vld [vmem:[#allocation5 + $0xec] sm:$0xf]  ;;  %v9714_v55 = vpop.f32.mrf.mxu0 }
 0x6d1   :  { %v9676_v34 = vpop.f32.mrf.mxu2 }
 0x6d5   :  { %v4688_v36 = vpop.f32.mrf.mxu3 }
 0x6d6   :  { %v4689_v47 = vadd.f32 %v4688_v36, %v4640_v63  ;;  %4839 = vmatmul.bf16.gmra.mxu2 %v6178_v16  ;;  %v6875_v63 = vld [vmem:[#allocation5 + $0xa4] sm:$0xf]  ;;  %v6211_v36 = vld [vmem:[#allocation5 + $0xc4] sm:$0xf0] }
 0x6d7   :  { %v6214_v28 = vor.u32 %v6875_v63, %v6211_v36  ;;  %v6282_v63 = vor.u32 %v6897_v3, %v6281_v38 }
 0x6d8   :  { %v9666_v8 = vadd.f32 %v4737_v15, %v4689_v47  ;;  %v6880_v15 = vld [vmem:[#allocation5 + $0xc8] sm:$0xf0] }
 0x6d9   :  { %4722 = vmatmul.bf16.gmra.mxu3 %v6382_v46  ;;  %v4644_v10 = vpop.f32.mrf.mxu2  ;;  %v6218_v47 = vor.u32 %v6880_v15, %v6217_v37  ;;  %v6183_v46 = vld [vmem:[#allocation5 + $0x84] sm:$0xf0] }
 0x6da   :  { %v6186_v6 = vor.u32 %v6867_v29, %v6183_v46  ;;  %v6255_v29 = vld [vmem:[#allocation5 + $0x114] sm:$0xf0] }
 0x6dd   :  { %v9681_v43 = vpop.f32.mrf.mxu3  ;;  %v4595_v12 = vpop.f32.mrf.mxu1 }
 0x6de   :  { %v4645_v17 = vadd.f32 %v4644_v10, %v4595_v12  ;;  %v6246_v12 = vor.u32 %v6888_v21, %v6245_v45  ;;  %v6902_v45 = vld [vmem:[#allocation5 + $0x17c] sm:$0xf]  ;;  %v6319_v21 = vld [vmem:[#allocation5 + $0x19c] sm:$0xf0] }
 0x6e0   :  { %4766 = vmatmul.bf16.gmra.mxu0 %v6350_v13  ;;  %4790 = vmatmul.bf16.gmra.mxu1 %v6174_v61 }
 0x6e1   :  { %v9695_v31 = vpop.f32.mrf.mxu2 }
 0x6e5   :  { %v4693_v56 = vpop.f32.mrf.mxu3  ;;  %v9688_v14 = vpop.f32.mrf.mxu1 }
 0x6e6   :  { %v4694_v19 = vadd.f32 %v4693_v56, %v4645_v17  ;;  %4844 = vmatmul.bf16.gmra.mxu2 %v6214_v28  ;;  %v6250_v56 = vor.u32 %v6884_v23, %v6247_v42  ;;  %v6993_v28 = vld [vmem:[%s10248_s4 + $0x210] sm:$0xff]  ;;  %v6325_v23 = vld [vmem:[#allocation5 + $0x180] sm:$0xf]  ;;  %v6907_v42 = vld [vmem:[#allocation5 + $0x1a0] sm:$0xf0] }
 0x6e7   :  { %4978 = vmatpush.bf16.msra.mxu1 %v6993_v28 }
 0x6e8   :  { %v9690_v24 = vadd.f32 %v4742_v2, %v4694_v19  ;;  %v6283_v2 = vld [vmem:[#allocation5 + $0x154] sm:$0xf0] }
 0x6e9   :  { %4883 = vmatmul.bf16.vlgmr.msra.gmra.mxu3 %v6146_v50  ;;  %v4649_v26 = vpop.f32.mrf.mxu2  ;;  %v6253_v50 = vld [vmem:[#allocation5 + $0xf0] sm:$0xf] }
 0x6ea   :  { %v6254_v19 = vor.u32 %v6889_v9, %v6253_v50 }
 0x6eb   :  { %4979 = vmatpush.bf16.msra.mxu1 %v6992_v33 }
 0x6ed   :  { %v9697_v1 = vpop.f32.mrf.mxu3  ;;  %v4600_v51 = vpop.f32.mrf.mxu1 }
 0x6ee   :  { %v4650_v25 = vadd.f32 %v4649_v26, %v4600_v51 }
 0x6f0   :  { %4771 = vmatmul.bf16.gmra.mxu0 %v6386_v27  ;;  %4795 = vmatmul.bf16.gmra.mxu1 %v6210_v49  ;;  %v6290_v49 = vor.u32 %v6898_v22, %v6289_v35  ;;  %v6915_v35 = vld [vmem:[#allocation5 + $0x1e0] sm:$0xf0] }
 0x6f1   :  { %v4651_v18 = vpop.f32.mrf.mxu2  ;;  %v6911_v22 = vld [vmem:[#allocation5 + $0x1c4] sm:$0xf] }
 0x6f5   :  { %v4602_v60 = vpop.f32.mrf.mxu1  ;;  %v4698_v13 = vpop.f32.mrf.mxu3 }
 0x6f6   :  { %v4699_v4 = vadd.f32 %v4698_v13, %v4650_v25  ;;  %v4652_v10 = vadd.f32 %v4651_v18, %v4602_v60  ;;  %4849 = vmatmul.bf16.gmra.mxu2 %v6250_v56 }
 0x6f8   :  { %v9704_v30 = vadd.f32 %v4747_v59, %v4699_v4  ;;  %v6317_v59 = vld [vmem:[#allocation5 + $0x178] sm:$0xf] }
 0x6f9   :  { %4888 = vmatmul.bf16.gmra.mxu3 %v6182_v52  ;;  %v4654_v7 = vpop.f32.mrf.mxu2  ;;  %v6318_v9 = vor.u32 %v6906_v44, %v6317_v59 }
 0x6fd   :  { %v4605_v27 = vpop.f32.mrf.mxu1  ;;  %v4700_v17 = vpop.f32.mrf.mxu3 }
 0x6fe   :  { %v9709_v11 = vadd.f32 %v4700_v17, %v4652_v10  ;;  %v4655_v20 = vadd.f32 %v4654_v7, %v4605_v27  ;;  %v6322_v27 = vor.u32 %v6902_v45, %v6319_v21 }
 0x700   :  { %4932 = vmatmul.bf16.vlgmr.msra.gmra.mxu0 %v6150_v62  ;;  %4800 = vmatmul.bf16.gmra.mxu1 %v6246_v12  ;;  %v6893_v62 = vld [vmem:[#allocation5 + $0x134] sm:$0xf] }
 0x701   :  { %v4656_v0 = vpop.f32.mrf.mxu2  ;;  %v6286_v15 = vor.u32 %v6893_v62, %v6283_v2  ;;  %v6353_v2 = vld [vmem:[#allocation5 + $0x1c0] sm:$0xf] }
 0x705   :  { %v4607_v61 = vpop.f32.mrf.mxu1  ;;  %v4703_v16 = vpop.f32.mrf.mxu3 }
 0x706   :  { %v4704_v52 = vadd.f32 %v4703_v16, %v4655_v20  ;;  %v4657_v36 = vadd.f32 %v4656_v0, %v4607_v61  ;;  %4854 = vmatmul.bf16.gmra.mxu2 %v6286_v15  ;;  %v6355_v0 = vld [vmem:[#allocation5 + $0x1e4] sm:$0xf0] }
 0x707   :  { %v6358_v28 = vor.u32 %v6911_v22, %v6355_v0  ;;  %v6363_v22 = vld [vmem:[#allocation5 + $0x1ec] sm:$0xf0] }
 0x709   :  { %4893 = vmatmul.bf16.gmra.mxu3 %v6218_v47  ;;  %v6885_v47 = vld [vmem:[#allocation5 + $0xf4] sm:$0xf] }
 0x70a   :  { %v6258_v46 = vor.u32 %v6885_v47, %v6255_v29 }
 0x70d   :  { %v4610_v32 = vpop.f32.mrf.mxu1  ;;  %v4705_v37 = vpop.f32.mrf.mxu3 }
 0x70e   :  { %v4706_v51 = vadd.f32 %v4705_v37, %v4657_v36  ;;  %v6916_v36 = vld [vmem:[#allocation5 + $0x1e8] sm:$0xf0]  ;;  %v6354_v37 = vor.u32 %v6915_v35, %v6353_v2 }
 0x70f   :  { %v6912_v35 = vld [vmem:[#allocation5 + $0x1cc] sm:$0xf] }
 0x710   :  { %4937 = vmatmul.bf16.gmra.mxu0 %v6186_v6  ;;  %4805 = vmatmul.bf16.gmra.mxu1 %v6282_v63  ;;  %v4659_v6 = vpop.f32.mrf.mxu2  ;;  %v6361_v63 = vld [vmem:[#allocation5 + $0x1c8] sm:$0xf]  ;;  %v6366_v0 = vor.u32 %v6912_v35, %v6363_v22 }
 0x711   :  { %v4660_v25 = vadd.f32 %v4659_v6, %v4610_v32 }
 0x715   :  { %v4612_v60 = vpop.f32.mrf.mxu1 }
 0x716   :  { %4859 = vmatmul.bf16.gmra.mxu2 %v6322_v27  ;;  %v6924_v27 = vld [vmem:[#allocation5 + $0x228] sm:$0xf0] }
 0x718   :  { %v4661_v50 = vpop.f32.mrf.mxu2 }
 0x719   :  { %4898 = vmatmul.bf16.gmra.mxu3 %v6254_v19  ;;  %v4662_v12 = vadd.f32 %v4661_v50, %v4612_v60  ;;  %v6326_v19 = vor.u32 %v6907_v42, %v6325_v23 }
 0x71d   :  { %v4615_v10 = vpop.f32.mrf.mxu1 }
 0x720   :  { %4942 = vmatmul.bf16.gmra.mxu0 %v6222_v58  ;;  %4810 = vmatmul.bf16.gmra.mxu1 %v6318_v9  ;;  %v6291_v58 = vld [vmem:[#allocation5 + $0x15c] sm:$0xf0]  ;;  %v4664_v20 = vpop.f32.mrf.mxu2  ;;  %v3444_v9 = vld [vmem:[#allocation4 + $0x131] sm:$0xff] }
 0x721   :  { %v6294_v7 = vor.u32 %v6894_v41, %v6291_v58  ;;  %v4665_v16 = vadd.f32 %v4664_v20, %v4615_v10  ;;  %v6389_v10 = vld [vmem:[#allocation5 + $0x208] sm:$0xf] }
 0x722   :  { %v6390_v58 = vor.u32 %v6924_v27, %v6389_v10 }
 0x726   :  { %4864 = vmatmul.bf16.gmra.mxu2 %v6358_v28  ;;  %v6153_v28 = vld [vmem:[#allocation5 + $0x20] sm:$0xf] }
 0x728   :  { %v4666_v32 = vpop.f32.mrf.mxu2 }
 0x729   :  { %4903 = vmatmul.bf16.gmra.mxu3 %v6290_v49 }
 0x72c   :  { %v4708_v53 = vpop.f32.mrf.mxu3 }
 0x72d   :  { %v4752_v26 = vpop.f32.mrf.mxu0  ;;  %v4709_v4 = vadd.f32 %v4708_v53, %v4660_v25  ;;  %v3380_v25 = vld [vmem:[#allocation4 + $0x130] sm:$0xff]  ;;  %v6903_v53 = vld [vmem:[#allocation5 + $0x184] sm:$0xf] }
 0x72e   :  { %v9719_v13 = vadd.f32 %v4752_v26, %v4704_v52  ;;  %v4617_v52 = vpop.f32.mrf.mxu1  ;;  %v6991_v26 = vld [vmem:[%s10248_s4 + $0x200] sm:$0xff]  ;;  %v3396_v60 = vpack.c.bf16 %v3380_v25, %v3380_v25 }
 0x72f   :  { %v4667_v49 = vadd.f32 %v4666_v32, %v4617_v52  ;;  %4980 = vmatpush.bf16.msra.mxu1 %v6991_v26 }
 0x730   :  { %4947 = vmatmul.bf16.gmra.mxu0 %v6258_v46  ;;  %v6362_v46 = vor.u32 %v6916_v36, %v6361_v63  ;;  %4815 = vmatmul.bf16.gmra.mxu1 %v6354_v37  ;;  %3412 = vst.msk [vmem:[#allocation5 + $0x234] sm:$0xf] %vm3010_vm4, %v3396_v60  ;;  %v4669_v44 = vpop.f32.mrf.mxu2 }
 0x731   :  { %3428 = vst.msk [vmem:[#allocation5 + $0x234] sm:$0xf] %vm3027_vm6, %v10271_v48 }
 0x734   :  { %v4710_v56 = vpop.f32.mrf.mxu3 }
 0x735   :  { %v4754_v18 = vpop.f32.mrf.mxu0  ;;  %v4711_v54 = vadd.f32 %v4710_v56, %v4662_v12  ;;  %v3460_v12 = vpack.c.bf16 %v3444_v9, %v3444_v9  ;;  %v6920_v56 = vld [vmem:[#allocation5 + $0x20c] sm:$0xf] }
 0x736   :  { %v9721_v17 = vadd.f32 %v4754_v18, %v4706_v51  ;;  %v4620_v51 = vpop.f32.mrf.mxu1 }
 0x737   :  { %v4670_v21 = vadd.f32 %v4669_v44, %v4620_v51  ;;  %3476 = vst.msk [vmem:[#allocation5 + $0x238] sm:$0xf] %vm3010_vm4, %v3460_v12 }
 0x738   :  { %3492 = vst.msk [vmem:[#allocation5 + $0x238] sm:$0xf] %vm3027_vm6, %v10271_v48  ;;  %v6925_v33 = vld [vmem:[#allocation5 + $0x230] sm:$0xf0]  ;;  %v4671_v41 = vpop.f32.mrf.mxu2 }
 0x739   :  { %4908 = vmatmul.bf16.gmra.mxu3 %v6326_v19  ;;  %v6391_v19 = vld [vmem:[#allocation5 + $0x22c] sm:$0xf0] }
 0x73c   :  { %v4713_v3 = vpop.f32.mrf.mxu3 }
 0x73d   :  { %v4757_v61 = vpop.f32.mrf.mxu0  ;;  %v4714_v62 = vadd.f32 %v4713_v3, %v4665_v16  ;;  %v6394_v16 = vor.u32 %v6920_v56, %v6391_v19 }
 0x73e   :  { %v9726_v38 = vadd.f32 %v4757_v61, %v4709_v4  ;;  %v6327_v4 = vld [vmem:[#allocation5 + $0x1a4] sm:$0xf0]  ;;  %v4622_v23 = vpop.f32.mrf.mxu1 }
 0x73f   :  { %v6330_v59 = vor.u32 %v6903_v53, %v6327_v4  ;;  %v4672_v20 = vadd.f32 %v4671_v41, %v4622_v23  ;;  %4869 = vmatmul.bf16.gmra.mxu2 %v6394_v16  ;;  %v6399_v23 = vld [vmem:[#allocation5 + $0x234] sm:$0xf0]  ;;  %v6872_v41 = vld [vmem:[#allocation5 + $0x88] sm:$0xf0] }
 0x740   :  { %4952 = vmatmul.bf16.gmra.mxu0 %v6294_v7  ;;  %4820 = vmatmul.bf16.gmra.mxu1 %v6390_v58  ;;  %v4674_v63 = vpop.f32.mrf.mxu2 }
 0x744   :  { %v4715_v29 = vpop.f32.mrf.mxu3 }
 0x745   :  { %v4759_v15 = vpop.f32.mrf.mxu0  ;;  %v4716_v6 = vadd.f32 %v4715_v29, %v4667_v49  ;;  %v6863_v29 = vld [vmem:[#allocation5 + $0x40] sm:$0xf0] }
 0x746   :  { %v9728_v47 = vadd.f32 %v4759_v15, %v4711_v54  ;;  %v6397_v54 = vld [vmem:[#allocation5 + $0x210] sm:$0xf]  ;;  %v4625_v61 = vpop.f32.mrf.mxu1 }
 0x747   :  { %v4675_v32 = vadd.f32 %v4674_v63, %v4625_v61 }
 0x749   :  { %4913 = vmatmul.bf16.gmra.mxu3 %v6362_v46  ;;  %v4676_v46 = vpop.f32.mrf.mxu2 }
 0x74c   :  { %v4718_v50 = vpop.f32.mrf.mxu3 }
 0x74d   :  { %v4762_v45 = vpop.f32.mrf.mxu0  ;;  %v4719_v18 = vadd.f32 %v4718_v50, %v4670_v21  ;;  %v6921_v21 = vld [vmem:[#allocation5 + $0x214] sm:$0xf] }
 0x74e   :  { %v9736_v42 = vadd.f32 %v4762_v45, %v4714_v62  ;;  %v6398_v62 = vor.u32 %v6925_v33, %v6397_v54  ;;  %v4627_v37 = vpop.f32.mrf.mxu1  ;;  %v4642_v45 = vadd.f32 %v9676_v34, %v9674_v57  ;;  %v6402_v50 = vor.u32 %v6921_v21, %v6399_v23  ;;  %v6189_v33 = vld [vmem:[#allocation5 + $0x68] sm:$0xf] }
 0x74f   :  { %v4677_v25 = vadd.f32 %v4676_v46, %v4627_v37  ;;  %v6190_v34 = vor.u32 %v6872_v41, %v6189_v33 }
 0x750   :  { %4957 = vmatmul.bf16.gmra.mxu0 %v6330_v59 }
 0x751   :  { %v4835_v9 = vpop.f32.mrf.mxu2 }
 0x754   :  { %v4720_v3 = vpop.f32.mrf.mxu3 }
 0x755   :  { %v4764_v7 = vpop.f32.mrf.mxu0  ;;  %v4721_v2 = vadd.f32 %v4720_v3, %v4672_v20 }
 0x756   :  { %v9741_v52 = vadd.f32 %v4764_v7, %v4716_v6  ;;  %v6154_v6 = vor.u32 %v6863_v29, %v6153_v28  ;;  %v4786_v60 = vpop.f32.mrf.mxu1 }
 0x757   :  { %v4787_v59 = vadd.f32 %v4786_v60, %v9666_v8  ;;  %v3500_v60 = vld [vmem:[#allocation4 + $0x92] sm:$0xff] }
 0x758   :  { %4981 = vmatmul.bf16.vlgmr.msra.gmra.mxu1 %v6154_v6 }
 0x759   :  { %4918 = vmatmul.bf16.gmra.mxu3 %v6398_v62  ;;  %v4836_v10 = vadd.f32 %v4835_v9, %v4787_v59  ;;  %v4837_v57 = vpop.f32.mrf.mxu2  ;;  %v3516_v59 = vpack.c.bf16 %v3500_v60, %v3500_v60 }
 0x75b   :  { %3532 = vst.msk [vmem:[#allocation5 + $0x11c] sm:$0xf] %vm3010_vm4, %v3516_v59 }
 0x75c   :  { %v4723_v49 = vpop.f32.mrf.mxu3  ;;  %3548 = vst.msk [vmem:[#allocation5 + $0x11c] sm:$0xf] %vm3027_vm6, %v10271_v48 }
 0x75d   :  { %v4767_v36 = vpop.f32.mrf.mxu0  ;;  %v4724_v51 = vadd.f32 %v4723_v49, %v4675_v32 }
 0x75e   :  { %v9743_v15 = vadd.f32 %v4767_v36, %v4719_v18  ;;  %v4691_v18 = vadd.f32 %v9681_v43, %v4642_v45  ;;  %v4788_v27 = vpop.f32.mrf.mxu1 }
 0x760   :  { %4962 = vmatmul.bf16.gmra.mxu0 %v6366_v0  ;;  %v4740_v8 = vadd.f32 %v9686_v39, %v4691_v18 }
 0x761   :  { %v4840_v35 = vpop.f32.mrf.mxu2 }
 0x762   :  { %v4789_v58 = vadd.f32 %v4788_v27, %v4740_v8 }
 0x764   :  { %v4725_v4 = vpop.f32.mrf.mxu3  ;;  %v4838_v20 = vadd.f32 %v4837_v57, %v4789_v58  ;;  %v6297_v57 = vld [vmem:[#allocation5 + $0x140] sm:$0xf] }
 0x765   :  { %v4769_v26 = vpop.f32.mrf.mxu0  ;;  %v4726_v44 = vadd.f32 %v4725_v4, %v4677_v25 }
 0x766   :  { %v9745_v53 = vadd.f32 %v4769_v26, %v4721_v2  ;;  %v4791_v61 = vpop.f32.mrf.mxu1  ;;  %v4647_v2 = vadd.f32 %v9695_v31, %v9688_v14 }
 0x767   :  { %v4792_v43 = vadd.f32 %v4791_v61, %v9690_v24  ;;  %v6881_v24 = vld [vmem:[#allocation5 + $0xd0] sm:$0xf0] }
 0x768   :  { %4986 = vmatmul.bf16.gmra.mxu1 %v6190_v34  ;;  %v4696_v39 = vadd.f32 %v9697_v1, %v4647_v2  ;;  %v6899_v34 = vld [vmem:[#allocation5 + $0x160] sm:$0xf0] }
 0x769   :  { %v4841_v0 = vadd.f32 %v4840_v35, %v4792_v43  ;;  %v4842_v29 = vpop.f32.mrf.mxu2 }
 0x76a   :  { %v4745_v49 = vadd.f32 %v9702_v5, %v4696_v39  ;;  %v4750_v5 = vadd.f32 %v9714_v55, %v9709_v11 }
 0x76c   :  { %v4884_v19 = vpop.f32.mrf.mxu3 }
 0x76d   :  { %v4772_v12 = vpop.f32.mrf.mxu0  ;;  %v4885_v54 = vadd.f32 %v4884_v19, %v4836_v10  ;;  %v6890_v10 = vld [vmem:[#allocation5 + $0x118] sm:$0xf0] }
 0x76e   :  { %v9751_v56 = vadd.f32 %v4772_v12, %v4724_v51  ;;  %v4793_v63 = vpop.f32.mrf.mxu1  ;;  %v6225_v51 = vld [vmem:[#allocation5 + $0xb0] sm:$0xf]  ;;  %v6261_v12 = vld [vmem:[#allocation5 + $0xf8] sm:$0xf] }
 0x76f   :  { %v4794_v28 = vadd.f32 %v4793_v63, %v4745_v49  ;;  %v6226_v46 = vor.u32 %v6881_v24, %v6225_v51  ;;  %v6262_v27 = vor.u32 %v6890_v10, %v6261_v12 }
 0x770   :  { %4967 = vmatmul.bf16.gmra.mxu0 %v6402_v50 }
 0x771   :  { %v4843_v26 = vadd.f32 %v4842_v29, %v4794_v28 }
 0x774   :  { %v4886_v3 = vpop.f32.mrf.mxu3 }
 0x775   :  { %v4774_v7 = vpop.f32.mrf.mxu0  ;;  %v4887_v62 = vadd.f32 %v4886_v3, %v4838_v20 }
 0x776   :  { %v9754_v16 = vadd.f32 %v4774_v7, %v4726_v44  ;;  %v4796_v14 = vpop.f32.mrf.mxu1  ;;  %v4845_v44 = vpop.f32.mrf.mxu2  ;;  %v6298_v7 = vor.u32 %v6899_v34, %v6297_v57 }
 0x777   :  { %v4797_v1 = vadd.f32 %v4796_v14, %v9704_v30 }
 0x778   :  { %4991 = vmatmul.bf16.gmra.mxu1 %v6226_v46 }
 0x779   :  { %v4846_v21 = vadd.f32 %v4845_v44, %v4797_v1 }
 0x77c   :  { %v4889_v32 = vpop.f32.mrf.mxu3 }
 0x77d   :  { %v4933_v22 = vpop.f32.mrf.mxu0  ;;  %v4890_v37 = vadd.f32 %v4889_v32, %v4841_v0  ;;  %v6369_v0 = vld [vmem:[#allocation5 + $0x1d0] sm:$0xf] }
 0x77e   :  { %v9760_v36 = vadd.f32 %v4933_v22, %v4885_v54  ;;  %v4798_v23 = vpop.f32.mrf.mxu1 }
 0x77f   :  { %v9771_v9 = vadd.f32 %v4798_v23, %v4750_v5 }
 0x784   :  { %v4891_v25 = vpop.f32.mrf.mxu3 }
 0x785   :  { %v4935_v6 = vpop.f32.mrf.mxu0  ;;  %v4892_v4 = vadd.f32 %v4891_v25, %v4843_v26 }
 0x786   :  { %v9763_v31 = vadd.f32 %v4935_v6, %v4887_v62  ;;  %v4801_v54 = vpop.f32.mrf.mxu1  ;;  %v6908_v62 = vld [vmem:[#allocation5 + $0x1a8] sm:$0xf0] }
 0x787   :  { %v9774_v33 = vadd.f32 %v4801_v54, %v9719_v13  ;;  %v6333_v13 = vld [vmem:[#allocation5 + $0x188] sm:$0xf] }
 0x788   :  { %4996 = vmatmul.bf16.gmra.mxu1 %v6262_v27  ;;  %v6334_v2 = vor.u32 %v6908_v62, %v6333_v13 }
 0x78c   :  { %v4894_v30 = vpop.f32.mrf.mxu3 }
 0x78d   :  { %v4938_v45 = vpop.f32.mrf.mxu0  ;;  %v4895_v18 = vadd.f32 %v4894_v30, %v4846_v21 }
 0x78e   :  { %v4939_v50 = vadd.f32 %v4938_v45, %v4890_v37  ;;  %v4803_v55 = vpop.f32.mrf.mxu1 }
 0x78f   :  { %v9777_v58 = vadd.f32 %v4803_v55, %v9721_v17 }
 0x794   :  { %v4896_v25 = vpop.f32.mrf.mxu3 }
 0x795   :  { %v4940_v19 = vpop.f32.mrf.mxu0 }
 0x796   :  { %v4941_v8 = vadd.f32 %v4940_v19, %v4892_v4  ;;  %v4806_v20 = vpop.f32.mrf.mxu1 }
 0x797   :  { %v9780_v61 = vadd.f32 %v4806_v20, %v9726_v38  ;;  %v6917_v38 = vld [vmem:[#allocation5 + $0x1f0] sm:$0xf0] }
 0x798   :  { %5001 = vmatmul.bf16.gmra.mxu1 %v6298_v7  ;;  %v6370_v63 = vor.u32 %v6917_v38, %v6369_v0 }
 0x79c   :  { %v4899_v5 = vpop.f32.mrf.mxu3 }
 0x79d   :  { %v4943_v11 = vpop.f32.mrf.mxu0 }
 0x79e   :  { %v4944_v41 = vadd.f32 %v4943_v11, %v4895_v18  ;;  %v4808_v43 = vpop.f32.mrf.mxu1 }
 0x79f   :  { %v9783_v3 = vadd.f32 %v4808_v43, %v9728_v47  ;;  %v3508_v47 = vld [vmem:[#allocation4 + $0x132] sm:$0xff] }
 0x7a0   :  { %v3524_v49 = vpack.c.bf16 %v3508_v47, %v3508_v47 }
 0x7a2   :  { %3540 = vst.msk [vmem:[#allocation5 + $0x23c] sm:$0xf] %vm3010_vm4, %v3524_v49 }
 0x7a3   :  { %3556 = vst.msk [vmem:[#allocation5 + $0x23c] sm:$0xf] %vm3027_vm6, %v10271_v48  ;;  %v4847_v48 = vpop.f32.mrf.mxu2 }
 0x7a4   :  { %v4901_v23 = vpop.f32.mrf.mxu3  ;;  %v4848_v0 = vadd.f32 %v4847_v48, %v9771_v9 }
 0x7a5   :  { %v4945_v60 = vpop.f32.mrf.mxu0 }
 0x7a6   :  { %v4811_v35 = vpop.f32.mrf.mxu1  ;;  %v4897_v47 = vadd.f32 %v4896_v25, %v4848_v0 }
 0x7a7   :  { %v9786_v39 = vadd.f32 %v4811_v35, %v9736_v42 }
 0x7a8   :  { %5006 = vmatmul.bf16.gmra.mxu1 %v6334_v2 }
 0x7aa   :  { %v6926_v24 = vld [vmem:[#allocation5 + $0x238] sm:$0xf0] }
 0x7ac   :  { %v4904_v10 = vpop.f32.mrf.mxu3 }
 0x7ae   :  { %v4813_v17 = vpop.f32.mrf.mxu1 }
 0x7af   :  { %v9789_v22 = vadd.f32 %v4813_v17, %v9741_v52  ;;  %v6405_v52 = vld [vmem:[#allocation5 + $0x218] sm:$0xf] }
 0x7b0   :  { %v6406_v28 = vor.u32 %v6926_v24, %v6405_v52 }
 0x7b6   :  { %v4816_v32 = vpop.f32.mrf.mxu1 }
 0x7b7   :  { %v9792_v37 = vadd.f32 %v4816_v32, %v9743_v15 }
 0x7b8   :  { %5011 = vmatmul.bf16.gmra.mxu1 %v6370_v63 }
 0x7be   :  { %v4818_v42 = vpop.f32.mrf.mxu1 }
 0x7bf   :  { %v9798_v51 = vadd.f32 %v4818_v42, %v9745_v53 }
 0x7c6   :  { %v4821_v29 = vpop.f32.mrf.mxu1 }
 0x7c7   :  { %v9801_v46 = vadd.f32 %v4821_v29, %v9751_v56  ;;  %v4850_v56 = vpop.f32.mrf.mxu2 }
 0x7c8   :  { %5016 = vmatmul.bf16.gmra.mxu1 %v6406_v28  ;;  %v4851_v32 = vadd.f32 %v4850_v56, %v9774_v33 }
 0x7ca   :  { %v4900_v52 = vadd.f32 %v4899_v5, %v4851_v32 }
 0x7ce   :  { %v4823_v15 = vpop.f32.mrf.mxu1 }
 0x7cf   :  { %v9804_v6 = vadd.f32 %v4823_v15, %v9754_v16  ;;  %v4948_v16 = vpop.f32.mrf.mxu0  ;;  %v4852_v21 = vpop.f32.mrf.mxu2  ;;  %v4946_v15 = vadd.f32 %v4945_v60, %v4897_v47 }
 0x7d0   :  { %v4853_v49 = vadd.f32 %v4852_v21, %v9777_v58 }
 0x7d6   :  { %v4982_v26 = vpop.f32.mrf.mxu1 }
 0x7d7   :  { %v9807_v14 = vadd.f32 %v4982_v26, %v9760_v36  ;;  %v4950_v18 = vpop.f32.mrf.mxu0  ;;  %v4855_v12 = vpop.f32.mrf.mxu2  ;;  %v4902_v26 = vadd.f32 %v4901_v23, %v4853_v49 }
 0x7d8   :  { %v4856_v24 = vadd.f32 %v4855_v12, %v9780_v61 }
 0x7d9   :  { %v5035_v9 = vsel %vm5034_vm0, %v9807_v14, 0.0  ;;  %v4951_v21 = vadd.f32 %v4950_v18, %v4902_v26 }
 0x7da   :  { %v4905_v61 = vadd.f32 %v4904_v10, %v4856_v24 }
 0x7de   :  { %v4984_v1 = vpop.f32.mrf.mxu1 }
 0x7df   :  { %v9810_v53 = vadd.f32 %v4984_v1, %v9763_v31  ;;  %v4953_v27 = vpop.f32.mrf.mxu0  ;;  %v4857_v19 = vpop.f32.mrf.mxu2 }
 0x7e0   :  { %v4858_v29 = vadd.f32 %v4857_v19, %v9783_v3 }
 0x7e1   :  { %v5036_v28 = vsel %vm5034_vm0, %v9810_v53, 0.0 }
 0x7e2   :  { %v5037_v1 = vadd.f32 %v5036_v28, %v5035_v9 }
 0x7e6   :  { %v4987_v4 = vpop.f32.mrf.mxu1 }
 0x7e7   :  { %v9812_v59 = vadd.f32 %v4987_v4, %v4939_v50  ;;  %v4906_v50 = vpop.f32.mrf.mxu3  ;;  %v4955_v11 = vpop.f32.mrf.mxu0  ;;  %v4949_v4 = vadd.f32 %v4948_v16, %v4900_v52  ;;  %v4954_v16 = vadd.f32 %v4953_v27, %v4905_v61 }
 0x7e8   :  { %v4860_v57 = vpop.f32.mrf.mxu2  ;;  %v4907_v3 = vadd.f32 %v4906_v50, %v4858_v29 }
 0x7e9   :  { %v5038_v33 = vsel %vm5034_vm0, %v9812_v59, 0.0  ;;  %v4861_v58 = vadd.f32 %v4860_v57, %v9786_v39 }
 0x7ea   :  { %v4956_v50 = vadd.f32 %v4955_v11, %v4907_v3 }
 0x7ee   :  { %v4989_v44 = vpop.f32.mrf.mxu1 }
 0x7ef   :  { %v9814_v45 = vadd.f32 %v4989_v44, %v4941_v8  ;;  %v4909_v34 = vpop.f32.mrf.mxu3  ;;  %v4958_v7 = vpop.f32.mrf.mxu0  ;;  %v5039_v44 = vadd.f32 %v5038_v33, %v5037_v1 }
 0x7f0   :  { %v4862_v20 = vpop.f32.mrf.mxu2  ;;  %v4910_v12 = vadd.f32 %v4909_v34, %v4861_v58 }
 0x7f1   :  { %v5040_v56 = vsel %vm5034_vm0, %v9814_v45, 0.0  ;;  %v4863_v23 = vadd.f32 %v4862_v20, %v9789_v22 }
 0x7f2   :  { %v5041_v19 = vadd.f32 %v5040_v56, %v5039_v44  ;;  %v4959_v34 = vadd.f32 %v4958_v7, %v4910_v12 }
 0x7f6   :  { %v4992_v36 = vpop.f32.mrf.mxu1 }
 0x7f7   :  { %v9816_v30 = vadd.f32 %v4992_v36, %v4944_v41  ;;  %v4911_v43 = vpop.f32.mrf.mxu3  ;;  %v4960_v62 = vpop.f32.mrf.mxu0 }
 0x7f8   :  { %v4865_v41 = vpop.f32.mrf.mxu2  ;;  %v4912_v32 = vadd.f32 %v4911_v43, %v4863_v23 }
 0x7f9   :  { %v5042_v36 = vsel %vm5034_vm0, %v9816_v30, 0.0  ;;  %v4866_v10 = vadd.f32 %v4865_v41, %v9792_v37 }
 0x7fa   :  { %v5043_v18 = vadd.f32 %v5042_v36, %v5041_v19  ;;  %v4961_v52 = vadd.f32 %v4960_v62, %v4912_v32 }
 0x7fe   :  { %v4994_v31 = vpop.f32.mrf.mxu1 }
 0x7ff   :  { %v4914_v35 = vpop.f32.mrf.mxu3  ;;  %v4963_v17 = vpop.f32.mrf.mxu0  ;;  %v9832_v5 = vadd.f32 %v4994_v31, %v4946_v15 }
 0x800   :  { %v4867_v38 = vpop.f32.mrf.mxu2  ;;  %v4915_v37 = vadd.f32 %v4914_v35, %v4866_v10 }
 0x801   :  { %v5044_v31 = vsel %vm5034_vm0, %v9832_v5, 0.0  ;;  %v4868_v22 = vadd.f32 %v4867_v38, %v9798_v51 }
 0x802   :  { %v5045_v27 = vadd.f32 %v5044_v31, %v5043_v18  ;;  %v4964_v28 = vadd.f32 %v4963_v17, %v4915_v37 }
 0x806   :  { %v4997_v54 = vpop.f32.mrf.mxu1 }
 0x807   :  { %v4916_v42 = vpop.f32.mrf.mxu3  ;;  %v4965_v48 = vpop.f32.mrf.mxu0  ;;  %v9837_v39 = vadd.f32 %v4997_v54, %v4949_v4 }
 0x808   :  { %v4870_v60 = vpop.f32.mrf.mxu2  ;;  %v4917_v51 = vadd.f32 %v4916_v42, %v4868_v22 }
 0x809   :  { %v5046_v54 = vsel %vm5034_vm0, %v9837_v39, 0.0  ;;  %v4871_v41 = vadd.f32 %v4870_v60, %v9801_v46 }
 0x80a   :  { %v5047_v43 = vadd.f32 %v5046_v54, %v5045_v27  ;;  %v4966_v15 = vadd.f32 %v4965_v48, %v4917_v51 }
 0x80e   :  { %v4999_v55 = vpop.f32.mrf.mxu1 }
 0x80f   :  { %v9842_v57 = vadd.f32 %v4999_v55, %v4951_v21  ;;  %v4919_v0 = vpop.f32.mrf.mxu3  ;;  %v4968_v49 = vpop.f32.mrf.mxu0 }
 0x810   :  { %v4872_v7 = vpop.f32.mrf.mxu2  ;;  %v4920_v35 = vadd.f32 %v4919_v0, %v4871_v41  ;;  %v9884_v0 = vand.u32 7, %v10284_v40 }
 0x811   :  { %v5048_v55 = vsel %vm5034_vm0, %v9842_v57, 0.0  ;;  %v4873_v26 = vadd.f32 %v4872_v7, %v9804_v6 }
 0x812   :  { %v5049_v24 = vadd.f32 %v5048_v55, %v5047_v43  ;;  %v4969_v58 = vadd.f32 %v4968_v49, %v4920_v35  ;;  %vm5101_vm1 = vcmp.eq.s32.totalorder %v9884_v0, 2  ;;  %vm5087_vm2 = vcmp.eq.s32.totalorder %v9884_v0, 1 }
 0x813   :  { %vm5072_vm3 = vcmp.eq.s32.totalorder %v9884_v0, 0  ;;  %vm5143_vm9 = vcmp.eq.s32.totalorder %v9884_v0, 5  ;;  %vm5129_vm10 = vcmp.eq.s32.totalorder %v9884_v0, 4  ;;  %vm5115_vm11 = vcmp.eq.s32.totalorder %v9884_v0, 3 }
 0x814   :  { %vm5171_vm12 = vcmp.eq.s32.totalorder %v9884_v0, 7  ;;  %vm5157_vm13 = vcmp.eq.s32.totalorder %v9884_v0, 6 }
 0x816   :  { %v5002_v8 = vpop.f32.mrf.mxu1 }
 0x817   :  { %v9847_v20 = vadd.f32 %v5002_v8, %v4954_v16  ;;  %v4970_v61 = vpop.f32.mrf.mxu0 }
 0x819   :  { %v5050_v38 = vsel %vm5034_vm0, %v9847_v20, 0.0 }
 0x81e   :  { %v5004_v13 = vpop.f32.mrf.mxu1 }
 0x81f   :  { %v9852_v11 = vadd.f32 %v5004_v13, %v4956_v50  ;;  %v5051_v13 = vadd.f32 %v5050_v38, %v5049_v24 }
 0x821   :  { %v5052_v46 = vsel %vm5034_vm0, %v9852_v11, 0.0 }
 0x822   :  { %v5053_v9 = vadd.f32 %v5052_v46, %v5051_v13 }
 0x826   :  { %v5007_v2 = vpop.f32.mrf.mxu1 }
 0x827   :  { %v9856_v8 = vadd.f32 %v5007_v2, %v4959_v34  ;;  %v4921_v2 = vpop.f32.mrf.mxu3 }
 0x828   :  { %v4922_v4 = vadd.f32 %v4921_v2, %v4873_v26 }
 0x829   :  { %v5054_v62 = vsel %vm5034_vm0, %v9856_v8, 0.0 }
 0x82a   :  { %v4971_v60 = vadd.f32 %v4970_v61, %v4922_v4 }
 0x82e   :  { %v5009_v63 = vpop.f32.mrf.mxu1 }
 0x82f   :  { %v9860_v29 = vadd.f32 %v5009_v63, %v4961_v52  ;;  %v5055_v63 = vadd.f32 %v5054_v62, %v5053_v9 }
 0x831   :  { %v5056_v17 = vsel %vm5034_vm0, %v9860_v29, 0.0 }
 0x832   :  { %v5057_v56 = vadd.f32 %v5056_v17, %v5055_v63 }
 0x836   :  { %v5012_v25 = vpop.f32.mrf.mxu1 }
 0x837   :  { %v9865_v42 = vadd.f32 %v5012_v25, %v4964_v28 }
 0x839   :  { %v5058_v48 = vsel %vm5034_vm0, %v9865_v42, 0.0 }
 0x83a   :  { %v5059_v3 = vadd.f32 %v5058_v48, %v5057_v56 }
 0x83e   :  { %v5014_v47 = vpop.f32.mrf.mxu1 }
 0x83f   :  { %v9869_v1 = vadd.f32 %v5014_v47, %v4966_v15 }
 0x841   :  { %v5060_v25 = vsel %vm5034_vm0, %v9869_v1, 0.0 }
 0x842   :  { %v5061_v21 = vadd.f32 %v5060_v25, %v5059_v3 }
 0x846   :  { %v5017_v33 = vpop.f32.mrf.mxu1 }
 0x847   :  { %v9873_v6 = vadd.f32 %v5017_v33, %v4969_v58 }
 0x849   :  { %v5062_v44 = vsel %vm5034_vm0, %v9873_v6, 0.0 }
 0x84a   :  { %v5063_v12 = vadd.f32 %v5062_v44, %v5061_v21 }
 0x84e   :  { %v5019_v23 = vpop.f32.mrf.mxu1 }
 0x84f   :  { %v9879_v36 = vadd.f32 %v5019_v23, %v4971_v60 }
 0x851   :  { %v5064_v19 = vsel %vm5034_vm0, %v9879_v36, 0.0 }
 0x852   :  { %v5065_v16 = vadd.f32 %v5064_v19, %v5063_v12 }
 0x854   :  { %v5066_v10 = vrot.slane %v5065_v16, 4 }
 0x856   :  { %v5067_v31 = vadd.f32 %v5066_v10, %v5065_v16 }
 0x858   :  { %v5068_v50 = vrot.slane %v5067_v31, 2 }
 0x85a   :  { %v5069_v18 = vadd.f32 %v5068_v50, %v5067_v31 }
 0x85c   :  { %v5070_v32 = vrot.slane %v5069_v18, 1 }
 0x85e   :  { %v5071_v22 = vadd.f32 %v5070_v32, %v5069_v18 }
 0x860   :  { %v5102_v54 = vsel %vm5101_vm1, %v5071_v22, 0.0  ;;  %v5088_v34 = vsel %vm5087_vm2, %v5071_v22, 0.0  ;;  %v5073_v40 = vsel %vm5072_vm3, %v5071_v22, 0.0  ;;  %v5144_v41 = vsel %vm5143_vm9, %v5071_v22, 0.0 }
 0x861   :  { %v5103_v27 = vsel %vm5074_vm5, %v5102_v54, 0.0  ;;  %v5089_v47 = vsel %vm5074_vm5, %v5088_v34, 0.0  ;;  %v5075_v37 = vsel %vm5074_vm5, %v5073_v40, 0.0  ;;  %v5130_v55 = vsel %vm5129_vm10, %v5071_v22, 0.0 }
 0x862   :  { %5104 = vadd.xlane.f32.xlu2 %v5103_v27  ;;  %5090 = vadd.xlane.f32.xlu0 %v5089_v47  ;;  %v5116_v49 = vsel %vm5115_vm11, %v5071_v22, 0.0  ;;  %v5145_v43 = vsel %vm5074_vm5, %v5144_v41, 0.0  ;;  %v5131_v52 = vsel %vm5074_vm5, %v5130_v55, 0.0  ;;  %v5172_v38 = vsel %vm5171_vm12, %v5071_v22, 0.0 }
 0x863   :  { %5076 = vadd.xlane.f32.xlu1 %v5075_v37  ;;  %v5117_v51 = vsel %vm5074_vm5, %v5116_v49, 0.0  ;;  %v5158_v7 = vsel %vm5157_vm13, %v5071_v22, 0.0  ;;  %v5173_v24 = vsel %vm5074_vm5, %v5172_v38, 0.0 }
 0x864   :  { %v5159_v28 = vsel %vm5074_vm5, %v5158_v7, 0.0 }
 0x86a   :  { %5146 = vadd.xlane.f32.xlu2 %v5145_v43  ;;  %5132 = vadd.xlane.f32.xlu0 %v5131_v52 }
 0x86b   :  { %5118 = vadd.xlane.f32.xlu1 %v5117_v51 }
 0x872   :  { %5174 = vadd.xlane.f32.xlu0 %v5173_v24 }
 0x873   :  { %5160 = vadd.xlane.f32.xlu1 %v5159_v28 }
 0x8d5   :  { %v5105_v35 = vpop.xlane.xlu2 %5104  ;;  %v5091_v46 = vpop.xlane.xlu0 %5090 }
 0x8d6   :  { %v5106_v13 = vrot.slane %v5105_v35, 4  ;;  %v5092_v15 = vrot.slane %v5091_v46, 4  ;;  %v5077_v26 = vpop.xlane.xlu1 %5076 }
 0x8d7   :  { %v5078_v62 = vrot.slane %v5077_v26, 4 }
 0x8d8   :  { %v5107_v2 = vadd.f32 %v5106_v13, %v5105_v35  ;;  %v5093_v9 = vadd.f32 %v5092_v15, %v5091_v46 }
 0x8d9   :  { %v5079_v33 = vadd.f32 %v5078_v62, %v5077_v26 }
 0x8da   :  { %v5108_v58 = vrot.slane %v5107_v2, 2  ;;  %v5094_v17 = vrot.slane %v5093_v9, 2 }
 0x8db   :  { %v5080_v63 = vrot.slane %v5079_v33, 2 }
 0x8dc   :  { %v5095_v4 = vadd.f32 %v5094_v17, %v5093_v9  ;;  %v5109_v48 = vadd.f32 %v5108_v58, %v5107_v2 }
 0x8dd   :  { %v5147_v61 = vpop.xlane.xlu2 %5146  ;;  %v5133_v56 = vpop.xlane.xlu0 %5132  ;;  %v5081_v25 = vadd.f32 %v5080_v63, %v5079_v33 }
 0x8de   :  { %v5148_v3 = vrot.slane %v5147_v61, 4  ;;  %v5134_v60 = vrot.slane %v5133_v56, 4  ;;  %v5119_v44 = vpop.xlane.xlu1 %5118  ;;  %v5096_v21 = vrot.slane %v5095_v4, 1  ;;  %v5110_v23 = vrot.slane %v5109_v48, 1 }
 0x8df   :  { %v5120_v12 = vrot.slane %v5119_v44, 4  ;;  %v5082_v19 = vrot.slane %v5081_v25, 1 }
 0x8e0   :  { %v5149_v16 = vadd.f32 %v5148_v3, %v5147_v61  ;;  %v5135_v10 = vadd.f32 %v5134_v60, %v5133_v56  ;;  %v5097_v31 = vadd.f32 %v5096_v21, %v5095_v4  ;;  %v5111_v32 = vadd.f32 %v5110_v23, %v5109_v48 }
 0x8e1   :  { %v5121_v50 = vadd.f32 %v5120_v12, %v5119_v44  ;;  %v5083_v18 = vadd.f32 %v5082_v19, %v5081_v25 }
 0x8e2   :  { %v5150_v22 = vrot.slane %v5149_v16, 2  ;;  %v5136_v54 = vrot.slane %v5135_v10, 2 }
 0x8e3   :  { %v5122_v34 = vrot.slane %v5121_v50, 2  ;;  %7039 = vpush %v5083_v18 }
 0x8e4   :  { %7041 = vpush %v5097_v31  ;;  %v5137_v40 = vadd.f32 %v5136_v54, %v5135_v10  ;;  %v5151_v27 = vadd.f32 %v5150_v22, %v5149_v16 }
 0x8e5   :  { %7043 = vpush %v5111_v32  ;;  %v5175_v47 = vpop.xlane.xlu0 %5174  ;;  %v5123_v37 = vadd.f32 %v5122_v34, %v5121_v50 }
 0x8e6   :  { %v5176_v41 = vrot.slane %v5175_v47, 4  ;;  %v5161_v55 = vpop.xlane.xlu1 %5160  ;;  %v5138_v49 = vrot.slane %v5137_v40, 1  ;;  %v5152_v43 = vrot.slane %v5151_v27, 1 }
 0x8e7   :  { %v5162_v52 = vrot.slane %v5161_v55, 4  ;;  %v5124_v51 = vrot.slane %v5123_v37, 1 }
 0x8e8   :  { %v5177_v38 = vadd.f32 %v5176_v41, %v5175_v47  ;;  %v5139_v7 = vadd.f32 %v5138_v49, %v5137_v40  ;;  %v5153_v35 = vadd.f32 %v5152_v43, %v5151_v27 }
 0x8e9   :  { %v5163_v24 = vadd.f32 %v5162_v52, %v5161_v55  ;;  %v5125_v28 = vadd.f32 %v5124_v51, %v5123_v37 }
 0x8ea   :  { %v5178_v46 = vrot.slane %v5177_v38, 2 }
 0x8eb   :  { %v5164_v13 = vrot.slane %v5163_v24, 2  ;;  %7045 = vpush %v5125_v28 }
 0x8ec   :  { %7047 = vpush %v5139_v7  ;;  %v5179_v15 = vadd.f32 %v5178_v46, %v5177_v38 }
 0x8ed   :  { %7049 = vpush %v5153_v35  ;;  %v5165_v26 = vadd.f32 %v5164_v13, %v5163_v24 }
 0x8ee   :  { %v5180_v62 = vrot.slane %v5179_v15, 1 }
 0x8ef   :  { %v5166_v2 = vrot.slane %v5165_v26, 1 }
 0x8f0   :  { %v5181_v9 = vadd.f32 %v5180_v62, %v5179_v15 }
 0x8f1   :  { %v5167_v33 = vadd.f32 %v5166_v2, %v5165_v26 }
 0x8f3   :  { %7051 = vpush %v5167_v33 }
 0x8f4   :  { %7053 = vpush %v5181_v9 }
 0x914   :  { %s7040_s4 = spop %7039 }
 0x915   :  { %v5085_v58 = vstv %s7040_s4  ;;  %s7042_s15 = spop %7041 }
 0x916   :  { %v5086_v17 = vsel %vm5072_vm3, %v5085_v58, 0.0  ;;  %v5099_v63 = vstv %s7042_s15  ;;  %s7044_s1 = spop %7043 }
 0x917   :  { %v5100_v4 = vsel %vm5087_vm2, %v5099_v63, %v5086_v17  ;;  %v5113_v48 = vstv %s7044_s1 }
 0x918   :  { %v5114_v56 = vsel %vm5101_vm1, %v5113_v48, %v5100_v4 }
 0x91c   :  { %s7046_s16 = spop %7045 }
 0x91d   :  { %v5127_v61 = vstv %s7046_s16  ;;  %s7048_s17 = spop %7047 }
 0x91e   :  { %v5128_v25 = vsel %vm5115_vm11, %v5127_v61, %v5114_v56  ;;  %v5141_v3 = vstv %s7048_s17  ;;  %s7050_s18 = spop %7049 }
 0x91f   :  { %v5142_v60 = vsel %vm5129_vm10, %v5141_v3, %v5128_v25  ;;  %v5155_v44 = vstv %s7050_s18 }
 0x920   :  { %v5156_v21 = vsel %vm5143_vm9, %v5155_v44, %v5142_v60 }
 0x924   :  { %s7052_s19 = spop %7051 }
 0x925   :  { %v5169_v23 = vstv %s7052_s19  ;;  %s7054_s20 = spop %7053 }
 0x926   :  { %v5170_v12 = vsel %vm5157_vm13, %v5169_v23, %v5156_v21  ;;  %v5183_v19 = vstv %s7054_s20 }
 0x927   :  { %v5184_v16 = vsel %vm5171_vm12, %v5183_v19, %v5170_v12 }
 0x928   :  { %v5185_v10 = vmul.f32 0.0009765625, %v5184_v16 }
 0x92a   :  { %v9935_v31 = vsub.f32 %v9807_v14, %v5185_v10  ;;  %v9938_v50 = vsub.f32 %v9810_v53, %v5185_v10  ;;  %v9941_v18 = vsub.f32 %v9812_v59, %v5185_v10  ;;  %v9944_v32 = vsub.f32 %v9814_v45, %v5185_v10 }
 0x92b   :  { %v9951_v34 = vsub.f32 %v9816_v30, %v5185_v10  ;;  %v9956_v53 = vsub.f32 %v9832_v5, %v5185_v10  ;;  %v9963_v47 = vsub.f32 %v9837_v39, %v5185_v10  ;;  %v9969_v5 = vsub.f32 %v9842_v57, %v5185_v10 }
 0x92c   :  { %v5202_v22 = vmul.f32 %v9935_v31, %v9935_v31  ;;  %v5203_v54 = vmul.f32 %v9938_v50, %v9938_v50  ;;  %v5204_v14 = vmul.f32 %v9941_v18, %v9941_v18  ;;  %v5205_v59 = vmul.f32 %v9944_v32, %v9944_v32 }
 0x92d   :  { %v5206_v30 = vmul.f32 %v9951_v34, %v9951_v34  ;;  %v5207_v55 = vmul.f32 %v9956_v53, %v9956_v53  ;;  %v9975_v52 = vsub.f32 %v9847_v20, %v5185_v10  ;;  %v5208_v39 = vmul.f32 %v9963_v47, %v9963_v47 }
 0x92e   :  { %v5218_v45 = vsel %vm5034_vm0, %v5202_v22, 0.0  ;;  %v5219_v40 = vsel %vm5034_vm0, %v5203_v54, 0.0  ;;  %v5221_v37 = vsel %vm5034_vm0, %v5204_v14, 0.0  ;;  %v5223_v49 = vsel %vm5034_vm0, %v5205_v59, 0.0 }
 0x92f   :  { %v5220_v27 = vadd.f32 %v5219_v40, %v5218_v45  ;;  %v5225_v51 = vsel %vm5034_vm0, %v5206_v30, 0.0  ;;  %v9981_v7 = vsub.f32 %v9852_v11, %v5185_v10  ;;  %v5209_v57 = vmul.f32 %v9969_v5, %v9969_v5 }
 0x930   :  { %v5227_v24 = vsel %vm5034_vm0, %v5207_v55, 0.0  ;;  %v9987_v35 = vsub.f32 %v9856_v8, %v5185_v10  ;;  %v5210_v20 = vmul.f32 %v9975_v52, %v9975_v52  ;;  %v5229_v46 = vsel %vm5034_vm0, %v5208_v39, 0.0 }
 0x931   :  { %v5222_v41 = vadd.f32 %v5221_v37, %v5220_v27  ;;  %v9993_v15 = vsub.f32 %v9860_v29, %v5185_v10  ;;  %v5211_v11 = vmul.f32 %v9981_v7, %v9981_v7  ;;  %v5231_v26 = vsel %vm5034_vm0, %v5209_v57, 0.0 }
 0x932   :  { %v9999_v2 = vsub.f32 %v9865_v42, %v5185_v10  ;;  %v5212_v8 = vmul.f32 %v9987_v35, %v9987_v35  ;;  %v5233_v9 = vsel %vm5034_vm0, %v5210_v20, 0.0  ;;  %v10005_v58 = vsub.f32 %v9869_v1, %v5185_v10 }
 0x933   :  { %v5224_v43 = vadd.f32 %v5223_v49, %v5222_v41  ;;  %v5213_v29 = vmul.f32 %v9993_v15, %v9993_v15  ;;  %v5235_v17 = vsel %vm5034_vm0, %v5211_v11, 0.0  ;;  %v10011_v4 = vsub.f32 %v9873_v6, %v5185_v10 }
 0x934   :  { %v5214_v42 = vmul.f32 %v9999_v2, %v9999_v2  ;;  %v5237_v48 = vsel %vm5034_vm0, %v5212_v8, 0.0  ;;  %v10017_v56 = vsub.f32 %v9879_v36, %v5185_v10  ;;  %v5215_v1 = vmul.f32 %v10005_v58, %v10005_v58 }
 0x935   :  { %v5226_v38 = vadd.f32 %v5225_v51, %v5224_v43  ;;  %v5239_v25 = vsel %vm5034_vm0, %v5213_v29, 0.0  ;;  %v5216_v60 = vmul.f32 %v10011_v4, %v10011_v4 }
 0x936   :  { %v5241_v6 = vsel %vm5034_vm0, %v5214_v42, 0.0  ;;  %v5217_v21 = vmul.f32 %v10017_v56, %v10017_v56  ;;  %v5243_v23 = vsel %vm5034_vm0, %v5215_v1, 0.0 }
 0x937   :  { %v5228_v28 = vadd.f32 %v5227_v24, %v5226_v38  ;;  %v5245_v36 = vsel %vm5034_vm0, %v5216_v60, 0.0 }
 0x938   :  { %v5247_v16 = vsel %vm5034_vm0, %v5217_v21, 0.0 }
 0x939   :  { %v5230_v13 = vadd.f32 %v5229_v46, %v5228_v28 }
 0x93b   :  { %v5232_v62 = vadd.f32 %v5231_v26, %v5230_v13 }
 0x93d   :  { %v5234_v33 = vadd.f32 %v5233_v9, %v5232_v62 }
 0x93f   :  { %v5236_v63 = vadd.f32 %v5235_v17, %v5234_v33 }
 0x941   :  { %v5238_v61 = vadd.f32 %v5237_v48, %v5236_v63 }
 0x943   :  { %v5240_v3 = vadd.f32 %v5239_v25, %v5238_v61 }
 0x945   :  { %v5242_v44 = vadd.f32 %v5241_v6, %v5240_v3 }
 0x947   :  { %v5244_v12 = vadd.f32 %v5243_v23, %v5242_v44 }
 0x949   :  { %v5246_v19 = vadd.f32 %v5245_v36, %v5244_v12 }
 0x94b   :  { %v5248_v10 = vadd.f32 %v5247_v16, %v5246_v19 }
 0x94d   :  { %v5249_v22 = vrot.slane %v5248_v10, 4 }
 0x94f   :  { %v5250_v54 = vadd.f32 %v5249_v22, %v5248_v10 }
 0x951   :  { %v5251_v14 = vrot.slane %v5250_v54, 2 }
 0x953   :  { %v5252_v59 = vadd.f32 %v5251_v14, %v5250_v54 }
 0x955   :  { %v5253_v45 = vrot.slane %v5252_v59, 1 }
 0x957   :  { %v5254_v40 = vadd.f32 %v5253_v45, %v5252_v59 }
 0x959   :  { %v5281_v27 = vsel %vm5101_vm1, %v5254_v40, 0.0  ;;  %v5268_v30 = vsel %vm5087_vm2, %v5254_v40, 0.0  ;;  %v5255_v37 = vsel %vm5072_vm3, %v5254_v40, 0.0  ;;  %v5320_v43 = vsel %vm5143_vm9, %v5254_v40, 0.0 }
 0x95a   :  { %v5282_v41 = vsel %vm5074_vm5, %v5281_v27, 0.0  ;;  %v5269_v55 = vsel %vm5074_vm5, %v5268_v30, 0.0  ;;  %v5256_v49 = vsel %vm5074_vm5, %v5255_v37, 0.0  ;;  %v5307_v39 = vsel %vm5129_vm10, %v5254_v40, 0.0 }
 0x95b   :  { %5283 = vadd.xlane.f32.xlu0 %v5282_v41  ;;  %5270 = vadd.xlane.f32.xlu1 %v5269_v55  ;;  %v5294_v51 = vsel %vm5115_vm11, %v5254_v40, 0.0  ;;  %v5321_v38 = vsel %vm5074_vm5, %v5320_v43, 0.0  ;;  %v5308_v57 = vsel %vm5074_vm5, %v5307_v39, 0.0  ;;  %v5346_v28 = vsel %vm5171_vm12, %v5254_v40, 0.0 }
 0x95c   :  { %5257 = vadd.xlane.f32.xlu2 %v5256_v49  ;;  %v5295_v24 = vsel %vm5074_vm5, %v5294_v51, 0.0  ;;  %v5333_v20 = vsel %vm5157_vm13, %v5254_v40, 0.0  ;;  %v5347_v46 = vsel %vm5074_vm5, %v5346_v28, 0.0 }
 0x95d   :  { %v5334_v13 = vsel %vm5074_vm5, %v5333_v20, 0.0 }
 0x963   :  { %5322 = vadd.xlane.f32.xlu0 %v5321_v38  ;;  %5309 = vadd.xlane.f32.xlu1 %v5308_v57 }
 0x964   :  { %5296 = vadd.xlane.f32.xlu2 %v5295_v24 }
 0x96b   :  { %5348 = vadd.xlane.f32.xlu1 %v5347_v46 }
 0x96c   :  { %5335 = vadd.xlane.f32.xlu2 %v5334_v13 }
 0x9ce   :  { %v5284_v11 = vpop.xlane.xlu0 %5283  ;;  %v5271_v26 = vpop.xlane.xlu1 %5270 }
 0x9cf   :  { %v5285_v62 = vrot.slane %v5284_v11, 4  ;;  %v5272_v8 = vrot.slane %v5271_v26, 4  ;;  %v5258_v9 = vpop.xlane.xlu2 %5257 }
 0x9d0   :  { %v5259_v33 = vrot.slane %v5258_v9, 4 }
 0x9d1   :  { %v5286_v29 = vadd.f32 %v5285_v62, %v5284_v11  ;;  %v5273_v17 = vadd.f32 %v5272_v8, %v5271_v26 }
 0x9d2   :  { %v5260_v63 = vadd.f32 %v5259_v33, %v5258_v9 }
 0x9d3   :  { %v5287_v42 = vrot.slane %v5286_v29, 2  ;;  %v5274_v48 = vrot.slane %v5273_v17, 2 }
 0x9d4   :  { %v5261_v61 = vrot.slane %v5260_v63, 2 }
 0x9d5   :  { %v5275_v1 = vadd.f32 %v5274_v48, %v5273_v17  ;;  %v5288_v25 = vadd.f32 %v5287_v42, %v5286_v29 }
 0x9d6   :  { %v5323_v3 = vpop.xlane.xlu0 %5322  ;;  %v5310_v60 = vpop.xlane.xlu1 %5309  ;;  %v5262_v6 = vadd.f32 %v5261_v61, %v5260_v63 }
 0x9d7   :  { %v5324_v44 = vrot.slane %v5323_v3, 4  ;;  %v5311_v21 = vrot.slane %v5310_v60, 4  ;;  %v5297_v23 = vpop.xlane.xlu2 %5296  ;;  %v5276_v12 = vrot.slane %v5275_v1, 1  ;;  %v5289_v36 = vrot.slane %v5288_v25, 1 }
 0x9d8   :  { %v5298_v19 = vrot.slane %v5297_v23, 4  ;;  %v5263_v16 = vrot.slane %v5262_v6, 1 }
 0x9d9   :  { %v5325_v10 = vadd.f32 %v5324_v44, %v5323_v3  ;;  %v5312_v22 = vadd.f32 %v5311_v21, %v5310_v60  ;;  %v5277_v54 = vadd.f32 %v5276_v12, %v5275_v1  ;;  %v5290_v45 = vadd.f32 %v5289_v36, %v5288_v25 }
 0x9da   :  { %v5299_v14 = vadd.f32 %v5298_v19, %v5297_v23  ;;  %v5264_v59 = vadd.f32 %v5263_v16, %v5262_v6 }
 0x9db   :  { %v5326_v40 = vrot.slane %v5325_v10, 2  ;;  %v5313_v27 = vrot.slane %v5312_v22, 2 }
 0x9dc   :  { %v5300_v30 = vrot.slane %v5299_v14, 2  ;;  %7055 = vpush %v5264_v59 }
 0x9dd   :  { %v5327_v37 = vadd.f32 %v5326_v40, %v5325_v10  ;;  %7057 = vpush %v5277_v54  ;;  %v5314_v41 = vadd.f32 %v5313_v27, %v5312_v22 }
 0x9de   :  { %7059 = vpush %v5290_v45  ;;  %v5349_v55 = vpop.xlane.xlu1 %5348  ;;  %v5301_v49 = vadd.f32 %v5300_v30, %v5299_v14 }
 0x9df   :  { %v5350_v43 = vrot.slane %v5349_v55, 4  ;;  %v5336_v39 = vpop.xlane.xlu2 %5335  ;;  %v5315_v51 = vrot.slane %v5314_v41, 1  ;;  %v5328_v38 = vrot.slane %v5327_v37, 1 }
 0x9e0   :  { %v5337_v57 = vrot.slane %v5336_v39, 4  ;;  %v5302_v24 = vrot.slane %v5301_v49, 1 }
 0x9e1   :  { %v5351_v28 = vadd.f32 %v5350_v43, %v5349_v55  ;;  %v5316_v20 = vadd.f32 %v5315_v51, %v5314_v41  ;;  %v5329_v11 = vadd.f32 %v5328_v38, %v5327_v37 }
 0x9e2   :  { %v5338_v46 = vadd.f32 %v5337_v57, %v5336_v39  ;;  %v5303_v13 = vadd.f32 %v5302_v24, %v5301_v49  ;;  %v7077_v49 = vld [vmem:[%s10249_s5] ss:$0 sm:$0xff] }
 0x9e3   :  { %v5352_v26 = vrot.slane %v5351_v28, 2 }
 0x9e4   :  { %v5339_v62 = vrot.slane %v5338_v46, 2  ;;  %7061 = vpush %v5303_v13 }
 0x9e5   :  { %v5353_v8 = vadd.f32 %v5352_v26, %v5351_v28  ;;  %7063 = vpush %v5316_v20 }
 0x9e6   :  { %v5340_v9 = vadd.f32 %v5339_v62, %v5338_v46  ;;  %7065 = vpush %v5329_v11 }
 0x9e7   :  { %v5354_v33 = vrot.slane %v5353_v8, 1 }
 0x9e8   :  { %v5341_v29 = vrot.slane %v5340_v9, 1 }
 0x9e9   :  { %v5355_v17 = vadd.f32 %v5354_v33, %v5353_v8 }
 0x9ea   :  { %v5342_v63 = vadd.f32 %v5341_v29, %v5340_v9 }
 0x9ec   :  { %7067 = vpush %v5342_v63 }
 0x9ed   :  { %7069 = vpush %v5355_v17 }
 0xa0d   :  { %s7056_s21 = spop %7055 }
 0xa0e   :  { %v5266_v42 = vstv %s7056_s21  ;;  %s7058_s22 = spop %7057 }
 0xa0f   :  { %v5267_v48 = vsel %vm5072_vm3, %v5266_v42, 0.0  ;;  %v5279_v61 = vstv %s7058_s22  ;;  %s7060_s23 = spop %7059 }
 0xa10   :  { %v5280_v1 = vsel %vm5087_vm2, %v5279_v61, %v5267_v48  ;;  %v5292_v25 = vstv %s7060_s23 }
 0xa11   :  { %v5293_v60 = vsel %vm5101_vm1, %v5292_v25, %v5280_v1 }
 0xa15   :  { %s7062_s24 = spop %7061 }
 0xa16   :  { %v5305_v3 = vstv %s7062_s24  ;;  %s7064_s25 = spop %7063 }
 0xa17   :  { %v5306_v6 = vsel %vm5115_vm11, %v5305_v3, %v5293_v60  ;;  %v5318_v44 = vstv %s7064_s25  ;;  %s7066_s26 = spop %7065 }
 0xa18   :  { %v5319_v21 = vsel %vm5129_vm10, %v5318_v44, %v5306_v6  ;;  %v5331_v23 = vstv %s7066_s26 }
 0xa19   :  { %v5332_v12 = vsel %vm5143_vm9, %v5331_v23, %v5319_v21 }
 0xa1d   :  { %s7068_s27 = spop %7067 }
 0xa1e   :  { %v5344_v36 = vstv %s7068_s27  ;;  %s7070_s0 = spop %7069 }
 0xa1f   :  { %v5345_v19 = vsel %vm5157_vm13, %v5344_v36, %v5332_v12  ;;  %v5357_v16 = vstv %s7070_s0 }
 0xa20   :  { %v5358_v10 = vsel %vm5171_vm12, %v5357_v16, %v5345_v19 }
 0xa21   :  { %v5359_v22 = vmul.f32 0.0009765625, %v5358_v10 }
 0xa23   :  { %v5360_v54 = vadd.f32 1e-05, %v5359_v22 }
 0xa25   :  { %7113 = vrsqrt.f32 %v5360_v54  ;;  %vm5367_vm15 = vweird.f32 %v5360_v54 }
 0xa2b   :  { %v7114_v14 = vpop.eup %7113 }
 0xa2c   :  { %v5362_v59 = vmul.f32 %v7114_v14, %v5360_v54  ;;  %vm5368_vm14 = vweird.f32 %v7114_v14 }
 0xa2d   :  { %vm5369_vm4 = vmor %vm5367_vm15, %vm5368_vm14 }
 0xa2e   :  { %v5363_v45 = vmul.f32 %v7114_v14, %v5362_v59 }
 0xa30   :  { %v5364_v40 = vmul.f32 0.5, %v5363_v45 }
 0xa32   :  { %v5365_v27 = vsub.f32 1.5, %v5364_v40 }
 0xa34   :  { %v5366_v30 = vmul.f32 %v7114_v14, %v5365_v27 }
 0xa36   :  { %v5370_v37 = vsel %vm5369_vm4, %v7114_v14, %v5366_v30 }
 0xa37   :  { %v5371_v41 = vmul.f32 %v5370_v37, %v9935_v31  ;;  %v5372_v55 = vmul.f32 %v5370_v37, %v9938_v50  ;;  %v5373_v0 = vmul.f32 %v5370_v37, %v9941_v18  ;;  %v5374_v43 = vmul.f32 %v5370_v37, %v9944_v32  ;;  %v7078_v31 = vld [vmem:[%s10250_s6] ss:$0 sm:$0xff] }
 0xa38   :  { %v5375_v39 = vmul.f32 %v5370_v37, %v9951_v34  ;;  %v5376_v51 = vmul.f32 %v5370_v37, %v9956_v53  ;;  %v5377_v38 = vmul.f32 %v5370_v37, %v9963_v47  ;;  %v5378_v50 = vmul.f32 %v5370_v37, %v9969_v5 }
 0xa39   :  { %v5391_v57 = vmul.f32 %v7077_v49, %v5371_v41  ;;  %v5392_v24 = vmul.f32 %v7077_v49, %v5372_v55  ;;  %v5393_v28 = vmul.f32 %v7077_v49, %v5373_v0  ;;  %v5394_v18 = vmul.f32 %v7077_v49, %v5374_v43 }
 0xa3a   :  { %v5379_v20 = vmul.f32 %v5370_v37, %v9975_v52  ;;  %v5395_v46 = vmul.f32 %v7077_v49, %v5375_v39  ;;  %v5380_v32 = vmul.f32 %v5370_v37, %v9981_v7  ;;  %v5381_v34 = vmul.f32 %v5370_v37, %v9987_v35 }
 0xa3b   :  { %v5382_v53 = vmul.f32 %v5370_v37, %v9993_v15  ;;  %v5396_v47 = vmul.f32 %v7077_v49, %v5376_v51  ;;  %v5397_v13 = vmul.f32 %v7077_v49, %v5377_v38  ;;  %v10088_v11 = vadd.f32 %v7078_v31, %v5391_v57 }
 0xa3c   :  { %v10090_v26 = vadd.f32 %v7078_v31, %v5392_v24  ;;  %v10092_v62 = vadd.f32 %v7078_v31, %v5393_v28  ;;  %v5383_v5 = vmul.f32 %v5370_v37, %v9999_v2  ;;  %v5384_v8 = vmul.f32 %v5370_v37, %v10005_v58 }
 0xa3d   :  { %v5398_v52 = vmul.f32 %v7077_v49, %v5378_v50  ;;  %v10096_v9 = vadd.f32 %v7078_v31, %v5394_v18  ;;  %v5385_v7 = vmul.f32 %v5370_v37, %v10011_v4  ;;  %v5386_v35 = vmul.f32 %v5370_v37, %v10017_v56 }
 0xa3e   :  { %v5399_v15 = vmul.f32 %v7077_v49, %v5379_v20  ;;  %v10100_v33 = vadd.f32 %v7078_v31, %v5395_v46  ;;  %v5400_v29 = vmul.f32 %v7077_v49, %v5380_v32  ;;  %v5401_v17 = vmul.f32 %v7077_v49, %v5381_v34 }
 0xa3f   :  { %v5402_v63 = vmul.f32 %v7077_v49, %v5382_v53  ;;  %v10102_v42 = vadd.f32 %v7078_v31, %v5396_v47  ;;  %v10104_v48 = vadd.f32 %v7078_v31, %v5397_v13  ;;  %v5443_v2 = vmul.f32 1.442695, %v10088_v11 }
 0xa40   :  { %v5445_v58 = vmul.f32 1.442695, %v10090_v26  ;;  %v5447_v61 = vmul.f32 1.442695, %v10092_v62  ;;  %v5403_v1 = vmul.f32 %v7077_v49, %v5383_v5  ;;  %v5404_v4 = vmul.f32 %v7077_v49, %v5384_v8 }
 0xa41   :  { %v10109_v25 = vadd.f32 %v7078_v31, %v5398_v52  ;;  %v5449_v56 = vmul.f32 1.442695, %v10096_v9  ;;  %v5405_v3 = vmul.f32 %v7077_v49, %v5385_v7  ;;  %v10112_v60 = vadd.f32 %v7078_v31, %v5399_v15 }
 0xa42   :  { %7115 = vpow2.f32 %v5443_v2  ;;  %v5451_v6 = vmul.f32 1.442695, %v10100_v33  ;;  %v5406_v44 = vmul.f32 %v7077_v49, %v5386_v35  ;;  %v10115_v21 = vadd.f32 %v7078_v31, %v5400_v29 }
 0xa43   :  { %7117 = vpow2.f32 %v5445_v58  ;;  %v5453_v23 = vmul.f32 1.442695, %v10102_v42  ;;  %v10118_v12 = vadd.f32 %v7078_v31, %v5401_v17  ;;  %v5455_v36 = vmul.f32 1.442695, %v10104_v48 }
 0xa44   :  { %7119 = vpow2.f32 %v5447_v61  ;;  %v10121_v19 = vadd.f32 %v7078_v31, %v5402_v63  ;;  %v5457_v16 = vmul.f32 1.442695, %v10109_v25  ;;  %v10124_v10 = vadd.f32 %v7078_v31, %v5403_v1 }
 0xa45   :  { %7121 = vpow2.f32 %v5449_v56  ;;  %v10126_v22 = vadd.f32 %v7078_v31, %v5404_v4  ;;  %v5459_v54 = vmul.f32 1.442695, %v10112_v60  ;;  %v10129_v14 = vadd.f32 %v7078_v31, %v5405_v3 }
 0xa46   :  { %7123 = vpow2.f32 %v5451_v6  ;;  %v10131_v59 = vadd.f32 %v7078_v31, %v5406_v44  ;;  %v5461_v45 = vmul.f32 1.442695, %v10115_v21  ;;  %vm5427_vm6 = vcmp.gt.f32.partialorder %v10088_v11, 0.0 }
 0xa47   :  { %7125 = vpow2.f32 %v5453_v23  ;;  %vm5428_vm7 = vcmp.gt.f32.partialorder %v10090_v26, 0.0  ;;  %v5463_v27 = vmul.f32 1.442695, %v10118_v12  ;;  %vm5429_vm8 = vcmp.gt.f32.partialorder %v10092_v62, 0.0 }
 0xa48   :  { %v7116_v40 = vpop.eup %7115  ;;  %7127 = vpow2.f32 %v5455_v36  ;;  %v5465_v37 = vmul.f32 1.442695, %v10121_v19  ;;  %vm5430_vm1 = vcmp.gt.f32.partialorder %v10096_v9, 0.0  ;;  %v5467_v0 = vmul.f32 1.442695, %v10124_v10 }
 0xa49   :  { %v7118_v30 = vpop.eup %7117  ;;  %7129 = vpow2.f32 %v5457_v16  ;;  %v6695_v41 = vadd.f32 -1.0, %v7116_v40  ;;  %v5469_v39 = vmul.f32 1.442695, %v10126_v22  ;;  %v5471_v24 = vmul.f32 1.442695, %v10129_v14 }
 0xa4a   :  { %v7120_v55 = vpop.eup %7119  ;;  %7131 = vpow2.f32 %v5459_v54  ;;  %v6696_v49 = vadd.f32 -1.0, %v7118_v30  ;;  %v5473_v18 = vmul.f32 1.442695, %v10131_v59  ;;  %vm5431_vm2 = vcmp.gt.f32.partialorder %v10100_v33, 0.0 }
 0xa4b   :  { %v7122_v43 = vpop.eup %7121  ;;  %7133 = vpow2.f32 %v5461_v45  ;;  %v6697_v51 = vadd.f32 -1.0, %v7120_v55  ;;  %v5491_v38 = vsel %vm5427_vm6, %v10088_v11, %v6695_v41  ;;  %vm5432_vm3 = vcmp.gt.f32.partialorder %v10102_v42, 0.0 }
 0xa4c   :  { %v7124_v57 = vpop.eup %7123  ;;  %7135 = vpow2.f32 %v5463_v27  ;;  %v6698_v28 = vadd.f32 -1.0, %v7122_v43  ;;  %v5492_v31 = vsel %vm5428_vm7, %v10090_v26, %v6696_v49  ;;  %5507 = vst.msk [vmem:[%s10251_s7] sm:$0xff] %vm5034_vm0, %v5491_v38  ;;  %vm5433_vm5 = vcmp.gt.f32.partialorder %v10104_v48, 0.0 }
 0xa4d   :  { %v7126_v50 = vpop.eup %7125  ;;  %7137 = vpow2.f32 %v5465_v37  ;;  %v6699_v20 = vadd.f32 -1.0, %v7124_v57  ;;  %v5493_v46 = vsel %vm5429_vm8, %v10092_v62, %v6697_v51  ;;  %5508 = vst.msk [vmem:[%s10251_s7 + $0x8] sm:$0xff] %vm5034_vm0, %v5492_v31  ;;  %vm5434_vm9 = vcmp.gt.f32.partialorder %v10109_v25, 0.0 }
 0xa4e   :  { %v7128_v32 = vpop.eup %7127  ;;  %7139 = vpow2.f32 %v5467_v0  ;;  %v6700_v34 = vadd.f32 -1.0, %v7126_v50  ;;  %v5494_v53 = vsel %vm5430_vm1, %v10096_v9, %v6698_v28  ;;  %5509 = vst.msk [vmem:[%s10251_s7 + $0x10] sm:$0xff] %vm5034_vm0, %v5493_v46  ;;  %vm5435_vm10 = vcmp.gt.f32.partialorder %v10112_v60, 0.0 }
 0xa4f   :  { %v7130_v47 = vpop.eup %7129  ;;  %7141 = vpow2.f32 %v5469_v39  ;;  %v6701_v13 = vadd.f32 -1.0, %v7128_v32  ;;  %v5495_v11 = vsel %vm5431_vm2, %v10100_v33, %v6699_v20  ;;  %5510 = vst.msk [vmem:[%s10251_s7 + $0x18] sm:$0xff] %vm5034_vm0, %v5494_v53  ;;  %vm5436_vm11 = vcmp.gt.f32.partialorder %v10115_v21, 0.0 }
 0xa50   :  { %v7132_v26 = vpop.eup %7131  ;;  %7143 = vpow2.f32 %v5471_v24  ;;  %v6702_v62 = vadd.f32 -1.0, %v7130_v47  ;;  %v5496_v5 = vsel %vm5432_vm3, %v10102_v42, %v6700_v34  ;;  %5511 = vst.msk [vmem:[%s10251_s7 + $0x20] sm:$0xff] %vm5034_vm0, %v5495_v11  ;;  %vm5437_vm12 = vcmp.gt.f32.partialorder %v10118_v12, 0.0 }
 0xa51   :  { %v7134_v8 = vpop.eup %7133  ;;  %7145 = vpow2.f32 %v5473_v18  ;;  %v6703_v52 = vadd.f32 -1.0, %v7132_v26  ;;  %v5497_v9 = vsel %vm5433_vm5, %v10104_v48, %v6701_v13  ;;  %5512 = vst.msk [vmem:[%s10251_s7 + $0x28] sm:$0xff] %vm5034_vm0, %v5496_v5  ;;  %vm5438_vm13 = vcmp.gt.f32.partialorder %v10121_v19, 0.0 }
 0xa52   :  { %v7136_v7 = vpop.eup %7135  ;;  %v6704_v35 = vadd.f32 -1.0, %v7134_v8  ;;  %v5498_v15 = vsel %vm5434_vm9, %v10109_v25, %v6702_v62  ;;  %5513 = vst.msk [vmem:[%s10251_s7 + $0x30] sm:$0xff] %vm5034_vm0, %v5497_v9  ;;  %vm5439_vm14 = vcmp.gt.f32.partialorder %v10124_v10, 0.0  ;;  %vm5440_vm15 = vcmp.gt.f32.partialorder %v10126_v22, 0.0 }
 0xa53   :  { %v7138_v33 = vpop.eup %7137  ;;  %v6705_v29 = vadd.f32 -1.0, %v7136_v7  ;;  %v5499_v17 = vsel %vm5435_vm10, %v10112_v60, %v6703_v52  ;;  %5514 = vst.msk [vmem:[%s10251_s7 + $0x38] sm:$0xff] %vm5034_vm0, %v5498_v15  ;;  %vm5441_vm4 = vcmp.gt.f32.partialorder %v10129_v14, 0.0  ;;  %vm5442_vm6 = vcmp.gt.f32.partialorder %v10131_v59, 0.0 }
 0xa54   :  { %v7140_v63 = vpop.eup %7139  ;;  %v6706_v42 = vadd.f32 -1.0, %v7138_v33  ;;  %v5500_v48 = vsel %vm5436_vm11, %v10115_v21, %v6704_v35  ;;  %5515 = vst.msk [vmem:[%s10251_s7 + $0x40] sm:$0xff] %vm5034_vm0, %v5499_v17 }
 0xa55   :  { %v7142_v2 = vpop.eup %7141  ;;  %v6707_v58 = vadd.f32 -1.0, %v7140_v63  ;;  %v5501_v61 = vsel %vm5437_vm12, %v10118_v12, %v6705_v29  ;;  %5516 = vst.msk [vmem:[%s10251_s7 + $0x48] sm:$0xff] %vm5034_vm0, %v5500_v48 }
 0xa56   :  { %v7144_v1 = vpop.eup %7143  ;;  %v6708_v4 = vadd.f32 -1.0, %v7142_v2  ;;  %v5502_v25 = vsel %vm5438_vm13, %v10121_v19, %v6706_v42  ;;  %5517 = vst.msk [vmem:[%s10251_s7 + $0x50] sm:$0xff] %vm5034_vm0, %v5501_v61 }
 0xa57   :  { %v7146_v56 = vpop.eup %7145  ;;  %v6709_v3 = vadd.f32 -1.0, %v7144_v1  ;;  %v5503_v60 = vsel %vm5439_vm14, %v10124_v10, %v6707_v58  ;;  %5518 = vst.msk [vmem:[%s10251_s7 + $0x58] sm:$0xff] %vm5034_vm0, %v5502_v25 }
 0xa58   :  { %v6710_v6 = vadd.f32 -1.0, %v7146_v56  ;;  %v5504_v44 = vsel %vm5440_vm15, %v10126_v22, %v6708_v4  ;;  %5519 = vst.msk [vmem:[%s10251_s7 + $0x60] sm:$0xff] %vm5034_vm0, %v5503_v60 }
 0xa59   :  { %v5505_v21 = vsel %vm5441_vm4, %v10129_v14, %v6709_v3  ;;  %5520 = vst.msk [vmem:[%s10251_s7 + $0x68] sm:$0xff] %vm5034_vm0, %v5504_v44 }
 0xa5a   :  { %v5506_v23 = vsel %vm5442_vm6, %v10131_v59, %v6710_v6  ;;  %5521 = vst.msk [vmem:[%s10251_s7 + $0x70] sm:$0xff] %vm5034_vm0, %v5505_v21 }
 0xa5b   :  { %5522 = vst.msk [vmem:[%s10251_s7 + $0x78] sm:$0xff] %vm5034_vm0, %v5506_v23 }

</bundles_post_ra>
